<compile_context>
chip_gen: v7x
topology: tpu7x:2x2x1
jax: 0.10.0
libtpu: 0.0.40
codegen_flags: <defaults>
</compile_context>

<pallas_src>
import functools
import math

import jax
import jax.numpy as jnp
from jax import lax
from jax.experimental import pallas as pl
from jax.experimental.pallas import tpu as pltpu


POS_PAD = 8                       # pos-like streams (3 coords) are lane-padded to 8
VMEM_LIMIT = 48 * 1024 * 1024     # explicit scoped-VMEM budget (fits v5e/v6e/v7x)
CONV_ACT_BUDGET = 6 * 1024 * 1024 # cap on the live (tg*K, cout) f32 intermediate


# ----------------------------------------------------------------------------- utils
def _round_up(x, m):
    return -(-x // m) * m


def _pad_to(a, shape):
    pads = [(0, s - d) for d, s in zip(a.shape, shape)]
    return jnp.pad(a, pads)


def _choose_tile(n, cap, unit=8, min_steps=1):
    """Tile size: multiple of `unit`, ~<= cap, derived from the step count so the
    tail tile is not mostly padding.  min_steps=2 keeps >=2 grid steps when the
    problem allows it (v7x: both TensorCores get work)."""
    n_units = max(1, -(-n // unit))
    steps = max(min_steps, -(-n // max(cap, unit)))
    steps = min(steps, n_units)            # never create empty steps
    return -(-n_units // steps) * unit


# ----------------------------------------------------------------------------- fused Pallas kernel
def _fused_mlp_kernel(*refs, n_streams, relu_flags, reduce_k, logsoftmax, n_valid):
    """Fused multi-layer MLP over one row tile.

    refs = [x_stream_0..x_stream_{S-1},                 (rows, C_s) bf16
            W0_stream_0..W0_stream_{S-1}, b0,           layer 0 (split/merged contraction)
            W_1, b_1, ..., W_{L-1}, b_{L-1},            remaining layers
            o_ref]
    Optionally max-reduces groups of `reduce_k` consecutive rows and/or applies a
    column-masked log_softmax at the end.
    """
    n_layers = len(relu_flags)
    xs = refs[:n_streams]
    o_ref = refs[-1]
    p = n_streams

    # layer 0: split contraction over the input streams (avoids concat padding)
    acc = None
    for s in range(n_streams):
        part = jnp.dot(xs[s][...], refs[p][...], preferred_element_type=jnp.float32)
        acc = part if acc is None else acc + part
        p += 1
    acc = acc + refs[p][...]
    p += 1
    if relu_flags[0]:
        acc = jnp.maximum(acc, 0.0)

    # remaining layers, weights VMEM-resident, activations never leave the kernel
    for li in range(1, n_layers):
        w_ref = refs[p]
        b_ref = refs[p + 1]
        p += 2
        acc = jnp.dot(acc.astype(jnp.bfloat16), w_ref[...],
                      preferred_element_type=jnp.float32) + b_ref[...]
        if relu_flags[li]:
            acc = jnp.maximum(acc, 0.0)

    if reduce_k is not None:
        rows, c = acc.shape
        acc = jnp.max(acc.reshape(rows // reduce_k, reduce_k, c), axis=1)

    if logsoftmax:
        cols = lax.broadcasted_iota(jnp.int32, acc.shape, 1)
        acc = jnp.where(cols < n_valid, acc, -1e30)   # mask padded class columns
        z = acc - jnp.max(acc, axis=-1, keepdims=True)
        acc = z - jnp.log(jnp.sum(jnp.exp(z), axis=-1, keepdims=True))

    o_ref[...] = acc.astype(o_ref.dtype)


# ----------------------------------------------------------------------------- Pallas wrappers
def _append_layer_operands(layers, operands, in_specs):
    for ws, b in layers:
        for w in ws:
            operands.append(w)
            in_specs.append(pl.BlockSpec(w.shape, lambda i: (0, 0)))
        operands.append(b)
        in_specs.append(pl.BlockSpec(b.shape, lambda i: (0, 0)))


def fused_mlp(streams, layers, *, relu_flags=None, logsoftmax=False, n_valid=0,
              out_dtype=jnp.bfloat16, tm_cap=1024):
    """Fused MLP over rows.  streams: list of (n, C_s) arrays (split first layer)."""
    assert len(layers[0][0]) == len(streams)
    assert all(len(l[0]) == 1 for l in layers[1:])
    if relu_flags is None:
        relu_flags = tuple(i < len(layers) - 1 for i in range(len(layers)))
    n = streams[0].shape[0]
    tm = _choose_tile(n, tm_cap, min_steps=2)
    n_p = _round_up(n, tm)
    xs = [_pad_to(s.astype(jnp.bfloat16), (n_p, s.shape[1])) for s in streams]
    cout = layers[-1][0][0].shape[1]

    operands, in_specs = [], []
    for s in xs:
        operands.append(s)
        in_specs.append(pl.BlockSpec((tm, s.shape[1]), lambda i: (i, 0)))
    _append_layer_operands(layers, operands, in_specs)

    out = pl.pallas_call(
        functools.partial(_fused_mlp_kernel, n_streams=len(xs), relu_flags=relu_flags,
                          reduce_k=None, logsoftmax=logsoftmax, n_valid=n_valid),
        out_shape=jax.ShapeDtypeStruct((n_p, cout), out_dtype),
        grid=(n_p // tm,),
        in_specs=in_specs,
        out_specs=pl.BlockSpec((tm, cout), lambda i: (i, 0)),
        compiler_params=pltpu.CompilerParams(dimension_semantics=("parallel",),
                                             vmem_limit_bytes=VMEM_LIMIT),
    )(*operands)
    return out[:n]


def fused_conv_max(streams, layers, *, tg=None, tg_cap=64, out_dtype=jnp.bfloat16):
    """Fused PointNetConv: per-edge MLP + max aggregation over K neighbors.

    streams: list of (G, K, C_s) arrays (neighbor features / relative positions).
    Returns (G, C_out).  K must be a multiple of 8 (caller pads with duplicate
    self-neighbors, which never change the max)."""
    assert len(layers[0][0]) == len(streams)
    assert all(len(l[0]) == 1 for l in layers[1:])
    G, K = streams[0].shape[0], streams[0].shape[1]
    relu_flags = tuple(i < len(layers) - 1 for i in range(len(layers)))
    cout = layers[-1][0][0].shape[1]
    maxw = max(b.shape[1] for _, b in layers)

    if tg is None:
        # cap tg so the live (tg*K, maxw) f32 intermediate stays under budget,
        # then size it from the step count (>=2 steps when possible, v7x megacore)
        cap_vmem = max(8, (CONV_ACT_BUDGET // (K * maxw * 4)) // 8 * 8)
        tg = _choose_tile(G, min(tg_cap, cap_vmem), min_steps=2)
    G_p = _round_up(G, tg)

    xs = []
    for s in streams:
        s = _pad_to(s.astype(jnp.bfloat16), (G_p, K, s.shape[2]))
        xs.append(s.reshape(G_p * K, s.shape[2]))
    rows_blk = tg * K

    operands, in_specs = [], []
    for s in xs:
        operands.append(s)
        in_specs.append(pl.BlockSpec((rows_blk, s.shape[1]), lambda i: (i, 0)))
    _append_layer_operands(layers, operands, in_specs)

    out = pl.pallas_call(
        functools.partial(_fused_mlp_kernel, n_streams=len(xs), relu_flags=relu_flags,
                          reduce_k=K, logsoftmax=False, n_valid=0),
        out_shape=jax.ShapeDtypeStruct((G_p, cout), out_dtype),
        grid=(G_p // tg,),
        in_specs=in_specs,
        out_specs=pl.BlockSpec((tg, cout), lambda i: (i, 0)),
        compiler_params=pltpu.CompilerParams(dimension_semantics=("parallel",),
                                             vmem_limit_bytes=VMEM_LIMIT),
    )(*operands)
    return out[:G]


# ----------------------------------------------------------------------------- graph glue (plain JAX)
def _pairwise_d2(a, b):
    """|a-b|^2 in matmul form (MXU, no (B,m,n,3) broadcast intermediate)."""
    a2 = jnp.sum(a * a, axis=-1)
    b2 = jnp.sum(b * b, axis=-1)
    ab = jnp.einsum('bmd,bnd->bmn', a, b)
    return jnp.maximum(a2[..., :, None] + b2[..., None, :] - 2.0 * ab, 0.0)


def fps_single(pos_b, m):
    # TODO(synk): serial FPS stays in XLA (m-step fori_loop); a VMEM-resident Pallas
    #             FPS kernel would remove this wall-clock tail at large N.
    n = pos_b.shape[0]

    def body(i, state):
        sel, dists, last = state
        d = jnp.sum((pos_b - pos_b[last]) ** 2, axis=-1)
        dists = jnp.minimum(dists, d)
        nxt = jnp.argmax(dists).astype(jnp.int32)
        sel = sel.at[i].set(nxt)
        return sel, dists, nxt

    sel0 = jnp.zeros((m,), jnp.int32)
    sel, _, _ = lax.fori_loop(
        1, m, body, (sel0, jnp.full((n,), jnp.inf, jnp.float32), jnp.int32(0)))
    return sel


def sa_module(x, pos, B, n, ratio, r, mlp_p, *, merged, max_neighbors=64):
    C = x.shape[1]
    x3 = x.reshape(B, n, C)
    pos3 = pos.reshape(B, n, 3)
    m = int(math.ceil(ratio * n))
    idx = jax.vmap(lambda p: fps_single(p, m))(pos3)              # (B, m) local FPS indices
    bar = jnp.arange(B)[:, None]
    pos_c = pos3[bar, idx]                                        # (B, m, 3) centroids
    # radius neighborhood (dense, nearest <= max_neighbors within r)
    d2 = _pairwise_d2(pos_c, pos3)                                # (B, m, n)
    valid = d2 <= r * r
    K0 = min(max_neighbors, n)
    vals, nbr = lax.top_k(jnp.where(valid, -d2, -jnp.inf), K0)    # (B, m, K0)
    # invalid / padded slots -> the centroid itself (d2=0 so always valid);
    # duplicate self-edges never change the max aggregation -> no mask needed.
    nbr = jnp.where(vals > -jnp.inf, nbr, idx[:, :, None])
    K = _round_up(K0, 8)
    if K > K0:
        nbr = jnp.concatenate(
            [nbr, jnp.broadcast_to(idx[:, :, None], (B, m, K - K0))], axis=2)
    bar3 = jnp.arange(B)[:, None, None]
    x_nb = x3[bar3, nbr]                                          # (B, m, K, C)
    rel = pos3[bar3, nbr] - pos_c[:, :, None, :]                  # (B, m, K, 3)
    rel = _pad_to(rel, (B, m, K, POS_PAD))
    if merged:
        # single MXU K-pass: features and relative positions concatenated (<=256 wide)
        feat = jnp.concatenate([x_nb.astype(jnp.bfloat16),
                                rel.astype(jnp.bfloat16)], axis=-1)
        streams = [feat.reshape(B * m, K, C + POS_PAD)]
    else:
        streams = [x_nb.reshape(B * m, K, C), rel.reshape(B * m, K, POS_PAD)]
    out = fused_conv_max(streams, mlp_p)                          # fused MLP + max
    return out, pos_c.reshape(B * m, 3), m


def global_sa_module(x, pos, B, n, mlp_p):
    C = x.shape[1]
    n_p = _round_up(n, 8)
    pad_idx = jnp.minimum(jnp.arange(n_p), n - 1)                 # duplicate-pad points (max-safe)
    x3 = x.reshape(B, n, C)[:, pad_idx, :]
    pos3 = pos.reshape(B, n, 3)[:, pad_idx, :]
    pos3 = _pad_to(pos3, (B, n_p, POS_PAD))
    # full-extent group block: no fake groups go through the widest MLP
    out = fused_conv_max([x3, pos3], mlp_p, tg=B)                 # MLP + global_max_pool fused
    return out, jnp.zeros((B, 3), jnp.float32), 1


def knn_interpolate_jax(x_src, pos_src, pos_dst, B, n_src, n_dst, k):
    C = x_src.shape[1]
    xs = x_src.reshape(B, n_src, C).astype(jnp.float32)
    ps = pos_src.reshape(B, n_src, 3)
    pd = pos_dst.reshape(B, n_dst, 3)
    d2 = _pairwise_d2(pd, ps)                                     # (B, nd, ns)
    vals, idx = lax.top_k(-d2, k)
    w = 1.0 / jnp.maximum(-vals, 1e-16)                           # (B, nd, k)
    bar3 = jnp.arange(B)[:, None, None]
    f = xs[bar3, idx]                                             # (B, nd, k, C)
    y = jnp.sum(f * w[..., None], axis=2) / jnp.sum(w, axis=2, keepdims=True)
    return y.reshape(B * n_dst, C)


def fp_module(x, pos, x_skip, pos_skip, B, n_src, n_dst, k, mlp_p):
    xi = knn_interpolate_jax(x, pos, pos_skip, B, n_src, n_dst, k)
    return fused_mlp([xi, x_skip], mlp_p)                         # split-concat fused MLP


# ----------------------------------------------------------------------------- params & forward
def make_mlp_params(key, stream_w, stream_p, widths, widths_p, merge=False):
    """torch_geometric MLP (plain_last=True) params, channel-padded once, bf16 weights.

    Returns list of layers; layers[0] = ([W per input stream], b), layers[i>0] = ([W], b).
    With merge=True the per-stream layer-0 weights are stacked into one (sum_p, w0)
    matrix so the caller can pass a single concatenated stream (one MXU K-pass).
    Padded rows/cols are zero so padded lanes stay exactly 0 through the network.
    BatchNorm is an eval-mode identity; Dropout is off."""
    L = len(widths)
    keys = jax.random.split(key, L + len(stream_w))
    layers = []
    fan_in = sum(stream_w)
    ws = []
    for si, (sw, sp) in enumerate(zip(stream_w, stream_p)):
        w = jax.random.normal(keys[si], (sw, widths[0]), jnp.float32) * (1.0 / math.sqrt(fan_in))
        ws.append(_pad_to(w, (sp, widths_p[0])).astype(jnp.bfloat16))
    if merge:
        ws = [jnp.concatenate(ws, axis=0)]                        # stacked rows, one weight
    layers.append((ws, jnp.zeros((1, widths_p[0]), jnp.float32)))
    for li in range(1, L):
        w = jax.random.normal(keys[len(stream_w) + li - 1],
                              (widths[li - 1], widths[li]), jnp.float32)
        w = w * (1.0 / math.sqrt(widths[li - 1]))
        layers.append(([_pad_to(w, (widths_p[li - 1], widths_p[li])).astype(jnp.bfloat16)],
                       jnp.zeros((1, widths_p[li]), jnp.float32)))
    return layers


def init_params(key, num_features, num_classes):
    F_p = _round_up(num_features, 8)
    ks = jax.random.split(key, 7)
    return {
        # merged streams where the combined width fits one <=256 MXU K-pass
        "sa1": make_mlp_params(ks[0], [num_features, 3], [F_p, POS_PAD],
                               [64, 64, 128], [128, 128, 128], merge=True),
        "sa2": make_mlp_params(ks[1], [128, 3], [128, POS_PAD],
                               [128, 128, 256], [128, 128, 256], merge=True),
        "sa3": make_mlp_params(ks[2], [256, 3], [256, POS_PAD],
                               [256, 512, 1024], [256, 512, 1024]),
        "fp3": make_mlp_params(ks[3], [1024, 256], [1024, 256], [256, 256], [256, 256]),
        "fp2": make_mlp_params(ks[4], [256, 128], [256, 128], [256, 128], [256, 128]),
        "fp1": make_mlp_params(ks[5], [128, num_features], [128, F_p],
                               [128, 128, 128], [128, 128, 128], merge=True),
        "cls": make_mlp_params(ks[6], [128], [128],
                               [128, 128, num_classes], [128, 128, 128]),
    }


def pn2_forward(params, x0, pos0, *, B, N, num_classes):
    F = x0.shape[1]
    x0p = _pad_to(x0, (x0.shape[0], _round_up(F, 8)))             # lane-pad input features once
    # SA hierarchy (fused conv-MLP + max kernels)
    x1, pos1, n1 = sa_module(x0p, pos0, B, N, 0.2, 2.0, params["sa1"], merged=True)
    x2, pos2, n2 = sa_module(x1, pos1, B, n1, 0.25, 8.0, params["sa2"], merged=True)
    x3, pos3, n3 = global_sa_module(x2, pos2, B, n2, params["sa3"])
    # FP hierarchy (fused split-concat MLP kernels)
    h3 = fp_module(x3, pos3, x2, pos2, B, n3, n2, 1, params["fp3"])
    h2 = fp_module(h3, pos2, x1, pos1, B, n2, n1, 3, params["fp2"])
    # fp1 MLP + classifier MLP + log_softmax merged into ONE fused kernel
    xi1 = knn_interpolate_jax(h2, pos1, pos0, B, n1, N, 3)
    feat = jnp.concatenate([xi1.astype(jnp.bfloat16), x0p.astype(jnp.bfloat16)], axis=-1)
    out = fused_mlp([feat], params["fp1"] + params["cls"],
                    relu_flags=(True, True, False, True, True, False),
                    logsoftmax=True, n_valid=num_classes, out_dtype=jnp.float32)
    return out[:, :num_classes]


# ----------------------------------------------------------------------------- main
if __name__ == "__main__":
    B, N, NUM_FEATURES, NUM_CLASSES = 2, 64, 4, 6

    key = jax.random.PRNGKey(0)
    k_pos, k_x, k_par = jax.random.split(key, 3)
    pos = jax.random.uniform(k_pos, (B * N, 3), jnp.float32)          # data.pos
    x = jax.random.normal(k_x, (B * N, NUM_FEATURES), jnp.float32)    # data.x
    # data.batch is implicit: points are contiguous, equal-sized per batch element.

    params = init_params(k_par, NUM_FEATURES, NUM_CLASSES)

    fwd = jax.jit(functools.partial(pn2_forward, B=B, N=N, num_classes=NUM_CLASSES))
    out = jax.block_until_ready(fwd(params, x, pos))

    assert out.shape == (B * N, NUM_CLASSES), out.shape
    assert bool(jnp.all(jnp.isfinite(out)))
    # rows of log_softmax should exponentiate-sum to ~1
    assert bool(jnp.all(jnp.abs(jnp.sum(jnp.exp(out), axis=-1) - 1.0) < 1e-3))
    print("KERNEL_OK")
</pallas_src>

<mosaic_0001>
module attributes {stable_mosaic.version = 11 : i64} {
  func.func @_fused_mlp_kernel(%arg0: i32, %arg1: memref<1024x16xbf16, #tpu.memory_space<vmem>>, %arg2: memref<16x128xbf16, #tpu.memory_space<vmem>>, %arg3: memref<1x128xf32, #tpu.memory_space<vmem>>, %arg4: memref<128x128xbf16, #tpu.memory_space<vmem>>, %arg5: memref<1x128xf32, #tpu.memory_space<vmem>>, %arg6: memref<128x128xbf16, #tpu.memory_space<vmem>>, %arg7: memref<1x128xf32, #tpu.memory_space<vmem>>, %arg8: memref<16x128xbf16, #tpu.memory_space<vmem>>) attributes {dimension_semantics = [#tpu.dimension_semantics<parallel>], iteration_bounds = array<i64: 2>, scalar_prefetch = 0 : i64, scratch_operands = 0 : i64, tpu.core_type = #tpu.core_type<tc>, window_params = [{transform_indices = @transform_0, window_bounds = array<i64: 1024, 16>}, {pipeline_mode = #tpu.pipeline_mode<synchronous>, transform_indices = @transform_1, window_bounds = array<i64: 16, 128>}, {pipeline_mode = #tpu.pipeline_mode<synchronous>, transform_indices = @transform_2, window_bounds = array<i64: 1, 128>}, {pipeline_mode = #tpu.pipeline_mode<synchronous>, transform_indices = @transform_3, window_bounds = array<i64: 128, 128>}, {pipeline_mode = #tpu.pipeline_mode<synchronous>, transform_indices = @transform_4, window_bounds = array<i64: 1, 128>}, {pipeline_mode = #tpu.pipeline_mode<synchronous>, transform_indices = @transform_5, window_bounds = array<i64: 128, 128>}, {pipeline_mode = #tpu.pipeline_mode<synchronous>, transform_indices = @transform_6, window_bounds = array<i64: 1, 128>}, {transform_indices = @transform_7, window_bounds = array<i64: 16, 128>}]} {
    %c0 = arith.constant 0 : index
    %c0_0 = arith.constant 0 : index
    %0 = vector.load %arg1[%c0, %c0_0] : memref<1024x16xbf16, #tpu.memory_space<vmem>>, vector<1024x16xbf16>
    %c0_1 = arith.constant 0 : index
    %c0_2 = arith.constant 0 : index
    %1 = vector.load %arg2[%c0_1, %c0_2] : memref<16x128xbf16, #tpu.memory_space<vmem>>, vector<16x128xbf16>
    %cst = arith.constant dense<0.000000e+00> : vector<1024x128xf32>
    %2 = tpu.matmul %0, %1, %cst {dimension_numbers = #tpu.dot_dimension_numbers<[1], [0], [0], [1], [0, 0, 1, 1], [], []>} : vector<1024x16xbf16>, vector<16x128xbf16>, vector<1024x128xf32> -> vector<1024x128xf32>
    %c0_3 = arith.constant 0 : index
    %c0_4 = arith.constant 0 : index
    %3 = vector.load %arg3[%c0_3, %c0_4] : memref<1x128xf32, #tpu.memory_space<vmem>>, vector<1x128xf32>
    %4 = vector.broadcast %3 : vector<1x128xf32> to vector<1024x128xf32>
    %5 = arith.addf %2, %4 : vector<1024x128xf32>
    %cst_5 = arith.constant 0.000000e+00 : f32
    %6 = vector.broadcast %cst_5 : f32 to vector<1024x128xf32>
    %7 = arith.maximumf %5, %6 : vector<1024x128xf32>
    %8 = arith.truncf %7 : vector<1024x128xf32> to vector<1024x128xbf16>
    %c0_6 = arith.constant 0 : index
    %c0_7 = arith.constant 0 : index
    %9 = vector.load %arg4[%c0_6, %c0_7] : memref<128x128xbf16, #tpu.memory_space<vmem>>, vector<128x128xbf16>
    %cst_8 = arith.constant dense<0.000000e+00> : vector<1024x128xf32>
    %10 = tpu.matmul %8, %9, %cst_8 {dimension_numbers = #tpu.dot_dimension_numbers<[1], [0], [0], [1], [0, 0, 1, 1], [], []>} : vector<1024x128xbf16>, vector<128x128xbf16>, vector<1024x128xf32> -> vector<1024x128xf32>
    %c0_9 = arith.constant 0 : index
    %c0_10 = arith.constant 0 : index
    %11 = vector.load %arg5[%c0_9, %c0_10] : memref<1x128xf32, #tpu.memory_space<vmem>>, vector<1x128xf32>
    %12 = vector.broadcast %11 : vector<1x128xf32> to vector<1024x128xf32>
    %13 = arith.addf %10, %12 : vector<1024x128xf32>
    %cst_11 = arith.constant 0.000000e+00 : f32
    %14 = vector.broadcast %cst_11 : f32 to vector<1024x128xf32>
    %15 = arith.maximumf %13, %14 : vector<1024x128xf32>
    %16 = arith.truncf %15 : vector<1024x128xf32> to vector<1024x128xbf16>
    %c0_12 = arith.constant 0 : index
    %c0_13 = arith.constant 0 : index
    %17 = vector.load %arg6[%c0_12, %c0_13] : memref<128x128xbf16, #tpu.memory_space<vmem>>, vector<128x128xbf16>
    %cst_14 = arith.constant dense<0.000000e+00> : vector<1024x128xf32>
    %18 = tpu.matmul %16, %17, %cst_14 {dimension_numbers = #tpu.dot_dimension_numbers<[1], [0], [0], [1], [0, 0, 1, 1], [], []>} : vector<1024x128xbf16>, vector<128x128xbf16>, vector<1024x128xf32> -> vector<1024x128xf32>
    %c0_15 = arith.constant 0 : index
    %c0_16 = arith.constant 0 : index
    %19 = vector.load %arg7[%c0_15, %c0_16] : memref<1x128xf32, #tpu.memory_space<vmem>>, vector<1x128xf32>
    %20 = vector.broadcast %19 : vector<1x128xf32> to vector<1024x128xf32>
    %21 = arith.addf %18, %20 : vector<1024x128xf32>
    %22 = vector.shape_cast %21 : vector<1024x128xf32> to vector<16x64x128xf32>
    %cst_17 = arith.constant dense<0xFF800000> : vector<16x128xf32>
    %23 = vector.multi_reduction <maximumf>, %22, %cst_17 [1] : vector<16x64x128xf32> to vector<16x128xf32>
    %24 = arith.truncf %23 : vector<16x128xf32> to vector<16x128xbf16>
    %c0_18 = arith.constant 0 : index
    %c0_19 = arith.constant 0 : index
    %25 = vector.load %arg8[%c0_18, %c0_19] : memref<16x128xbf16, #tpu.memory_space<vmem>>, vector<16x128xbf16>
    tpu.vector_store %arg8[%c0_18, %c0_19], %24 {strides = array<i32>} : memref<16x128xbf16, #tpu.memory_space<vmem>>, vector<16x128xbf16>,
    return
  }
  func.func @transform_0(%arg0: i32) -> (i32, i32) {
    %c0_i32 = arith.constant 0 : i32
    %c0_i32_0 = arith.constant 0 : i32
    return %arg0, %c0_i32 : i32, i32
  }
  func.func @transform_1(%arg0: i32) -> (i32, i32) {
    %c0_i32 = arith.constant 0 : i32
    %c0_i32_0 = arith.constant 0 : i32
    %c0_i32_1 = arith.constant 0 : i32
    return %c0_i32, %c0_i32_0 : i32, i32
  }
  func.func @transform_2(%arg0: i32) -> (i32, i32) {
    %c0_i32 = arith.constant 0 : i32
    %c0_i32_0 = arith.constant 0 : i32
    %c0_i32_1 = arith.constant 0 : i32
    return %c0_i32, %c0_i32_0 : i32, i32
  }
  func.func @transform_3(%arg0: i32) -> (i32, i32) {
    %c0_i32 = arith.constant 0 : i32
    %c0_i32_0 = arith.constant 0 : i32
    %c0_i32_1 = arith.constant 0 : i32
    return %c0_i32, %c0_i32_0 : i32, i32
  }
  func.func @transform_4(%arg0: i32) -> (i32, i32) {
    %c0_i32 = arith.constant 0 : i32
    %c0_i32_0 = arith.constant 0 : i32
    %c0_i32_1 = arith.constant 0 : i32
    return %c0_i32, %c0_i32_0 : i32, i32
  }
  func.func @transform_5(%arg0: i32) -> (i32, i32) {
    %c0_i32 = arith.constant 0 : i32
    %c0_i32_0 = arith.constant 0 : i32
    %c0_i32_1 = arith.constant 0 : i32
    return %c0_i32, %c0_i32_0 : i32, i32
  }
  func.func @transform_6(%arg0: i32) -> (i32, i32) {
    %c0_i32 = arith.constant 0 : i32
    %c0_i32_0 = arith.constant 0 : i32
    %c0_i32_1 = arith.constant 0 : i32
    return %c0_i32, %c0_i32_0 : i32, i32
  }
  func.func @transform_7(%arg0: i32) -> (i32, i32) {
    %c0_i32 = arith.constant 0 : i32
    %c0_i32_0 = arith.constant 0 : i32
    return %arg0, %c0_i32 : i32, i32
  }
}

module attributes {stable_mosaic.version = 11 : i64} {
  func.func @_fused_mlp_kernel(%arg0: i32, %arg1: memref<128x136xbf16, #tpu.memory_space<vmem>>, %arg2: memref<136x128xbf16, #tpu.memory_space<vmem>>, %arg3: memref<1x128xf32, #tpu.memory_space<vmem>>, %arg4: memref<128x128xbf16, #tpu.memory_space<vmem>>, %arg5: memref<1x128xf32, #tpu.memory_space<vmem>>, %arg6: memref<128x256xbf16, #tpu.memory_space<vmem>>, %arg7: memref<1x256xf32, #tpu.memory_space<vmem>>, %arg8: memref<8x256xbf16, #tpu.memory_space<vmem>>) attributes {dimension_semantics = [#tpu.dimension_semantics<parallel>], iteration_bounds = array<i64: 1>, scalar_prefetch = 0 : i64, scratch_operands = 0 : i64, tpu.core_type = #tpu.core_type<tc>, window_params = [{transform_indices = @transform_0, window_bounds = array<i64: 128, 136>}, {pipeline_mode = #tpu.pipeline_mode<synchronous>, transform_indices = @transform_1, window_bounds = array<i64: 136, 128>}, {pipeline_mode = #tpu.pipeline_mode<synchronous>, transform_indices = @transform_2, window_bounds = array<i64: 1, 128>}, {pipeline_mode = #tpu.pipeline_mode<synchronous>, transform_indices = @transform_3, window_bounds = array<i64: 128, 128>}, {pipeline_mode = #tpu.pipeline_mode<synchronous>, transform_indices = @transform_4, window_bounds = array<i64: 1, 128>}, {pipeline_mode = #tpu.pipeline_mode<synchronous>, transform_indices = @transform_5, window_bounds = array<i64: 128, 256>}, {pipeline_mode = #tpu.pipeline_mode<synchronous>, transform_indices = @transform_6, window_bounds = array<i64: 1, 256>}, {transform_indices = @transform_7, window_bounds = array<i64: 8, 256>}]} {
    %c0 = arith.constant 0 : index
    %c0_0 = arith.constant 0 : index
    %0 = vector.load %arg1[%c0, %c0_0] : memref<128x136xbf16, #tpu.memory_space<vmem>>, vector<128x136xbf16>
    %c0_1 = arith.constant 0 : index
    %c0_2 = arith.constant 0 : index
    %1 = vector.load %arg2[%c0_1, %c0_2] : memref<136x128xbf16, #tpu.memory_space<vmem>>, vector<136x128xbf16>
    %cst = arith.constant dense<0.000000e+00> : vector<128x128xf32>
    %2 = tpu.matmul %0, %1, %cst {dimension_numbers = #tpu.dot_dimension_numbers<[1], [0], [0], [1], [0, 0, 1, 1], [], []>} : vector<128x136xbf16>, vector<136x128xbf16>, vector<128x128xf32> -> vector<128x128xf32>
    %c0_3 = arith.constant 0 : index
    %c0_4 = arith.constant 0 : index
    %3 = vector.load %arg3[%c0_3, %c0_4] : memref<1x128xf32, #tpu.memory_space<vmem>>, vector<1x128xf32>
    %4 = vector.broadcast %3 : vector<1x128xf32> to vector<128x128xf32>
    %5 = arith.addf %2, %4 : vector<128x128xf32>
    %cst_5 = arith.constant 0.000000e+00 : f32
    %6 = vector.broadcast %cst_5 : f32 to vector<128x128xf32>
    %7 = arith.maximumf %5, %6 : vector<128x128xf32>
    %8 = arith.truncf %7 : vector<128x128xf32> to vector<128x128xbf16>
    %c0_6 = arith.constant 0 : index
    %c0_7 = arith.constant 0 : index
    %9 = vector.load %arg4[%c0_6, %c0_7] : memref<128x128xbf16, #tpu.memory_space<vmem>>, vector<128x128xbf16>
    %cst_8 = arith.constant dense<0.000000e+00> : vector<128x128xf32>
    %10 = tpu.matmul %8, %9, %cst_8 {dimension_numbers = #tpu.dot_dimension_numbers<[1], [0], [0], [1], [0, 0, 1, 1], [], []>} : vector<128x128xbf16>, vector<128x128xbf16>, vector<128x128xf32> -> vector<128x128xf32>
    %c0_9 = arith.constant 0 : index
    %c0_10 = arith.constant 0 : index
    %11 = vector.load %arg5[%c0_9, %c0_10] : memref<1x128xf32, #tpu.memory_space<vmem>>, vector<1x128xf32>
    %12 = vector.broadcast %11 : vector<1x128xf32> to vector<128x128xf32>
    %13 = arith.addf %10, %12 : vector<128x128xf32>
    %cst_11 = arith.constant 0.000000e+00 : f32
    %14 = vector.broadcast %cst_11 : f32 to vector<128x128xf32>
    %15 = arith.maximumf %13, %14 : vector<128x128xf32>
    %16 = arith.truncf %15 : vector<128x128xf32> to vector<128x128xbf16>
    %c0_12 = arith.constant 0 : index
    %c0_13 = arith.constant 0 : index
    %17 = vector.load %arg6[%c0_12, %c0_13] : memref<128x256xbf16, #tpu.memory_space<vmem>>, vector<128x256xbf16>
    %cst_14 = arith.constant dense<0.000000e+00> : vector<128x256xf32>
    %18 = tpu.matmul %16, %17, %cst_14 {dimension_numbers = #tpu.dot_dimension_numbers<[1], [0], [0], [1], [0, 0, 1, 1], [], []>} : vector<128x128xbf16>, vector<128x256xbf16>, vector<128x256xf32> -> vector<128x256xf32>
    %c0_15 = arith.constant 0 : index
    %c0_16 = arith.constant 0 : index
    %19 = vector.load %arg7[%c0_15, %c0_16] : memref<1x256xf32, #tpu.memory_space<vmem>>, vector<1x256xf32>
    %20 = vector.broadcast %19 : vector<1x256xf32> to vector<128x256xf32>
    %21 = arith.addf %18, %20 : vector<128x256xf32>
    %22 = vector.shape_cast %21 : vector<128x256xf32> to vector<8x16x256xf32>
    %cst_17 = arith.constant dense<0xFF800000> : vector<8x256xf32>
    %23 = vector.multi_reduction <maximumf>, %22, %cst_17 [1] : vector<8x16x256xf32> to vector<8x256xf32>
    %24 = arith.truncf %23 : vector<8x256xf32> to vector<8x256xbf16>
    %c0_18 = arith.constant 0 : index
    %c0_19 = arith.constant 0 : index
    %25 = vector.load %arg8[%c0_18, %c0_19] : memref<8x256xbf16, #tpu.memory_space<vmem>>, vector<8x256xbf16>
    tpu.vector_store %arg8[%c0_18, %c0_19], %24 {strides = array<i32>} : memref<8x256xbf16, #tpu.memory_space<vmem>>, vector<8x256xbf16>,
    return
  }
  func.func @transform_0(%arg0: i32) -> (i32, i32) {
    %c0_i32 = arith.constant 0 : i32
    %c0_i32_0 = arith.constant 0 : i32
    return %arg0, %c0_i32 : i32, i32
  }
  func.func @transform_1(%arg0: i32) -> (i32, i32) {
    %c0_i32 = arith.constant 0 : i32
    %c0_i32_0 = arith.constant 0 : i32
    %c0_i32_1 = arith.constant 0 : i32
    return %c0_i32, %c0_i32_0 : i32, i32
  }
  func.func @transform_2(%arg0: i32) -> (i32, i32) {
    %c0_i32 = arith.constant 0 : i32
    %c0_i32_0 = arith.constant 0 : i32
    %c0_i32_1 = arith.constant 0 : i32
    return %c0_i32, %c0_i32_0 : i32, i32
  }
  func.func @transform_3(%arg0: i32) -> (i32, i32) {
    %c0_i32 = arith.constant 0 : i32
    %c0_i32_0 = arith.constant 0 : i32
    %c0_i32_1 = arith.constant 0 : i32
    return %c0_i32, %c0_i32_0 : i32, i32
  }
  func.func @transform_4(%arg0: i32) -> (i32, i32) {
    %c0_i32 = arith.constant 0 : i32
    %c0_i32_0 = arith.constant 0 : i32
    %c0_i32_1 = arith.constant 0 : i32
    return %c0_i32, %c0_i32_0 : i32, i32
  }
  func.func @transform_5(%arg0: i32) -> (i32, i32) {
    %c0_i32 = arith.constant 0 : i32
    %c0_i32_0 = arith.constant 0 : i32
    %c0_i32_1 = arith.constant 0 : i32
    return %c0_i32, %c0_i32_0 : i32, i32
  }
  func.func @transform_6(%arg0: i32) -> (i32, i32) {
    %c0_i32 = arith.constant 0 : i32
    %c0_i32_0 = arith.constant 0 : i32
    %c0_i32_1 = arith.constant 0 : i32
    return %c0_i32, %c0_i32_0 : i32, i32
  }
  func.func @transform_7(%arg0: i32) -> (i32, i32) {
    %c0_i32 = arith.constant 0 : i32
    %c0_i32_0 = arith.constant 0 : i32
    return %arg0, %c0_i32 : i32, i32
  }
}

module attributes {stable_mosaic.version = 11 : i64} {
  func.func @_fused_mlp_kernel(%arg0: i32, %arg1: memref<16x256xbf16, #tpu.memory_space<vmem>>, %arg2: memref<16x8xbf16, #tpu.memory_space<vmem>>, %arg3: memref<256x256xbf16, #tpu.memory_space<vmem>>, %arg4: memref<8x256xbf16, #tpu.memory_space<vmem>>, %arg5: memref<1x256xf32, #tpu.memory_space<vmem>>, %arg6: memref<256x512xbf16, #tpu.memory_space<vmem>>, %arg7: memref<1x512xf32, #tpu.memory_space<vmem>>, %arg8: memref<512x1024xbf16, #tpu.memory_space<vmem>>, %arg9: memref<1x1024xf32, #tpu.memory_space<vmem>>, %arg10: memref<2x1024xbf16, #tpu.memory_space<vmem>>) attributes {dimension_semantics = [#tpu.dimension_semantics<parallel>], iteration_bounds = array<i64: 1>, scalar_prefetch = 0 : i64, scratch_operands = 0 : i64, tpu.core_type = #tpu.core_type<tc>, window_params = [{transform_indices = @transform_0, window_bounds = array<i64: 16, 256>}, {transform_indices = @transform_1, window_bounds = array<i64: 16, 8>}, {pipeline_mode = #tpu.pipeline_mode<synchronous>, transform_indices = @transform_2, window_bounds = array<i64: 256, 256>}, {pipeline_mode = #tpu.pipeline_mode<synchronous>, transform_indices = @transform_3, window_bounds = array<i64: 8, 256>}, {pipeline_mode = #tpu.pipeline_mode<synchronous>, transform_indices = @transform_4, window_bounds = array<i64: 1, 256>}, {pipeline_mode = #tpu.pipeline_mode<synchronous>, transform_indices = @transform_5, window_bounds = array<i64: 256, 512>}, {pipeline_mode = #tpu.pipeline_mode<synchronous>, transform_indices = @transform_6, window_bounds = array<i64: 1, 512>}, {pipeline_mode = #tpu.pipeline_mode<synchronous>, transform_indices = @transform_7, window_bounds = array<i64: 512, 1024>}, {pipeline_mode = #tpu.pipeline_mode<synchronous>, transform_indices = @transform_8, window_bounds = array<i64: 1, 1024>}, {transform_indices = @transform_9, window_bounds = array<i64: 2, 1024>}]} {
    %c0 = arith.constant 0 : index
    %c0_0 = arith.constant 0 : index
    %0 = vector.load %arg1[%c0, %c0_0] : memref<16x256xbf16, #tpu.memory_space<vmem>>, vector<16x256xbf16>
    %c0_1 = arith.constant 0 : index
    %c0_2 = arith.constant 0 : index
    %1 = vector.load %arg3[%c0_1, %c0_2] : memref<256x256xbf16, #tpu.memory_space<vmem>>, vector<256x256xbf16>
    %cst = arith.constant dense<0.000000e+00> : vector<16x256xf32>
    %2 = tpu.matmul %0, %1, %cst {dimension_numbers = #tpu.dot_dimension_numbers<[1], [0], [0], [1], [0, 0, 1, 1], [], []>} : vector<16x256xbf16>, vector<256x256xbf16>, vector<16x256xf32> -> vector<16x256xf32>
    %c0_3 = arith.constant 0 : index
    %c0_4 = arith.constant 0 : index
    %3 = vector.load %arg2[%c0_3, %c0_4] : memref<16x8xbf16, #tpu.memory_space<vmem>>, vector<16x8xbf16>
    %c0_5 = arith.constant 0 : index
    %c0_6 = arith.constant 0 : index
    %4 = vector.load %arg4[%c0_5, %c0_6] : memref<8x256xbf16, #tpu.memory_space<vmem>>, vector<8x256xbf16>
    %cst_7 = arith.constant dense<0.000000e+00> : vector<16x256xf32>
    %5 = tpu.matmul %3, %4, %cst_7 {dimension_numbers = #tpu.dot_dimension_numbers<[1], [0], [0], [1], [0, 0, 1, 1], [], []>} : vector<16x8xbf16>, vector<8x256xbf16>, vector<16x256xf32> -> vector<16x256xf32>
    %6 = arith.addf %2, %5 : vector<16x256xf32>
    %c0_8 = arith.constant 0 : index
    %c0_9 = arith.constant 0 : index
    %7 = vector.load %arg5[%c0_8, %c0_9] : memref<1x256xf32, #tpu.memory_space<vmem>>, vector<1x256xf32>
    %8 = vector.broadcast %7 : vector<1x256xf32> to vector<16x256xf32>
    %9 = arith.addf %6, %8 : vector<16x256xf32>
    %cst_10 = arith.constant 0.000000e+00 : f32
    %10 = vector.broadcast %cst_10 : f32 to vector<16x256xf32>
    %11 = arith.maximumf %9, %10 : vector<16x256xf32>
    %12 = arith.truncf %11 : vector<16x256xf32> to vector<16x256xbf16>
    %c0_11 = arith.constant 0 : index
    %c0_12 = arith.constant 0 : index
    %13 = vector.load %arg6[%c0_11, %c0_12] : memref<256x512xbf16, #tpu.memory_space<vmem>>, vector<256x512xbf16>
    %cst_13 = arith.constant dense<0.000000e+00> : vector<16x512xf32>
    %14 = tpu.matmul %12, %13, %cst_13 {dimension_numbers = #tpu.dot_dimension_numbers<[1], [0], [0], [1], [0, 0, 1, 1], [], []>} : vector<16x256xbf16>, vector<256x512xbf16>, vector<16x512xf32> -> vector<16x512xf32>
    %c0_14 = arith.constant 0 : index
    %c0_15 = arith.constant 0 : index
    %15 = vector.load %arg7[%c0_14, %c0_15] : memref<1x512xf32, #tpu.memory_space<vmem>>, vector<1x512xf32>
    %16 = vector.broadcast %15 : vector<1x512xf32> to vector<16x512xf32>
    %17 = arith.addf %14, %16 : vector<16x512xf32>
    %cst_16 = arith.constant 0.000000e+00 : f32
    %18 = vector.broadcast %cst_16 : f32 to vector<16x512xf32>
    %19 = arith.maximumf %17, %18 : vector<16x512xf32>
    %20 = arith.truncf %19 : vector<16x512xf32> to vector<16x512xbf16>
    %c0_17 = arith.constant 0 : index
    %c0_18 = arith.constant 0 : index
    %21 = vector.load %arg8[%c0_17, %c0_18] : memref<512x1024xbf16, #tpu.memory_space<vmem>>, vector<512x1024xbf16>
    %cst_19 = arith.constant dense<0.000000e+00> : vector<16x1024xf32>
    %22 = tpu.matmul %20, %21, %cst_19 {dimension_numbers = #tpu.dot_dimension_numbers<[1], [0], [0], [1], [0, 0, 1, 1], [], []>} : vector<16x512xbf16>, vector<512x1024xbf16>, vector<16x1024xf32> -> vector<16x1024xf32>
    %c0_20 = arith.constant 0 : index
    %c0_21 = arith.constant 0 : index
    %23 = vector.load %arg9[%c0_20, %c0_21] : memref<1x1024xf32, #tpu.memory_space<vmem>>, vector<1x1024xf32>
    %24 = vector.broadcast %23 : vector<1x1024xf32> to vector<16x1024xf32>
    %25 = arith.addf %22, %24 : vector<16x1024xf32>
    %26 = vector.shape_cast %25 : vector<16x1024xf32> to vector<2x8x1024xf32>
    %cst_22 = arith.constant dense<0xFF800000> : vector<2x1024xf32>
    %27 = vector.multi_reduction <maximumf>, %26, %cst_22 [1] : vector<2x8x1024xf32> to vector<2x1024xf32>
    %28 = arith.truncf %27 : vector<2x1024xf32> to vector<2x1024xbf16>
    %c0_23 = arith.constant 0 : index
    %c0_24 = arith.constant 0 : index
    %29 = vector.load %arg10[%c0_23, %c0_24] : memref<2x1024xbf16, #tpu.memory_space<vmem>>, vector<2x1024xbf16>
    tpu.vector_store %arg10[%c0_23, %c0_24], %28 {strides = array<i32>} : memref<2x1024xbf16, #tpu.memory_space<vmem>>, vector<2x1024xbf16>,
    return
  }
  func.func @transform_0(%arg0: i32) -> (i32, i32) {
    %c0_i32 = arith.constant 0 : i32
    %c0_i32_0 = arith.constant 0 : i32
    return %arg0, %c0_i32 : i32, i32
  }
  func.func @transform_1(%arg0: i32) -> (i32, i32) {
    %c0_i32 = arith.constant 0 : i32
    %c0_i32_0 = arith.constant 0 : i32
    return %arg0, %c0_i32 : i32, i32
  }
  func.func @transform_2(%arg0: i32) -> (i32, i32) {
    %c0_i32 = arith.constant 0 : i32
    %c0_i32_0 = arith.constant 0 : i32
    %c0_i32_1 = arith.constant 0 : i32
    return %c0_i32, %c0_i32_0 : i32, i32
  }
  func.func @transform_3(%arg0: i32) -> (i32, i32) {
    %c0_i32 = arith.constant 0 : i32
    %c0_i32_0 = arith.constant 0 : i32
    %c0_i32_1 = arith.constant 0 : i32
    return %c0_i32, %c0_i32_0 : i32, i32
  }
  func.func @transform_4(%arg0: i32) -> (i32, i32) {
    %c0_i32 = arith.constant 0 : i32
    %c0_i32_0 = arith.constant 0 : i32
    %c0_i32_1 = arith.constant 0 : i32
    return %c0_i32, %c0_i32_0 : i32, i32
  }
  func.func @transform_5(%arg0: i32) -> (i32, i32) {
    %c0_i32 = arith.constant 0 : i32
    %c0_i32_0 = arith.constant 0 : i32
    %c0_i32_1 = arith.constant 0 : i32
    return %c0_i32, %c0_i32_0 : i32, i32
  }
  func.func @transform_6(%arg0: i32) -> (i32, i32) {
    %c0_i32 = arith.constant 0 : i32
    %c0_i32_0 = arith.constant 0 : i32
    %c0_i32_1 = arith.constant 0 : i32
    return %c0_i32, %c0_i32_0 : i32, i32
  }
  func.func @transform_7(%arg0: i32) -> (i32, i32) {
    %c0_i32 = arith.constant 0 : i32
    %c0_i32_0 = arith.constant 0 : i32
    %c0_i32_1 = arith.constant 0 : i32
    return %c0_i32, %c0_i32_0 : i32, i32
  }
  func.func @transform_8(%arg0: i32) -> (i32, i32) {
    %c0_i32 = arith.constant 0 : i32
    %c0_i32_0 = arith.constant 0 : i32
    %c0_i32_1 = arith.constant 0 : i32
    return %c0_i32, %c0_i32_0 : i32, i32
  }
  func.func @transform_9(%arg0: i32) -> (i32, i32) {
    %c0_i32 = arith.constant 0 : i32
    %c0_i32_0 = arith.constant 0 : i32
    return %arg0, %c0_i32 : i32, i32
  }
}

module attributes {stable_mosaic.version = 11 : i64} {
  func.func @_fused_mlp_kernel(%arg0: i32, %arg1: memref<8x1024xbf16, #tpu.memory_space<vmem>>, %arg2: memref<8x256xbf16, #tpu.memory_space<vmem>>, %arg3: memref<1024x256xbf16, #tpu.memory_space<vmem>>, %arg4: memref<256x256xbf16, #tpu.memory_space<vmem>>, %arg5: memref<1x256xf32, #tpu.memory_space<vmem>>, %arg6: memref<256x256xbf16, #tpu.memory_space<vmem>>, %arg7: memref<1x256xf32, #tpu.memory_space<vmem>>, %arg8: memref<8x256xbf16, #tpu.memory_space<vmem>>) attributes {dimension_semantics = [#tpu.dimension_semantics<parallel>], iteration_bounds = array<i64: 1>, scalar_prefetch = 0 : i64, scratch_operands = 0 : i64, tpu.core_type = #tpu.core_type<tc>, window_params = [{transform_indices = @transform_0, window_bounds = array<i64: 8, 1024>}, {transform_indices = @transform_1, window_bounds = array<i64: 8, 256>}, {pipeline_mode = #tpu.pipeline_mode<synchronous>, transform_indices = @transform_2, window_bounds = array<i64: 1024, 256>}, {pipeline_mode = #tpu.pipeline_mode<synchronous>, transform_indices = @transform_3, window_bounds = array<i64: 256, 256>}, {pipeline_mode = #tpu.pipeline_mode<synchronous>, transform_indices = @transform_4, window_bounds = array<i64: 1, 256>}, {pipeline_mode = #tpu.pipeline_mode<synchronous>, transform_indices = @transform_5, window_bounds = array<i64: 256, 256>}, {pipeline_mode = #tpu.pipeline_mode<synchronous>, transform_indices = @transform_6, window_bounds = array<i64: 1, 256>}, {transform_indices = @transform_7, window_bounds = array<i64: 8, 256>}]} {
    %c0 = arith.constant 0 : index
    %c0_0 = arith.constant 0 : index
    %0 = vector.load %arg1[%c0, %c0_0] : memref<8x1024xbf16, #tpu.memory_space<vmem>>, vector<8x1024xbf16>
    %c0_1 = arith.constant 0 : index
    %c0_2 = arith.constant 0 : index
    %1 = vector.load %arg3[%c0_1, %c0_2] : memref<1024x256xbf16, #tpu.memory_space<vmem>>, vector<1024x256xbf16>
    %cst = arith.constant dense<0.000000e+00> : vector<8x256xf32>
    %2 = tpu.matmul %0, %1, %cst {dimension_numbers = #tpu.dot_dimension_numbers<[1], [0], [0], [1], [0, 0, 1, 1], [], []>} : vector<8x1024xbf16>, vector<1024x256xbf16>, vector<8x256xf32> -> vector<8x256xf32>
    %c0_3 = arith.constant 0 : index
    %c0_4 = arith.constant 0 : index
    %3 = vector.load %arg2[%c0_3, %c0_4] : memref<8x256xbf16, #tpu.memory_space<vmem>>, vector<8x256xbf16>
    %c0_5 = arith.constant 0 : index
    %c0_6 = arith.constant 0 : index
    %4 = vector.load %arg4[%c0_5, %c0_6] : memref<256x256xbf16, #tpu.memory_space<vmem>>, vector<256x256xbf16>
    %cst_7 = arith.constant dense<0.000000e+00> : vector<8x256xf32>
    %5 = tpu.matmul %3, %4, %cst_7 {dimension_numbers = #tpu.dot_dimension_numbers<[1], [0], [0], [1], [0, 0, 1, 1], [], []>} : vector<8x256xbf16>, vector<256x256xbf16>, vector<8x256xf32> -> vector<8x256xf32>
    %6 = arith.addf %2, %5 : vector<8x256xf32>
    %c0_8 = arith.constant 0 : index
    %c0_9 = arith.constant 0 : index
    %7 = vector.load %arg5[%c0_8, %c0_9] : memref<1x256xf32, #tpu.memory_space<vmem>>, vector<1x256xf32>
    %8 = vector.broadcast %7 : vector<1x256xf32> to vector<8x256xf32>
    %9 = arith.addf %6, %8 : vector<8x256xf32>
    %cst_10 = arith.constant 0.000000e+00 : f32
    %10 = vector.broadcast %cst_10 : f32 to vector<8x256xf32>
    %11 = arith.maximumf %9, %10 : vector<8x256xf32>
    %12 = arith.truncf %11 : vector<8x256xf32> to vector<8x256xbf16>
    %c0_11 = arith.constant 0 : index
    %c0_12 = arith.constant 0 : index
    %13 = vector.load %arg6[%c0_11, %c0_12] : memref<256x256xbf16, #tpu.memory_space<vmem>>, vector<256x256xbf16>
    %cst_13 = arith.constant dense<0.000000e+00> : vector<8x256xf32>
    %14 = tpu.matmul %12, %13, %cst_13 {dimension_numbers = #tpu.dot_dimension_numbers<[1], [0], [0], [1], [0, 0, 1, 1], [], []>} : vector<8x256xbf16>, vector<256x256xbf16>, vector<8x256xf32> -> vector<8x256xf32>
    %c0_14 = arith.constant 0 : index
    %c0_15 = arith.constant 0 : index
    %15 = vector.load %arg7[%c0_14, %c0_15] : memref<1x256xf32, #tpu.memory_space<vmem>>, vector<1x256xf32>
    %16 = vector.broadcast %15 : vector<1x256xf32> to vector<8x256xf32>
    %17 = arith.addf %14, %16 : vector<8x256xf32>
    %18 = arith.truncf %17 : vector<8x256xf32> to vector<8x256xbf16>
    %c0_16 = arith.constant 0 : index
    %c0_17 = arith.constant 0 : index
    %19 = vector.load %arg8[%c0_16, %c0_17] : memref<8x256xbf16, #tpu.memory_space<vmem>>, vector<8x256xbf16>
    tpu.vector_store %arg8[%c0_16, %c0_17], %18 {strides = array<i32>} : memref<8x256xbf16, #tpu.memory_space<vmem>>, vector<8x256xbf16>,
    return
  }
  func.func @transform_0(%arg0: i32) -> (i32, i32) {
    %c0_i32 = arith.constant 0 : i32
    %c0_i32_0 = arith.constant 0 : i32
    return %arg0, %c0_i32 : i32, i32
  }
  func.func @transform_1(%arg0: i32) -> (i32, i32) {
    %c0_i32 = arith.constant 0 : i32
    %c0_i32_0 = arith.constant 0 : i32
    return %arg0, %c0_i32 : i32, i32
  }
  func.func @transform_2(%arg0: i32) -> (i32, i32) {
    %c0_i32 = arith.constant 0 : i32
    %c0_i32_0 = arith.constant 0 : i32
    %c0_i32_1 = arith.constant 0 : i32
    return %c0_i32, %c0_i32_0 : i32, i32
  }
  func.func @transform_3(%arg0: i32) -> (i32, i32) {
    %c0_i32 = arith.constant 0 : i32
    %c0_i32_0 = arith.constant 0 : i32
    %c0_i32_1 = arith.constant 0 : i32
    return %c0_i32, %c0_i32_0 : i32, i32
  }
  func.func @transform_4(%arg0: i32) -> (i32, i32) {
    %c0_i32 = arith.constant 0 : i32
    %c0_i32_0 = arith.constant 0 : i32
    %c0_i32_1 = arith.constant 0 : i32
    return %c0_i32, %c0_i32_0 : i32, i32
  }
  func.func @transform_5(%arg0: i32) -> (i32, i32) {
    %c0_i32 = arith.constant 0 : i32
    %c0_i32_0 = arith.constant 0 : i32
    %c0_i32_1 = arith.constant 0 : i32
    return %c0_i32, %c0_i32_0 : i32, i32
  }
  func.func @transform_6(%arg0: i32) -> (i32, i32) {
    %c0_i32 = arith.constant 0 : i32
    %c0_i32_0 = arith.constant 0 : i32
    %c0_i32_1 = arith.constant 0 : i32
    return %c0_i32, %c0_i32_0 : i32, i32
  }
  func.func @transform_7(%arg0: i32) -> (i32, i32) {
    %c0_i32 = arith.constant 0 : i32
    %c0_i32_0 = arith.constant 0 : i32
    return %arg0, %c0_i32 : i32, i32
  }
}

module attributes {stable_mosaic.version = 11 : i64} {
  func.func @_fused_mlp_kernel(%arg0: i32, %arg1: memref<16x256xbf16, #tpu.memory_space<vmem>>, %arg2: memref<16x128xbf16, #tpu.memory_space<vmem>>, %arg3: memref<256x256xbf16, #tpu.memory_space<vmem>>, %arg4: memref<128x256xbf16, #tpu.memory_space<vmem>>, %arg5: memref<1x256xf32, #tpu.memory_space<vmem>>, %arg6: memref<256x128xbf16, #tpu.memory_space<vmem>>, %arg7: memref<1x128xf32, #tpu.memory_space<vmem>>, %arg8: memref<16x128xbf16, #tpu.memory_space<vmem>>) attributes {dimension_semantics = [#tpu.dimension_semantics<parallel>], iteration_bounds = array<i64: 2>, scalar_prefetch = 0 : i64, scratch_operands = 0 : i64, tpu.core_type = #tpu.core_type<tc>, window_params = [{transform_indices = @transform_0, window_bounds = array<i64: 16, 256>}, {transform_indices = @transform_1, window_bounds = array<i64: 16, 128>}, {pipeline_mode = #tpu.pipeline_mode<synchronous>, transform_indices = @transform_2, window_bounds = array<i64: 256, 256>}, {pipeline_mode = #tpu.pipeline_mode<synchronous>, transform_indices = @transform_3, window_bounds = array<i64: 128, 256>}, {pipeline_mode = #tpu.pipeline_mode<synchronous>, transform_indices = @transform_4, window_bounds = array<i64: 1, 256>}, {pipeline_mode = #tpu.pipeline_mode<synchronous>, transform_indices = @transform_5, window_bounds = array<i64: 256, 128>}, {pipeline_mode = #tpu.pipeline_mode<synchronous>, transform_indices = @transform_6, window_bounds = array<i64: 1, 128>}, {transform_indices = @transform_7, window_bounds = array<i64: 16, 128>}]} {
    %c0 = arith.constant 0 : index
    %c0_0 = arith.constant 0 : index
    %0 = vector.load %arg1[%c0, %c0_0] : memref<16x256xbf16, #tpu.memory_space<vmem>>, vector<16x256xbf16>
    %c0_1 = arith.constant 0 : index
    %c0_2 = arith.constant 0 : index
    %1 = vector.load %arg3[%c0_1, %c0_2] : memref<256x256xbf16, #tpu.memory_space<vmem>>, vector<256x256xbf16>
    %cst = arith.constant dense<0.000000e+00> : vector<16x256xf32>
    %2 = tpu.matmul %0, %1, %cst {dimension_numbers = #tpu.dot_dimension_numbers<[1], [0], [0], [1], [0, 0, 1, 1], [], []>} : vector<16x256xbf16>, vector<256x256xbf16>, vector<16x256xf32> -> vector<16x256xf32>
    %c0_3 = arith.constant 0 : index
    %c0_4 = arith.constant 0 : index
    %3 = vector.load %arg2[%c0_3, %c0_4] : memref<16x128xbf16, #tpu.memory_space<vmem>>, vector<16x128xbf16>
    %c0_5 = arith.constant 0 : index
    %c0_6 = arith.constant 0 : index
    %4 = vector.load %arg4[%c0_5, %c0_6] : memref<128x256xbf16, #tpu.memory_space<vmem>>, vector<128x256xbf16>
    %cst_7 = arith.constant dense<0.000000e+00> : vector<16x256xf32>
    %5 = tpu.matmul %3, %4, %cst_7 {dimension_numbers = #tpu.dot_dimension_numbers<[1], [0], [0], [1], [0, 0, 1, 1], [], []>} : vector<16x128xbf16>, vector<128x256xbf16>, vector<16x256xf32> -> vector<16x256xf32>
    %6 = arith.addf %2, %5 : vector<16x256xf32>
    %c0_8 = arith.constant 0 : index
    %c0_9 = arith.constant 0 : index
    %7 = vector.load %arg5[%c0_8, %c0_9] : memref<1x256xf32, #tpu.memory_space<vmem>>, vector<1x256xf32>
    %8 = vector.broadcast %7 : vector<1x256xf32> to vector<16x256xf32>
    %9 = arith.addf %6, %8 : vector<16x256xf32>
    %cst_10 = arith.constant 0.000000e+00 : f32
    %10 = vector.broadcast %cst_10 : f32 to vector<16x256xf32>
    %11 = arith.maximumf %9, %10 : vector<16x256xf32>
    %12 = arith.truncf %11 : vector<16x256xf32> to vector<16x256xbf16>
    %c0_11 = arith.constant 0 : index
    %c0_12 = arith.constant 0 : index
    %13 = vector.load %arg6[%c0_11, %c0_12] : memref<256x128xbf16, #tpu.memory_space<vmem>>, vector<256x128xbf16>
    %cst_13 = arith.constant dense<0.000000e+00> : vector<16x128xf32>
    %14 = tpu.matmul %12, %13, %cst_13 {dimension_numbers = #tpu.dot_dimension_numbers<[1], [0], [0], [1], [0, 0, 1, 1], [], []>} : vector<16x256xbf16>, vector<256x128xbf16>, vector<16x128xf32> -> vector<16x128xf32>
    %c0_14 = arith.constant 0 : index
    %c0_15 = arith.constant 0 : index
    %15 = vector.load %arg7[%c0_14, %c0_15] : memref<1x128xf32, #tpu.memory_space<vmem>>, vector<1x128xf32>
    %16 = vector.broadcast %15 : vector<1x128xf32> to vector<16x128xf32>
    %17 = arith.addf %14, %16 : vector<16x128xf32>
    %18 = arith.truncf %17 : vector<16x128xf32> to vector<16x128xbf16>
    %c0_16 = arith.constant 0 : index
    %c0_17 = arith.constant 0 : index
    %19 = vector.load %arg8[%c0_16, %c0_17] : memref<16x128xbf16, #tpu.memory_space<vmem>>, vector<16x128xbf16>
    tpu.vector_store %arg8[%c0_16, %c0_17], %18 {strides = array<i32>} : memref<16x128xbf16, #tpu.memory_space<vmem>>, vector<16x128xbf16>,
    return
  }
  func.func @transform_0(%arg0: i32) -> (i32, i32) {
    %c0_i32 = arith.constant 0 : i32
    %c0_i32_0 = arith.constant 0 : i32
    return %arg0, %c0_i32 : i32, i32
  }
  func.func @transform_1(%arg0: i32) -> (i32, i32) {
    %c0_i32 = arith.constant 0 : i32
    %c0_i32_0 = arith.constant 0 : i32
    return %arg0, %c0_i32 : i32, i32
  }
  func.func @transform_2(%arg0: i32) -> (i32, i32) {
    %c0_i32 = arith.constant 0 : i32
    %c0_i32_0 = arith.constant 0 : i32
    %c0_i32_1 = arith.constant 0 : i32
    return %c0_i32, %c0_i32_0 : i32, i32
  }
  func.func @transform_3(%arg0: i32) -> (i32, i32) {
    %c0_i32 = arith.constant 0 : i32
    %c0_i32_0 = arith.constant 0 : i32
    %c0_i32_1 = arith.constant 0 : i32
    return %c0_i32, %c0_i32_0 : i32, i32
  }
  func.func @transform_4(%arg0: i32) -> (i32, i32) {
    %c0_i32 = arith.constant 0 : i32
    %c0_i32_0 = arith.constant 0 : i32
    %c0_i32_1 = arith.constant 0 : i32
    return %c0_i32, %c0_i32_0 : i32, i32
  }
  func.func @transform_5(%arg0: i32) -> (i32, i32) {
    %c0_i32 = arith.constant 0 : i32
    %c0_i32_0 = arith.constant 0 : i32
    %c0_i32_1 = arith.constant 0 : i32
    return %c0_i32, %c0_i32_0 : i32, i32
  }
  func.func @transform_6(%arg0: i32) -> (i32, i32) {
    %c0_i32 = arith.constant 0 : i32
    %c0_i32_0 = arith.constant 0 : i32
    %c0_i32_1 = arith.constant 0 : i32
    return %c0_i32, %c0_i32_0 : i32, i32
  }
  func.func @transform_7(%arg0: i32) -> (i32, i32) {
    %c0_i32 = arith.constant 0 : i32
    %c0_i32_0 = arith.constant 0 : i32
    return %arg0, %c0_i32 : i32, i32
  }
}

module attributes {stable_mosaic.version = 11 : i64} {
  func.func @_fused_mlp_kernel(%arg0: i32, %arg1: memref<64x136xbf16, #tpu.memory_space<vmem>>, %arg2: memref<136x128xbf16, #tpu.memory_space<vmem>>, %arg3: memref<1x128xf32, #tpu.memory_space<vmem>>, %arg4: memref<128x128xbf16, #tpu.memory_space<vmem>>, %arg5: memref<1x128xf32, #tpu.memory_space<vmem>>, %arg6: memref<128x128xbf16, #tpu.memory_space<vmem>>, %arg7: memref<1x128xf32, #tpu.memory_space<vmem>>, %arg8: memref<128x128xbf16, #tpu.memory_space<vmem>>, %arg9: memref<1x128xf32, #tpu.memory_space<vmem>>, %arg10: memref<128x128xbf16, #tpu.memory_space<vmem>>, %arg11: memref<1x128xf32, #tpu.memory_space<vmem>>, %arg12: memref<128x128xbf16, #tpu.memory_space<vmem>>, %arg13: memref<1x128xf32, #tpu.memory_space<vmem>>, %arg14: memref<64x128xf32, #tpu.memory_space<vmem>>) attributes {dimension_semantics = [#tpu.dimension_semantics<parallel>], iteration_bounds = array<i64: 2>, scalar_prefetch = 0 : i64, scratch_operands = 0 : i64, tpu.core_type = #tpu.core_type<tc>, window_params = [{transform_indices = @transform_0, window_bounds = array<i64: 64, 136>}, {pipeline_mode = #tpu.pipeline_mode<synchronous>, transform_indices = @transform_1, window_bounds = array<i64: 136, 128>}, {pipeline_mode = #tpu.pipeline_mode<synchronous>, transform_indices = @transform_2, window_bounds = array<i64: 1, 128>}, {pipeline_mode = #tpu.pipeline_mode<synchronous>, transform_indices = @transform_3, window_bounds = array<i64: 128, 128>}, {pipeline_mode = #tpu.pipeline_mode<synchronous>, transform_indices = @transform_4, window_bounds = array<i64: 1, 128>}, {pipeline_mode = #tpu.pipeline_mode<synchronous>, transform_indices = @transform_5, window_bounds = array<i64: 128, 128>}, {pipeline_mode = #tpu.pipeline_mode<synchronous>, transform_indices = @transform_6, window_bounds = array<i64: 1, 128>}, {pipeline_mode = #tpu.pipeline_mode<synchronous>, transform_indices = @transform_7, window_bounds = array<i64: 128, 128>}, {pipeline_mode = #tpu.pipeline_mode<synchronous>, transform_indices = @transform_8, window_bounds = array<i64: 1, 128>}, {pipeline_mode = #tpu.pipeline_mode<synchronous>, transform_indices = @transform_9, window_bounds = array<i64: 128, 128>}, {pipeline_mode = #tpu.pipeline_mode<synchronous>, transform_indices = @transform_10, window_bounds = array<i64: 1, 128>}, {pipeline_mode = #tpu.pipeline_mode<synchronous>, transform_indices = @transform_11, window_bounds = array<i64: 128, 128>}, {pipeline_mode = #tpu.pipeline_mode<synchronous>, transform_indices = @transform_12, window_bounds = array<i64: 1, 128>}, {transform_indices = @transform_13, window_bounds = array<i64: 64, 128>}]} {
    %c0 = arith.constant 0 : index
    %c0_0 = arith.constant 0 : index
    %0 = vector.load %arg1[%c0, %c0_0] : memref<64x136xbf16, #tpu.memory_space<vmem>>, vector<64x136xbf16>
    %c0_1 = arith.constant 0 : index
    %c0_2 = arith.constant 0 : index
    %1 = vector.load %arg2[%c0_1, %c0_2] : memref<136x128xbf16, #tpu.memory_space<vmem>>, vector<136x128xbf16>
    %cst = arith.constant dense<0.000000e+00> : vector<64x128xf32>
    %2 = tpu.matmul %0, %1, %cst {dimension_numbers = #tpu.dot_dimension_numbers<[1], [0], [0], [1], [0, 0, 1, 1], [], []>} : vector<64x136xbf16>, vector<136x128xbf16>, vector<64x128xf32> -> vector<64x128xf32>
    %c0_3 = arith.constant 0 : index
    %c0_4 = arith.constant 0 : index
    %3 = vector.load %arg3[%c0_3, %c0_4] : memref<1x128xf32, #tpu.memory_space<vmem>>, vector<1x128xf32>
    %4 = vector.broadcast %3 : vector<1x128xf32> to vector<64x128xf32>
    %5 = arith.addf %2, %4 : vector<64x128xf32>
    %cst_5 = arith.constant 0.000000e+00 : f32
    %6 = vector.broadcast %cst_5 : f32 to vector<64x128xf32>
    %7 = arith.maximumf %5, %6 : vector<64x128xf32>
    %8 = arith.truncf %7 : vector<64x128xf32> to vector<64x128xbf16>
    %c0_6 = arith.constant 0 : index
    %c0_7 = arith.constant 0 : index
    %9 = vector.load %arg4[%c0_6, %c0_7] : memref<128x128xbf16, #tpu.memory_space<vmem>>, vector<128x128xbf16>
    %cst_8 = arith.constant dense<0.000000e+00> : vector<64x128xf32>
    %10 = tpu.matmul %8, %9, %cst_8 {dimension_numbers = #tpu.dot_dimension_numbers<[1], [0], [0], [1], [0, 0, 1, 1], [], []>} : vector<64x128xbf16>, vector<128x128xbf16>, vector<64x128xf32> -> vector<64x128xf32>
    %c0_9 = arith.constant 0 : index
    %c0_10 = arith.constant 0 : index
    %11 = vector.load %arg5[%c0_9, %c0_10] : memref<1x128xf32, #tpu.memory_space<vmem>>, vector<1x128xf32>
    %12 = vector.broadcast %11 : vector<1x128xf32> to vector<64x128xf32>
    %13 = arith.addf %10, %12 : vector<64x128xf32>
    %cst_11 = arith.constant 0.000000e+00 : f32
    %14 = vector.broadcast %cst_11 : f32 to vector<64x128xf32>
    %15 = arith.maximumf %13, %14 : vector<64x128xf32>
    %16 = arith.truncf %15 : vector<64x128xf32> to vector<64x128xbf16>
    %c0_12 = arith.constant 0 : index
    %c0_13 = arith.constant 0 : index
    %17 = vector.load %arg6[%c0_12, %c0_13] : memref<128x128xbf16, #tpu.memory_space<vmem>>, vector<128x128xbf16>
    %cst_14 = arith.constant dense<0.000000e+00> : vector<64x128xf32>
    %18 = tpu.matmul %16, %17, %cst_14 {dimension_numbers = #tpu.dot_dimension_numbers<[1], [0], [0], [1], [0, 0, 1, 1], [], []>} : vector<64x128xbf16>, vector<128x128xbf16>, vector<64x128xf32> -> vector<64x128xf32>
    %c0_15 = arith.constant 0 : index
    %c0_16 = arith.constant 0 : index
    %19 = vector.load %arg7[%c0_15, %c0_16] : memref<1x128xf32, #tpu.memory_space<vmem>>, vector<1x128xf32>
    %20 = vector.broadcast %19 : vector<1x128xf32> to vector<64x128xf32>
    %21 = arith.addf %18, %20 : vector<64x128xf32>
    %22 = arith.truncf %21 : vector<64x128xf32> to vector<64x128xbf16>
    %c0_17 = arith.constant 0 : index
    %c0_18 = arith.constant 0 : index
    %23 = vector.load %arg8[%c0_17, %c0_18] : memref<128x128xbf16, #tpu.memory_space<vmem>>, vector<128x128xbf16>
    %cst_19 = arith.constant dense<0.000000e+00> : vector<64x128xf32>
    %24 = tpu.matmul %22, %23, %cst_19 {dimension_numbers = #tpu.dot_dimension_numbers<[1], [0], [0], [1], [0, 0, 1, 1], [], []>} : vector<64x128xbf16>, vector<128x128xbf16>, vector<64x128xf32> -> vector<64x128xf32>
    %c0_20 = arith.constant 0 : index
    %c0_21 = arith.constant 0 : index
    %25 = vector.load %arg9[%c0_20, %c0_21] : memref<1x128xf32, #tpu.memory_space<vmem>>, vector<1x128xf32>
    %26 = vector.broadcast %25 : vector<1x128xf32> to vector<64x128xf32>
    %27 = arith.addf %24, %26 : vector<64x128xf32>
    %cst_22 = arith.constant 0.000000e+00 : f32
    %28 = vector.broadcast %cst_22 : f32 to vector<64x128xf32>
    %29 = arith.maximumf %27, %28 : vector<64x128xf32>
    %30 = arith.truncf %29 : vector<64x128xf32> to vector<64x128xbf16>
    %c0_23 = arith.constant 0 : index
    %c0_24 = arith.constant 0 : index
    %31 = vector.load %arg10[%c0_23, %c0_24] : memref<128x128xbf16, #tpu.memory_space<vmem>>, vector<128x128xbf16>
    %cst_25 = arith.constant dense<0.000000e+00> : vector<64x128xf32>
    %32 = tpu.matmul %30, %31, %cst_25 {dimension_numbers = #tpu.dot_dimension_numbers<[1], [0], [0], [1], [0, 0, 1, 1], [], []>} : vector<64x128xbf16>, vector<128x128xbf16>, vector<64x128xf32> -> vector<64x128xf32>
    %c0_26 = arith.constant 0 : index
    %c0_27 = arith.constant 0 : index
    %33 = vector.load %arg11[%c0_26, %c0_27] : memref<1x128xf32, #tpu.memory_space<vmem>>, vector<1x128xf32>
    %34 = vector.broadcast %33 : vector<1x128xf32> to vector<64x128xf32>
    %35 = arith.addf %32, %34 : vector<64x128xf32>
    %cst_28 = arith.constant 0.000000e+00 : f32
    %36 = vector.broadcast %cst_28 : f32 to vector<64x128xf32>
    %37 = arith.maximumf %35, %36 : vector<64x128xf32>
    %38 = arith.truncf %37 : vector<64x128xf32> to vector<64x128xbf16>
    %c0_29 = arith.constant 0 : index
    %c0_30 = arith.constant 0 : index
    %39 = vector.load %arg12[%c0_29, %c0_30] : memref<128x128xbf16, #tpu.memory_space<vmem>>, vector<128x128xbf16>
    %cst_31 = arith.constant dense<0.000000e+00> : vector<64x128xf32>
    %40 = tpu.matmul %38, %39, %cst_31 {dimension_numbers = #tpu.dot_dimension_numbers<[1], [0], [0], [1], [0, 0, 1, 1], [], []>} : vector<64x128xbf16>, vector<128x128xbf16>, vector<64x128xf32> -> vector<64x128xf32>
    %c0_32 = arith.constant 0 : index
    %c0_33 = arith.constant 0 : index
    %41 = vector.load %arg13[%c0_32, %c0_33] : memref<1x128xf32, #tpu.memory_space<vmem>>, vector<1x128xf32>
    %42 = vector.broadcast %41 : vector<1x128xf32> to vector<64x128xf32>
    %43 = arith.addf %40, %42 : vector<64x128xf32>
    %44 = tpu.iota {dimensions = array<i32: 1>} : vector<64x128xi32>
    %c6_i32 = arith.constant 6 : i32
    %45 = vector.broadcast %c6_i32 : i32 to vector<64x128xi32>
    %46 = arith.cmpi slt, %44, %45 : vector<64x128xi32>
    %cst_34 = arith.constant -1.000000e+30 : f32
    %47 = vector.broadcast %cst_34 : f32 to vector<64x128xf32>
    %48 = arith.select %46, %43, %47 : vector<64x128xi1>, vector<64x128xf32>
    %cst_35 = arith.constant dense<0xFF800000> : vector<64xf32>
    %49 = vector.multi_reduction <maximumf>, %48, %cst_35 [1] : vector<64x128xf32> to vector<64xf32>
    %50 = vector.shape_cast %49 : vector<64xf32> to vector<64x1xf32>
    %51 = vector.broadcast %50 : vector<64x1xf32> to vector<64x128xf32>
    %52 = arith.subf %48, %51 : vector<64x128xf32>
    %53 = math.exp %52 : vector<64x128xf32>
    %cst_36 = arith.constant dense<0.000000e+00> : vector<64xf32>
    %54 = vector.multi_reduction <add>, %53, %cst_36 [1] : vector<64x128xf32> to vector<64xf32>
    %55 = vector.shape_cast %54 : vector<64xf32> to vector<64x1xf32>
    %56 = math.log %55 : vector<64x1xf32>
    %57 = vector.broadcast %56 : vector<64x1xf32> to vector<64x128xf32>
    %58 = arith.subf %52, %57 : vector<64x128xf32>
    %c0_37 = arith.constant 0 : index
    %c0_38 = arith.constant 0 : index
    %59 = vector.load %arg14[%c0_37, %c0_38] : memref<64x128xf32, #tpu.memory_space<vmem>>, vector<64x128xf32>
    tpu.vector_store %arg14[%c0_37, %c0_38], %58 {strides = array<i32>} : memref<64x128xf32, #tpu.memory_space<vmem>>, vector<64x128xf32>,
    return
  }
  func.func @transform_0(%arg0: i32) -> (i32, i32) {
    %c0_i32 = arith.constant 0 : i32
    %c0_i32_0 = arith.constant 0 : i32
    return %arg0, %c0_i32 : i32, i32
  }
  func.func @transform_1(%arg0: i32) -> (i32, i32) {
    %c0_i32 = arith.constant 0 : i32
    %c0_i32_0 = arith.constant 0 : i32
    %c0_i32_1 = arith.constant 0 : i32
    return %c0_i32, %c0_i32_0 : i32, i32
  }
  func.func @transform_2(%arg0: i32) -> (i32, i32) {
    %c0_i32 = arith.constant 0 : i32
    %c0_i32_0 = arith.constant 0 : i32
    %c0_i32_1 = arith.constant 0 : i32
    return %c0_i32, %c0_i32_0 : i32, i32
  }
  func.func @transform_3(%arg0: i32) -> (i32, i32) {
    %c0_i32 = arith.constant 0 : i32
    %c0_i32_0 = arith.constant 0 : i32
    %c0_i32_1 = arith.constant 0 : i32
    return %c0_i32, %c0_i32_0 : i32, i32
  }
  func.func @transform_4(%arg0: i32) -> (i32, i32) {
    %c0_i32 = arith.constant 0 : i32
    %c0_i32_0 = arith.constant 0 : i32
    %c0_i32_1 = arith.constant 0 : i32
    return %c0_i32, %c0_i32_0 : i32, i32
  }
  func.func @transform_5(%arg0: i32) -> (i32, i32) {
    %c0_i32 = arith.constant 0 : i32
    %c0_i32_0 = arith.constant 0 : i32
    %c0_i32_1 = arith.constant 0 : i32
    return %c0_i32, %c0_i32_0 : i32, i32
  }
  func.func @transform_6(%arg0: i32) -> (i32, i32) {
    %c0_i32 = arith.constant 0 : i32
    %c0_i32_0 = arith.constant 0 : i32
    %c0_i32_1 = arith.constant 0 : i32
    return %c0_i32, %c0_i32_0 : i32, i32
  }
  func.func @transform_7(%arg0: i32) -> (i32, i32) {
    %c0_i32 = arith.constant 0 : i32
    %c0_i32_0 = arith.constant 0 : i32
    %c0_i32_1 = arith.constant 0 : i32
    return %c0_i32, %c0_i32_0 : i32, i32
  }
  func.func @transform_8(%arg0: i32) -> (i32, i32) {
    %c0_i32 = arith.constant 0 : i32
    %c0_i32_0 = arith.constant 0 : i32
    %c0_i32_1 = arith.constant 0 : i32
    return %c0_i32, %c0_i32_0 : i32, i32
  }
  func.func @transform_9(%arg0: i32) -> (i32, i32) {
    %c0_i32 = arith.constant 0 : i32
    %c0_i32_0 = arith.constant 0 : i32
    %c0_i32_1 = arith.constant 0 : i32
    return %c0_i32, %c0_i32_0 : i32, i32
  }
  func.func @transform_10(%arg0: i32) -> (i32, i32) {
    %c0_i32 = arith.constant 0 : i32
    %c0_i32_0 = arith.constant 0 : i32
    %c0_i32_1 = arith.constant 0 : i32
    return %c0_i32, %c0_i32_0 : i32, i32
  }
  func.func @transform_11(%arg0: i32) -> (i32, i32) {
    %c0_i32 = arith.constant 0 : i32
    %c0_i32_0 = arith.constant 0 : i32
    %c0_i32_1 = arith.constant 0 : i32
    return %c0_i32, %c0_i32_0 : i32, i32
  }
  func.func @transform_12(%arg0: i32) -> (i32, i32) {
    %c0_i32 = arith.constant 0 : i32
    %c0_i32_0 = arith.constant 0 : i32
    %c0_i32_1 = arith.constant 0 : i32
    return %c0_i32, %c0_i32_0 : i32, i32
  }
  func.func @transform_13(%arg0: i32) -> (i32, i32) {
    %c0_i32 = arith.constant 0 : i32
    %c0_i32_0 = arith.constant 0 : i32
    return %arg0, %c0_i32 : i32, i32
  }
}

</mosaic_0001>

<bundles_post_ra>
// kernel: custom-call.22
= control target key start
LH: loop header
LB: loop body
LE: loop exit
PB: predicated region body
PF: predicated region fallthrough
CT: control target
= control target key end

     0   :  { %s6_s0 = inlined_call_operand.vmem [shape: f32[2,64], index: 0, kind: output, shape index: {}]  }

// kernel: custom-call.23
= control target key start
LH: loop header
LB: loop body
LE: loop exit
PB: predicated region body
PF: predicated region fallthrough
CT: control target
= control target key end

     0   :  { %s6_s0 = inlined_call_operand.vmem [shape: f32[2,13], index: 0, kind: output, shape index: {}]  }

// kernel: pn2_forward.6
= control target key start
LH: loop header
LB: loop body
LE: loop exit
PB: predicated region body
PF: predicated region fallthrough
CT: control target
= control target key end

     0   :  { %s4430_s24 = smov 0   ;;  %s5145_s0 = inlined_call_operand.vmem [shape: bf16[2048,16], index: 0, kind: input, shape index: {}]   ;;  %s5146_s1 = inlined_call_operand.vmem [shape: bf16[16,128], index: 1, kind: input, shape index: {}]   ;;  %s5147_s2 = inlined_call_operand.vmem [shape: f32[1,128], index: 2, kind: input, shape index: {}]   ;;  %s5148_s3 = inlined_call_operand.vmem [shape: bf16[128,128], index: 3, kind: input, shape index: {}]   ;;  %s5149_s4 = inlined_call_operand.vmem [shape: f32[1,128], index: 4, kind: input, shape index: {}]   ;;  %s5150_s5 = inlined_call_operand.vmem [shape: bf16[128,128], index: 5, kind: input, shape index: {}]   ;;  %s5151_s6 = inlined_call_operand.vmem [shape: f32[1,128], index: 6, kind: input, shape index: {}]   ;;  %s5152_s7 = inlined_call_operand.vmem [shape: bf16[32,128], index: 7, kind: output, shape index: {}]  }
   0x1 LB: > { %s3471_s25 = sadd.s32 4294967295, %s4388_s24   ;;  %p3475_p0 = scmp.ge.s32.totalorder %s4388_s24, 1  ;;  %s4388_s24 = sphi %s4430_s24, %s17_s24  }
   0x2   : > { %p238_p1 = scmp.lt.s32.totalorder %s4388_s24, 3 }
   0x4   : > { %p239_p2 = pnand %p3475_p0, %p238_p1 }
   0x5   : > { %v4299_v0 = vld [vmem:[%s5146_s1] sm:$0xff] (!%p239_p2)   ;;  %s3476_s28 = sshll.u32 (!%p239_p2), %s3471_s25, 7  ;;  %vm746_vm0 = vcmask (!%p239_p2), 130048   ;;  %v4335_v11 = vld [vmem:[%s5148_s3 + $0x8] sm:$0xff] (!%p239_p2)   ;;  %v4344_v14 = vld [vmem:[%s5148_s3 + $0x10] sm:$0xff] (!%p239_p2)   ;;  %vm3388_vm1 = vcmask (!%p239_p2), 1041409  }
   0x6   : > { %242 = sbr.rel (%p239_p2) target bundleno = 953 (0x3b9), region = 48  ;;  %p271_p3 = scmp.lt.s32.totalorder (!%p239_p2), %s3476_s28, 255  ;;  %3871 = vmatprep.subr.bf16.mxu0 (!%p239_p2), %v4299_v0  ;;  %4289 = vmatprep.subr.bf16.mxu1 (!%p239_p2), %v4299_v0  ;;  %v4326_v1 = vld [vmem:[%s5148_s3] sm:$0xff] (!%p239_p2)   ;;  %v4349_v20 = vld [vmem:[%s5148_s3 + $0x18] sm:$0xff] (!%p239_p2)   ;;  %v4359_v32 = vld [vmem:[%s5148_s3 + $0x28] sm:$0xff] (!%p239_p2)   ;;  %vm3390_vm2 = vcmask (!%p239_p2), 1042434  }
   0x7   : > { %3872 = vmatpush3.bf16.msra.mxu0 (!%p239_p2), %v4299_v0  ;;  %4290 = vmatpush3.bf16.msra.mxu1 (!%p239_p2), %v4299_v0  ;;  %v4354_v21 = vld [vmem:[%s5148_s3 + $0x20] sm:$0xff] (!%p239_p2)   ;;  %v4364_v35 = vld [vmem:[%s5148_s3 + $0x30] sm:$0xff] (!%p239_p2)   ;;  %v4369_v40 = vld [vmem:[%s5148_s3 + $0x38] sm:$0xff] (!%p239_p2)   ;;  %vm3392_vm3 = vcmask (!%p239_p2), 1043459   ;;  %vm3394_vm4 = vcmask (!%p239_p2), 1044484   ;;  %vm3396_vm5 = vcmask (!%p239_p2), 1045509  }
   0x8   : > { %4001 = vmatprep.subr.bf16.mxu1 (!%p239_p2), %v4326_v1  ;;  %vm3398_vm6 = vcmask (!%p239_p2), 1046534   ;;  %vm3400_vm7 = vcmask (!%p239_p2), 1047559  }
   0xd   : > { %s5154_s28 = smov (!%p271_p3, %s3476_s28), 255 }
   0xe   : > { %s3477_s8 = sshll.u32 %s5154_s28, 2 }
   0xf   : > { %s4449_s11 = scalar_lea.vmem %s5145_s0, %s3477_s8  ;;  %s3478_s8 = sshll.u32 %s3471_s25, 1 }
  0x10   : > { %v4300_v2 = vld [vmem:[%s4449_s11] sm:$0xff]   ;;  %v4301_v3 = vld [vmem:[%s4449_s11 + $0x8] sm:$0xff]   ;;  %v4302_v4 = vld [vmem:[%s4449_s11 + $0x10] sm:$0xff]   ;;  %p277_p4 = scmp.lt.s32.totalorder %s3478_s8, 3 }
  0x11   : > { %3873 = vmatprep.mubr.msk.bf16.mxu0 %vm746_vm0, %v4300_v2  ;;  %v4303_v5 = vld [vmem:[%s4449_s11 + $0x18] sm:$0xff]   ;;  %v4304_v6 = vld [vmem:[%s4449_s11 + $0x20] sm:$0xff]   ;;  %v4305_v7 = vld [vmem:[%s4449_s11 + $0x28] sm:$0xff]  }
  0x12   : > { %3874 = vmatmul.mubr.msk.bf16.vlgmr.msra.gmra.mrb[0].mxu0 %vm746_vm0, %v4301_v3  ;;  %v4306_v8 = vld [vmem:[%s4449_s11 + $0x30] sm:$0xff]   ;;  %v4307_v9 = vld [vmem:[%s4449_s11 + $0x38] sm:$0xff]   ;;  %v4308_v10 = vld [vmem:[%s4449_s11 + $0x40] sm:$0xff]   ;;  %s5156_s8 = smov (!%p277_p4, %s3478_s8), 3 }
  0x13   : > { %3877 = vmatprep.mubr.msk.bf16.mxu0 %vm746_vm0, %v4302_v4  ;;  %v4324_v12 = vld [vmem:[%s4449_s11 + $0x100] sm:$0xff]   ;;  %v4325_v13 = vld [vmem:[%s4449_s11 + $0x108] sm:$0xff]   ;;  %v4329_v15 = vld [vmem:[%s4449_s11 + $0x110] sm:$0xff]   ;;  %s3479_s25 = sshll.u32 %s5156_s8, 2 }
  0x14   : > { %3937 = vmatprep.mubr.msk.bf16.mxu1 %vm746_vm0, %v4324_v12  ;;  %v4309_v16 = vld [vmem:[%s4449_s11 + $0x48] sm:$0xff]   ;;  %v4310_v17 = vld [vmem:[%s4449_s11 + $0x50] sm:$0xff]   ;;  %v4330_v18 = vld [vmem:[%s4449_s11 + $0x118] sm:$0xff]  }
  0x15   : > { %3938 = vmatmul.mubr.msk.bf16.vlgmr.msra.gmra.mrb[0].mxu1 %vm746_vm0, %v4325_v13  ;;  %v4333_v19 = vld [vmem:[%s4449_s11 + $0x120] sm:$0xff]   ;;  %v4311_v22 = vld [vmem:[%s4449_s11 + $0x58] sm:$0xff]   ;;  %v4334_v24 = vld [vmem:[%s4449_s11 + $0x128] sm:$0xff]  }
  0x16   : > { %4002 = vmatpush3.bf16.msra.mxu1 %v4326_v1  ;;  %3941 = vmatprep.mubr.msk.bf16.mxu1 %vm746_vm0, %v4329_v15  ;;  %v4312_v23 = vld [vmem:[%s4449_s11 + $0x60] sm:$0xff]   ;;  %v4338_v25 = vld [vmem:[%s4449_s11 + $0x130] sm:$0xff]   ;;  %v4313_v26 = vld [vmem:[%s4449_s11 + $0x68] sm:$0xff]  }
  0x17   : > { %4003 = vmatprep.subr.bf16.mxu1 %v4335_v11  ;;  %v4314_v27 = vld [vmem:[%s4449_s11 + $0x70] sm:$0xff]   ;;  %v4339_v28 = vld [vmem:[%s4449_s11 + $0x138] sm:$0xff]   ;;  %v4342_v29 = vld [vmem:[%s4449_s11 + $0x140] sm:$0xff]  }
  0x18   : > { %v4315_v30 = vld [vmem:[%s4449_s11 + $0x78] sm:$0xff]   ;;  %v4316_v31 = vld [vmem:[%s4449_s11 + $0x80] sm:$0xff]   ;;  %v4343_v33 = vld [vmem:[%s4449_s11 + $0x148] sm:$0xff]  }
  0x19   : > { %v4345_v34 = vld [vmem:[%s4449_s11 + $0x150] sm:$0xff]   ;;  %v4317_v36 = vld [vmem:[%s4449_s11 + $0x88] sm:$0xff]   ;;  %v4346_v38 = vld [vmem:[%s4449_s11 + $0x158] sm:$0xff]  }
  0x1a   : > { %3878 = vmatmul.mubr.msk.bf16.gmra.mrb[4].mxu0 %vm746_vm0, %v4303_v5  ;;  %4004 = vmatpush3.bf16.msra.mxu1 %v4335_v11  ;;  %v4318_v37 = vld [vmem:[%s4449_s11 + $0x90] sm:$0xff]   ;;  %v4347_v39 = vld [vmem:[%s4449_s11 + $0x160] sm:$0xff]   ;;  %v4319_v41 = vld [vmem:[%s4449_s11 + $0x98] sm:$0xff]  }
  0x1b   : > { %3881 = vmatprep.mubr.msk.bf16.mxu0 %vm746_vm0, %v4304_v6  ;;  %4005 = vmatprep.subr.bf16.mxu1 %v4344_v14  ;;  %v4348_v42 = vld [vmem:[%s4449_s11 + $0x168] sm:$0xff]   ;;  %v4320_v43 = vld [vmem:[%s4449_s11 + $0xa0] sm:$0xff]   ;;  %v4350_v44 = vld [vmem:[%s4449_s11 + $0x170] sm:$0xff]  }
  0x1c   : > { %v4321_v45 = vld [vmem:[%s4449_s11 + $0xa8] sm:$0xff]   ;;  %v4351_v46 = vld [vmem:[%s4449_s11 + $0x178] sm:$0xff]   ;;  %v4322_v47 = vld [vmem:[%s4449_s11 + $0xb0] sm:$0xff]  }
  0x1d   : > { %3942 = vmatmul.mubr.msk.bf16.gmra.mrb[4].mxu1 %vm746_vm0, %v4330_v18  ;;  %v4352_v48 = vld [vmem:[%s4449_s11 + $0x180] sm:$0xff]   ;;  %v4323_v49 = vld [vmem:[%s4449_s11 + $0xb8] sm:$0xff]   ;;  %v4353_v50 = vld [vmem:[%s4449_s11 + $0x188] sm:$0xff]  }
  0x1e   : > { %3945 = vmatprep.mubr.msk.bf16.mxu1 %vm746_vm0, %v4333_v19  ;;  %4006 = vmatpush3.bf16.msra.mxu1 %v4344_v14  ;;  %v4327_v51 = vld [vmem:[%s4449_s11 + $0xc0] sm:$0xff]   ;;  %v4355_v52 = vld [vmem:[%s4449_s11 + $0x190] sm:$0xff]   ;;  %v4328_v53 = vld [vmem:[%s4449_s11 + $0xc8] sm:$0xff]  }
  0x1f   : > { %4007 = vmatprep.subr.bf16.mxu1 %v4349_v20  ;;  %v4356_v54 = vld [vmem:[%s4449_s11 + $0x198] sm:$0xff]   ;;  %v4331_v55 = vld [vmem:[%s4449_s11 + $0xd0] sm:$0xff]   ;;  %v4357_v56 = vld [vmem:[%s4449_s11 + $0x1a0] sm:$0xff]  }
  0x20   : > { %v4332_v57 = vld [vmem:[%s4449_s11 + $0xd8] sm:$0xff]   ;;  %v4358_v58 = vld [vmem:[%s4449_s11 + $0x1a8] sm:$0xff]   ;;  %v4336_v59 = vld [vmem:[%s4449_s11 + $0xe0] sm:$0xff]  }
  0x21   : > { %v4360_v60 = vld [vmem:[%s4449_s11 + $0x1b0] sm:$0xff]   ;;  %v4337_v61 = vld [vmem:[%s4449_s11 + $0xe8] sm:$0xff]   ;;  %v4361_v62 = vld [vmem:[%s4449_s11 + $0x1b8] sm:$0xff]  }
  0x22   : > { %3882 = vmatmul.mubr.msk.bf16.gmra.mrb[8].mxu0 %vm746_vm0, %v4305_v7  ;;  %4008 = vmatpush3.bf16.msra.mxu1 %v4349_v20  ;;  %v4340_v63 = vld [vmem:[%s4449_s11 + $0xf0] sm:$0xff]   ;;  %v4362_v0 = vld [vmem:[%s4449_s11 + $0x1c0] sm:$0xff]   ;;  %v4341_v1 = vld [vmem:[%s4449_s11 + $0xf8] sm:$0xff]  }
  0x23   : > { %3885 = vmatprep.mubr.msk.bf16.mxu0 %vm746_vm0, %v4306_v8  ;;  %4009 = vmatprep.subr.bf16.mxu1 %v4354_v21  ;;  %v4363_v2 = vld [vmem:[%s4449_s11 + $0x1c8] sm:$0xff]   ;;  %v4365_v3 = vld [vmem:[%s4449_s11 + $0x1d0] sm:$0xff]   ;;  %v4366_v4 = vld [vmem:[%s4449_s11 + $0x1d8] sm:$0xff]  }
  0x24   : > { %v4367_v5 = vld [vmem:[%s4449_s11 + $0x1e0] sm:$0xff]   ;;  %v4368_v6 = vld [vmem:[%s4449_s11 + $0x1e8] sm:$0xff]   ;;  %v4370_v7 = vld [vmem:[%s4449_s11 + $0x1f0] sm:$0xff]  }
  0x25   : > { %3946 = vmatmul.mubr.msk.bf16.gmra.mrb[8].mxu1 %vm746_vm0, %v4334_v24  ;;  %v4371_v8 = vld [vmem:[%s4449_s11 + $0x1f8] sm:$0xff]   ;;  %v4609_v11 = vld [vmem:[%s5147_s2] ss:$0 sm:$0xff]  ;;  %v4374_v20 = vld [vmem:[%s5150_s5 + $0x10] sm:$0xff]   ;;  %s5069_s11 = scalar_lea.vmem %s5152_s7, %s3479_s25 }
  0x26   : > { %3949 = vmatprep.mubr.msk.bf16.mxu1 %vm746_vm0, %v4338_v25  ;;  %4010 = vmatpush3.bf16.msra.mxu1 %v4354_v21 }
  0x27   : > { %4011 = vmatprep.subr.bf16.mxu1 %v4359_v32 }
  0x2a   : > { %3886 = vmatmul.mubr.msk.bf16.gmra.mrb[12].mxu0 %vm746_vm0, %v4307_v9  ;;  %4012 = vmatpush3.bf16.msra.mxu1 %v4359_v32  ;;  %v4372_v9 = vld [vmem:[%s5150_s5] sm:$0xff]  }
  0x2b   : > { %3889 = vmatprep.mubr.msk.bf16.mxu0 %vm746_vm0, %v4308_v10  ;;  %4013 = vmatprep.subr.bf16.mxu1 %v4364_v35  ;;  %v4373_v10 = vld [vmem:[%s5150_s5 + $0x8] sm:$0xff]  }
  0x2c   : > { %4145 = vmatprep.subr.bf16.mxu0 %v4372_v9 }
  0x2d   : > { %3950 = vmatmul.mubr.msk.bf16.gmra.mrb[12].mxu1 %vm746_vm0, %v4339_v28  ;;  %4146 = vmatpush3.bf16.msra.mxu0 %v4372_v9 }
  0x2e   : > { %3953 = vmatprep.mubr.msk.bf16.mxu1 %vm746_vm0, %v4342_v29  ;;  %4014 = vmatpush3.bf16.msra.mxu1 %v4364_v35 }
  0x2f   : > { %4015 = vmatprep.subr.bf16.mxu1 %v4369_v40  ;;  %4147 = vmatprep.subr.bf16.mxu0 %v4373_v10 }
  0x31   : > { %4148 = vmatpush3.bf16.msra.mxu0 %v4373_v10 }
  0x32   : > { %3890 = vmatmul.mubr.msk.bf16.gmra.mrb[16].mxu0 %vm746_vm0, %v4309_v16  ;;  %4016 = vmatpush3.bf16.msra.mxu1 %v4369_v40 }
  0x33   : > { %3893 = vmatprep.mubr.msk.bf16.mxu0 %vm746_vm0, %v4310_v17  ;;  %4149 = vmatprep.subr.bf16.mxu0 %v4374_v20 }
  0x35   : > { %3954 = vmatmul.mubr.msk.bf16.gmra.mrb[16].mxu1 %vm746_vm0, %v4343_v33  ;;  %4150 = vmatpush3.bf16.msra.mxu0 %v4374_v20 }
  0x36   : > { %3957 = vmatprep.mubr.msk.bf16.mxu1 %vm746_vm0, %v4345_v34 }
  0x3a   : > { %3894 = vmatmul.mubr.msk.bf16.gmra.mrb[20].mxu0 %vm746_vm0, %v4311_v22 }
  0x3b   : > { %3897 = vmatprep.mubr.msk.bf16.mxu0 %vm746_vm0, %v4312_v23 }
  0x3d   : > { %3958 = vmatmul.mubr.msk.bf16.gmra.mrb[20].mxu1 %vm746_vm0, %v4346_v38 }
  0x3e   : > { %3961 = vmatprep.mubr.msk.bf16.mxu1 %vm746_vm0, %v4347_v39 }
  0x42   : > { %3898 = vmatmul.mubr.msk.bf16.gmra.mrb[24].mxu0 %vm746_vm0, %v4313_v26 }
  0x43   : > { %3901 = vmatprep.mubr.msk.bf16.mxu0 %vm746_vm0, %v4314_v27 }
  0x45   : > { %3962 = vmatmul.mubr.msk.bf16.gmra.mrb[24].mxu1 %vm746_vm0, %v4348_v42 }
  0x46   : > { %3965 = vmatprep.mubr.msk.bf16.mxu1 %vm746_vm0, %v4350_v44 }
  0x4a   : > { %3902 = vmatmul.mubr.msk.bf16.gmra.mrb[28].mxu0 %vm746_vm0, %v4315_v30 }
  0x4b   : > { %3905 = vmatprep.mubr.msk.bf16.mxu0 %vm746_vm0, %v4316_v31 }
  0x4d   : > { %3966 = vmatmul.mubr.msk.bf16.gmra.mrb[28].mxu1 %vm746_vm0, %v4351_v46 }
  0x4e   : > { %3969 = vmatprep.mubr.msk.bf16.mxu1 %vm746_vm0, %v4352_v48 }
  0x52   : > { %3906 = vmatmul.mubr.msk.bf16.gmra.mrb[32].mxu0 %vm746_vm0, %v4317_v36 }
  0x53   : > { %3909 = vmatprep.mubr.msk.bf16.mxu0 %vm746_vm0, %v4318_v37 }
  0x55   : > { %3970 = vmatmul.mubr.msk.bf16.gmra.mrb[32].mxu1 %vm746_vm0, %v4353_v50 }
  0x56   : > { %3973 = vmatprep.mubr.msk.bf16.mxu1 %vm746_vm0, %v4355_v52 }
  0x5a   : > { %3910 = vmatmul.mubr.msk.bf16.gmra.mrb[36].mxu0 %vm746_vm0, %v4319_v41 }
  0x5b   : > { %3913 = vmatprep.mubr.msk.bf16.mxu0 %vm746_vm0, %v4320_v43 }
  0x5d   : > { %3974 = vmatmul.mubr.msk.bf16.gmra.mrb[36].mxu1 %vm746_vm0, %v4356_v54 }
  0x5e   : > { %3977 = vmatprep.mubr.msk.bf16.mxu1 %vm746_vm0, %v4357_v56 }
  0x62   : > { %3914 = vmatmul.mubr.msk.bf16.gmra.mrb[40].mxu0 %vm746_vm0, %v4321_v45 }
  0x63   : > { %3917 = vmatprep.mubr.msk.bf16.mxu0 %vm746_vm0, %v4322_v47 }
  0x65   : > { %3978 = vmatmul.mubr.msk.bf16.gmra.mrb[40].mxu1 %vm746_vm0, %v4358_v58 }
  0x66   : > { %3981 = vmatprep.mubr.msk.bf16.mxu1 %vm746_vm0, %v4360_v60 }
  0x6a   : > { %3918 = vmatmul.mubr.msk.bf16.gmra.mrb[44].mxu0 %vm746_vm0, %v4323_v49  ;;  %v4375_v49 = vld [vmem:[%s5150_s5 + $0x18] sm:$0xff]  }
  0x6b   : > { %3921 = vmatprep.mubr.msk.bf16.mxu0 %vm746_vm0, %v4327_v51  ;;  %4151 = vmatprep.subr.bf16.mxu0 %v4375_v49 }
  0x6c   : > { %4152 = vmatpush3.bf16.msra.mxu0 %v4375_v49 }
  0x6d   : > { %3982 = vmatmul.mubr.msk.bf16.gmra.mrb[44].mxu1 %vm746_vm0, %v4361_v62 }
  0x6e   : > { %3985 = vmatprep.mubr.msk.bf16.mxu1 %vm746_vm0, %v4362_v0 }
  0x72   : > { %3922 = vmatmul.mubr.msk.bf16.gmra.mrb[48].mxu0 %vm746_vm0, %v4328_v53 }
  0x73   : > { %3925 = vmatprep.mubr.msk.bf16.mxu0 %vm746_vm0, %v4331_v55 }
  0x75   : > { %3986 = vmatmul.mubr.msk.bf16.gmra.mrb[48].mxu1 %vm746_vm0, %v4363_v2 }
  0x76   : > { %3989 = vmatprep.mubr.msk.bf16.mxu1 %vm746_vm0, %v4365_v3 }
  0x7a   : > { %3926 = vmatmul.mubr.msk.bf16.gmra.mrb[52].mxu0 %vm746_vm0, %v4332_v57 }
  0x7b   : > { %3929 = vmatprep.mubr.msk.bf16.mxu0 %vm746_vm0, %v4336_v59 }
  0x7d   : > { %3990 = vmatmul.mubr.msk.bf16.gmra.mrb[52].mxu1 %vm746_vm0, %v4366_v4 }
  0x7e   : > { %3993 = vmatprep.mubr.msk.bf16.mxu1 %vm746_vm0, %v4367_v5 }
  0x82   : > { %3930 = vmatmul.mubr.msk.bf16.gmra.mrb[56].mxu0 %vm746_vm0, %v4337_v61 }
  0x83   : > { %3933 = vmatprep.mubr.msk.bf16.mxu0 %vm746_vm0, %v4340_v63 }
  0x85   : > { %3994 = vmatmul.mubr.msk.bf16.gmra.mrb[56].mxu1 %vm746_vm0, %v4368_v6 }
  0x86   : > { %3997 = vmatprep.mubr.msk.bf16.mxu1 %vm746_vm0, %v4370_v7 }
  0x8a   : > { %3934 = vmatmul.mubr.msk.bf16.gmra.mrb[60].mxu0 %vm746_vm0, %v4341_v1 }
  0x8d   : > { %3998 = vmatmul.mubr.msk.bf16.gmra.mrb[60].mxu1 %vm746_vm0, %v4371_v8 }
  0xe5   : > { %v3875_v12 = vpop.f32.mrb[0].mxu0 }
  0xe6   : > { %v982_v13 = vadd.f32 %v3875_v12, %v4609_v11  ;;  %v973_v14 = vpop.f32.mrb[1].mxu0 }
  0xe7   : > { %v974_v15 = vadd.f32 %v4609_v11, %v973_v14  ;;  %v3876_v16 = vpop.f32.mrb[2].mxu0 }
  0xe8   : > { %v985_v17 = vadd.f32 %v3876_v16, %v4609_v11  ;;  %v976_v18 = vpop.f32.mrb[3].mxu0  ;;  %v1486_v21 = vmax.f32 %v982_v13, 0.0  ;;  %v3939_v57 = vpop.f32.mrb[0].mxu1 }
  0xe9   : > { %v977_v19 = vadd.f32 %v4609_v11, %v976_v18  ;;  %v1484_v23 = vmax.f32 %v974_v15, 0.0  ;;  %v1238_v60 = vadd.f32 %v3939_v57, %v4609_v11  ;;  %v1229_v61 = vpop.f32.mrb[1].mxu1 }
  0xea   : > { %v1487_v22 = vmax.f32 %v985_v17, 0.0  ;;  %v1230_v0 = vadd.f32 %v4609_v11, %v1229_v61  ;;  %v3940_v1 = vpop.f32.mrb[2].mxu1 }
  0xeb   : > { %v1485_v24 = vmax.f32 %v977_v19, 0.0  ;;  %v1550_v4 = vmax.f32 %v1238_v60, 0.0  ;;  %v1241_v5 = vadd.f32 %v3940_v1, %v4609_v11  ;;  %v1232_v6 = vpop.f32.mrb[3].mxu1 }
  0xec   : > { %v1613_v25 = vpack.c.bf16 %v1487_v22, %v1486_v21  ;;  %v1548_v8 = vmax.f32 %v1230_v0, 0.0  ;;  %v1233_v9 = vadd.f32 %v4609_v11, %v1232_v6 }
  0xed   : > { %v1612_v26 = vpack.c.bf16 %v1485_v24, %v1484_v23  ;;  %v3879_v27 = vpop.f32.mrb[4].mxu0  ;;  %v1551_v13 = vmax.f32 %v1241_v5, 0.0 }
  0xee   : > { %v998_v28 = vadd.f32 %v3879_v27, %v4609_v11  ;;  %v989_v29 = vpop.f32.mrb[5].mxu0  ;;  %v1549_v16 = vmax.f32 %v1233_v9, 0.0 }
  0xef   : > { %v990_v30 = vadd.f32 %v4609_v11, %v989_v29  ;;  %v3880_v31 = vpop.f32.mrb[6].mxu0  ;;  %4017 = vmatprep.mubr.bf16.mxu1 %v1612_v26  ;;  %v4637_v18 = vpack.c.bf16 %v1551_v13, %v1550_v4 }
  0xf0   : > { %v1001_v32 = vadd.f32 %v3880_v31, %v4609_v11  ;;  %v992_v33 = vpop.f32.mrb[7].mxu0  ;;  %4018 = vmatmul.mubr.bf16.vlgmr.msra.gmra.mrb[64].mxu1 %v1613_v25  ;;  %v1490_v35 = vmax.f32 %v998_v28, 0.0  ;;  %v4639_v21 = vpack.c.bf16 %v1549_v16, %v1548_v8  ;;  %v3943_v22 = vpop.f32.mrb[4].mxu1 }
  0xf1   : > { %v993_v34 = vadd.f32 %v4609_v11, %v992_v33  ;;  %v1488_v37 = vmax.f32 %v990_v30, 0.0  ;;  %v1254_v25 = vadd.f32 %v3943_v22, %v4609_v11  ;;  %v1245_v26 = vpop.f32.mrb[5].mxu1 }
  0xf2   : > { %v1491_v36 = vmax.f32 %v1001_v32, 0.0  ;;  %v1246_v29 = vadd.f32 %v4609_v11, %v1245_v26  ;;  %v3944_v30 = vpop.f32.mrb[6].mxu1 }
  0xf3   : > { %v1489_v38 = vmax.f32 %v993_v34, 0.0  ;;  %v1554_v33 = vmax.f32 %v1254_v25, 0.0  ;;  %v1257_v34 = vadd.f32 %v3944_v30, %v4609_v11 }
  0xf4   : > { %v1615_v39 = vpack.c.bf16 %v1491_v36, %v1490_v35  ;;  %v1248_v35 = vpop.f32.mrb[7].mxu1 }
  0xf5   : > { %v1614_v40 = vpack.c.bf16 %v1489_v38, %v1488_v37  ;;  %v3883_v41 = vpop.f32.mrb[8].mxu0  ;;  %v1552_v37 = vmax.f32 %v1246_v29, 0.0  ;;  %v1249_v38 = vadd.f32 %v4609_v11, %v1248_v35  ;;  %v4377_v35 = vld [vmem:[%s5150_s5 + $0x28] sm:$0xff]  }
  0xf6   : > { %v1014_v42 = vadd.f32 %v3883_v41, %v4609_v11  ;;  %v1005_v43 = vpop.f32.mrb[9].mxu0 }
  0xf7   : > { %v1006_v44 = vadd.f32 %v4609_v11, %v1005_v43  ;;  %v3884_v45 = vpop.f32.mrb[10].mxu0  ;;  %4021 = vmatprep.mubr.bf16.mxu1 %v1614_v40 }
  0xf8   : > { %v1017_v46 = vadd.f32 %v3884_v45, %v4609_v11  ;;  %v1008_v47 = vpop.f32.mrb[11].mxu0  ;;  %4022 = vmatmul.mubr.bf16.gmra.mrb[68].mxu1 %v1615_v39  ;;  %v1494_v50 = vmax.f32 %v1014_v42, 0.0  ;;  %v4376_v39 = vld [vmem:[%s5150_s5 + $0x20] sm:$0xff]   ;;  %v1555_v42 = vmax.f32 %v1257_v34, 0.0  ;;  %v1553_v45 = vmax.f32 %v1249_v38, 0.0 }
  0xf9   : > { %v1009_v48 = vadd.f32 %v4609_v11, %v1008_v47  ;;  %v1492_v52 = vmax.f32 %v1006_v44, 0.0  ;;  %4153 = vmatprep.subr.bf16.mxu0 %v4376_v39 }
  0xfa   : > { %v1495_v51 = vmax.f32 %v1017_v46, 0.0  ;;  %v4652_v47 = vpack.c.bf16 %v1555_v42, %v1554_v33  ;;  %4154 = vmatpush3.bf16.msra.mxu0 %v4376_v39 }
  0xfb   : > { %v1493_v53 = vmax.f32 %v1009_v48, 0.0  ;;  %4155 = vmatprep.subr.bf16.mxu0 %v4377_v35 }
  0xfc   : > { %v1617_v54 = vpack.c.bf16 %v1495_v51, %v1494_v50  ;;  %v4654_v50 = vpack.c.bf16 %v1553_v45, %v1552_v37  ;;  %v3947_v51 = vpop.f32.mrb[8].mxu1 }
  0xfd   : > { %v1616_v55 = vpack.c.bf16 %v1493_v53, %v1492_v52  ;;  %v3887_v56 = vpop.f32.mrb[12].mxu0 }
  0xfe   : > { %v1030_v58 = vadd.f32 %v3887_v56, %v4609_v11  ;;  %v1021_v59 = vpop.f32.mrb[13].mxu0  ;;  %4156 = vmatpush3.bf16.msra.mxu0 %v4377_v35  ;;  %v4378_v35 = vld [vmem:[%s5150_s5 + $0x30] sm:$0xff]  }
  0xff   : > { %v1022_v62 = vadd.f32 %v4609_v11, %v1021_v59  ;;  %v3888_v63 = vpop.f32.mrb[14].mxu0  ;;  %4025 = vmatprep.mubr.bf16.mxu1 %v1616_v55  ;;  %v1261_v55 = vpop.f32.mrb[9].mxu1  ;;  %4157 = vmatprep.subr.bf16.mxu0 %v4378_v35 }
 0x100   : > { %v1033_v2 = vadd.f32 %v3888_v63, %v4609_v11  ;;  %v1024_v3 = vpop.f32.mrb[15].mxu0  ;;  %4026 = vmatmul.mubr.bf16.gmra.mrb[72].mxu1 %v1617_v54  ;;  %v1498_v10 = vmax.f32 %v1030_v58, 0.0  ;;  %v1270_v54 = vadd.f32 %v3947_v51, %v4609_v11  ;;  %v1262_v58 = vadd.f32 %v4609_v11, %v1261_v55  ;;  %v3948_v59 = vpop.f32.mrb[10].mxu1 }
 0x101   : > { %v1025_v7 = vadd.f32 %v4609_v11, %v1024_v3  ;;  %v1496_v14 = vmax.f32 %v1022_v62, 0.0  ;;  %v1273_v63 = vadd.f32 %v3948_v59, %v4609_v11  ;;  %v1264_v0 = vpop.f32.mrb[11].mxu1 }
 0x102   : > { %v1499_v12 = vmax.f32 %v1033_v2, 0.0  ;;  %v1558_v62 = vmax.f32 %v1270_v54, 0.0  ;;  %v1556_v2 = vmax.f32 %v1262_v58, 0.0  ;;  %v1265_v3 = vadd.f32 %v4609_v11, %v1264_v0  ;;  %v3951_v16 = vpop.f32.mrb[12].mxu1  ;;  %4158 = vmatpush3.bf16.msra.mxu0 %v4378_v35 }
 0x103   : > { %v1497_v15 = vmax.f32 %v1025_v7, 0.0  ;;  %v1559_v6 = vmax.f32 %v1273_v63, 0.0  ;;  %v1277_v22 = vpop.f32.mrb[13].mxu1 }
 0x104   : > { %v1619_v17 = vpack.c.bf16 %v1499_v12, %v1498_v10  ;;  %v1557_v9 = vmax.f32 %v1265_v3, 0.0  ;;  %v1278_v25 = vadd.f32 %v4609_v11, %v1277_v22  ;;  %v3952_v26 = vpop.f32.mrb[14].mxu1 }
 0x105   : > { %v1618_v19 = vpack.c.bf16 %v1497_v15, %v1496_v14  ;;  %v3891_v20 = vpop.f32.mrb[16].mxu0  ;;  %v4664_v12 = vpack.c.bf16 %v1559_v6, %v1558_v62  ;;  %v1289_v30 = vadd.f32 %v3952_v26, %v4609_v11 }
 0x106   : > { %v1046_v23 = vadd.f32 %v3891_v20, %v4609_v11  ;;  %v1037_v24 = vpop.f32.mrb[17].mxu0  ;;  %v4666_v15 = vpack.c.bf16 %v1557_v9, %v1556_v2  ;;  %v1286_v20 = vadd.f32 %v3951_v16, %v4609_v11  ;;  %v1560_v33 = vmax.f32 %v1278_v25, 0.0 }
 0x107   : > { %v1038_v27 = vadd.f32 %v4609_v11, %v1037_v24  ;;  %v3892_v28 = vpop.f32.mrb[18].mxu0  ;;  %4029 = vmatprep.mubr.bf16.mxu1 %v1618_v19  ;;  %v1563_v38 = vmax.f32 %v1289_v30, 0.0 }
 0x108   : > { %v1049_v31 = vadd.f32 %v3892_v28, %v4609_v11  ;;  %v1040_v32 = vpop.f32.mrb[19].mxu0  ;;  %4030 = vmatmul.mubr.bf16.gmra.mrb[76].mxu1 %v1619_v17  ;;  %v1502_v40 = vmax.f32 %v1046_v23, 0.0  ;;  %v1562_v29 = vmax.f32 %v1286_v20, 0.0 }
 0x109   : > { %v1041_v36 = vadd.f32 %v4609_v11, %v1040_v32  ;;  %v1500_v43 = vmax.f32 %v1038_v27, 0.0 }
 0x10a   : > { %v1503_v41 = vmax.f32 %v1049_v31, 0.0  ;;  %v1280_v31 = vpop.f32.mrb[15].mxu1 }
 0x10b   : > { %v1501_v44 = vmax.f32 %v1041_v36, 0.0  ;;  %v1281_v34 = vadd.f32 %v4609_v11, %v1280_v31 }
 0x10c   : > { %v1621_v46 = vpack.c.bf16 %v1503_v41, %v1502_v40 }
 0x10d   : > { %v1620_v48 = vpack.c.bf16 %v1501_v44, %v1500_v43  ;;  %v3895_v49 = vpop.f32.mrb[20].mxu0  ;;  %v1561_v41 = vmax.f32 %v1281_v34, 0.0  ;;  %v4679_v43 = vpack.c.bf16 %v1563_v38, %v1562_v29 }
 0x10e   : > { %v1062_v52 = vadd.f32 %v3895_v49, %v4609_v11  ;;  %v1053_v53 = vpop.f32.mrb[21].mxu0 }
 0x10f   : > { %v1054_v56 = vadd.f32 %v4609_v11, %v1053_v53  ;;  %v3896_v57 = vpop.f32.mrb[22].mxu0  ;;  %4033 = vmatprep.mubr.bf16.mxu1 %v1620_v48  ;;  %v3955_v48 = vpop.f32.mrb[16].mxu1 }
 0x110   : > { %v1065_v60 = vadd.f32 %v3896_v57, %v4609_v11  ;;  %v1056_v61 = vpop.f32.mrb[23].mxu0  ;;  %4034 = vmatmul.mubr.bf16.gmra.mrb[80].mxu1 %v1621_v46  ;;  %v1506_v4 = vmax.f32 %v1062_v52, 0.0  ;;  %v4681_v46 = vpack.c.bf16 %v1561_v41, %v1560_v33  ;;  %v1302_v52 = vadd.f32 %v3955_v48, %v4609_v11  ;;  %v1293_v53 = vpop.f32.mrb[17].mxu1 }
 0x111   : > { %v1057_v1 = vadd.f32 %v4609_v11, %v1056_v61  ;;  %v1504_v7 = vmax.f32 %v1054_v56, 0.0  ;;  %v1294_v56 = vadd.f32 %v4609_v11, %v1293_v53  ;;  %v3956_v57 = vpop.f32.mrb[18].mxu1 }
 0x112   : > { %v1507_v5 = vmax.f32 %v1065_v60, 0.0  ;;  %v1566_v60 = vmax.f32 %v1302_v52, 0.0  ;;  %v1305_v61 = vadd.f32 %v3956_v57, %v4609_v11  ;;  %v1296_v62 = vpop.f32.mrb[19].mxu1 }
 0x113   : > { %v1505_v8 = vmax.f32 %v1057_v1, 0.0  ;;  %v1564_v0 = vmax.f32 %v1294_v56, 0.0  ;;  %v1297_v1 = vadd.f32 %v4609_v11, %v1296_v62  ;;  %v3959_v16 = vpop.f32.mrb[20].mxu1 }
 0x114   : > { %v1623_v10 = vpack.c.bf16 %v1507_v5, %v1506_v4  ;;  %v1567_v4 = vmax.f32 %v1305_v61, 0.0  ;;  %v1318_v20 = vadd.f32 %v3959_v16, %v4609_v11  ;;  %v1309_v22 = vpop.f32.mrb[21].mxu1 }
 0x115   : > { %v1622_v13 = vpack.c.bf16 %v1505_v8, %v1504_v7  ;;  %v3899_v14 = vpop.f32.mrb[24].mxu0  ;;  %v1565_v7 = vmax.f32 %v1297_v1, 0.0  ;;  %v1310_v25 = vadd.f32 %v4609_v11, %v1309_v22  ;;  %v3960_v26 = vpop.f32.mrb[22].mxu1 }
 0x116   : > { %v1078_v17 = vadd.f32 %v3899_v14, %v4609_v11  ;;  %v1069_v19 = vpop.f32.mrb[25].mxu0  ;;  %v4691_v9 = vpack.c.bf16 %v1567_v4, %v1566_v60  ;;  %v1570_v29 = vmax.f32 %v1318_v20, 0.0  ;;  %v1321_v30 = vadd.f32 %v3960_v26, %v4609_v11  ;;  %v1312_v31 = vpop.f32.mrb[23].mxu1 }
 0x117   : > { %v1070_v23 = vadd.f32 %v4609_v11, %v1069_v19  ;;  %v3900_v24 = vpop.f32.mrb[26].mxu0  ;;  %4037 = vmatprep.mubr.bf16.mxu1 %v1622_v13  ;;  %v4693_v14 = vpack.c.bf16 %v1565_v7, %v1564_v0  ;;  %v1568_v33 = vmax.f32 %v1310_v25, 0.0  ;;  %v1313_v34 = vadd.f32 %v4609_v11, %v1312_v31 }
 0x118   : > { %v1081_v27 = vadd.f32 %v3900_v24, %v4609_v11  ;;  %v1072_v28 = vpop.f32.mrb[27].mxu0  ;;  %4038 = vmatmul.mubr.bf16.gmra.mrb[84].mxu1 %v1623_v10  ;;  %v1510_v36 = vmax.f32 %v1078_v17, 0.0  ;;  %v1571_v38 = vmax.f32 %v1321_v30, 0.0 }
 0x119   : > { %v1073_v32 = vadd.f32 %v4609_v11, %v1072_v28  ;;  %v1508_v39 = vmax.f32 %v1070_v23, 0.0  ;;  %v1569_v41 = vmax.f32 %v1313_v34, 0.0 }
 0x11a   : > { %v1511_v37 = vmax.f32 %v1081_v27, 0.0 }
 0x11b   : > { %v1509_v40 = vmax.f32 %v1073_v32, 0.0 }
 0x11c   : > { %v1625_v42 = vpack.c.bf16 %v1511_v37, %v1510_v36 }
 0x11d   : > { %v1624_v44 = vpack.c.bf16 %v1509_v40, %v1508_v39  ;;  %v3903_v45 = vpop.f32.mrb[28].mxu0 }
 0x11e   : > { %v1094_v49 = vadd.f32 %v3903_v45, %v4609_v11  ;;  %v1085_v51 = vpop.f32.mrb[29].mxu0 }
 0x11f   : > { %v1086_v54 = vadd.f32 %v4609_v11, %v1085_v51  ;;  %v3904_v55 = vpop.f32.mrb[30].mxu0  ;;  %4041 = vmatprep.mubr.bf16.mxu1 %v1624_v44  ;;  %v4706_v44 = vpack.c.bf16 %v1571_v38, %v1570_v29  ;;  %v3963_v51 = vpop.f32.mrb[24].mxu1 }
 0x120   : > { %v1097_v58 = vadd.f32 %v3904_v55, %v4609_v11  ;;  %v1088_v59 = vpop.f32.mrb[31].mxu0  ;;  %4042 = vmatmul.mubr.bf16.gmra.mrb[88].mxu1 %v1625_v42  ;;  %v1514_v2 = vmax.f32 %v1094_v49, 0.0  ;;  %v4708_v49 = vpack.c.bf16 %v1569_v41, %v1568_v33  ;;  %v1325_v55 = vpop.f32.mrb[25].mxu1 }
 0x121   : > { %v1089_v63 = vadd.f32 %v4609_v11, %v1088_v59  ;;  %v1512_v5 = vmax.f32 %v1086_v54, 0.0  ;;  %v1334_v54 = vadd.f32 %v3963_v51, %v4609_v11  ;;  %v3964_v59 = vpop.f32.mrb[26].mxu1 }
 0x122   : > { %v1515_v3 = vmax.f32 %v1097_v58, 0.0  ;;  %v1326_v58 = vadd.f32 %v4609_v11, %v1325_v55  ;;  %v1328_v0 = vpop.f32.mrb[27].mxu1 }
 0x123   : > { %v1513_v6 = vmax.f32 %v1089_v63, 0.0  ;;  %v1574_v62 = vmax.f32 %v1334_v54, 0.0  ;;  %v1337_v63 = vadd.f32 %v3964_v59, %v4609_v11  ;;  %v3967_v22 = vpop.f32.mrb[28].mxu1 }
 0x124   : > { %v1627_v8 = vpack.c.bf16 %v1515_v3, %v1514_v2  ;;  %v1572_v2 = vmax.f32 %v1326_v58, 0.0  ;;  %v1329_v3 = vadd.f32 %v4609_v11, %v1328_v0  ;;  %v1350_v25 = vadd.f32 %v3967_v22, %v4609_v11  ;;  %v1341_v26 = vpop.f32.mrb[29].mxu1 }
 0x125   : > { %v1626_v10 = vpack.c.bf16 %v1513_v6, %v1512_v5  ;;  %v3907_v13 = vpop.f32.mrb[32].mxu0  ;;  %v1575_v6 = vmax.f32 %v1337_v63, 0.0  ;;  %v1342_v29 = vadd.f32 %v4609_v11, %v1341_v26  ;;  %v3968_v30 = vpop.f32.mrb[30].mxu1 }
 0x126   : > { %v1110_v17 = vadd.f32 %v3907_v13, %v4609_v11  ;;  %v1101_v19 = vpop.f32.mrb[33].mxu0  ;;  %v1578_v33 = vmax.f32 %v1350_v25, 0.0  ;;  %v1353_v34 = vadd.f32 %v3968_v30, %v4609_v11  ;;  %v1344_v35 = vpop.f32.mrb[31].mxu1 }
 0x127   : > { %v1102_v23 = vadd.f32 %v4609_v11, %v1101_v19  ;;  %v3908_v24 = vpop.f32.mrb[34].mxu0  ;;  %4045 = vmatprep.mubr.bf16.mxu1 %v1626_v10  ;;  %v1573_v10 = vmax.f32 %v1329_v3, 0.0  ;;  %v4718_v16 = vpack.c.bf16 %v1575_v6, %v1574_v62  ;;  %v1345_v38 = vadd.f32 %v4609_v11, %v1344_v35 }
 0x128   : > { %v1113_v27 = vadd.f32 %v3908_v24, %v4609_v11  ;;  %v1104_v28 = vpop.f32.mrb[35].mxu0  ;;  %4046 = vmatmul.mubr.bf16.gmra.mrb[92].mxu1 %v1627_v8  ;;  %v1518_v36 = vmax.f32 %v1110_v17, 0.0 }
 0x129   : > { %v1105_v32 = vadd.f32 %v4609_v11, %v1104_v28  ;;  %v1516_v39 = vmax.f32 %v1102_v23, 0.0  ;;  %v4720_v20 = vpack.c.bf16 %v1573_v10, %v1572_v2  ;;  %v1577_v51 = vmax.f32 %v1345_v38, 0.0 }
 0x12a   : > { %v1519_v37 = vmax.f32 %v1113_v27, 0.0 }
 0x12b   : > { %v1517_v40 = vmax.f32 %v1105_v32, 0.0 }
 0x12c   : > { %v1629_v42 = vpack.c.bf16 %v1519_v37, %v1518_v36  ;;  %v1576_v37 = vmax.f32 %v1342_v29, 0.0 }
 0x12d   : > { %v1628_v45 = vpack.c.bf16 %v1517_v40, %v1516_v39  ;;  %v3911_v48 = vpop.f32.mrb[36].mxu0  ;;  %v4379_v39 = vld [vmem:[%s5150_s5 + $0x38] sm:$0xff]  }
 0x12e   : > { %v1126_v52 = vadd.f32 %v3911_v48, %v4609_v11  ;;  %v1117_v53 = vpop.f32.mrb[37].mxu0  ;;  %4159 = vmatprep.subr.bf16.mxu0 %v4379_v39 }
 0x12f   : > { %v1118_v56 = vadd.f32 %v4609_v11, %v1117_v53  ;;  %v3912_v57 = vpop.f32.mrb[38].mxu0  ;;  %4049 = vmatprep.mubr.bf16.mxu1 %v1628_v45  ;;  %4160 = vmatpush3.bf16.msra.mxu0 %v4379_v39 }
 0x130   : > { %v1129_v60 = vadd.f32 %v3912_v57, %v4609_v11  ;;  %v1120_v61 = vpop.f32.mrb[39].mxu0  ;;  %4050 = vmatmul.mubr.bf16.gmra.mrb[96].mxu1 %v1629_v42  ;;  %v1522_v4 = vmax.f32 %v1126_v52, 0.0  ;;  %v1579_v42 = vmax.f32 %v1353_v34, 0.0  ;;  %v3971_v57 = vpop.f32.mrb[32].mxu1 }
 0x131   : > { %v1121_v1 = vadd.f32 %v4609_v11, %v1120_v61  ;;  %v1520_v7 = vmax.f32 %v1118_v56, 0.0  ;;  %v4735_v56 = vpack.c.bf16 %v1577_v51, %v1576_v37  ;;  %v1357_v61 = vpop.f32.mrb[33].mxu1 }
 0x132   : > { %v1523_v5 = vmax.f32 %v1129_v60, 0.0  ;;  %v4733_v53 = vpack.c.bf16 %v1579_v42, %v1578_v33  ;;  %v1366_v60 = vadd.f32 %v3971_v57, %v4609_v11  ;;  %v1358_v0 = vadd.f32 %v4609_v11, %v1357_v61 }
 0x133   : > { %v1521_v8 = vmax.f32 %v1121_v1, 0.0  ;;  %v3972_v1 = vpop.f32.mrb[34].mxu1 }
 0x134   : > { %v1631_v13 = vpack.c.bf16 %v1523_v5, %v1522_v4  ;;  %v1582_v4 = vmax.f32 %v1366_v60, 0.0  ;;  %v1369_v5 = vadd.f32 %v3972_v1, %v4609_v11  ;;  %v1360_v6 = vpop.f32.mrb[35].mxu1 }
 0x135   : > { %v1630_v17 = vpack.c.bf16 %v1521_v8, %v1520_v7  ;;  %v3915_v19 = vpop.f32.mrb[40].mxu0  ;;  %v1580_v8 = vmax.f32 %v1358_v0, 0.0  ;;  %v1361_v10 = vadd.f32 %v4609_v11, %v1360_v6  ;;  %v3975_v30 = vpop.f32.mrb[36].mxu1 }
 0x136   : > { %v1142_v23 = vadd.f32 %v3915_v19, %v4609_v11  ;;  %v1133_v24 = vpop.f32.mrb[41].mxu0  ;;  %v1583_v19 = vmax.f32 %v1369_v5, 0.0  ;;  %v1382_v33 = vadd.f32 %v3975_v30, %v4609_v11  ;;  %v1373_v34 = vpop.f32.mrb[37].mxu1 }
 0x137   : > { %v1134_v27 = vadd.f32 %v4609_v11, %v1133_v24  ;;  %v3916_v28 = vpop.f32.mrb[42].mxu0  ;;  %4053 = vmatprep.mubr.bf16.mxu1 %v1630_v17  ;;  %v1581_v24 = vmax.f32 %v1361_v10, 0.0  ;;  %v1374_v37 = vadd.f32 %v4609_v11, %v1373_v34  ;;  %v3976_v38 = vpop.f32.mrb[38].mxu1 }
 0x138   : > { %v1145_v31 = vadd.f32 %v3916_v28, %v4609_v11  ;;  %v1136_v32 = vpop.f32.mrb[43].mxu0  ;;  %4054 = vmatmul.mubr.bf16.gmra.mrb[100].mxu1 %v1631_v13  ;;  %v1526_v40 = vmax.f32 %v1142_v23, 0.0  ;;  %v4745_v26 = vpack.c.bf16 %v1583_v19, %v1582_v4  ;;  %v1385_v42 = vadd.f32 %v3976_v38, %v4609_v11 }
 0x139   : > { %v1137_v36 = vadd.f32 %v4609_v11, %v1136_v32  ;;  %v1524_v45 = vmax.f32 %v1134_v27, 0.0  ;;  %v4747_v29 = vpack.c.bf16 %v1581_v24, %v1580_v8  ;;  %v1584_v51 = vmax.f32 %v1374_v37, 0.0 }
 0x13a   : > { %v1527_v41 = vmax.f32 %v1145_v31, 0.0  ;;  %v1587_v57 = vmax.f32 %v1385_v42, 0.0 }
 0x13b   : > { %v1525_v48 = vmax.f32 %v1137_v36, 0.0 }
 0x13c   : > { %v1633_v52 = vpack.c.bf16 %v1527_v41, %v1526_v40  ;;  %v1586_v41 = vmax.f32 %v1382_v33, 0.0 }
 0x13d   : > { %v1632_v54 = vpack.c.bf16 %v1525_v48, %v1524_v45  ;;  %v3919_v55 = vpop.f32.mrb[44].mxu0  ;;  %v1376_v45 = vpop.f32.mrb[39].mxu1 }
 0x13e   : > { %v1158_v58 = vadd.f32 %v3919_v55, %v4609_v11  ;;  %v1149_v59 = vpop.f32.mrb[45].mxu0 }
 0x13f   : > { %v1150_v62 = vadd.f32 %v4609_v11, %v1149_v59  ;;  %v3920_v63 = vpop.f32.mrb[46].mxu0  ;;  %4057 = vmatprep.mubr.bf16.mxu1 %v1632_v54 }
 0x140   : > { %v1161_v2 = vadd.f32 %v3920_v63, %v4609_v11  ;;  %v1152_v3 = vpop.f32.mrb[47].mxu0  ;;  %4058 = vmatmul.mubr.bf16.gmra.mrb[104].mxu1 %v1633_v52  ;;  %v1530_v13 = vmax.f32 %v1158_v58, 0.0  ;;  %v1377_v52 = vadd.f32 %v4609_v11, %v1376_v45 }
 0x141   : > { %v1153_v7 = vadd.f32 %v4609_v11, %v1152_v3  ;;  %v1528_v22 = vmax.f32 %v1150_v62, 0.0  ;;  %v4757_v62 = vpack.c.bf16 %v1587_v57, %v1586_v41 }
 0x142   : > { %v1531_v17 = vmax.f32 %v1161_v2, 0.0  ;;  %v1585_v60 = vmax.f32 %v1377_v52, 0.0  ;;  %v3979_v2 = vpop.f32.mrb[40].mxu1 }
 0x143   : > { %v1529_v23 = vmax.f32 %v1153_v7, 0.0  ;;  %v1398_v5 = vadd.f32 %v3979_v2, %v4609_v11  ;;  %v1389_v6 = vpop.f32.mrb[41].mxu1 }
 0x144   : > { %v1635_v25 = vpack.c.bf16 %v1531_v17, %v1530_v13  ;;  %v4759_v1 = vpack.c.bf16 %v1585_v60, %v1584_v51  ;;  %v1390_v10 = vadd.f32 %v4609_v11, %v1389_v6  ;;  %v3980_v13 = vpop.f32.mrb[42].mxu1 }
 0x145   : > { %v1634_v27 = vpack.c.bf16 %v1529_v23, %v1528_v22  ;;  %v3923_v28 = vpop.f32.mrb[48].mxu0  ;;  %v1590_v22 = vmax.f32 %v1398_v5, 0.0  ;;  %v1401_v23 = vadd.f32 %v3980_v13, %v4609_v11  ;;  %v1392_v24 = vpop.f32.mrb[43].mxu1 }
 0x146   : > { %v1174_v31 = vadd.f32 %v3923_v28, %v4609_v11  ;;  %v1165_v32 = vpop.f32.mrb[49].mxu0  ;;  %v1393_v28 = vadd.f32 %v4609_v11, %v1392_v24  ;;  %v3983_v41 = vpop.f32.mrb[44].mxu1 }
 0x147   : > { %v1166_v35 = vadd.f32 %v4609_v11, %v1165_v32  ;;  %v3924_v36 = vpop.f32.mrb[50].mxu0  ;;  %4061 = vmatprep.mubr.bf16.mxu1 %v1634_v27  ;;  %v1588_v27 = vmax.f32 %v1390_v10, 0.0  ;;  %v1591_v32 = vmax.f32 %v1401_v23, 0.0  ;;  %v1405_v51 = vpop.f32.mrb[45].mxu1 }
 0x148   : > { %v1177_v39 = vadd.f32 %v3924_v36, %v4609_v11  ;;  %v1168_v40 = vpop.f32.mrb[51].mxu0  ;;  %4062 = vmatmul.mubr.bf16.gmra.mrb[108].mxu1 %v1635_v25  ;;  %v1534_v54 = vmax.f32 %v1174_v31, 0.0  ;;  %v3984_v57 = vpop.f32.mrb[46].mxu1 }
 0x149   : > { %v1169_v48 = vadd.f32 %v4609_v11, %v1168_v40  ;;  %v1532_v58 = vmax.f32 %v1166_v35, 0.0  ;;  %v1589_v35 = vmax.f32 %v1393_v28, 0.0  ;;  %v4769_v37 = vpack.c.bf16 %v1591_v32, %v1590_v22 }
 0x14a   : > { %v1535_v55 = vmax.f32 %v1177_v39, 0.0 }
 0x14b   : > { %v1533_v59 = vmax.f32 %v1169_v48, 0.0  ;;  %v4771_v40 = vpack.c.bf16 %v1589_v35, %v1588_v27  ;;  %v1414_v48 = vadd.f32 %v3983_v41, %v4609_v11 }
 0x14c   : > { %v1637_v61 = vpack.c.bf16 %v1535_v55, %v1534_v54  ;;  %v1406_v55 = vadd.f32 %v4609_v11, %v1405_v51 }
 0x14d   : > { %v1636_v63 = vpack.c.bf16 %v1533_v59, %v1532_v58  ;;  %v3927_v0 = vpop.f32.mrb[52].mxu0  ;;  %v1594_v60 = vmax.f32 %v1414_v48, 0.0 }
 0x14e   : > { %v1190_v3 = vadd.f32 %v3927_v0, %v4609_v11  ;;  %v1181_v4 = vpop.f32.mrb[53].mxu0  ;;  %v1592_v2 = vmax.f32 %v1406_v55, 0.0 }
 0x14f   : > { %v1182_v7 = vadd.f32 %v4609_v11, %v1181_v4  ;;  %v3928_v8 = vpop.f32.mrb[54].mxu0  ;;  %4065 = vmatprep.mubr.bf16.mxu1 %v1636_v63  ;;  %v1408_v63 = vpop.f32.mrb[47].mxu1 }
 0x150   : > { %v1193_v17 = vadd.f32 %v3928_v8, %v4609_v11  ;;  %v1184_v19 = vpop.f32.mrb[55].mxu0  ;;  %4066 = vmatmul.mubr.bf16.gmra.mrb[112].mxu1 %v1637_v61  ;;  %v1538_v30 = vmax.f32 %v1190_v3, 0.0  ;;  %v1417_v61 = vadd.f32 %v3984_v57, %v4609_v11  ;;  %v1409_v3 = vadd.f32 %v4609_v11, %v1408_v63  ;;  %v3987_v24 = vpop.f32.mrb[48].mxu1 }
 0x151   : > { %v1185_v25 = vadd.f32 %v4609_v11, %v1184_v19  ;;  %v1536_v33 = vmax.f32 %v1182_v7, 0.0  ;;  %v1430_v28 = vadd.f32 %v3987_v24, %v4609_v11 }
 0x152   : > { %v1539_v31 = vmax.f32 %v1193_v17, 0.0  ;;  %v1595_v6 = vmax.f32 %v1417_v61, 0.0  ;;  %v1593_v10 = vmax.f32 %v1409_v3, 0.0 }
 0x153   : > { %v1537_v34 = vmax.f32 %v1185_v25, 0.0 }
 0x154   : > { %v1639_v36 = vpack.c.bf16 %v1539_v31, %v1538_v30  ;;  %v4781_v17 = vpack.c.bf16 %v1595_v6, %v1594_v60  ;;  %v4783_v23 = vpack.c.bf16 %v1593_v10, %v1592_v2  ;;  %v1421_v30 = vpop.f32.mrb[49].mxu1 }
 0x155   : > { %v1638_v38 = vpack.c.bf16 %v1537_v34, %v1536_v33  ;;  %v3931_v39 = vpop.f32.mrb[56].mxu0  ;;  %v1422_v33 = vadd.f32 %v4609_v11, %v1421_v30  ;;  %v3988_v34 = vpop.f32.mrb[50].mxu1 }
 0x156   : > { %v1206_v42 = vadd.f32 %v3931_v39, %v4609_v11  ;;  %v1197_v45 = vpop.f32.mrb[57].mxu0  ;;  %v1433_v39 = vadd.f32 %v3988_v34, %v4609_v11  ;;  %v1424_v41 = vpop.f32.mrb[51].mxu1 }
 0x157   : > { %v1198_v52 = vadd.f32 %v4609_v11, %v1197_v45  ;;  %v3932_v54 = vpop.f32.mrb[58].mxu0  ;;  %4069 = vmatprep.mubr.bf16.mxu1 %v1638_v38  ;;  %v1598_v38 = vmax.f32 %v1430_v28, 0.0  ;;  %v1596_v45 = vmax.f32 %v1422_v33, 0.0  ;;  %v1425_v48 = vadd.f32 %v4609_v11, %v1424_v41 }
 0x158   : > { %v1209_v58 = vadd.f32 %v3932_v54, %v4609_v11  ;;  %v1200_v59 = vpop.f32.mrb[59].mxu0  ;;  %4070 = vmatmul.mubr.bf16.gmra.mrb[116].mxu1 %v1639_v36  ;;  %v1542_v4 = vmax.f32 %v1206_v42, 0.0  ;;  %v1599_v54 = vmax.f32 %v1433_v39, 0.0 }
 0x159   : > { %v1201_v0 = vadd.f32 %v4609_v11, %v1200_v59  ;;  %v1540_v7 = vmax.f32 %v1198_v52, 0.0 }
 0x15a   : > { %v1543_v5 = vmax.f32 %v1209_v58, 0.0  ;;  %v1597_v58 = vmax.f32 %v1425_v48, 0.0  ;;  %v4793_v60 = vpack.c.bf16 %v1599_v54, %v1598_v38 }
 0x15b   : > { %v1541_v8 = vmax.f32 %v1201_v0, 0.0  ;;  %v3991_v0 = vpop.f32.mrb[52].mxu1 }
 0x15c   : > { %v1641_v13 = vpack.c.bf16 %v1543_v5, %v1542_v4  ;;  %v4795_v63 = vpack.c.bf16 %v1597_v58, %v1596_v45  ;;  %v1446_v2 = vadd.f32 %v3991_v0, %v4609_v11  ;;  %v1437_v3 = vpop.f32.mrb[53].mxu1 }
 0x15d   : > { %v1640_v19 = vpack.c.bf16 %v1541_v8, %v1540_v7  ;;  %v3935_v22 = vpop.f32.mrb[60].mxu0  ;;  %v1438_v4 = vadd.f32 %v4609_v11, %v1437_v3  ;;  %v3992_v5 = vpop.f32.mrb[54].mxu1 }
 0x15e   : > { %v1222_v25 = vadd.f32 %v3935_v22, %v4609_v11  ;;  %v1213_v27 = vpop.f32.mrb[61].mxu0  ;;  %v1602_v6 = vmax.f32 %v1446_v2, 0.0  ;;  %v1449_v7 = vadd.f32 %v3992_v5, %v4609_v11  ;;  %v1440_v8 = vpop.f32.mrb[55].mxu1 }
 0x15f   : > { %v1214_v31 = vadd.f32 %v4609_v11, %v1213_v27  ;;  %v3936_v32 = vpop.f32.mrb[62].mxu0  ;;  %4073 = vmatprep.mubr.bf16.mxu1 %v1640_v19  ;;  %v1600_v10 = vmax.f32 %v1438_v4, 0.0  ;;  %v3995_v27 = vpop.f32.mrb[56].mxu1 }
 0x160   : > { %v1225_v35 = vadd.f32 %v3936_v32, %v4609_v11  ;;  %v1216_v36 = vpop.f32.mrb[63].mxu0  ;;  %4074 = vmatmul.mubr.bf16.gmra.mrb[120].mxu1 %v1641_v13  ;;  %v1546_v51 = vmax.f32 %v1222_v25, 0.0  ;;  %v1441_v13 = vadd.f32 %v4609_v11, %v1440_v8  ;;  %v1603_v19 = vmax.f32 %v1449_v7, 0.0  ;;  %v1453_v30 = vpop.f32.mrb[57].mxu1 }
 0x161   : > { %v1217_v42 = vadd.f32 %v4609_v11, %v1216_v36  ;;  %v1544_v55 = vmax.f32 %v1214_v31, 0.0  ;;  %v1462_v28 = vadd.f32 %v3995_v27, %v4609_v11  ;;  %v1454_v31 = vadd.f32 %v4609_v11, %v1453_v30  ;;  %v3996_v32 = vpop.f32.mrb[58].mxu1 }
 0x162   : > { %v1547_v52 = vmax.f32 %v1225_v35, 0.0  ;;  %v1601_v22 = vmax.f32 %v1441_v13, 0.0  ;;  %v4802_v24 = vpack.c.bf16 %v1603_v19, %v1602_v6  ;;  %v1456_v34 = vpop.f32.mrb[59].mxu1 }
 0x163   : > { %v1545_v57 = vmax.f32 %v1217_v42, 0.0  ;;  %v1606_v33 = vmax.f32 %v1462_v28, 0.0  ;;  %v1604_v35 = vmax.f32 %v1454_v31, 0.0  ;;  %v1457_v36 = vadd.f32 %v4609_v11, %v1456_v34  ;;  %v3999_v45 = vpop.f32.mrb[60].mxu1 }
 0x164   : > { %v1643_v59 = vpack.c.bf16 %v1547_v52, %v1546_v51  ;;  %v4804_v25 = vpack.c.bf16 %v1601_v22, %v1600_v10  ;;  %v1478_v48 = vadd.f32 %v3999_v45, %v4609_v11  ;;  %v1469_v51 = vpop.f32.mrb[61].mxu1 }
 0x165   : > { %v1642_v61 = vpack.c.bf16 %v1545_v57, %v1544_v55  ;;  %v1605_v39 = vmax.f32 %v1457_v36, 0.0  ;;  %v4000_v52 = vpop.f32.mrb[62].mxu1 }
 0x166   : > { %v1610_v54 = vmax.f32 %v1478_v48, 0.0  ;;  %v1472_v55 = vpop.f32.mrb[63].mxu1 }
 0x167   : > { %4077 = vmatprep.mubr.bf16.mxu1 %v1642_v61  ;;  %v4814_v42 = vpack.c.bf16 %v1605_v39, %v1604_v35  ;;  %v1473_v58 = vadd.f32 %v4609_v11, %v1472_v55 }
 0x168   : > { %4078 = vmatmul.mubr.bf16.gmra.mrb[124].mxu1 %v1643_v59 }
 0x169   : > { %4081 = vmatprep.mubr.bf16.mxu1 %v4639_v21  ;;  %v1465_v21 = vadd.f32 %v3996_v32, %v4609_v11  ;;  %v1609_v61 = vmax.f32 %v1473_v58, 0.0 }
 0x16b   : > { %v1607_v38 = vmax.f32 %v1465_v21, 0.0 }
 0x16d   : > { %v4812_v41 = vpack.c.bf16 %v1607_v38, %v1606_v33 }
 0x170   : > { %4082 = vmatmul.mubr.bf16.gmra.mrb[128].mxu1 %v4637_v18  ;;  %v1470_v18 = vadd.f32 %v4609_v11, %v1469_v51 }
 0x171   : > { %4085 = vmatprep.mubr.bf16.mxu1 %v4654_v50  ;;  %v1481_v50 = vadd.f32 %v4000_v52, %v4609_v11  ;;  %v4847_v11 = vld [vmem:[%s5149_s4] ss:$0 sm:$0xff] }
 0x172   : > { %v1608_v57 = vmax.f32 %v1470_v18, 0.0 }
 0x173   : > { %v1611_v59 = vmax.f32 %v1481_v50, 0.0 }
 0x174   : > { %v4824_v2 = vpack.c.bf16 %v1609_v61, %v1608_v57 }
 0x175   : > { %v4822_v0 = vpack.c.bf16 %v1611_v59, %v1610_v54 }
 0x178   : > { %4086 = vmatmul.mubr.bf16.gmra.mrb[132].mxu1 %v4652_v47 }
 0x179   : > { %4089 = vmatprep.mubr.bf16.mxu1 %v4666_v15 }
 0x180   : > { %4090 = vmatmul.mubr.bf16.gmra.mrb[136].mxu1 %v4664_v12 }
 0x181   : > { %4093 = vmatprep.mubr.bf16.mxu1 %v4681_v46 }
 0x188   : > { %4094 = vmatmul.mubr.bf16.gmra.mrb[140].mxu1 %v4679_v43 }
 0x189   : > { %4097 = vmatprep.mubr.bf16.mxu1 %v4693_v14 }
 0x190   : > { %4098 = vmatmul.mubr.bf16.gmra.mrb[144].mxu1 %v4691_v9 }
 0x191   : > { %4101 = vmatprep.mubr.bf16.mxu1 %v4708_v49 }
 0x198   : > { %4102 = vmatmul.mubr.bf16.gmra.mrb[148].mxu1 %v4706_v44 }
 0x199   : > { %4105 = vmatprep.mubr.bf16.mxu1 %v4720_v20 }
 0x1a0   : > { %4106 = vmatmul.mubr.bf16.gmra.mrb[152].mxu1 %v4718_v16 }
 0x1a1   : > { %4109 = vmatprep.mubr.bf16.mxu1 %v4735_v56 }
 0x1a8   : > { %4110 = vmatmul.mubr.bf16.gmra.mrb[156].mxu1 %v4733_v53 }
 0x1a9   : > { %4113 = vmatprep.mubr.bf16.mxu1 %v4747_v29 }
 0x1b0   : > { %4114 = vmatmul.mubr.bf16.gmra.mrb[160].mxu1 %v4745_v26 }
 0x1b1   : > { %4117 = vmatprep.mubr.bf16.mxu1 %v4759_v1 }
 0x1b8   : > { %4118 = vmatmul.mubr.bf16.gmra.mrb[164].mxu1 %v4757_v62 }
 0x1b9   : > { %4121 = vmatprep.mubr.bf16.mxu1 %v4771_v40 }
 0x1c0   : > { %4122 = vmatmul.mubr.bf16.gmra.mrb[168].mxu1 %v4769_v37 }
 0x1c1   : > { %4125 = vmatprep.mubr.bf16.mxu1 %v4783_v23 }
 0x1c3   : > { %v4019_v47 = vpop.f32.mrb[64].mxu1 }
 0x1c4   : > { %v1790_v12 = vadd.f32 %v4019_v47, %v4847_v11  ;;  %v1781_v15 = vpop.f32.mrb[65].mxu1 }
 0x1c5   : > { %v1782_v43 = vadd.f32 %v4847_v11, %v1781_v15  ;;  %v4020_v46 = vpop.f32.mrb[66].mxu1 }
 0x1c6   : > { %v1793_v9 = vadd.f32 %v4020_v46, %v4847_v11  ;;  %v1784_v14 = vpop.f32.mrb[67].mxu1  ;;  %v2294_v49 = vmax.f32 %v1790_v12, 0.0 }
 0x1c7   : > { %v1785_v44 = vadd.f32 %v4847_v11, %v1784_v14  ;;  %v2292_v20 = vmax.f32 %v1782_v43, 0.0 }
 0x1c8   : > { %v2295_v16 = vmax.f32 %v1793_v9, 0.0  ;;  %4126 = vmatmul.mubr.bf16.gmra.mrb[172].mxu1 %v4781_v17 }
 0x1c9   : > { %v2293_v53 = vmax.f32 %v1785_v44, 0.0  ;;  %4129 = vmatprep.mubr.bf16.mxu1 %v4795_v63 }
 0x1ca   : > { %v2421_v56 = vpack.c.bf16 %v2295_v16, %v2294_v49 }
 0x1cb   : > { %v2420_v26 = vpack.c.bf16 %v2293_v53, %v2292_v20  ;;  %v4023_v29 = vpop.f32.mrb[68].mxu1 }
 0x1cc   : > { %v1806_v62 = vadd.f32 %v4023_v29, %v4847_v11  ;;  %v1797_v1 = vpop.f32.mrb[69].mxu1 }
 0x1cd   : > { %v1798_v37 = vadd.f32 %v4847_v11, %v1797_v1  ;;  %v4024_v40 = vpop.f32.mrb[70].mxu1  ;;  %4161 = vmatprep.mubr.bf16.mxu0 %v2420_v26 }
 0x1ce   : > { %v1809_v23 = vadd.f32 %v4024_v40, %v4847_v11  ;;  %v1800_v3 = vpop.f32.mrb[71].mxu1  ;;  %4162 = vmatmul.mubr.bf16.vlgmr.msra.gmra.mrb[64].mxu0 %v2421_v56  ;;  %v2298_v4 = vmax.f32 %v1806_v62, 0.0 }
 0x1cf   : > { %v1801_v17 = vadd.f32 %v4847_v11, %v1800_v3  ;;  %v2296_v63 = vmax.f32 %v1798_v37, 0.0 }
 0x1d0   : > { %v2299_v5 = vmax.f32 %v1809_v23, 0.0  ;;  %4130 = vmatmul.mubr.bf16.gmra.mrb[176].mxu1 %v4793_v60 }
 0x1d1   : > { %v2297_v6 = vmax.f32 %v1801_v17, 0.0  ;;  %4133 = vmatprep.mubr.bf16.mxu1 %v4804_v25 }
 0x1d2   : > { %v2423_v7 = vpack.c.bf16 %v2299_v5, %v2298_v4 }
 0x1d3   : > { %v2422_v8 = vpack.c.bf16 %v2297_v6, %v2296_v63  ;;  %v4027_v10 = vpop.f32.mrb[72].mxu1 }
 0x1d4   : > { %v1822_v13 = vadd.f32 %v4027_v10, %v4847_v11  ;;  %v1813_v19 = vpop.f32.mrb[73].mxu1 }
 0x1d5   : > { %v1814_v22 = vadd.f32 %v4847_v11, %v1813_v19  ;;  %v4028_v27 = vpop.f32.mrb[74].mxu1  ;;  %4165 = vmatprep.mubr.bf16.mxu0 %v2422_v8 }
 0x1d6   : > { %v1825_v28 = vadd.f32 %v4028_v27, %v4847_v11  ;;  %v1816_v30 = vpop.f32.mrb[75].mxu1  ;;  %4166 = vmatmul.mubr.bf16.gmra.mrb[68].mxu0 %v2423_v7  ;;  %v2302_v31 = vmax.f32 %v1822_v13, 0.0 }
 0x1d7   : > { %v1817_v60 = vadd.f32 %v4847_v11, %v1816_v30  ;;  %v2300_v25 = vmax.f32 %v1814_v22, 0.0 }
 0x1d8   : > { %v2303_v32 = vmax.f32 %v1825_v28, 0.0  ;;  %4134 = vmatmul.mubr.bf16.gmra.mrb[180].mxu1 %v4802_v24 }
 0x1d9   : > { %v2301_v33 = vmax.f32 %v1817_v60, 0.0  ;;  %4137 = vmatprep.mubr.bf16.mxu1 %v4814_v42 }
 0x1da   : > { %v2425_v21 = vpack.c.bf16 %v2303_v32, %v2302_v31 }
 0x1db   : > { %v2424_v34 = vpack.c.bf16 %v2301_v33, %v2300_v25  ;;  %v4031_v35 = vpop.f32.mrb[76].mxu1 }
 0x1dc   : > { %v1838_v36 = vadd.f32 %v4031_v35, %v4847_v11  ;;  %v1829_v38 = vpop.f32.mrb[77].mxu1 }
 0x1dd   : > { %v1830_v39 = vadd.f32 %v4847_v11, %v1829_v38  ;;  %v4032_v45 = vpop.f32.mrb[78].mxu1  ;;  %4169 = vmatprep.mubr.bf16.mxu0 %v2424_v34 }
 0x1de   : > { %v1841_v48 = vadd.f32 %v4032_v45, %v4847_v11  ;;  %v1832_v51 = vpop.f32.mrb[79].mxu1  ;;  %4170 = vmatmul.mubr.bf16.gmra.mrb[72].mxu0 %v2425_v21  ;;  %v2306_v18 = vmax.f32 %v1838_v36, 0.0 }
 0x1df   : > { %v1833_v24 = vadd.f32 %v4847_v11, %v1832_v51  ;;  %v2304_v42 = vmax.f32 %v1830_v39, 0.0 }
 0x1e0   : > { %v2307_v52 = vmax.f32 %v1841_v48, 0.0  ;;  %4138 = vmatmul.mubr.bf16.gmra.mrb[184].mxu1 %v4812_v41 }
 0x1e1   : > { %v2305_v54 = vmax.f32 %v1833_v24, 0.0  ;;  %4141 = vmatprep.mubr.bf16.mxu1 %v4824_v2 }
 0x1e2   : > { %v2427_v50 = vpack.c.bf16 %v2307_v52, %v2306_v18 }
 0x1e3   : > { %v2426_v55 = vpack.c.bf16 %v2305_v54, %v2304_v42  ;;  %v4035_v57 = vpop.f32.mrb[80].mxu1 }
 0x1e4   : > { %v1854_v58 = vadd.f32 %v4035_v57, %v4847_v11  ;;  %v1845_v59 = vpop.f32.mrb[81].mxu1 }
 0x1e5   : > { %v1846_v61 = vadd.f32 %v4847_v11, %v1845_v59  ;;  %v4036_v47 = vpop.f32.mrb[82].mxu1  ;;  %4173 = vmatprep.mubr.bf16.mxu0 %v2426_v55 }
 0x1e6   : > { %v1857_v12 = vadd.f32 %v4036_v47, %v4847_v11  ;;  %v1848_v15 = vpop.f32.mrb[83].mxu1  ;;  %4174 = vmatmul.mubr.bf16.gmra.mrb[76].mxu0 %v2427_v50  ;;  %v2310_v43 = vmax.f32 %v1854_v58, 0.0 }
 0x1e7   : > { %v1849_v41 = vadd.f32 %v4847_v11, %v1848_v15  ;;  %v2308_v2 = vmax.f32 %v1846_v61, 0.0 }
 0x1e8   : > { %v2311_v46 = vmax.f32 %v1857_v12, 0.0  ;;  %4142 = vmatmul.mubr.bf16.gmra.mrb[188].mxu1 %v4822_v0 }
 0x1e9   : > { %v2309_v9 = vmax.f32 %v1849_v41, 0.0 }
 0x1ea   : > { %v2429_v14 = vpack.c.bf16 %v2311_v46, %v2310_v43 }
 0x1eb   : > { %v2428_v44 = vpack.c.bf16 %v2309_v9, %v2308_v2  ;;  %v4039_v49 = vpop.f32.mrb[84].mxu1 }
 0x1ec   : > { %v1870_v16 = vadd.f32 %v4039_v49, %v4847_v11  ;;  %v1861_v20 = vpop.f32.mrb[85].mxu1 }
 0x1ed   : > { %v1862_v53 = vadd.f32 %v4847_v11, %v1861_v20  ;;  %v4040_v56 = vpop.f32.mrb[86].mxu1  ;;  %4177 = vmatprep.mubr.bf16.mxu0 %v2428_v44 }
 0x1ee   : > { %v1873_v26 = vadd.f32 %v4040_v56, %v4847_v11  ;;  %v1864_v29 = vpop.f32.mrb[87].mxu1  ;;  %4178 = vmatmul.mubr.bf16.gmra.mrb[80].mxu0 %v2429_v14  ;;  %v2314_v1 = vmax.f32 %v1870_v16, 0.0 }
 0x1ef   : > { %v1865_v62 = vadd.f32 %v4847_v11, %v1864_v29  ;;  %v2312_v37 = vmax.f32 %v1862_v53, 0.0 }
 0x1f0   : > { %v2315_v0 = vmax.f32 %v1873_v26, 0.0 }
 0x1f1   : > { %v2313_v40 = vmax.f32 %v1865_v62, 0.0 }
 0x1f2   : > { %v2431_v23 = vpack.c.bf16 %v2315_v0, %v2314_v1 }
 0x1f3   : > { %v2430_v3 = vpack.c.bf16 %v2313_v40, %v2312_v37  ;;  %v4043_v17 = vpop.f32.mrb[88].mxu1 }
 0x1f4   : > { %v1886_v4 = vadd.f32 %v4043_v17, %v4847_v11  ;;  %v1877_v5 = vpop.f32.mrb[89].mxu1 }
 0x1f5   : > { %v1878_v63 = vadd.f32 %v4847_v11, %v1877_v5  ;;  %v4044_v6 = vpop.f32.mrb[90].mxu1  ;;  %4181 = vmatprep.mubr.bf16.mxu0 %v2430_v3 }
 0x1f6   : > { %v1889_v7 = vadd.f32 %v4044_v6, %v4847_v11  ;;  %v1880_v8 = vpop.f32.mrb[91].mxu1  ;;  %4182 = vmatmul.mubr.bf16.gmra.mrb[84].mxu0 %v2431_v23  ;;  %v2318_v13 = vmax.f32 %v1886_v4, 0.0 }
 0x1f7   : > { %v1881_v10 = vadd.f32 %v4847_v11, %v1880_v8  ;;  %v2316_v22 = vmax.f32 %v1878_v63, 0.0 }
 0x1f8   : > { %v2319_v19 = vmax.f32 %v1889_v7, 0.0 }
 0x1f9   : > { %v2317_v27 = vmax.f32 %v1881_v10, 0.0 }
 0x1fa   : > { %v2433_v28 = vpack.c.bf16 %v2319_v19, %v2318_v13 }
 0x1fb   : > { %v2432_v30 = vpack.c.bf16 %v2317_v27, %v2316_v22  ;;  %v4047_v60 = vpop.f32.mrb[92].mxu1 }
 0x1fc   : > { %v1902_v31 = vadd.f32 %v4047_v60, %v4847_v11  ;;  %v1893_v32 = vpop.f32.mrb[93].mxu1 }
 0x1fd   : > { %v1894_v25 = vadd.f32 %v4847_v11, %v1893_v32  ;;  %v4048_v33 = vpop.f32.mrb[94].mxu1  ;;  %4185 = vmatprep.mubr.bf16.mxu0 %v2432_v30 }
 0x1fe   : > { %v1905_v21 = vadd.f32 %v4048_v33, %v4847_v11  ;;  %v1896_v34 = vpop.f32.mrb[95].mxu1  ;;  %4186 = vmatmul.mubr.bf16.gmra.mrb[88].mxu0 %v2433_v28  ;;  %v2322_v36 = vmax.f32 %v1902_v31, 0.0 }
 0x1ff   : > { %v1897_v35 = vadd.f32 %v4847_v11, %v1896_v34  ;;  %v2320_v39 = vmax.f32 %v1894_v25, 0.0 }
 0x200   : > { %v2323_v38 = vmax.f32 %v1905_v21, 0.0 }
 0x201   : > { %v2321_v45 = vmax.f32 %v1897_v35, 0.0 }
 0x202   : > { %v2435_v48 = vpack.c.bf16 %v2323_v38, %v2322_v36 }
 0x203   : > { %v2434_v51 = vpack.c.bf16 %v2321_v45, %v2320_v39  ;;  %v4051_v24 = vpop.f32.mrb[96].mxu1 }
 0x204   : > { %v1918_v18 = vadd.f32 %v4051_v24, %v4847_v11  ;;  %v1909_v52 = vpop.f32.mrb[97].mxu1 }
 0x205   : > { %v1910_v42 = vadd.f32 %v4847_v11, %v1909_v52  ;;  %v4052_v54 = vpop.f32.mrb[98].mxu1  ;;  %4189 = vmatprep.mubr.bf16.mxu0 %v2434_v51 }
 0x206   : > { %v1921_v50 = vadd.f32 %v4052_v54, %v4847_v11  ;;  %v1912_v55 = vpop.f32.mrb[99].mxu1  ;;  %4190 = vmatmul.mubr.bf16.gmra.mrb[92].mxu0 %v2435_v48  ;;  %v2326_v58 = vmax.f32 %v1918_v18, 0.0 }
 0x207   : > { %v1913_v57 = vadd.f32 %v4847_v11, %v1912_v55  ;;  %v2324_v61 = vmax.f32 %v1910_v42, 0.0 }
 0x208   : > { %v2327_v59 = vmax.f32 %v1921_v50, 0.0 }
 0x209   : > { %v2325_v47 = vmax.f32 %v1913_v57, 0.0 }
 0x20a   : > { %v2437_v12 = vpack.c.bf16 %v2327_v59, %v2326_v58 }
 0x20b   : > { %v2436_v15 = vpack.c.bf16 %v2325_v47, %v2324_v61  ;;  %v4055_v41 = vpop.f32.mrb[100].mxu1 }
 0x20c   : > { %v1934_v43 = vadd.f32 %v4055_v41, %v4847_v11  ;;  %v1925_v46 = vpop.f32.mrb[101].mxu1 }
 0x20d   : > { %v1926_v2 = vadd.f32 %v4847_v11, %v1925_v46  ;;  %v4056_v9 = vpop.f32.mrb[102].mxu1  ;;  %4193 = vmatprep.mubr.bf16.mxu0 %v2436_v15 }
 0x20e   : > { %v1937_v14 = vadd.f32 %v4056_v9, %v4847_v11  ;;  %v1928_v44 = vpop.f32.mrb[103].mxu1  ;;  %4194 = vmatmul.mubr.bf16.gmra.mrb[96].mxu0 %v2437_v12  ;;  %v2330_v16 = vmax.f32 %v1934_v43, 0.0 }
 0x20f   : > { %v1929_v49 = vadd.f32 %v4847_v11, %v1928_v44  ;;  %v2328_v53 = vmax.f32 %v1926_v2, 0.0 }
 0x210   : > { %v2331_v20 = vmax.f32 %v1937_v14, 0.0 }
 0x211   : > { %v2329_v56 = vmax.f32 %v1929_v49, 0.0 }
 0x212   : > { %v2439_v26 = vpack.c.bf16 %v2331_v20, %v2330_v16 }
 0x213   : > { %v2438_v29 = vpack.c.bf16 %v2329_v56, %v2328_v53  ;;  %v4059_v62 = vpop.f32.mrb[104].mxu1 }
 0x214   : > { %v1950_v1 = vadd.f32 %v4059_v62, %v4847_v11  ;;  %v1941_v0 = vpop.f32.mrb[105].mxu1 }
 0x215   : > { %v1942_v37 = vadd.f32 %v4847_v11, %v1941_v0  ;;  %v4060_v40 = vpop.f32.mrb[106].mxu1  ;;  %4197 = vmatprep.mubr.bf16.mxu0 %v2438_v29 }
 0x216   : > { %v1953_v23 = vadd.f32 %v4060_v40, %v4847_v11  ;;  %v1944_v3 = vpop.f32.mrb[107].mxu1  ;;  %4198 = vmatmul.mubr.bf16.gmra.mrb[100].mxu0 %v2439_v26  ;;  %v2334_v4 = vmax.f32 %v1950_v1, 0.0 }
 0x217   : > { %v1945_v17 = vadd.f32 %v4847_v11, %v1944_v3  ;;  %v2332_v63 = vmax.f32 %v1942_v37, 0.0 }
 0x218   : > { %v2335_v5 = vmax.f32 %v1953_v23, 0.0 }
 0x219   : > { %v2333_v6 = vmax.f32 %v1945_v17, 0.0 }
 0x21a   : > { %v2441_v7 = vpack.c.bf16 %v2335_v5, %v2334_v4 }
 0x21b   : > { %v2440_v8 = vpack.c.bf16 %v2333_v6, %v2332_v63  ;;  %v4063_v10 = vpop.f32.mrb[108].mxu1 }
 0x21c   : > { %v1966_v13 = vadd.f32 %v4063_v10, %v4847_v11  ;;  %v1957_v19 = vpop.f32.mrb[109].mxu1 }
 0x21d   : > { %v1958_v22 = vadd.f32 %v4847_v11, %v1957_v19  ;;  %v4064_v27 = vpop.f32.mrb[110].mxu1  ;;  %4201 = vmatprep.mubr.bf16.mxu0 %v2440_v8 }
 0x21e   : > { %v1969_v28 = vadd.f32 %v4064_v27, %v4847_v11  ;;  %v1960_v30 = vpop.f32.mrb[111].mxu1  ;;  %4202 = vmatmul.mubr.bf16.gmra.mrb[104].mxu0 %v2441_v7  ;;  %v2338_v31 = vmax.f32 %v1966_v13, 0.0 }
 0x21f   : > { %v1961_v60 = vadd.f32 %v4847_v11, %v1960_v30  ;;  %v2336_v25 = vmax.f32 %v1958_v22, 0.0 }
 0x220   : > { %v2339_v32 = vmax.f32 %v1969_v28, 0.0 }
 0x221   : > { %v2337_v33 = vmax.f32 %v1961_v60, 0.0 }
 0x222   : > { %v2443_v21 = vpack.c.bf16 %v2339_v32, %v2338_v31 }
 0x223   : > { %v2442_v34 = vpack.c.bf16 %v2337_v33, %v2336_v25  ;;  %v4067_v35 = vpop.f32.mrb[112].mxu1 }
 0x224   : > { %v1982_v36 = vadd.f32 %v4067_v35, %v4847_v11  ;;  %v1973_v38 = vpop.f32.mrb[113].mxu1 }
 0x225   : > { %v1974_v39 = vadd.f32 %v4847_v11, %v1973_v38  ;;  %v4068_v45 = vpop.f32.mrb[114].mxu1  ;;  %4205 = vmatprep.mubr.bf16.mxu0 %v2442_v34 }
 0x226   : > { %v1985_v48 = vadd.f32 %v4068_v45, %v4847_v11  ;;  %v1976_v51 = vpop.f32.mrb[115].mxu1  ;;  %4206 = vmatmul.mubr.bf16.gmra.mrb[108].mxu0 %v2443_v21  ;;  %v2342_v18 = vmax.f32 %v1982_v36, 0.0 }
 0x227   : > { %v1977_v24 = vadd.f32 %v4847_v11, %v1976_v51  ;;  %v2340_v42 = vmax.f32 %v1974_v39, 0.0 }
 0x228   : > { %v2343_v52 = vmax.f32 %v1985_v48, 0.0 }
 0x229   : > { %v2341_v54 = vmax.f32 %v1977_v24, 0.0 }
 0x22a   : > { %v2445_v50 = vpack.c.bf16 %v2343_v52, %v2342_v18 }
 0x22b   : > { %v2444_v55 = vpack.c.bf16 %v2341_v54, %v2340_v42  ;;  %v4071_v57 = vpop.f32.mrb[116].mxu1 }
 0x22c   : > { %v1998_v58 = vadd.f32 %v4071_v57, %v4847_v11  ;;  %v1989_v59 = vpop.f32.mrb[117].mxu1 }
 0x22d   : > { %v1990_v61 = vadd.f32 %v4847_v11, %v1989_v59  ;;  %v4072_v47 = vpop.f32.mrb[118].mxu1  ;;  %4209 = vmatprep.mubr.bf16.mxu0 %v2444_v55 }
 0x22e   : > { %v2001_v12 = vadd.f32 %v4072_v47, %v4847_v11  ;;  %v1992_v15 = vpop.f32.mrb[119].mxu1  ;;  %4210 = vmatmul.mubr.bf16.gmra.mrb[112].mxu0 %v2445_v50  ;;  %v2346_v43 = vmax.f32 %v1998_v58, 0.0 }
 0x22f   : > { %v1993_v41 = vadd.f32 %v4847_v11, %v1992_v15  ;;  %v2344_v2 = vmax.f32 %v1990_v61, 0.0 }
 0x230   : > { %v2347_v46 = vmax.f32 %v2001_v12, 0.0 }
 0x231   : > { %v2345_v9 = vmax.f32 %v1993_v41, 0.0 }
 0x232   : > { %v2447_v14 = vpack.c.bf16 %v2347_v46, %v2346_v43 }
 0x233   : > { %v2446_v44 = vpack.c.bf16 %v2345_v9, %v2344_v2  ;;  %v4075_v49 = vpop.f32.mrb[120].mxu1 }
 0x234   : > { %v2014_v16 = vadd.f32 %v4075_v49, %v4847_v11  ;;  %v2005_v20 = vpop.f32.mrb[121].mxu1 }
 0x235   : > { %v2006_v53 = vadd.f32 %v4847_v11, %v2005_v20  ;;  %v4076_v56 = vpop.f32.mrb[122].mxu1  ;;  %4213 = vmatprep.mubr.bf16.mxu0 %v2446_v44 }
 0x236   : > { %v2017_v26 = vadd.f32 %v4076_v56, %v4847_v11  ;;  %v2008_v29 = vpop.f32.mrb[123].mxu1  ;;  %4214 = vmatmul.mubr.bf16.gmra.mrb[116].mxu0 %v2447_v14  ;;  %v2350_v1 = vmax.f32 %v2014_v16, 0.0 }
 0x237   : > { %v2009_v62 = vadd.f32 %v4847_v11, %v2008_v29  ;;  %v2348_v37 = vmax.f32 %v2006_v53, 0.0 }
 0x238   : > { %v2351_v0 = vmax.f32 %v2017_v26, 0.0 }
 0x239   : > { %v2349_v40 = vmax.f32 %v2009_v62, 0.0 }
 0x23a   : > { %v2449_v23 = vpack.c.bf16 %v2351_v0, %v2350_v1 }
 0x23b   : > { %v2448_v3 = vpack.c.bf16 %v2349_v40, %v2348_v37  ;;  %v4079_v17 = vpop.f32.mrb[124].mxu1 }
 0x23c   : > { %v2030_v4 = vadd.f32 %v4079_v17, %v4847_v11  ;;  %v2021_v5 = vpop.f32.mrb[125].mxu1 }
 0x23d   : > { %v2022_v63 = vadd.f32 %v4847_v11, %v2021_v5  ;;  %v4080_v6 = vpop.f32.mrb[126].mxu1  ;;  %4217 = vmatprep.mubr.bf16.mxu0 %v2448_v3 }
 0x23e   : > { %v2033_v7 = vadd.f32 %v4080_v6, %v4847_v11  ;;  %v2024_v8 = vpop.f32.mrb[127].mxu1  ;;  %4218 = vmatmul.mubr.bf16.gmra.mrb[120].mxu0 %v2449_v23  ;;  %v2354_v13 = vmax.f32 %v2030_v4, 0.0 }
 0x23f   : > { %v2025_v10 = vadd.f32 %v4847_v11, %v2024_v8  ;;  %v2352_v22 = vmax.f32 %v2022_v63, 0.0 }
 0x240   : > { %v2355_v19 = vmax.f32 %v2033_v7, 0.0 }
 0x241   : > { %v2353_v27 = vmax.f32 %v2025_v10, 0.0 }
 0x242   : > { %v2451_v28 = vpack.c.bf16 %v2355_v19, %v2354_v13 }
 0x243   : > { %v2450_v30 = vpack.c.bf16 %v2353_v27, %v2352_v22  ;;  %v4083_v60 = vpop.f32.mrb[128].mxu1 }
 0x244   : > { %v2046_v31 = vadd.f32 %v4083_v60, %v4847_v11  ;;  %v2037_v32 = vpop.f32.mrb[129].mxu1 }
 0x245   : > { %v2038_v25 = vadd.f32 %v4847_v11, %v2037_v32  ;;  %v4084_v33 = vpop.f32.mrb[130].mxu1  ;;  %4221 = vmatprep.mubr.bf16.mxu0 %v2450_v30 }
 0x246   : > { %v2049_v21 = vadd.f32 %v4084_v33, %v4847_v11  ;;  %v2040_v34 = vpop.f32.mrb[131].mxu1  ;;  %4222 = vmatmul.mubr.bf16.gmra.mrb[124].mxu0 %v2451_v28  ;;  %v2358_v36 = vmax.f32 %v2046_v31, 0.0 }
 0x247   : > { %v2041_v35 = vadd.f32 %v4847_v11, %v2040_v34  ;;  %v2356_v39 = vmax.f32 %v2038_v25, 0.0 }
 0x248   : > { %v2359_v38 = vmax.f32 %v2049_v21, 0.0 }
 0x249   : > { %v2357_v45 = vmax.f32 %v2041_v35, 0.0 }
 0x24a   : > { %v2453_v48 = vpack.c.bf16 %v2359_v38, %v2358_v36 }
 0x24b   : > { %v2452_v51 = vpack.c.bf16 %v2357_v45, %v2356_v39  ;;  %v4087_v24 = vpop.f32.mrb[132].mxu1 }
 0x24c   : > { %v2062_v18 = vadd.f32 %v4087_v24, %v4847_v11  ;;  %v2053_v52 = vpop.f32.mrb[133].mxu1 }
 0x24d   : > { %v2054_v42 = vadd.f32 %v4847_v11, %v2053_v52  ;;  %v4088_v54 = vpop.f32.mrb[134].mxu1  ;;  %4225 = vmatprep.mubr.bf16.mxu0 %v2452_v51 }
 0x24e   : > { %v2065_v50 = vadd.f32 %v4088_v54, %v4847_v11  ;;  %v2056_v55 = vpop.f32.mrb[135].mxu1  ;;  %4226 = vmatmul.mubr.bf16.gmra.mrb[128].mxu0 %v2453_v48  ;;  %v2362_v58 = vmax.f32 %v2062_v18, 0.0 }
 0x24f   : > { %v2057_v57 = vadd.f32 %v4847_v11, %v2056_v55  ;;  %v2360_v61 = vmax.f32 %v2054_v42, 0.0 }
 0x250   : > { %v2363_v59 = vmax.f32 %v2065_v50, 0.0 }
 0x251   : > { %v2361_v47 = vmax.f32 %v2057_v57, 0.0 }
 0x252   : > { %v2455_v12 = vpack.c.bf16 %v2363_v59, %v2362_v58 }
 0x253   : > { %v2454_v15 = vpack.c.bf16 %v2361_v47, %v2360_v61  ;;  %v4091_v41 = vpop.f32.mrb[136].mxu1 }
 0x254   : > { %v2078_v43 = vadd.f32 %v4091_v41, %v4847_v11  ;;  %v2069_v46 = vpop.f32.mrb[137].mxu1 }
 0x255   : > { %v2070_v2 = vadd.f32 %v4847_v11, %v2069_v46  ;;  %v4092_v9 = vpop.f32.mrb[138].mxu1  ;;  %4229 = vmatprep.mubr.bf16.mxu0 %v2454_v15 }
 0x256   : > { %v2081_v14 = vadd.f32 %v4092_v9, %v4847_v11  ;;  %v2072_v44 = vpop.f32.mrb[139].mxu1  ;;  %4230 = vmatmul.mubr.bf16.gmra.mrb[132].mxu0 %v2455_v12  ;;  %v2366_v16 = vmax.f32 %v2078_v43, 0.0 }
 0x257   : > { %v2073_v49 = vadd.f32 %v4847_v11, %v2072_v44  ;;  %v2364_v53 = vmax.f32 %v2070_v2, 0.0 }
 0x258   : > { %v2367_v20 = vmax.f32 %v2081_v14, 0.0 }
 0x259   : > { %v2365_v56 = vmax.f32 %v2073_v49, 0.0 }
 0x25a   : > { %v2457_v26 = vpack.c.bf16 %v2367_v20, %v2366_v16 }
 0x25b   : > { %v2456_v29 = vpack.c.bf16 %v2365_v56, %v2364_v53  ;;  %v4095_v62 = vpop.f32.mrb[140].mxu1 }
 0x25c   : > { %v2094_v1 = vadd.f32 %v4095_v62, %v4847_v11  ;;  %v2085_v0 = vpop.f32.mrb[141].mxu1 }
 0x25d   : > { %v2086_v37 = vadd.f32 %v4847_v11, %v2085_v0  ;;  %v4096_v40 = vpop.f32.mrb[142].mxu1  ;;  %4233 = vmatprep.mubr.bf16.mxu0 %v2456_v29 }
 0x25e   : > { %v2097_v23 = vadd.f32 %v4096_v40, %v4847_v11  ;;  %v2088_v3 = vpop.f32.mrb[143].mxu1  ;;  %4234 = vmatmul.mubr.bf16.gmra.mrb[136].mxu0 %v2457_v26  ;;  %v2370_v4 = vmax.f32 %v2094_v1, 0.0 }
 0x25f   : > { %v2089_v17 = vadd.f32 %v4847_v11, %v2088_v3  ;;  %v2368_v63 = vmax.f32 %v2086_v37, 0.0 }
 0x260   : > { %v2371_v5 = vmax.f32 %v2097_v23, 0.0 }
 0x261   : > { %v2369_v6 = vmax.f32 %v2089_v17, 0.0 }
 0x262   : > { %v2459_v7 = vpack.c.bf16 %v2371_v5, %v2370_v4 }
 0x263   : > { %v2458_v8 = vpack.c.bf16 %v2369_v6, %v2368_v63  ;;  %v4099_v10 = vpop.f32.mrb[144].mxu1 }
 0x264   : > { %v2110_v13 = vadd.f32 %v4099_v10, %v4847_v11  ;;  %v2101_v19 = vpop.f32.mrb[145].mxu1 }
 0x265   : > { %v2102_v22 = vadd.f32 %v4847_v11, %v2101_v19  ;;  %v4100_v27 = vpop.f32.mrb[146].mxu1  ;;  %4237 = vmatprep.mubr.bf16.mxu0 %v2458_v8 }
 0x266   : > { %v2113_v28 = vadd.f32 %v4100_v27, %v4847_v11  ;;  %v2104_v30 = vpop.f32.mrb[147].mxu1  ;;  %4238 = vmatmul.mubr.bf16.gmra.mrb[140].mxu0 %v2459_v7  ;;  %v2374_v31 = vmax.f32 %v2110_v13, 0.0 }
 0x267   : > { %v2105_v60 = vadd.f32 %v4847_v11, %v2104_v30  ;;  %v2372_v25 = vmax.f32 %v2102_v22, 0.0 }
 0x268   : > { %v2375_v32 = vmax.f32 %v2113_v28, 0.0 }
 0x269   : > { %v2373_v33 = vmax.f32 %v2105_v60, 0.0 }
 0x26a   : > { %v2461_v21 = vpack.c.bf16 %v2375_v32, %v2374_v31 }
 0x26b   : > { %v2460_v34 = vpack.c.bf16 %v2373_v33, %v2372_v25  ;;  %v4103_v35 = vpop.f32.mrb[148].mxu1 }
 0x26c   : > { %v2126_v36 = vadd.f32 %v4103_v35, %v4847_v11  ;;  %v2117_v38 = vpop.f32.mrb[149].mxu1 }
 0x26d   : > { %v2118_v39 = vadd.f32 %v4847_v11, %v2117_v38  ;;  %v4104_v45 = vpop.f32.mrb[150].mxu1  ;;  %4241 = vmatprep.mubr.bf16.mxu0 %v2460_v34 }
 0x26e   : > { %v2129_v48 = vadd.f32 %v4104_v45, %v4847_v11  ;;  %v2120_v51 = vpop.f32.mrb[151].mxu1  ;;  %4242 = vmatmul.mubr.bf16.gmra.mrb[144].mxu0 %v2461_v21  ;;  %v2378_v18 = vmax.f32 %v2126_v36, 0.0 }
 0x26f   : > { %v2121_v24 = vadd.f32 %v4847_v11, %v2120_v51  ;;  %v2376_v42 = vmax.f32 %v2118_v39, 0.0 }
 0x270   : > { %v2379_v52 = vmax.f32 %v2129_v48, 0.0 }
 0x271   : > { %v2377_v54 = vmax.f32 %v2121_v24, 0.0 }
 0x272   : > { %v2463_v50 = vpack.c.bf16 %v2379_v52, %v2378_v18 }
 0x273   : > { %v2462_v55 = vpack.c.bf16 %v2377_v54, %v2376_v42  ;;  %v4107_v57 = vpop.f32.mrb[152].mxu1 }
 0x274   : > { %v2142_v58 = vadd.f32 %v4107_v57, %v4847_v11  ;;  %v2133_v59 = vpop.f32.mrb[153].mxu1 }
 0x275   : > { %v2134_v61 = vadd.f32 %v4847_v11, %v2133_v59  ;;  %v4108_v47 = vpop.f32.mrb[154].mxu1  ;;  %4245 = vmatprep.mubr.bf16.mxu0 %v2462_v55 }
 0x276   : > { %v2145_v12 = vadd.f32 %v4108_v47, %v4847_v11  ;;  %v2136_v15 = vpop.f32.mrb[155].mxu1  ;;  %4246 = vmatmul.mubr.bf16.gmra.mrb[148].mxu0 %v2463_v50  ;;  %v2382_v43 = vmax.f32 %v2142_v58, 0.0 }
 0x277   : > { %v2137_v41 = vadd.f32 %v4847_v11, %v2136_v15  ;;  %v2380_v2 = vmax.f32 %v2134_v61, 0.0 }
 0x278   : > { %v2383_v46 = vmax.f32 %v2145_v12, 0.0 }
 0x279   : > { %v2381_v9 = vmax.f32 %v2137_v41, 0.0 }
 0x27a   : > { %v2465_v14 = vpack.c.bf16 %v2383_v46, %v2382_v43 }
 0x27b   : > { %v2464_v44 = vpack.c.bf16 %v2381_v9, %v2380_v2  ;;  %v4111_v49 = vpop.f32.mrb[156].mxu1 }
 0x27c   : > { %v2158_v16 = vadd.f32 %v4111_v49, %v4847_v11  ;;  %v2149_v20 = vpop.f32.mrb[157].mxu1 }
 0x27d   : > { %v2150_v53 = vadd.f32 %v4847_v11, %v2149_v20  ;;  %v4112_v56 = vpop.f32.mrb[158].mxu1  ;;  %4249 = vmatprep.mubr.bf16.mxu0 %v2464_v44 }
 0x27e   : > { %v2161_v26 = vadd.f32 %v4112_v56, %v4847_v11  ;;  %v2152_v29 = vpop.f32.mrb[159].mxu1  ;;  %4250 = vmatmul.mubr.bf16.gmra.mrb[152].mxu0 %v2465_v14  ;;  %v2386_v1 = vmax.f32 %v2158_v16, 0.0 }
 0x27f   : > { %v2153_v62 = vadd.f32 %v4847_v11, %v2152_v29  ;;  %v2384_v37 = vmax.f32 %v2150_v53, 0.0 }
 0x280   : > { %v2387_v0 = vmax.f32 %v2161_v26, 0.0 }
 0x281   : > { %v2385_v40 = vmax.f32 %v2153_v62, 0.0  ;;  %v4973_v62 = vld [vmem:[%s5151_s6] ss:$0 sm:$0xff] }
 0x282   : > { %v2467_v23 = vpack.c.bf16 %v2387_v0, %v2386_v1 }
 0x283   : > { %v2466_v3 = vpack.c.bf16 %v2385_v40, %v2384_v37  ;;  %v4115_v17 = vpop.f32.mrb[160].mxu1 }
 0x284   : > { %v2174_v4 = vadd.f32 %v4115_v17, %v4847_v11  ;;  %v2165_v5 = vpop.f32.mrb[161].mxu1 }
 0x285   : > { %v2166_v63 = vadd.f32 %v4847_v11, %v2165_v5  ;;  %v4116_v6 = vpop.f32.mrb[162].mxu1  ;;  %4253 = vmatprep.mubr.bf16.mxu0 %v2466_v3 }
 0x286   : > { %v2177_v7 = vadd.f32 %v4116_v6, %v4847_v11  ;;  %v2168_v8 = vpop.f32.mrb[163].mxu1  ;;  %4254 = vmatmul.mubr.bf16.gmra.mrb[156].mxu0 %v2467_v23  ;;  %v2390_v13 = vmax.f32 %v2174_v4, 0.0 }
 0x287   : > { %v2169_v10 = vadd.f32 %v4847_v11, %v2168_v8  ;;  %v2388_v22 = vmax.f32 %v2166_v63, 0.0 }
 0x288   : > { %v2391_v19 = vmax.f32 %v2177_v7, 0.0 }
 0x289   : > { %v2389_v27 = vmax.f32 %v2169_v10, 0.0 }
 0x28a   : > { %v2469_v28 = vpack.c.bf16 %v2391_v19, %v2390_v13 }
 0x28b   : > { %v2468_v30 = vpack.c.bf16 %v2389_v27, %v2388_v22  ;;  %v4119_v60 = vpop.f32.mrb[164].mxu1 }
 0x28c   : > { %v2190_v31 = vadd.f32 %v4119_v60, %v4847_v11  ;;  %v2181_v32 = vpop.f32.mrb[165].mxu1 }
 0x28d   : > { %v2182_v25 = vadd.f32 %v4847_v11, %v2181_v32  ;;  %v4120_v33 = vpop.f32.mrb[166].mxu1  ;;  %4257 = vmatprep.mubr.bf16.mxu0 %v2468_v30 }
 0x28e   : > { %v2193_v21 = vadd.f32 %v4120_v33, %v4847_v11  ;;  %v2184_v34 = vpop.f32.mrb[167].mxu1  ;;  %4258 = vmatmul.mubr.bf16.gmra.mrb[160].mxu0 %v2469_v28  ;;  %v2394_v36 = vmax.f32 %v2190_v31, 0.0 }
 0x28f   : > { %v2185_v35 = vadd.f32 %v4847_v11, %v2184_v34  ;;  %v2392_v39 = vmax.f32 %v2182_v25, 0.0 }
 0x290   : > { %v2395_v38 = vmax.f32 %v2193_v21, 0.0 }
 0x291   : > { %v2393_v45 = vmax.f32 %v2185_v35, 0.0 }
 0x292   : > { %v2471_v48 = vpack.c.bf16 %v2395_v38, %v2394_v36 }
 0x293   : > { %v2470_v51 = vpack.c.bf16 %v2393_v45, %v2392_v39  ;;  %v4123_v24 = vpop.f32.mrb[168].mxu1 }
 0x294   : > { %v2206_v18 = vadd.f32 %v4123_v24, %v4847_v11  ;;  %v2197_v52 = vpop.f32.mrb[169].mxu1 }
 0x295   : > { %v2198_v42 = vadd.f32 %v4847_v11, %v2197_v52  ;;  %v4124_v54 = vpop.f32.mrb[170].mxu1  ;;  %4261 = vmatprep.mubr.bf16.mxu0 %v2470_v51 }
 0x296   : > { %v2209_v50 = vadd.f32 %v4124_v54, %v4847_v11  ;;  %v2200_v55 = vpop.f32.mrb[171].mxu1  ;;  %4262 = vmatmul.mubr.bf16.gmra.mrb[164].mxu0 %v2471_v48  ;;  %v2398_v58 = vmax.f32 %v2206_v18, 0.0 }
 0x297   : > { %v2201_v57 = vadd.f32 %v4847_v11, %v2200_v55  ;;  %v2396_v61 = vmax.f32 %v2198_v42, 0.0 }
 0x298   : > { %v2399_v59 = vmax.f32 %v2209_v50, 0.0 }
 0x299   : > { %v2397_v47 = vmax.f32 %v2201_v57, 0.0 }
 0x29a   : > { %v2473_v12 = vpack.c.bf16 %v2399_v59, %v2398_v58 }
 0x29b   : > { %v2472_v15 = vpack.c.bf16 %v2397_v47, %v2396_v61  ;;  %v4127_v41 = vpop.f32.mrb[172].mxu1 }
 0x29c   : > { %v2222_v43 = vadd.f32 %v4127_v41, %v4847_v11  ;;  %v2213_v46 = vpop.f32.mrb[173].mxu1 }
 0x29d   : > { %v2214_v2 = vadd.f32 %v4847_v11, %v2213_v46  ;;  %v4128_v9 = vpop.f32.mrb[174].mxu1  ;;  %4265 = vmatprep.mubr.bf16.mxu0 %v2472_v15 }
 0x29e   : > { %v2225_v14 = vadd.f32 %v4128_v9, %v4847_v11  ;;  %v2216_v44 = vpop.f32.mrb[175].mxu1  ;;  %4266 = vmatmul.mubr.bf16.gmra.mrb[168].mxu0 %v2473_v12  ;;  %v2402_v16 = vmax.f32 %v2222_v43, 0.0 }
 0x29f   : > { %v2217_v49 = vadd.f32 %v4847_v11, %v2216_v44  ;;  %v2400_v53 = vmax.f32 %v2214_v2, 0.0 }
 0x2a0   : > { %v2403_v20 = vmax.f32 %v2225_v14, 0.0 }
 0x2a1   : > { %v2401_v56 = vmax.f32 %v2217_v49, 0.0  ;;  %v4163_v26 = vpop.f32.mrb[64].mxu0  ;;  %v4380_v49 = vld [vmem:[%s5149_s4] ss:$0 sm:$0xff] }
 0x2a2   : > { %v2475_v29 = vpack.c.bf16 %v2403_v20, %v2402_v16  ;;  %v2589_v1 = vpop.f32.mrb[65].mxu0  ;;  %v2598_v10 = vadd.f32 %v4163_v26, %v4973_v62 }
 0x2a3   : > { %v2474_v0 = vpack.c.bf16 %v2401_v56, %v2400_v53  ;;  %v4131_v37 = vpop.f32.mrb[176].mxu1  ;;  %v4164_v40 = vpop.f32.mrb[66].mxu0  ;;  %v2590_v4 = vadd.f32 %v4973_v62, %v2589_v1 }
 0x2a4   : > { %v2238_v23 = vadd.f32 %v4131_v37, %v4847_v11  ;;  %v2229_v3 = vpop.f32.mrb[177].mxu1  ;;  %v2592_v17 = vpop.f32.mrb[67].mxu0  ;;  %v2601_v28 = vadd.f32 %v4164_v40, %v4973_v62 }
 0x2a5   : > { %v2230_v5 = vadd.f32 %v4847_v11, %v2229_v3  ;;  %v2593_v63 = vadd.f32 %v4973_v62, %v2592_v17  ;;  %v4132_v6 = vpop.f32.mrb[178].mxu1  ;;  %4269 = vmatprep.mubr.bf16.mxu0 %v2474_v0 }
 0x2a6   : > { %v2241_v7 = vadd.f32 %v4132_v6, %v4847_v11  ;;  %v2232_v8 = vpop.f32.mrb[179].mxu1  ;;  %4270 = vmatmul.mubr.bf16.gmra.mrb[172].mxu0 %v2475_v29  ;;  %v2406_v22 = vmax.f32 %v2238_v23, 0.0 }
 0x2a7   : > { %v3100_v13 = vmax.f32 %v2590_v4, %v2593_v63  ;;  %v2233_v19 = vadd.f32 %v4847_v11, %v2232_v8  ;;  %v2404_v30 = vmax.f32 %v2230_v5, 0.0 }
 0x2a8   : > { %v2407_v27 = vmax.f32 %v2241_v7, 0.0 }
 0x2a9   : > { %v3101_v60 = vmax.f32 %v3100_v13, %v2598_v10  ;;  %v2405_v31 = vmax.f32 %v2233_v19, 0.0  ;;  %v4167_v32 = vpop.f32.mrb[68].mxu0 }
 0x2aa   : > { %v2477_v25 = vpack.c.bf16 %v2407_v27, %v2406_v22  ;;  %v2605_v33 = vpop.f32.mrb[69].mxu0  ;;  %v2614_v50 = vadd.f32 %v4167_v32, %v4973_v62 }
 0x2ab   : > { %v2476_v21 = vpack.c.bf16 %v2405_v31, %v2404_v30  ;;  %v2606_v34 = vadd.f32 %v4973_v62, %v2605_v33  ;;  %v3102_v35 = vmax.f32 %v3101_v60, %v2601_v28  ;;  %v4135_v36 = vpop.f32.mrb[180].mxu1  ;;  %v4168_v38 = vpop.f32.mrb[70].mxu0 }
 0x2ac   : > { %v2254_v39 = vadd.f32 %v4135_v36, %v4847_v11  ;;  %v2245_v45 = vpop.f32.mrb[181].mxu1  ;;  %v2608_v48 = vpop.f32.mrb[71].mxu0  ;;  %v2617_v61 = vadd.f32 %v4168_v38, %v4973_v62 }
 0x2ad   : > { %v3103_v51 = vmax.f32 %v3102_v35, %v2606_v34  ;;  %v2246_v24 = vadd.f32 %v4847_v11, %v2245_v45  ;;  %v2609_v18 = vadd.f32 %v4973_v62, %v2608_v48  ;;  %v4136_v52 = vpop.f32.mrb[182].mxu1  ;;  %4273 = vmatprep.mubr.bf16.mxu0 %v2476_v21 }
 0x2ae   : > { %v2257_v42 = vadd.f32 %v4136_v52, %v4847_v11  ;;  %v2248_v54 = vpop.f32.mrb[183].mxu1  ;;  %4274 = vmatmul.mubr.bf16.gmra.mrb[176].mxu0 %v2477_v25  ;;  %v2410_v58 = vmax.f32 %v2254_v39, 0.0 }
 0x2af   : > { %v3104_v55 = vmax.f32 %v3103_v51, %v2609_v18  ;;  %v2249_v57 = vadd.f32 %v4847_v11, %v2248_v54  ;;  %v2408_v47 = vmax.f32 %v2246_v24, 0.0 }
 0x2b0   : > { %v2411_v59 = vmax.f32 %v2257_v42, 0.0 }
 0x2b1   : > { %v3105_v12 = vmax.f32 %v3104_v55, %v2614_v50  ;;  %v2409_v15 = vmax.f32 %v2249_v57, 0.0  ;;  %v4171_v41 = vpop.f32.mrb[72].mxu0 }
 0x2b2   : > { %v2479_v43 = vpack.c.bf16 %v2411_v59, %v2410_v58  ;;  %v2621_v46 = vpop.f32.mrb[73].mxu0  ;;  %v2630_v40 = vadd.f32 %v4171_v41, %v4973_v62 }
 0x2b3   : > { %v3106_v2 = vmax.f32 %v3105_v12, %v2617_v61  ;;  %v2478_v9 = vpack.c.bf16 %v2409_v15, %v2408_v47  ;;  %v4139_v14 = vpop.f32.mrb[184].mxu1  ;;  %v4172_v44 = vpop.f32.mrb[74].mxu0  ;;  %v2622_v53 = vadd.f32 %v4973_v62, %v2621_v46 }
 0x2b4   : > { %v2270_v16 = vadd.f32 %v4380_v49, %v4139_v14  ;;  %v2261_v11 = vpop.f32.mrb[185].mxu1  ;;  %v2624_v20 = vpop.f32.mrb[75].mxu0  ;;  %v2633_v5 = vadd.f32 %v4172_v44, %v4973_v62 }
 0x2b5   : > { %v2262_v56 = vadd.f32 %v4380_v49, %v2261_v11  ;;  %v2625_v26 = vadd.f32 %v4973_v62, %v2624_v20  ;;  %v4140_v29 = vpop.f32.mrb[186].mxu1  ;;  %4277 = vmatprep.mubr.bf16.mxu0 %v2478_v9  ;;  %v3107_v37 = vrot.slane %v3106_v2, 4 }
 0x2b6   : > { %v2273_v1 = vadd.f32 %v4380_v49, %v4140_v29  ;;  %v2264_v0 = vpop.f32.mrb[187].mxu1  ;;  %4278 = vmatmul.mubr.bf16.gmra.mrb[180].mxu0 %v2479_v43  ;;  %v2414_v17 = vmax.f32 %v2270_v16, 0.0 }
 0x2b7   : > { %v3113_v23 = vmax.f32 %v2622_v53, %v2625_v26  ;;  %v2265_v3 = vadd.f32 %v4380_v49, %v2264_v0  ;;  %v2412_v63 = vmax.f32 %v2262_v56, 0.0  ;;  %v3108_v19 = vmax.f32 %v3106_v2, %v3107_v37 }
 0x2b8   : > { %v2415_v4 = vmax.f32 %v2273_v1, 0.0 }
 0x2b9   : > { %v3114_v6 = vmax.f32 %v3113_v23, %v2630_v40  ;;  %v2413_v7 = vmax.f32 %v2265_v3, 0.0  ;;  %v4175_v8 = vpop.f32.mrb[76].mxu0  ;;  %v3109_v39 = vrot.slane %v3108_v19, 2 }
 0x2ba   : > { %v2481_v10 = vpack.c.bf16 %v2415_v4, %v2414_v17  ;;  %v2637_v13 = vpop.f32.mrb[77].mxu0  ;;  %v2646_v45 = vadd.f32 %v4175_v8, %v4973_v62 }
 0x2bb   : > { %v2480_v22 = vpack.c.bf16 %v2413_v7, %v2412_v63  ;;  %v2638_v27 = vadd.f32 %v4973_v62, %v2637_v13  ;;  %v3115_v28 = vmax.f32 %v3114_v6, %v2633_v5  ;;  %v4143_v30 = vpop.f32.mrb[188].mxu1  ;;  %v4176_v60 = vpop.f32.mrb[78].mxu0  ;;  %v3110_v59 = vmax.f32 %v3108_v19, %v3109_v39 }
 0x2bc   : > { %v2286_v31 = vadd.f32 %v4380_v49, %v4143_v30  ;;  %v2277_v32 = vpop.f32.mrb[189].mxu1  ;;  %v2640_v25 = vpop.f32.mrb[79].mxu0  ;;  %v2649_v52 = vadd.f32 %v4176_v60, %v4973_v62 }
 0x2bd   : > { %v3116_v33 = vmax.f32 %v3115_v28, %v2638_v27  ;;  %v2278_v21 = vadd.f32 %v4380_v49, %v2277_v32  ;;  %v2641_v34 = vadd.f32 %v4973_v62, %v2640_v25  ;;  %v4144_v35 = vpop.f32.mrb[190].mxu1  ;;  %4281 = vmatprep.mubr.bf16.mxu0 %v2480_v22  ;;  %v3111_v2 = vrot.slane %v3110_v59, 1 }
 0x2be   : > { %v2289_v36 = vadd.f32 %v4380_v49, %v4144_v35  ;;  %v2280_v38 = vpop.f32.mrb[191].mxu1  ;;  %4282 = vmatmul.mubr.bf16.gmra.mrb[184].mxu0 %v2481_v10  ;;  %v2418_v24 = vmax.f32 %v2286_v31, 0.0 }
 0x2bf   : > { %v3117_v48 = vmax.f32 %v3116_v33, %v2641_v34  ;;  %v2281_v51 = vadd.f32 %v4380_v49, %v2280_v38  ;;  %v2416_v42 = vmax.f32 %v2278_v21, 0.0  ;;  %v3112_v56 = vmax.f32 %v3110_v59, %v3111_v2 }
 0x2c0   : > { %v2419_v18 = vmax.f32 %v2289_v36, 0.0 }
 0x2c1   : > { %v3118_v54 = vmax.f32 %v3117_v48, %v2646_v45  ;;  %v2417_v50 = vmax.f32 %v2281_v51, 0.0  ;;  %v4179_v55 = vpop.f32.mrb[80].mxu0  ;;  %v3646_v17 = vpack.c.bf16 %v3112_v56, %v3112_v56 }
 0x2c2   : > { %v2483_v57 = vpack.c.bf16 %v2419_v18, %v2418_v24  ;;  %v2653_v58 = vpop.f32.mrb[81].mxu0  ;;  %v2662_v14 = vadd.f32 %v4179_v55, %v4973_v62 }
 0x2c3   : > { %v3119_v61 = vmax.f32 %v3118_v54, %v2649_v52  ;;  %v2482_v47 = vpack.c.bf16 %v2417_v50, %v2416_v42  ;;  %v4180_v12 = vpop.f32.mrb[82].mxu0  ;;  %v2654_v43 = vadd.f32 %v4973_v62, %v2653_v58  ;;  %v3372_v19 = vunpack.c.l.b16 %v3646_v17 }
 0x2c4   : > { %v2656_v15 = vpop.f32.mrb[83].mxu0  ;;  %v2665_v16 = vadd.f32 %v4180_v12, %v4973_v62 }
 0x2c5   : > { %v3120_v41 = vrot.slane %v3119_v61, 4  ;;  %v2657_v46 = vadd.f32 %v4973_v62, %v2656_v15  ;;  %4285 = vmatprep.mubr.bf16.mxu0 %v2482_v47 }
 0x2c6   : > { %4286 = vmatmul.mubr.bf16.gmra.mrb[188].mxu0 %v2483_v57 }
 0x2c7   : > { %v3121_v9 = vmax.f32 %v3119_v61, %v3120_v41  ;;  %v3126_v44 = vmax.f32 %v2654_v43, %v2657_v46 }
 0x2c9   : > { %v3122_v49 = vrot.slane %v3121_v9, 2  ;;  %v3127_v11 = vmax.f32 %v3126_v44, %v2662_v14  ;;  %v4183_v20 = vpop.f32.mrb[84].mxu0 }
 0x2ca   : > { %v2669_v53 = vpop.f32.mrb[85].mxu0  ;;  %v2678_v5 = vadd.f32 %v4183_v20, %v4973_v62 }
 0x2cb   : > { %v3123_v26 = vmax.f32 %v3121_v9, %v3122_v49  ;;  %v2670_v29 = vadd.f32 %v4973_v62, %v2669_v53  ;;  %v3128_v1 = vmax.f32 %v3127_v11, %v2665_v16  ;;  %v4184_v0 = vpop.f32.mrb[86].mxu0 }
 0x2cc   : > { %v2672_v37 = vpop.f32.mrb[87].mxu0  ;;  %v2681_v7 = vadd.f32 %v4184_v0, %v4973_v62 }
 0x2cd   : > { %v3124_v40 = vrot.slane %v3123_v26, 1  ;;  %v3129_v23 = vmax.f32 %v3128_v1, %v2670_v29  ;;  %v2673_v3 = vadd.f32 %v4973_v62, %v2672_v37 }
 0x2cf   : > { %v3125_v4 = vmax.f32 %v3123_v26, %v3124_v40  ;;  %v3130_v63 = vmax.f32 %v3129_v23, %v2673_v3 }
 0x2d1   : > { %v3647_v6 = vpack.c.bf16 %v3125_v4, %v3125_v4  ;;  %v3131_v8 = vmax.f32 %v3130_v63, %v2678_v5  ;;  %v4187_v10 = vpop.f32.mrb[88].mxu0 }
 0x2d2   : > { %v2685_v13 = vpop.f32.mrb[89].mxu0  ;;  %v2694_v21 = vadd.f32 %v4187_v10, %v4973_v62 }
 0x2d3   : > { %v3373_v22 = vunpack.c.l.b16 %v3647_v6  ;;  %v3132_v27 = vmax.f32 %v3131_v8, %v2681_v7  ;;  %v4188_v28 = vpop.f32.mrb[90].mxu0  ;;  %v2686_v32 = vadd.f32 %v4973_v62, %v2685_v13 }
 0x2d4   : > { %v2688_v30 = vpop.f32.mrb[91].mxu0  ;;  %v2697_v36 = vadd.f32 %v4188_v28, %v4973_v62 }
 0x2d5   : > { %v3389_v60 = vsel %vm3388_vm1, %v3373_v22, %v3372_v19  ;;  %v3133_v31 = vrot.slane %v3132_v27, 4  ;;  %v2689_v25 = vadd.f32 %v4973_v62, %v2688_v30 }
 0x2d7   : > { %v3134_v33 = vmax.f32 %v3132_v27, %v3133_v31  ;;  %v3139_v34 = vmax.f32 %v2686_v32, %v2689_v25 }
 0x2d9   : > { %v3135_v35 = vrot.slane %v3134_v33, 2  ;;  %v3140_v38 = vmax.f32 %v3139_v34, %v2694_v21  ;;  %v4191_v39 = vpop.f32.mrb[92].mxu0 }
 0x2da   : > { %v2701_v45 = vpop.f32.mrb[93].mxu0  ;;  %v2710_v57 = vadd.f32 %v4191_v39, %v4973_v62 }
 0x2db   : > { %v3136_v48 = vmax.f32 %v3134_v33, %v3135_v35  ;;  %v2702_v51 = vadd.f32 %v4973_v62, %v2701_v45  ;;  %v3141_v24 = vmax.f32 %v3140_v38, %v2697_v36  ;;  %v4192_v18 = vpop.f32.mrb[94].mxu0 }
 0x2dc   : > { %v2704_v52 = vpop.f32.mrb[95].mxu0  ;;  %v2713_v61 = vadd.f32 %v4192_v18, %v4973_v62 }
 0x2dd   : > { %v3137_v42 = vrot.slane %v3136_v48, 1  ;;  %v3142_v54 = vmax.f32 %v3141_v24, %v2702_v51  ;;  %v2705_v50 = vadd.f32 %v4973_v62, %v2704_v52 }
 0x2df   : > { %v3138_v55 = vmax.f32 %v3136_v48, %v3137_v42  ;;  %v3143_v58 = vmax.f32 %v3142_v54, %v2705_v50 }
 0x2e1   : > { %v3648_v59 = vpack.c.bf16 %v3138_v55, %v3138_v55  ;;  %v3144_v47 = vmax.f32 %v3143_v58, %v2710_v57  ;;  %v4195_v12 = vpop.f32.mrb[96].mxu0 }
 0x2e2   : > { %v2717_v15 = vpop.f32.mrb[97].mxu0  ;;  %v2726_v11 = vadd.f32 %v4195_v12, %v4973_v62 }
 0x2e3   : > { %v3374_v41 = vunpack.c.l.b16 %v3648_v59  ;;  %v3145_v43 = vmax.f32 %v3144_v47, %v2713_v61  ;;  %v4196_v46 = vpop.f32.mrb[98].mxu0  ;;  %v2718_v44 = vadd.f32 %v4973_v62, %v2717_v15 }
 0x2e4   : > { %v2720_v2 = vpop.f32.mrb[99].mxu0  ;;  %v2729_v56 = vadd.f32 %v4196_v46, %v4973_v62 }
 0x2e5   : > { %v3391_v9 = vsel %vm3390_vm2, %v3374_v41, %v3389_v60  ;;  %v3146_v14 = vrot.slane %v3145_v43, 4  ;;  %v2721_v49 = vadd.f32 %v4973_v62, %v2720_v2 }
 0x2e7   : > { %v3147_v16 = vmax.f32 %v3145_v43, %v3146_v14  ;;  %v3152_v20 = vmax.f32 %v2718_v44, %v2721_v49 }
 0x2e9   : > { %v3148_v53 = vrot.slane %v3147_v16, 2  ;;  %v3153_v26 = vmax.f32 %v3152_v20, %v2726_v11  ;;  %v4199_v29 = vpop.f32.mrb[100].mxu0 }
 0x2ea   : > { %v2733_v1 = vpop.f32.mrb[101].mxu0  ;;  %v2742_v6 = vadd.f32 %v4199_v29, %v4973_v62 }
 0x2eb   : > { %v3149_v0 = vmax.f32 %v3147_v16, %v3148_v53  ;;  %v2734_v37 = vadd.f32 %v4973_v62, %v2733_v1  ;;  %v3154_v40 = vmax.f32 %v3153_v26, %v2729_v56  ;;  %v4200_v23 = vpop.f32.mrb[102].mxu0 }
 0x2ec   : > { %v2736_v3 = vpop.f32.mrb[103].mxu0  ;;  %v2745_v10 = vadd.f32 %v4200_v23, %v4973_v62 }
 0x2ed   : > { %v3150_v17 = vrot.slane %v3149_v0, 1  ;;  %v3155_v4 = vmax.f32 %v3154_v40, %v2734_v37  ;;  %v2737_v5 = vadd.f32 %v4973_v62, %v2736_v3 }
 0x2ef   : > { %v3151_v63 = vmax.f32 %v3149_v0, %v3150_v17  ;;  %v3156_v7 = vmax.f32 %v3155_v4, %v2737_v5 }
 0x2f1   : > { %v3649_v8 = vpack.c.bf16 %v3151_v63, %v3151_v63  ;;  %v3157_v13 = vmax.f32 %v3156_v7, %v2742_v6  ;;  %v4203_v19 = vpop.f32.mrb[104].mxu0 }
 0x2f2   : > { %v2749_v22 = vpop.f32.mrb[105].mxu0  ;;  %v2758_v34 = vadd.f32 %v4203_v19, %v4973_v62 }
 0x2f3   : > { %v3375_v27 = vunpack.c.l.b16 %v3649_v8  ;;  %v3158_v28 = vmax.f32 %v3157_v13, %v2745_v10  ;;  %v4204_v30 = vpop.f32.mrb[106].mxu0  ;;  %v2750_v25 = vadd.f32 %v4973_v62, %v2749_v22 }
 0x2f4   : > { %v2752_v60 = vpop.f32.mrb[107].mxu0  ;;  %v2761_v38 = vadd.f32 %v4204_v30, %v4973_v62 }
 0x2f5   : > { %v3393_v31 = vsel %vm3392_vm3, %v3375_v27, %v3391_v9  ;;  %v3159_v32 = vrot.slane %v3158_v28, 4  ;;  %v2753_v33 = vadd.f32 %v4973_v62, %v2752_v60 }
 0x2f7   : > { %v3160_v21 = vmax.f32 %v3158_v28, %v3159_v32  ;;  %v3165_v35 = vmax.f32 %v2750_v25, %v2753_v33 }
 0x2f9   : > { %v3161_v36 = vrot.slane %v3160_v21, 2  ;;  %v3166_v39 = vmax.f32 %v3165_v35, %v2758_v34  ;;  %v4207_v45 = vpop.f32.mrb[108].mxu0 }
 0x2fa   : > { %v2765_v48 = vpop.f32.mrb[109].mxu0  ;;  %v2774_v58 = vadd.f32 %v4207_v45, %v4973_v62 }
 0x2fb   : > { %v3162_v51 = vmax.f32 %v3160_v21, %v3161_v36  ;;  %v2766_v24 = vadd.f32 %v4973_v62, %v2765_v48  ;;  %v3167_v18 = vmax.f32 %v3166_v39, %v2761_v38  ;;  %v4208_v52 = vpop.f32.mrb[110].mxu0 }
 0x2fc   : > { %v2768_v42 = vpop.f32.mrb[111].mxu0  ;;  %v2777_v47 = vadd.f32 %v4208_v52, %v4973_v62 }
 0x2fd   : > { %v3163_v54 = vrot.slane %v3162_v51, 1  ;;  %v3168_v50 = vmax.f32 %v3167_v18, %v2766_v24  ;;  %v2769_v55 = vadd.f32 %v4973_v62, %v2768_v42 }
 0x2ff   : > { %v3164_v57 = vmax.f32 %v3162_v51, %v3163_v54  ;;  %v3169_v59 = vmax.f32 %v3168_v50, %v2769_v55 }
 0x301   : > { %v3650_v61 = vpack.c.bf16 %v3164_v57, %v3164_v57  ;;  %v3170_v12 = vmax.f32 %v3169_v59, %v2774_v58  ;;  %v4211_v15 = vpop.f32.mrb[112].mxu0 }
 0x302   : > { %v2781_v41 = vpop.f32.mrb[113].mxu0  ;;  %v2790_v20 = vadd.f32 %v4211_v15, %v4973_v62 }
 0x303   : > { %v3376_v43 = vunpack.c.l.b16 %v3650_v61  ;;  %v3171_v46 = vmax.f32 %v3170_v12, %v2777_v47  ;;  %v4212_v2 = vpop.f32.mrb[114].mxu0  ;;  %v2782_v49 = vadd.f32 %v4973_v62, %v2781_v41 }
 0x304   : > { %v2784_v9 = vpop.f32.mrb[115].mxu0  ;;  %v2793_v26 = vadd.f32 %v4212_v2, %v4973_v62 }
 0x305   : > { %v3395_v14 = vsel %vm3394_vm4, %v3376_v43, %v3393_v31  ;;  %v3172_v44 = vrot.slane %v3171_v46, 4  ;;  %v2785_v16 = vadd.f32 %v4973_v62, %v2784_v9 }
 0x307   : > { %v3173_v11 = vmax.f32 %v3171_v46, %v3172_v44  ;;  %v3178_v53 = vmax.f32 %v2782_v49, %v2785_v16 }
 0x309   : > { %v3174_v56 = vrot.slane %v3173_v11, 2  ;;  %v3179_v29 = vmax.f32 %v3178_v53, %v2790_v20  ;;  %v4215_v1 = vpop.f32.mrb[116].mxu0 }
 0x30a   : > { %v2797_v0 = vpop.f32.mrb[117].mxu0  ;;  %v2806_v7 = vadd.f32 %v4215_v1, %v4973_v62 }
 0x30b   : > { %v3175_v37 = vmax.f32 %v3173_v11, %v3174_v56  ;;  %v2798_v40 = vadd.f32 %v4973_v62, %v2797_v0  ;;  %v3180_v23 = vmax.f32 %v3179_v29, %v2793_v26  ;;  %v4216_v3 = vpop.f32.mrb[118].mxu0 }
 0x30c   : > { %v2800_v17 = vpop.f32.mrb[119].mxu0  ;;  %v2809_v13 = vadd.f32 %v4216_v3, %v4973_v62 }
 0x30d   : > { %v3176_v4 = vrot.slane %v3175_v37, 1  ;;  %v3181_v5 = vmax.f32 %v3180_v23, %v2798_v40  ;;  %v2801_v63 = vadd.f32 %v4973_v62, %v2800_v17 }
 0x30f   : > { %v3177_v6 = vmax.f32 %v3175_v37, %v3176_v4  ;;  %v3182_v8 = vmax.f32 %v3181_v5, %v2801_v63 }
 0x311   : > { %v3651_v10 = vpack.c.bf16 %v3177_v6, %v3177_v6  ;;  %v3183_v19 = vmax.f32 %v3182_v8, %v2806_v7  ;;  %v4219_v22 = vpop.f32.mrb[120].mxu0 }
 0x312   : > { %v2813_v27 = vpop.f32.mrb[121].mxu0  ;;  %v2822_v35 = vadd.f32 %v4219_v22, %v4973_v62 }
 0x313   : > { %v3377_v28 = vunpack.c.l.b16 %v3651_v10  ;;  %v3184_v30 = vmax.f32 %v3183_v19, %v2809_v13  ;;  %v4220_v60 = vpop.f32.mrb[122].mxu0  ;;  %v2814_v33 = vadd.f32 %v4973_v62, %v2813_v27 }
 0x314   : > { %v2816_v31 = vpop.f32.mrb[123].mxu0  ;;  %v2825_v39 = vadd.f32 %v4220_v60, %v4973_v62 }
 0x315   : > { %v3397_v32 = vsel %vm3396_vm5, %v3377_v28, %v3395_v14  ;;  %v3185_v25 = vrot.slane %v3184_v30, 4  ;;  %v2817_v21 = vadd.f32 %v4973_v62, %v2816_v31 }
 0x317   : > { %v3186_v34 = vmax.f32 %v3184_v30, %v3185_v25  ;;  %v3191_v36 = vmax.f32 %v2814_v33, %v2817_v21 }
 0x319   : > { %v3187_v38 = vrot.slane %v3186_v34, 2  ;;  %v3192_v45 = vmax.f32 %v3191_v36, %v2822_v35  ;;  %v4223_v48 = vpop.f32.mrb[124].mxu0 }
 0x31a   : > { %v2829_v51 = vpop.f32.mrb[125].mxu0  ;;  %v2838_v59 = vadd.f32 %v4223_v48, %v4973_v62 }
 0x31b   : > { %v3188_v24 = vmax.f32 %v3186_v34, %v3187_v38  ;;  %v2830_v18 = vadd.f32 %v4973_v62, %v2829_v51  ;;  %v3193_v52 = vmax.f32 %v3192_v45, %v2825_v39  ;;  %v4224_v42 = vpop.f32.mrb[126].mxu0 }
 0x31c   : > { %v2832_v54 = vpop.f32.mrb[127].mxu0  ;;  %v2841_v12 = vadd.f32 %v4224_v42, %v4973_v62 }
 0x31d   : > { %v3189_v50 = vrot.slane %v3188_v24, 1  ;;  %v3194_v55 = vmax.f32 %v3193_v52, %v2830_v18  ;;  %v2833_v57 = vadd.f32 %v4973_v62, %v2832_v54 }
 0x31f   : > { %v3190_v58 = vmax.f32 %v3188_v24, %v3189_v50  ;;  %v3195_v61 = vmax.f32 %v3194_v55, %v2833_v57 }
 0x321   : > { %v3652_v47 = vpack.c.bf16 %v3190_v58, %v3190_v58  ;;  %v3196_v15 = vmax.f32 %v3195_v61, %v2838_v59  ;;  %v4227_v41 = vpop.f32.mrb[128].mxu0 }
 0x322   : > { %v2845_v43 = vpop.f32.mrb[129].mxu0  ;;  %v2854_v53 = vadd.f32 %v4227_v41, %v4973_v62 }
 0x323   : > { %v3378_v46 = vunpack.c.l.b16 %v3652_v47  ;;  %v3197_v2 = vmax.f32 %v3196_v15, %v2841_v12  ;;  %v4228_v9 = vpop.f32.mrb[130].mxu0  ;;  %v2846_v16 = vadd.f32 %v4973_v62, %v2845_v43 }
 0x324   : > { %v2848_v14 = vpop.f32.mrb[131].mxu0  ;;  %v2857_v29 = vadd.f32 %v4228_v9, %v4973_v62 }
 0x325   : > { %v3399_v44 = vsel %vm3398_vm6, %v3378_v46, %v3397_v32  ;;  %v3198_v49 = vrot.slane %v3197_v2, 4  ;;  %v2849_v11 = vadd.f32 %v4973_v62, %v2848_v14 }
 0x327   : > { %v3199_v20 = vmax.f32 %v3197_v2, %v3198_v49  ;;  %v3204_v56 = vmax.f32 %v2846_v16, %v2849_v11 }
 0x329   : > { %v3200_v26 = vrot.slane %v3199_v20, 2  ;;  %v3205_v1 = vmax.f32 %v3204_v56, %v2854_v53  ;;  %v4231_v0 = vpop.f32.mrb[132].mxu0 }
 0x32a   : > { %v2861_v37 = vpop.f32.mrb[133].mxu0  ;;  %v2870_v8 = vadd.f32 %v4231_v0, %v4973_v62 }
 0x32b   : > { %v3201_v40 = vmax.f32 %v3199_v20, %v3200_v26  ;;  %v2862_v23 = vadd.f32 %v4973_v62, %v2861_v37  ;;  %v3206_v3 = vmax.f32 %v3205_v1, %v2857_v29  ;;  %v4232_v17 = vpop.f32.mrb[134].mxu0 }
 0x32c   : > { %v2864_v4 = vpop.f32.mrb[135].mxu0  ;;  %v2873_v19 = vadd.f32 %v4232_v17, %v4973_v62 }
 0x32d   : > { %v3202_v5 = vrot.slane %v3201_v40, 1  ;;  %v3207_v63 = vmax.f32 %v3206_v3, %v2862_v23  ;;  %v2865_v6 = vadd.f32 %v4973_v62, %v2864_v4 }
 0x32f   : > { %v3203_v7 = vmax.f32 %v3201_v40, %v3202_v5  ;;  %v3208_v10 = vmax.f32 %v3207_v63, %v2865_v6 }
 0x331   : > { %v3653_v13 = vpack.c.bf16 %v3203_v7, %v3203_v7  ;;  %v3209_v22 = vmax.f32 %v3208_v10, %v2870_v8  ;;  %v4235_v27 = vpop.f32.mrb[136].mxu0 }
 0x332   : > { %v2877_v28 = vpop.f32.mrb[137].mxu0  ;;  %v2886_v36 = vadd.f32 %v4235_v27, %v4973_v62 }
 0x333   : > { %v3379_v30 = vunpack.c.l.b16 %v3653_v13  ;;  %v3210_v60 = vmax.f32 %v3209_v22, %v2873_v19  ;;  %v4236_v31 = vpop.f32.mrb[138].mxu0  ;;  %v2878_v33 = vadd.f32 %v4973_v62, %v2877_v28 }
 0x334   : > { %v2880_v32 = vpop.f32.mrb[139].mxu0  ;;  %v2889_v39 = vadd.f32 %v4236_v31, %v4973_v62 }
 0x335   : > { %v3401_v25 = vsel %vm3400_vm7, %v3379_v30, %v3399_v44  ;;  %v2881_v21 = vadd.f32 %v4973_v62, %v2880_v32  ;;  %v3211_v35 = vrot.slane %v3210_v60, 4 }
 0x336   : > { %v3409_v34 = vpack.c.b16 %v3401_v25, %v3401_v25 }
 0x337   : > { %v3217_v38 = vmax.f32 %v2878_v33, %v2881_v21  ;;  %v3212_v24 = vmax.f32 %v3210_v60, %v3211_v35 }
 0x338   : > { %3413 = vst [vmem:[%s5069_s11] sm:$0xf] %v3409_v34 }
 0x339   : > { %v3218_v45 = vmax.f32 %v3217_v38, %v2886_v36  ;;  %v4239_v48 = vpop.f32.mrb[140].mxu0  ;;  %v3213_v57 = vrot.slane %v3212_v24, 2 }
 0x33a   : > { %v2893_v51 = vpop.f32.mrb[141].mxu0  ;;  %v2902_v58 = vadd.f32 %v4239_v48, %v4973_v62 }
 0x33b   : > { %v2894_v18 = vadd.f32 %v4973_v62, %v2893_v51  ;;  %v3219_v52 = vmax.f32 %v3218_v45, %v2889_v39  ;;  %v4240_v42 = vpop.f32.mrb[142].mxu0  ;;  %v3214_v41 = vmax.f32 %v3212_v24, %v3213_v57 }
 0x33c   : > { %v2896_v54 = vpop.f32.mrb[143].mxu0  ;;  %v2905_v61 = vadd.f32 %v4240_v42, %v4973_v62 }
 0x33d   : > { %v3220_v50 = vmax.f32 %v3219_v52, %v2894_v18  ;;  %v2897_v55 = vadd.f32 %v4973_v62, %v2896_v54  ;;  %v3215_v49 = vrot.slane %v3214_v41, 1 }
 0x33f   : > { %v3221_v59 = vmax.f32 %v3220_v50, %v2897_v55  ;;  %v3216_v0 = vmax.f32 %v3214_v41, %v3215_v49 }
 0x341   : > { %v3222_v47 = vmax.f32 %v3221_v59, %v2902_v58  ;;  %v4243_v12 = vpop.f32.mrb[144].mxu0  ;;  %v3654_v6 = vpack.c.bf16 %v3216_v0, %v3216_v0 }
 0x342   : > { %v2909_v15 = vpop.f32.mrb[145].mxu0  ;;  %v2918_v11 = vadd.f32 %v4243_v12, %v4973_v62 }
 0x343   : > { %v3223_v43 = vmax.f32 %v3222_v47, %v2905_v61  ;;  %v4244_v46 = vpop.f32.mrb[146].mxu0  ;;  %v2910_v14 = vadd.f32 %v4973_v62, %v2909_v15  ;;  %v3380_v30 = vunpack.c.l.b16 %v3654_v6 }
 0x344   : > { %v2912_v2 = vpop.f32.mrb[147].mxu0  ;;  %v2921_v56 = vadd.f32 %v4244_v46, %v4973_v62 }
 0x345   : > { %v3224_v9 = vrot.slane %v3223_v43, 4  ;;  %v2913_v44 = vadd.f32 %v4973_v62, %v2912_v2 }
 0x347   : > { %v3225_v16 = vmax.f32 %v3223_v43, %v3224_v9  ;;  %v3230_v20 = vmax.f32 %v2910_v14, %v2913_v44 }
 0x349   : > { %v3226_v53 = vrot.slane %v3225_v16, 2  ;;  %v3231_v26 = vmax.f32 %v3230_v20, %v2918_v11  ;;  %v4247_v29 = vpop.f32.mrb[148].mxu0 }
 0x34a   : > { %v2925_v1 = vpop.f32.mrb[149].mxu0  ;;  %v2934_v8 = vadd.f32 %v4247_v29, %v4973_v62 }
 0x34b   : > { %v3227_v37 = vmax.f32 %v3225_v16, %v3226_v53  ;;  %v2926_v40 = vadd.f32 %v4973_v62, %v2925_v1  ;;  %v3232_v23 = vmax.f32 %v3231_v26, %v2921_v56  ;;  %v4248_v3 = vpop.f32.mrb[150].mxu0 }
 0x34c   : > { %v2928_v17 = vpop.f32.mrb[151].mxu0  ;;  %v2937_v19 = vadd.f32 %v4248_v3, %v4973_v62 }
 0x34d   : > { %v3228_v4 = vrot.slane %v3227_v37, 1  ;;  %v3233_v5 = vmax.f32 %v3232_v23, %v2926_v40  ;;  %v2929_v63 = vadd.f32 %v4973_v62, %v2928_v17 }
 0x34f   : > { %v3229_v7 = vmax.f32 %v3227_v37, %v3228_v4  ;;  %v3234_v10 = vmax.f32 %v3233_v5, %v2929_v63 }
 0x351   : > { %v3655_v13 = vpack.c.bf16 %v3229_v7, %v3229_v7  ;;  %v3235_v22 = vmax.f32 %v3234_v10, %v2934_v8  ;;  %v4251_v27 = vpop.f32.mrb[152].mxu0 }
 0x352   : > { %v2941_v28 = vpop.f32.mrb[153].mxu0  ;;  %v2950_v38 = vadd.f32 %v4251_v27, %v4973_v62 }
 0x353   : > { %v3381_v60 = vunpack.c.l.b16 %v3655_v13  ;;  %v3236_v31 = vmax.f32 %v3235_v22, %v2937_v19  ;;  %v4252_v32 = vpop.f32.mrb[154].mxu0  ;;  %v2942_v34 = vadd.f32 %v4973_v62, %v2941_v28 }
 0x354   : > { %v2944_v25 = vpop.f32.mrb[155].mxu0  ;;  %v2953_v48 = vadd.f32 %v4252_v32, %v4973_v62 }
 0x355   : > { %v3402_v33 = vsel %vm3388_vm1, %v3381_v60, %v3380_v30  ;;  %v3237_v21 = vrot.slane %v3236_v31, 4  ;;  %v2945_v35 = vadd.f32 %v4973_v62, %v2944_v25 }
 0x357   : > { %v3238_v36 = vmax.f32 %v3236_v31, %v3237_v21  ;;  %v3243_v39 = vmax.f32 %v2942_v34, %v2945_v35 }
 0x359   : > { %v3239_v45 = vrot.slane %v3238_v36, 2  ;;  %v3244_v51 = vmax.f32 %v3243_v39, %v2950_v38  ;;  %v4255_v24 = vpop.f32.mrb[156].mxu0 }
 0x35a   : > { %v2957_v18 = vpop.f32.mrb[157].mxu0  ;;  %v2966_v47 = vadd.f32 %v4255_v24, %v4973_v62 }
 0x35b   : > { %v3240_v52 = vmax.f32 %v3238_v36, %v3239_v45  ;;  %v2958_v42 = vadd.f32 %v4973_v62, %v2957_v18  ;;  %v3245_v54 = vmax.f32 %v3244_v51, %v2953_v48  ;;  %v4256_v50 = vpop.f32.mrb[158].mxu0 }
 0x35c   : > { %v2960_v55 = vpop.f32.mrb[159].mxu0  ;;  %v2969_v41 = vadd.f32 %v4256_v50, %v4973_v62 }
 0x35d   : > { %v3241_v57 = vrot.slane %v3240_v52, 1  ;;  %v3246_v58 = vmax.f32 %v3245_v54, %v2958_v42  ;;  %v2961_v59 = vadd.f32 %v4973_v62, %v2960_v55 }
 0x35f   : > { %v3242_v61 = vmax.f32 %v3240_v52, %v3241_v57  ;;  %v3247_v12 = vmax.f32 %v3246_v58, %v2961_v59 }
 0x361   : > { %v3656_v15 = vpack.c.bf16 %v3242_v61, %v3242_v61  ;;  %v3248_v43 = vmax.f32 %v3247_v12, %v2966_v47  ;;  %v4259_v46 = vpop.f32.mrb[160].mxu0 }
 0x362   : > { %v2973_v2 = vpop.f32.mrb[161].mxu0  ;;  %v2982_v26 = vadd.f32 %v4259_v46, %v4973_v62 }
 0x363   : > { %v3382_v9 = vunpack.c.l.b16 %v3656_v15  ;;  %v3249_v14 = vmax.f32 %v3248_v43, %v2969_v41  ;;  %v4260_v44 = vpop.f32.mrb[162].mxu0  ;;  %v2974_v20 = vadd.f32 %v4973_v62, %v2973_v2  ;;  %v5118_v43 = vld [vmem:[%s5151_s6] ss:$0 sm:$0xff] }
 0x364   : > { %v2976_v49 = vpop.f32.mrb[163].mxu0  ;;  %v2985_v0 = vadd.f32 %v4260_v44, %v4973_v62 }
 0x365   : > { %v3403_v16 = vsel %vm3390_vm2, %v3382_v9, %v3402_v33  ;;  %v3250_v11 = vrot.slane %v3249_v14, 4  ;;  %v2977_v53 = vadd.f32 %v4973_v62, %v2976_v49 }
 0x367   : > { %v3251_v56 = vmax.f32 %v3249_v14, %v3250_v11  ;;  %v3256_v29 = vmax.f32 %v2974_v20, %v2977_v53 }
 0x369   : > { %v3252_v1 = vrot.slane %v3251_v56, 2  ;;  %v3257_v37 = vmax.f32 %v3256_v29, %v2982_v26  ;;  %v4263_v40 = vpop.f32.mrb[164].mxu0 }
 0x36a   : > { %v2989_v23 = vpop.f32.mrb[165].mxu0  ;;  %v2998_v13 = vadd.f32 %v4263_v40, %v4973_v62 }
 0x36b   : > { %v3253_v3 = vmax.f32 %v3251_v56, %v3252_v1  ;;  %v2990_v17 = vadd.f32 %v4973_v62, %v2989_v23  ;;  %v3258_v4 = vmax.f32 %v3257_v37, %v2985_v0  ;;  %v4264_v5 = vpop.f32.mrb[166].mxu0 }
 0x36c   : > { %v2992_v63 = vpop.f32.mrb[167].mxu0  ;;  %v3001_v27 = vadd.f32 %v4264_v5, %v4973_v62 }
 0x36d   : > { %v3254_v6 = vrot.slane %v3253_v3, 1  ;;  %v3259_v7 = vmax.f32 %v3258_v4, %v2990_v17  ;;  %v2993_v8 = vadd.f32 %v4973_v62, %v2992_v63 }
 0x36f   : > { %v3255_v10 = vmax.f32 %v3253_v3, %v3254_v6  ;;  %v3260_v19 = vmax.f32 %v3259_v7, %v2993_v8 }
 0x371   : > { %v3657_v22 = vpack.c.bf16 %v3255_v10, %v3255_v10  ;;  %v3261_v28 = vmax.f32 %v3260_v19, %v2998_v13  ;;  %v4267_v30 = vpop.f32.mrb[168].mxu0 }
 0x372   : > { %v3005_v60 = vpop.f32.mrb[169].mxu0  ;;  %v3014_v39 = vadd.f32 %v4267_v30, %v4973_v62 }
 0x373   : > { %v3383_v31 = vunpack.c.l.b16 %v3657_v22  ;;  %v3262_v32 = vmax.f32 %v3261_v28, %v3001_v27  ;;  %v4268_v25 = vpop.f32.mrb[170].mxu0  ;;  %v3006_v35 = vadd.f32 %v4973_v62, %v3005_v60 }
 0x374   : > { %v3008_v33 = vpop.f32.mrb[171].mxu0  ;;  %v3017_v51 = vadd.f32 %v4268_v25, %v4973_v62 }
 0x375   : > { %v3404_v21 = vsel %vm3392_vm3, %v3383_v31, %v3403_v16  ;;  %v3263_v34 = vrot.slane %v3262_v32, 4  ;;  %v3009_v36 = vadd.f32 %v4973_v62, %v3008_v33 }
 0x377   : > { %v3264_v38 = vmax.f32 %v3262_v32, %v3263_v34  ;;  %v3269_v45 = vmax.f32 %v3006_v35, %v3009_v36 }
 0x379   : > { %v3265_v48 = vrot.slane %v3264_v38, 2  ;;  %v3270_v24 = vmax.f32 %v3269_v45, %v3014_v39  ;;  %v4271_v18 = vpop.f32.mrb[172].mxu0 }
 0x37a   : > { %v3021_v52 = vpop.f32.mrb[173].mxu0  ;;  %v3030_v12 = vadd.f32 %v4271_v18, %v4973_v62 }
 0x37b   : > { %v3266_v42 = vmax.f32 %v3264_v38, %v3265_v48  ;;  %v3022_v54 = vadd.f32 %v4973_v62, %v3021_v52  ;;  %v3271_v50 = vmax.f32 %v3270_v24, %v3017_v51  ;;  %v4272_v55 = vpop.f32.mrb[174].mxu0 }
 0x37c   : > { %v3024_v57 = vpop.f32.mrb[175].mxu0  ;;  %v3033_v46 = vadd.f32 %v5118_v43, %v4272_v55 }
 0x37d   : > { %v3267_v58 = vrot.slane %v3266_v42, 1  ;;  %v3272_v59 = vmax.f32 %v3271_v50, %v3022_v54  ;;  %v3025_v61 = vadd.f32 %v4973_v62, %v3024_v57 }
 0x37f   : > { %v3268_v47 = vmax.f32 %v3266_v42, %v3267_v58  ;;  %v3273_v15 = vmax.f32 %v3272_v59, %v3025_v61 }
 0x381   : > { %v3658_v41 = vpack.c.bf16 %v3268_v47, %v3268_v47  ;;  %v3274_v2 = vmax.f32 %v3273_v15, %v3030_v12  ;;  %v4275_v9 = vpop.f32.mrb[176].mxu0 }
 0x382   : > { %v3037_v14 = vpop.f32.mrb[177].mxu0  ;;  %v3046_v29 = vadd.f32 %v5118_v43, %v4275_v9 }
 0x383   : > { %v3384_v44 = vunpack.c.l.b16 %v3658_v41  ;;  %v3275_v49 = vmax.f32 %v3274_v2, %v3033_v46  ;;  %v4276_v16 = vpop.f32.mrb[178].mxu0  ;;  %v3038_v62 = vadd.f32 %v5118_v43, %v3037_v14 }
 0x384   : > { %v3040_v11 = vpop.f32.mrb[179].mxu0  ;;  %v3049_v37 = vadd.f32 %v5118_v43, %v4276_v16 }
 0x385   : > { %v3405_v20 = vsel %vm3394_vm4, %v3384_v44, %v3404_v21  ;;  %v3276_v53 = vrot.slane %v3275_v49, 4  ;;  %v3041_v56 = vadd.f32 %v5118_v43, %v3040_v11 }
 0x387   : > { %v3277_v26 = vmax.f32 %v3275_v49, %v3276_v53  ;;  %v3282_v1 = vmax.f32 %v3038_v62, %v3041_v56 }
 0x389   : > { %v3278_v0 = vrot.slane %v3277_v26, 2  ;;  %v3283_v40 = vmax.f32 %v3282_v1, %v3046_v29  ;;  %v4279_v23 = vpop.f32.mrb[180].mxu0 }
 0x38a   : > { %v3053_v3 = vpop.f32.mrb[181].mxu0  ;;  %v3062_v19 = vadd.f32 %v5118_v43, %v4279_v23 }
 0x38b   : > { %v3279_v17 = vmax.f32 %v3277_v26, %v3278_v0  ;;  %v3054_v4 = vadd.f32 %v5118_v43, %v3053_v3  ;;  %v3284_v5 = vmax.f32 %v3283_v40, %v3049_v37  ;;  %v4280_v63 = vpop.f32.mrb[182].mxu0 }
 0x38c   : > { %v3056_v6 = vpop.f32.mrb[183].mxu0  ;;  %v3065_v28 = vadd.f32 %v5118_v43, %v4280_v63 }
 0x38d   : > { %v3280_v7 = vrot.slane %v3279_v17, 1  ;;  %v3285_v8 = vmax.f32 %v3284_v5, %v3054_v4  ;;  %v3057_v10 = vadd.f32 %v5118_v43, %v3056_v6 }
 0x38f   : > { %v3281_v13 = vmax.f32 %v3279_v17, %v3280_v7  ;;  %v3286_v22 = vmax.f32 %v3285_v8, %v3057_v10 }
 0x391   : > { %v3659_v27 = vpack.c.bf16 %v3281_v13, %v3281_v13  ;;  %v3287_v30 = vmax.f32 %v3286_v22, %v3062_v19  ;;  %v4283_v60 = vpop.f32.mrb[184].mxu0 }
 0x392   : > { %v3069_v31 = vpop.f32.mrb[185].mxu0  ;;  %v3078_v45 = vadd.f32 %v5118_v43, %v4283_v60 }
 0x393   : > { %v3385_v32 = vunpack.c.l.b16 %v3659_v27  ;;  %v3288_v25 = vmax.f32 %v3287_v30, %v3065_v28  ;;  %v4284_v33 = vpop.f32.mrb[186].mxu0  ;;  %v3070_v36 = vadd.f32 %v5118_v43, %v3069_v31 }
 0x394   : > { %v3072_v21 = vpop.f32.mrb[187].mxu0  ;;  %v3081_v24 = vadd.f32 %v5118_v43, %v4284_v33 }
 0x395   : > { %v3406_v34 = vsel %vm3396_vm5, %v3385_v32, %v3405_v20  ;;  %v3289_v35 = vrot.slane %v3288_v25, 4  ;;  %v3073_v38 = vadd.f32 %v5118_v43, %v3072_v21 }
 0x397   : > { %v3290_v39 = vmax.f32 %v3288_v25, %v3289_v35  ;;  %v3295_v48 = vmax.f32 %v3070_v36, %v3073_v38 }
 0x399   : > { %v3291_v51 = vrot.slane %v3290_v39, 2  ;;  %v3296_v18 = vmax.f32 %v3295_v48, %v3078_v45  ;;  %v4287_v52 = vpop.f32.mrb[188].mxu0 }
 0x39a   : > { %v3085_v42 = vpop.f32.mrb[189].mxu0  ;;  %v3094_v15 = vadd.f32 %v5118_v43, %v4287_v52 }
 0x39b   : > { %v3292_v54 = vmax.f32 %v3290_v39, %v3291_v51  ;;  %v3086_v50 = vadd.f32 %v5118_v43, %v3085_v42  ;;  %v3297_v55 = vmax.f32 %v3296_v18, %v3081_v24  ;;  %v4288_v57 = vpop.f32.mrb[190].mxu0 }
 0x39c   : > { %v3088_v58 = vpop.f32.mrb[191].mxu0  ;;  %v3097_v2 = vadd.f32 %v5118_v43, %v4288_v57 }
 0x39d   : > { %v3293_v59 = vrot.slane %v3292_v54, 1  ;;  %v3298_v61 = vmax.f32 %v3297_v55, %v3086_v50  ;;  %v3089_v47 = vadd.f32 %v5118_v43, %v3088_v58 }
 0x39f   : > { %v3294_v12 = vmax.f32 %v3292_v54, %v3293_v59  ;;  %v3299_v41 = vmax.f32 %v3298_v61, %v3089_v47 }
 0x3a1   : > { %v3660_v46 = vpack.c.bf16 %v3294_v12, %v3294_v12  ;;  %v3300_v9 = vmax.f32 %v3299_v41, %v3094_v15 }
 0x3a3   : > { %v3386_v14 = vunpack.c.l.b16 %v3660_v46  ;;  %v3301_v44 = vmax.f32 %v3300_v9, %v3097_v2 }
 0x3a5   : > { %v3407_v49 = vsel %vm3398_vm6, %v3386_v14, %v3406_v34  ;;  %v3302_v16 = vrot.slane %v3301_v44, 4 }
 0x3a7   : > { %v3303_v11 = vmax.f32 %v3301_v44, %v3302_v16 }
 0x3a9   : > { %v3304_v20 = vrot.slane %v3303_v11, 2 }
 0x3ab   : > { %v3305_v53 = vmax.f32 %v3303_v11, %v3304_v20 }
 0x3ad   : > { %v3306_v62 = vrot.slane %v3305_v53, 1 }
 0x3af   : > { %v3307_v56 = vmax.f32 %v3305_v53, %v3306_v62 }
 0x3b1   : > { %v3661_v26 = vpack.c.bf16 %v3307_v56, %v3307_v56 }
 0x3b3   : > { %v3387_v29 = vunpack.c.l.b16 %v3661_v26 }
 0x3b5   : > { %v3408_v1 = vsel %vm3400_vm7, %v3387_v29, %v3407_v49 }
 0x3b6   : > { %v3410_v0 = vpack.c.b16 %v3408_v1, %v3408_v1 }
 0x3b8   : > { %3414 = vst [vmem:[%s5069_s11 + $0x4] sm:$0xf] %v3410_v0 }
 0x3b9 PF: > { %s17_s24 = sadd.s32 1, %s4388_s24  }
 0x3ba   : > { %p14_p5 = scmp.ge.s32.totalorder %s17_s24, 4  }
 0x3bc   :  { %16 = sbr.rel (!%p14_p5) target bundleno = 1 (0x1), region = 78 }

// kernel: pn2_forward.7
= control target key start
LH: loop header
LB: loop body
LE: loop exit
PB: predicated region body
PF: predicated region fallthrough
CT: control target
= control target key end

     0   :  { %v1170_v0 = vmov 0   ;;  %vm190_vm0 = vcmask 64512   ;;  %vm215_vm1 = vcmask 1043456   ;;  %vm937_vm2 = vcmask 1041409   ;;  %s1449_s1 = inlined_call_operand.vmem [shape: bf16[136,128], index: 1, kind: input, shape index: {}]   ;;  %s1450_s0 = inlined_call_operand.vmem [shape: bf16[128,136], index: 0, kind: input, shape index: {}]   ;;  %s1451_s3 = inlined_call_operand.vmem [shape: bf16[128,128], index: 3, kind: input, shape index: {}]   ;;  %s1452_s5 = inlined_call_operand.vmem [shape: bf16[128,256], index: 5, kind: input, shape index: {}]   ;;  %s1453_s2 = inlined_call_operand.vmem [shape: f32[1,128], index: 2, kind: input, shape index: {}]   ;;  %s1454_s4 = inlined_call_operand.vmem [shape: f32[1,128], index: 4, kind: input, shape index: {}]   ;;  %s1455_s6 = inlined_call_operand.vmem [shape: f32[1,256], index: 6, kind: input, shape index: {}]   ;;  %s1456_s7 = inlined_call_operand.vmem [shape: bf16[8,256], index: 7, kind: output, shape index: {}]  }
   0x1   :  { %219 = vmatprep.subr.bf16.mxu0 %v1170_v0  ;;  %v1105_v1 = vld [vmem:[%s1449_s1] sm:$0xff]   ;;  %v1106_v2 = vld [vmem:[%s1449_s1 + $0x8] sm:$0xff]   ;;  %v1107_v3 = vld [vmem:[%s1449_s1 + $0x10] sm:$0xff]   ;;  %vm939_vm3 = vcmask 1042434   ;;  %vm941_vm4 = vcmask 1043459   ;;  %vm943_vm5 = vcmask 1044484  }
   0x2   :  { %220 = vmatpush1.bf16.msra.mxu0 %v1105_v1  ;;  %v1116_v4 = vld [vmem:[%s1450_s0 + $0x4] ss:$8 sps:$4 sm:$0xff]   ;;  %v1108_v5 = vld [vmem:[%s1449_s1 + $0x18] sm:$0xff]   ;;  %v1111_v10 = vld [vmem:[%s1449_s1 + $0x30] sm:$0xff]   ;;  %vm945_vm6 = vcmask 1045509   ;;  %vm947_vm7 = vcmask 1046534  }
   0x3   :  { %221 = vmatprep.subr.bf16.mxu0 %v1170_v0  ;;  %991 = vmatprep.mubr.msk.bf16.mxu0 %vm190_vm0, %v1116_v4  ;;  %v1109_v6 = vld [vmem:[%s1449_s1 + $0x20] sm:$0xff]   ;;  %v1110_v7 = vld [vmem:[%s1449_s1 + $0x28] sm:$0xff]   ;;  %v1140_v11 = vld [vmem:[%s1451_s3 + $0x10] sm:$0xff]   ;;  %vm949_vm8 = vcmask 1047559  }
   0x4   :  { %v1138_v8 = vld [vmem:[%s1451_s3] sm:$0xff]   ;;  %v1139_v9 = vld [vmem:[%s1451_s3 + $0x8] sm:$0xff]   ;;  %v1112_v12 = vld [vmem:[%s1449_s1 + $0x38] sm:$0xff]  }
   0x5   :  { %1056 = vmatprep.subr.bf16.mxu1 %v1138_v8  ;;  %v1113_v13 = vld [vmem:[%s1449_s1 + $0x40] ss:$0 sps:$4 sm:$0xff]   ;;  %v1141_v14 = vld [vmem:[%s1451_s3 + $0x18] sm:$0xff]   ;;  %v1120_v19 = vld [vmem:[%s1450_s0 + $0x24] ss:$8 sps:$4 sm:$0xff]  }
   0x6   :  { %222 = vmatpush1.bf16.msra.mxu0 %v1106_v2  ;;  %1057 = vmatpush3.bf16.msra.mxu1 %v1138_v8  ;;  %v217_v15 = vsel %vm215_vm1, %v1113_v13, 0  ;;  %v1114_v16 = vld [vmem:[%s1450_s0] ss:$8 sps:$4 sm:$0xff]   ;;  %v1117_v17 = vld [vmem:[%s1450_s0 + $0x14] ss:$8 sps:$4 sm:$0xff]  }
   0x7   :  { %223 = vmatprep.subr.bf16.mxu0 %v1170_v0  ;;  %1058 = vmatprep.subr.bf16.mxu1 %v1139_v9  ;;  %v1119_v18 = vld [vmem:[%s1450_s0 + $0x10] ss:$8 sps:$4 sm:$0xff]   ;;  %v1122_v20 = vld [vmem:[%s1450_s0 + $0x20] ss:$8 sps:$4 sm:$0xff]   ;;  %v1123_v21 = vld [vmem:[%s1450_s0 + $0x34] ss:$8 sps:$4 sm:$0xff]  }
   0x8   :  { %v1125_v22 = vld [vmem:[%s1450_s0 + $0x30] ss:$8 sps:$4 sm:$0xff]   ;;  %v1126_v23 = vld [vmem:[%s1450_s0 + $0x44] ss:$8 sps:$4 sm:$0xff]   ;;  %v1128_v24 = vld [vmem:[%s1450_s0 + $0x40] ss:$8 sps:$4 sm:$0xff]  }
   0x9   :  { %v1129_v25 = vld [vmem:[%s1450_s0 + $0x54] ss:$8 sps:$4 sm:$0xff]   ;;  %v1131_v26 = vld [vmem:[%s1450_s0 + $0x50] ss:$8 sps:$4 sm:$0xff]   ;;  %v1132_v27 = vld [vmem:[%s1450_s0 + $0x64] ss:$8 sps:$4 sm:$0xff]  }
   0xa   :  { %224 = vmatpush1.bf16.msra.mxu0 %v1107_v3  ;;  %1059 = vmatpush3.bf16.msra.mxu1 %v1139_v9  ;;  %v1134_v28 = vld [vmem:[%s1450_s0 + $0x60] ss:$8 sps:$4 sm:$0xff]   ;;  %v1135_v29 = vld [vmem:[%s1450_s0 + $0x74] ss:$8 sps:$4 sm:$0xff]   ;;  %v1137_v30 = vld [vmem:[%s1450_s0 + $0x70] ss:$8 sps:$4 sm:$0xff]  }
   0xb   :  { %225 = vmatprep.subr.bf16.mxu0 %v1170_v0  ;;  %1060 = vmatprep.subr.bf16.mxu1 %v1140_v11  ;;  %v1142_v31 = vld [vmem:[%s1451_s3 + $0x20] sm:$0xff]   ;;  %v1143_v32 = vld [vmem:[%s1451_s3 + $0x28] sm:$0xff]   ;;  %v1144_v33 = vld [vmem:[%s1451_s3 + $0x30] sm:$0xff]  }
   0xc   :  { %v1145_v34 = vld [vmem:[%s1451_s3 + $0x38] sm:$0xff]   ;;  %v1146_v35 = vld [vmem:[%s1452_s5] ss:$8 sps:$4 sm:$0xff]   ;;  %v1148_v36 = vld [vmem:[%s1452_s5 + $0x4] ss:$8 sps:$4 sm:$0xff]  }
   0xd   :  { %v1151_v37 = vld [vmem:[%s1452_s5 + $0x14] ss:$8 sps:$4 sm:$0xff]   ;;  %v1149_v38 = vld [vmem:[%s1452_s5 + $0x10] ss:$8 sps:$4 sm:$0xff]   ;;  %v1154_v39 = vld [vmem:[%s1452_s5 + $0x24] ss:$8 sps:$4 sm:$0xff]  }
   0xe   :  { %226 = vmatpush1.bf16.msra.mxu0 %v1108_v5  ;;  %1061 = vmatpush3.bf16.msra.mxu1 %v1140_v11  ;;  %v1152_v40 = vld [vmem:[%s1452_s5 + $0x20] ss:$8 sps:$4 sm:$0xff]   ;;  %v1157_v41 = vld [vmem:[%s1452_s5 + $0x34] ss:$8 sps:$4 sm:$0xff]   ;;  %v1155_v42 = vld [vmem:[%s1452_s5 + $0x30] ss:$8 sps:$4 sm:$0xff]  }
   0xf   :  { %227 = vmatprep.subr.bf16.mxu0 %v1170_v0  ;;  %1062 = vmatprep.subr.bf16.mxu1 %v1141_v14  ;;  %v1160_v43 = vld [vmem:[%s1452_s5 + $0x44] ss:$8 sps:$4 sm:$0xff]   ;;  %v1158_v44 = vld [vmem:[%s1452_s5 + $0x40] ss:$8 sps:$4 sm:$0xff]   ;;  %v1163_v45 = vld [vmem:[%s1452_s5 + $0x54] ss:$8 sps:$4 sm:$0xff]  }
  0x10   :  { %v1161_v46 = vld [vmem:[%s1452_s5 + $0x50] ss:$8 sps:$4 sm:$0xff]   ;;  %v1367_v47 = vld [vmem:[%s1453_s2] ss:$0 sm:$0xff] }
  0x12   :  { %228 = vmatpush1.bf16.msra.mxu0 %v1109_v6  ;;  %1063 = vmatpush3.bf16.msra.mxu1 %v1141_v14 }
  0x13   :  { %229 = vmatprep.subr.bf16.mxu0 %v1170_v0  ;;  %1064 = vmatprep.subr.bf16.mxu1 %v1142_v31 }
  0x16   :  { %230 = vmatpush1.bf16.msra.mxu0 %v1110_v7  ;;  %1065 = vmatpush3.bf16.msra.mxu1 %v1142_v31 }
  0x17   :  { %231 = vmatprep.subr.bf16.mxu0 %v1170_v0  ;;  %1066 = vmatprep.subr.bf16.mxu1 %v1143_v32 }
  0x1a   :  { %232 = vmatpush1.bf16.msra.mxu0 %v1111_v10  ;;  %1067 = vmatpush3.bf16.msra.mxu1 %v1143_v32 }
  0x1b   :  { %233 = vmatprep.subr.bf16.mxu0 %v1170_v0  ;;  %1068 = vmatprep.subr.bf16.mxu1 %v1144_v33 }
  0x1e   :  { %234 = vmatpush1.bf16.msra.mxu0 %v1112_v12  ;;  %1069 = vmatpush3.bf16.msra.mxu1 %v1144_v33 }
  0x1f   :  { %235 = vmatprep.subr.bf16.mxu0 %v1170_v0  ;;  %1070 = vmatprep.subr.bf16.mxu1 %v1145_v34 }
  0x22   :  { %236 = vmatpush1.bf16.msra.mxu0 %v217_v15  ;;  %1071 = vmatpush3.bf16.msra.mxu1 %v1145_v34 }
  0x23   :  { %1088 = vmatprep.subr.bf16.mxu1 %v1148_v36  ;;  %640 = vmatprep.subr.bf16.mxu0 %v1148_v36 }
  0x25   :  { %252 = vmatmul.mubr.bf16.vlgmr.msra.gmra.mrb[0].mxu0 %v1114_v16 }
  0x26   :  { %992 = vmatprep.mubr.msk.bf16.mxu0 %vm190_vm0, %v1117_v17  ;;  %641 = vmatpush1.bf16.msra.mxu0 %v1146_v35 }
  0x27   :  { %642 = vmatprep.subr.bf16.mxu0 %v1151_v37 }
  0x2a   :  { %643 = vmatpush1.bf16.msra.mxu0 %v1149_v38 }
  0x2b   :  { %644 = vmatprep.subr.bf16.mxu0 %v1154_v39 }
  0x2d   :  { %260 = vmatmul.mubr.bf16.gmra.mrb[4].mxu0 %v1119_v18 }
  0x2e   :  { %993 = vmatprep.mubr.msk.bf16.mxu0 %vm190_vm0, %v1120_v19  ;;  %645 = vmatpush1.bf16.msra.mxu0 %v1152_v40 }
  0x2f   :  { %646 = vmatprep.subr.bf16.mxu0 %v1157_v41 }
  0x32   :  { %647 = vmatpush1.bf16.msra.mxu0 %v1155_v42 }
  0x33   :  { %648 = vmatprep.subr.bf16.mxu0 %v1160_v43 }
  0x35   :  { %268 = vmatmul.mubr.bf16.gmra.mrb[8].mxu0 %v1122_v20 }
  0x36   :  { %994 = vmatprep.mubr.msk.bf16.mxu0 %vm190_vm0, %v1123_v21  ;;  %649 = vmatpush1.bf16.msra.mxu0 %v1158_v44 }
  0x37   :  { %650 = vmatprep.subr.bf16.mxu0 %v1163_v45 }
  0x3a   :  { %651 = vmatpush1.bf16.msra.mxu0 %v1161_v46 }
  0x3d   :  { %276 = vmatmul.mubr.bf16.gmra.mrb[12].mxu0 %v1125_v22 }
  0x3e   :  { %995 = vmatprep.mubr.msk.bf16.mxu0 %vm190_vm0, %v1126_v23 }
  0x45   :  { %284 = vmatmul.mubr.bf16.gmra.mrb[16].mxu0 %v1128_v24 }
  0x46   :  { %996 = vmatprep.mubr.msk.bf16.mxu0 %vm190_vm0, %v1129_v25 }
  0x4d   :  { %292 = vmatmul.mubr.bf16.gmra.mrb[20].mxu0 %v1131_v26 }
  0x4e   :  { %997 = vmatprep.mubr.msk.bf16.mxu0 %vm190_vm0, %v1132_v27 }
  0x55   :  { %300 = vmatmul.mubr.bf16.gmra.mrb[24].mxu0 %v1134_v28 }
  0x56   :  { %998 = vmatprep.mubr.msk.bf16.mxu0 %vm190_vm0, %v1135_v29 }
  0x5d   :  { %308 = vmatmul.mubr.bf16.gmra.mrb[28].mxu0 %v1137_v30 }
  0x5e   :  { %672 = vmatprep.mubr.bf16.mxu0 %v1170_v0 }
  0xf8   :  { %v253_v48 = vpop.f32.mrb[0].mxu0 }
  0xf9   :  { %v254_v49 = vadd.f32 %v1367_v47, %v253_v48  ;;  %v255_v50 = vpop.f32.mrb[1].mxu0 }
  0xfa   :  { %v256_v51 = vpop.f32.mrb[2].mxu0 }
  0xfb   :  { %v257_v52 = vadd.f32 %v1367_v47, %v256_v51  ;;  %v258_v53 = vpop.f32.mrb[3].mxu0  ;;  %v316_v54 = vmax.f32 %v254_v49, 0.0 }
  0xfd   :  { %v317_v55 = vmax.f32 %v257_v52, 0.0 }
  0xff   :  { %v332_v56 = vpack.c.bf16 %v317_v55, %v316_v54 }
 0x100   :  { %v261_v57 = vpop.f32.mrb[4].mxu0 }
 0x101   :  { %v262_v58 = vadd.f32 %v1367_v47, %v261_v57  ;;  %v263_v59 = vpop.f32.mrb[5].mxu0  ;;  %1072 = vmatprep.mubr.bf16.mxu1 %v332_v56 }
 0x102   :  { %v264_v60 = vpop.f32.mrb[6].mxu0  ;;  %v1164_v59 = vld [vmem:[%s1452_s5 + $0x60] ss:$8 sps:$4 sm:$0xff]  }
 0x103   :  { %v265_v61 = vadd.f32 %v1367_v47, %v264_v60  ;;  %v266_v62 = vpop.f32.mrb[7].mxu0  ;;  %v318_v63 = vmax.f32 %v262_v58, 0.0  ;;  %v1166_v58 = vld [vmem:[%s1452_s5 + $0x64] ss:$8 sps:$4 sm:$0xff]   ;;  %v1167_v60 = vld [vmem:[%s1452_s5 + $0x70] ss:$8 sps:$4 sm:$0xff]  }
 0x104   :  { %652 = vmatprep.subr.bf16.mxu0 %v1166_v58 }
 0x105   :  { %v319_v1 = vmax.f32 %v265_v61, 0.0  ;;  %653 = vmatpush1.bf16.msra.mxu0 %v1164_v59  ;;  %v999_v61 = vld [vmem:[%s1454_s4] ss:$0 sm:$0xff] }
 0x107   :  { %v333_v2 = vpack.c.bf16 %v319_v1, %v318_v63 }
 0x108   :  { %v269_v3 = vpop.f32.mrb[8].mxu0 }
 0x109   :  { %v270_v4 = vadd.f32 %v1367_v47, %v269_v3  ;;  %v271_v5 = vpop.f32.mrb[9].mxu0  ;;  %1073 = vmatmul.mubr.bf16.vlgmr.msra.gmra.mrb[0].mxu1 %v333_v2 }
 0x10a   :  { %v272_v6 = vpop.f32.mrb[10].mxu0  ;;  %1096 = vmatpush1.bf16.msra.mxu1 %v1146_v35 }
 0x10b   :  { %v273_v7 = vadd.f32 %v1367_v47, %v272_v6  ;;  %v274_v8 = vpop.f32.mrb[11].mxu0  ;;  %1089 = vmatprep.subr.bf16.mxu1 %v1151_v37  ;;  %v320_v9 = vmax.f32 %v270_v4, 0.0 }
 0x10d   :  { %v321_v10 = vmax.f32 %v273_v7, 0.0 }
 0x10e   :  { %1097 = vmatpush1.bf16.msra.mxu1 %v1149_v38 }
 0x10f   :  { %v334_v11 = vpack.c.bf16 %v321_v10, %v320_v9  ;;  %1090 = vmatprep.subr.bf16.mxu1 %v1154_v39 }
 0x110   :  { %v277_v12 = vpop.f32.mrb[12].mxu0 }
 0x111   :  { %v278_v13 = vadd.f32 %v1367_v47, %v277_v12  ;;  %v279_v14 = vpop.f32.mrb[13].mxu0  ;;  %1076 = vmatprep.mubr.bf16.mxu1 %v334_v11 }
 0x112   :  { %v280_v15 = vpop.f32.mrb[14].mxu0  ;;  %1098 = vmatpush1.bf16.msra.mxu1 %v1152_v40 }
 0x113   :  { %v281_v16 = vadd.f32 %v1367_v47, %v280_v15  ;;  %v282_v17 = vpop.f32.mrb[15].mxu0  ;;  %1091 = vmatprep.subr.bf16.mxu1 %v1157_v41  ;;  %v322_v18 = vmax.f32 %v278_v13, 0.0 }
 0x115   :  { %v323_v19 = vmax.f32 %v281_v16, 0.0 }
 0x116   :  { %1099 = vmatpush1.bf16.msra.mxu1 %v1155_v42 }
 0x117   :  { %v335_v20 = vpack.c.bf16 %v323_v19, %v322_v18  ;;  %1092 = vmatprep.subr.bf16.mxu1 %v1160_v43 }
 0x118   :  { %v285_v21 = vpop.f32.mrb[16].mxu0 }
 0x119   :  { %v286_v22 = vadd.f32 %v1367_v47, %v285_v21  ;;  %v287_v23 = vpop.f32.mrb[17].mxu0  ;;  %1077 = vmatmul.mubr.bf16.gmra.mrb[4].mxu1 %v335_v20 }
 0x11a   :  { %v288_v24 = vpop.f32.mrb[18].mxu0  ;;  %1100 = vmatpush1.bf16.msra.mxu1 %v1158_v44 }
 0x11b   :  { %v289_v25 = vadd.f32 %v1367_v47, %v288_v24  ;;  %v290_v26 = vpop.f32.mrb[19].mxu0  ;;  %1093 = vmatprep.subr.bf16.mxu1 %v1163_v45  ;;  %v324_v27 = vmax.f32 %v286_v22, 0.0 }
 0x11d   :  { %v325_v28 = vmax.f32 %v289_v25, 0.0 }
 0x11e   :  { %1101 = vmatpush1.bf16.msra.mxu1 %v1161_v46 }
 0x11f   :  { %v336_v29 = vpack.c.bf16 %v325_v28, %v324_v27  ;;  %1094 = vmatprep.subr.bf16.mxu1 %v1166_v58 }
 0x120   :  { %v293_v30 = vpop.f32.mrb[20].mxu0 }
 0x121   :  { %v294_v31 = vadd.f32 %v1367_v47, %v293_v30  ;;  %v295_v32 = vpop.f32.mrb[21].mxu0  ;;  %1080 = vmatprep.mubr.bf16.mxu1 %v336_v29 }
 0x122   :  { %v296_v33 = vpop.f32.mrb[22].mxu0  ;;  %1102 = vmatpush1.bf16.msra.mxu1 %v1164_v59  ;;  %v548_v59 = vld [vmem:[%s1455_s6] sm:$0x3] }
 0x123   :  { %v297_v34 = vadd.f32 %v1367_v47, %v296_v33  ;;  %v298_v35 = vpop.f32.mrb[23].mxu0  ;;  %v326_v36 = vmax.f32 %v294_v31, 0.0 }
 0x125   :  { %v327_v37 = vmax.f32 %v297_v34, 0.0 }
 0x127   :  { %v337_v38 = vpack.c.bf16 %v327_v37, %v326_v36 }
 0x128   :  { %v301_v39 = vpop.f32.mrb[24].mxu0 }
 0x129   :  { %v302_v40 = vadd.f32 %v1367_v47, %v301_v39  ;;  %v303_v41 = vpop.f32.mrb[25].mxu0  ;;  %1081 = vmatmul.mubr.bf16.gmra.mrb[8].mxu1 %v337_v38 }
 0x12a   :  { %v304_v42 = vpop.f32.mrb[26].mxu0 }
 0x12b   :  { %v305_v43 = vadd.f32 %v1367_v47, %v304_v42  ;;  %v306_v44 = vpop.f32.mrb[27].mxu0  ;;  %v328_v45 = vmax.f32 %v302_v40, 0.0 }
 0x12d   :  { %v329_v46 = vmax.f32 %v305_v43, 0.0 }
 0x12f   :  { %v338_v48 = vpack.c.bf16 %v329_v46, %v328_v45 }
 0x130   :  { %v309_v49 = vpop.f32.mrb[28].mxu0 }
 0x131   :  { %v310_v50 = vadd.f32 %v1367_v47, %v309_v49  ;;  %v311_v51 = vpop.f32.mrb[29].mxu0  ;;  %1084 = vmatprep.mubr.bf16.mxu1 %v338_v48 }
 0x132   :  { %v312_v52 = vpop.f32.mrb[30].mxu0 }
 0x133   :  { %v313_v53 = vadd.f32 %v1367_v47, %v312_v52  ;;  %v314_v54 = vpop.f32.mrb[31].mxu0  ;;  %v330_v55 = vmax.f32 %v310_v50, 0.0  ;;  %v1169_v47 = vld [vmem:[%s1452_s5 + $0x74] ss:$8 sps:$4 sm:$0xff]  }
 0x134   :  { %1095 = vmatprep.subr.bf16.mxu1 %v1169_v47  ;;  %654 = vmatprep.subr.bf16.mxu0 %v1169_v47 }
 0x135   :  { %v331_v56 = vmax.f32 %v313_v53, 0.0  ;;  %1103 = vmatpush1.bf16.msra.mxu1 %v1167_v60  ;;  %655 = vmatpush1.bf16.msra.mxu0 %v1167_v60 }
 0x137   :  { %v339_v57 = vpack.c.bf16 %v331_v56, %v330_v55  ;;  %v550_v56 = vlaneseq }
 0x139   :  { %1085 = vmatmul.mubr.bf16.gmra.mrb[12].mxu1 %v339_v57  ;;  %v551_v57 = vshrl.u32 %v550_v56, 7 }
 0x13a   :  { %682 = vmatprep.mubr.bf16.mxu1 %v1170_v0 }
 0x13b   :  { %v552_v58 = vsub.s32 0, %v551_v57  ;;  %v556_v47 = vsub.s32 1, %v551_v57 }
 0x13d   :  { %v1410_v60 = vrot.slane %v548_v59, %v552_v58 }
 0x1dc   :  { %v1074_v62 = vpop.f32.mrb[0].mxu1 }
 0x1dd   :  { %v454_v63 = vadd.f32 %v1074_v62, %v999_v61  ;;  %v445_v1 = vpop.f32.mrb[1].mxu1  ;;  %v1412_v62 = vrot.slane %v548_v59, %v556_v47 }
 0x1de   :  { %v446_v2 = vadd.f32 %v999_v61, %v445_v1  ;;  %v1075_v3 = vpop.f32.mrb[2].mxu1 }
 0x1df   :  { %v457_v4 = vadd.f32 %v1075_v3, %v999_v61  ;;  %v448_v5 = vpop.f32.mrb[3].mxu1  ;;  %v510_v7 = vmax.f32 %v454_v63, 0.0 }
 0x1e0   :  { %v449_v6 = vadd.f32 %v999_v61, %v448_v5  ;;  %v508_v9 = vmax.f32 %v446_v2, 0.0 }
 0x1e1   :  { %v511_v8 = vmax.f32 %v457_v4, 0.0 }
 0x1e2   :  { %v509_v10 = vmax.f32 %v449_v6, 0.0 }
 0x1e3   :  { %v525_v11 = vpack.c.bf16 %v511_v8, %v510_v7 }
 0x1e4   :  { %v524_v12 = vpack.c.bf16 %v509_v10, %v508_v9 }
 0x1e5   :  { %683 = vmatmul.mubr.bf16.vlgmr.msra.gmra.mrb[16].mxu1 %v525_v11 }
 0x1e6   :  { %673 = vmatmul.mubr.bf16.vlgmr.msra.gmra.mrb[32].mxu0 %v524_v12  ;;  %692 = vmatprep.mubr.bf16.mxu1 %v1170_v0 }
 0x1ec   :  { %v1078_v13 = vpop.f32.mrb[4].mxu1 }
 0x1ed   :  { %v470_v14 = vadd.f32 %v1078_v13, %v999_v61  ;;  %v461_v15 = vpop.f32.mrb[5].mxu1 }
 0x1ee   :  { %v462_v16 = vadd.f32 %v999_v61, %v461_v15  ;;  %v1079_v17 = vpop.f32.mrb[6].mxu1 }
 0x1ef   :  { %v473_v18 = vadd.f32 %v1079_v17, %v999_v61  ;;  %v464_v19 = vpop.f32.mrb[7].mxu1  ;;  %v514_v21 = vmax.f32 %v470_v14, 0.0 }
 0x1f0   :  { %v465_v20 = vadd.f32 %v999_v61, %v464_v19  ;;  %v512_v23 = vmax.f32 %v462_v16, 0.0 }
 0x1f1   :  { %v515_v22 = vmax.f32 %v473_v18, 0.0 }
 0x1f2   :  { %v513_v24 = vmax.f32 %v465_v20, 0.0 }
 0x1f3   :  { %v527_v25 = vpack.c.bf16 %v515_v22, %v514_v21 }
 0x1f4   :  { %v526_v26 = vpack.c.bf16 %v513_v24, %v512_v23 }
 0x1f6   :  { %693 = vmatmul.mubr.bf16.gmra.mrb[20].mxu1 %v526_v26 }
 0x1f7   :  { %702 = vmatprep.mubr.bf16.mxu1 %v1170_v0 }
 0x1fc   :  { %v1082_v27 = vpop.f32.mrb[8].mxu1 }
 0x1fd   :  { %v486_v28 = vadd.f32 %v1082_v27, %v999_v61  ;;  %v477_v29 = vpop.f32.mrb[9].mxu1 }
 0x1fe   :  { %v478_v30 = vadd.f32 %v999_v61, %v477_v29  ;;  %v1083_v31 = vpop.f32.mrb[10].mxu1  ;;  %703 = vmatmul.mubr.bf16.gmra.mrb[24].mxu1 %v527_v25 }
 0x1ff   :  { %v489_v32 = vadd.f32 %v1083_v31, %v999_v61  ;;  %v480_v33 = vpop.f32.mrb[11].mxu1  ;;  %712 = vmatprep.mubr.bf16.mxu1 %v1170_v0  ;;  %v518_v35 = vmax.f32 %v486_v28, 0.0 }
 0x200   :  { %v481_v34 = vadd.f32 %v999_v61, %v480_v33  ;;  %v516_v37 = vmax.f32 %v478_v30, 0.0 }
 0x201   :  { %v519_v36 = vmax.f32 %v489_v32, 0.0 }
 0x202   :  { %v517_v38 = vmax.f32 %v481_v34, 0.0 }
 0x203   :  { %v529_v39 = vpack.c.bf16 %v519_v36, %v518_v35 }
 0x204   :  { %v528_v40 = vpack.c.bf16 %v517_v38, %v516_v37 }
 0x206   :  { %713 = vmatmul.mubr.bf16.gmra.mrb[28].mxu1 %v528_v40 }
 0x207   :  { %722 = vmatprep.mubr.bf16.mxu1 %v1170_v0 }
 0x20c   :  { %v1086_v41 = vpop.f32.mrb[12].mxu1 }
 0x20d   :  { %v502_v42 = vadd.f32 %v1086_v41, %v999_v61  ;;  %v493_v43 = vpop.f32.mrb[13].mxu1 }
 0x20e   :  { %v494_v44 = vadd.f32 %v999_v61, %v493_v43  ;;  %v1087_v45 = vpop.f32.mrb[14].mxu1  ;;  %723 = vmatmul.mubr.bf16.gmra.mrb[32].mxu1 %v529_v39 }
 0x20f   :  { %v505_v46 = vadd.f32 %v1087_v45, %v999_v61  ;;  %v496_v48 = vpop.f32.mrb[15].mxu1  ;;  %732 = vmatprep.mubr.bf16.mxu1 %v1170_v0  ;;  %v522_v50 = vmax.f32 %v502_v42, 0.0 }
 0x210   :  { %v497_v49 = vadd.f32 %v999_v61, %v496_v48  ;;  %v520_v52 = vmax.f32 %v494_v44, 0.0 }
 0x211   :  { %v523_v51 = vmax.f32 %v505_v46, 0.0 }
 0x212   :  { %v521_v53 = vmax.f32 %v497_v49, 0.0 }
 0x213   :  { %v531_v54 = vpack.c.bf16 %v523_v51, %v522_v50 }
 0x214   :  { %v530_v55 = vpack.c.bf16 %v521_v53, %v520_v52 }
 0x216   :  { %733 = vmatmul.mubr.bf16.gmra.mrb[36].mxu1 %v530_v55 }
 0x217   :  { %742 = vmatprep.mubr.bf16.mxu1 %v1170_v0 }
 0x21e   :  { %743 = vmatmul.mubr.bf16.gmra.mrb[40].mxu1 %v531_v54 }
 0x2b8   :  { %v684_v61 = vpop.f32.mrb[16].mxu1 }
 0x2b9   :  { %v674_v63 = vpop.f32.mrb[32].mxu0  ;;  %v686_v1 = vpop.f32.mrb[17].mxu1  ;;  %v685_v0 = vadd.f32 %v684_v61, %v1410_v60 }
 0x2ba   :  { %v676_v2 = vpop.f32.mrb[33].mxu0  ;;  %v688_v3 = vpop.f32.mrb[18].mxu1  ;;  %v675_v7 = vadd.f32 %v674_v63, %v1410_v60  ;;  %v687_v8 = vadd.f32 %v686_v1, %v1412_v62 }
 0x2bb   :  { %v689_v4 = vadd.f32 %v688_v3, %v1410_v60  ;;  %v678_v5 = vpop.f32.mrb[34].mxu0  ;;  %v690_v6 = vpop.f32.mrb[19].mxu1  ;;  %v677_v12 = vadd.f32 %v676_v2, %v1412_v62 }
 0x2bc   :  { %v679_v9 = vadd.f32 %v678_v5, %v1410_v60  ;;  %v691_v10 = vadd.f32 %v690_v6, %v1412_v62  ;;  %v680_v11 = vpop.f32.mrb[35].mxu0 }
 0x2bd   :  { %v767_v13 = vmax.f32 %v685_v0, %v689_v4  ;;  %v681_v14 = vadd.f32 %v680_v11, %v1412_v62 }
 0x2be   :  { %v753_v15 = vmax.f32 %v675_v7, %v679_v9  ;;  %v774_v16 = vmax.f32 %v687_v8, %v691_v10 }
 0x2bf   :  { %v768_v17 = vrot.slane %v767_v13, 4  ;;  %v760_v18 = vmax.f32 %v677_v12, %v681_v14 }
 0x2c0   :  { %v754_v19 = vrot.slane %v753_v15, 4  ;;  %v775_v20 = vrot.slane %v774_v16, 4 }
 0x2c1   :  { %v769_v21 = vmax.f32 %v767_v13, %v768_v17  ;;  %v761_v22 = vrot.slane %v760_v18, 4 }
 0x2c2   :  { %v755_v23 = vmax.f32 %v753_v15, %v754_v19  ;;  %v776_v24 = vmax.f32 %v774_v16, %v775_v20 }
 0x2c3   :  { %v770_v25 = vrot.slane %v769_v21, 2  ;;  %v762_v26 = vmax.f32 %v760_v18, %v761_v22 }
 0x2c4   :  { %v756_v27 = vrot.slane %v755_v23, 2  ;;  %v777_v28 = vrot.slane %v776_v24, 2 }
 0x2c5   :  { %v771_v29 = vmax.f32 %v769_v21, %v770_v25  ;;  %v763_v30 = vrot.slane %v762_v26, 2 }
 0x2c6   :  { %v757_v31 = vmax.f32 %v755_v23, %v756_v27  ;;  %v778_v32 = vmax.f32 %v776_v24, %v777_v28 }
 0x2c7   :  { %v772_v33 = vrot.slane %v771_v29, 1  ;;  %v764_v34 = vmax.f32 %v762_v26, %v763_v30 }
 0x2c8   :  { %v758_v35 = vrot.slane %v757_v31, 1  ;;  %v779_v36 = vrot.slane %v778_v32, 1 }
 0x2c9   :  { %v773_v37 = vmax.f32 %v771_v29, %v772_v33  ;;  %v765_v38 = vrot.slane %v764_v34, 1  ;;  %v694_v39 = vpop.f32.mrb[20].mxu1 }
 0x2ca   :  { %v759_v40 = vmax.f32 %v757_v31, %v758_v35  ;;  %v780_v41 = vmax.f32 %v778_v32, %v779_v36  ;;  %v696_v42 = vpop.f32.mrb[21].mxu1  ;;  %v695_v46 = vadd.f32 %v694_v39, %v1410_v60 }
 0x2cb   :  { %v766_v43 = vmax.f32 %v764_v34, %v765_v38  ;;  %v698_v44 = vpop.f32.mrb[22].mxu1  ;;  %v697_v51 = vadd.f32 %v696_v42, %v1412_v62 }
 0x2cc   :  { %v1033_v45 = vpack.c.bf16 %v780_v41, %v773_v37  ;;  %v699_v48 = vadd.f32 %v698_v44, %v1410_v60  ;;  %v700_v49 = vpop.f32.mrb[23].mxu1 }
 0x2cd   :  { %v1032_v50 = vpack.c.bf16 %v766_v43, %v759_v40  ;;  %v701_v52 = vadd.f32 %v700_v49, %v1412_v62 }
 0x2ce   :  { %v923_v53 = vunpack.c.l.b16 %v1033_v45  ;;  %v924_v54 = vunpack.c.h.b16 %v1033_v45  ;;  %v781_v55 = vmax.f32 %v695_v46, %v699_v48 }
 0x2cf   :  { %v921_v56 = vunpack.c.l.b16 %v1032_v50  ;;  %v922_v57 = vunpack.c.h.b16 %v1032_v50  ;;  %v788_v58 = vmax.f32 %v697_v51, %v701_v52 }
 0x2d0   :  { %v782_v59 = vrot.slane %v781_v55, 4 }
 0x2d1   :  { %v938_v47 = vsel %vm937_vm2, %v923_v53, %v921_v56  ;;  %v951_v61 = vsel %vm937_vm2, %v924_v54, %v922_v57  ;;  %v789_v63 = vrot.slane %v788_v58, 4  ;;  %v704_v1 = vpop.f32.mrb[24].mxu1 }
 0x2d2   :  { %v783_v2 = vmax.f32 %v781_v55, %v782_v59  ;;  %v706_v3 = vpop.f32.mrb[25].mxu1  ;;  %v705_v6 = vadd.f32 %v704_v1, %v1410_v60 }
 0x2d3   :  { %v790_v0 = vmax.f32 %v788_v58, %v789_v63  ;;  %v708_v4 = vpop.f32.mrb[26].mxu1  ;;  %v707_v10 = vadd.f32 %v706_v3, %v1412_v62 }
 0x2d4   :  { %v784_v5 = vrot.slane %v783_v2, 2  ;;  %v709_v7 = vadd.f32 %v708_v4, %v1410_v60  ;;  %v710_v8 = vpop.f32.mrb[27].mxu1 }
 0x2d5   :  { %v791_v9 = vrot.slane %v790_v0, 2  ;;  %v711_v11 = vadd.f32 %v710_v8, %v1412_v62 }
 0x2d6   :  { %v785_v12 = vmax.f32 %v783_v2, %v784_v5  ;;  %v795_v13 = vmax.f32 %v705_v6, %v709_v7 }
 0x2d7   :  { %v792_v14 = vmax.f32 %v790_v0, %v791_v9  ;;  %v802_v15 = vmax.f32 %v707_v10, %v711_v11 }
 0x2d8   :  { %v786_v16 = vrot.slane %v785_v12, 1  ;;  %v796_v17 = vrot.slane %v795_v13, 4 }
 0x2d9   :  { %v793_v18 = vrot.slane %v792_v14, 1  ;;  %v803_v19 = vrot.slane %v802_v15, 4  ;;  %v714_v20 = vpop.f32.mrb[28].mxu1 }
 0x2da   :  { %v787_v21 = vmax.f32 %v785_v12, %v786_v16  ;;  %v797_v22 = vmax.f32 %v795_v13, %v796_v17  ;;  %v716_v23 = vpop.f32.mrb[29].mxu1  ;;  %v715_v28 = vadd.f32 %v714_v20, %v1410_v60 }
 0x2db   :  { %v794_v24 = vmax.f32 %v792_v14, %v793_v18  ;;  %v804_v25 = vmax.f32 %v802_v15, %v803_v19  ;;  %v718_v26 = vpop.f32.mrb[30].mxu1  ;;  %v717_v33 = vadd.f32 %v716_v23, %v1412_v62 }
 0x2dc   :  { %v798_v27 = vrot.slane %v797_v22, 2  ;;  %v719_v29 = vadd.f32 %v718_v26, %v1410_v60  ;;  %v720_v30 = vpop.f32.mrb[31].mxu1 }
 0x2dd   :  { %v1034_v31 = vpack.c.bf16 %v794_v24, %v787_v21  ;;  %v805_v32 = vrot.slane %v804_v25, 2  ;;  %v721_v34 = vadd.f32 %v720_v30, %v1412_v62 }
 0x2de   :  { %v799_v35 = vmax.f32 %v797_v22, %v798_v27  ;;  %v809_v36 = vmax.f32 %v715_v28, %v719_v29 }
 0x2df   :  { %v925_v37 = vunpack.c.l.b16 %v1034_v31  ;;  %v926_v38 = vunpack.c.h.b16 %v1034_v31  ;;  %v806_v39 = vmax.f32 %v804_v25, %v805_v32  ;;  %v816_v40 = vmax.f32 %v717_v33, %v721_v34 }
 0x2e0   :  { %v800_v41 = vrot.slane %v799_v35, 1  ;;  %v810_v42 = vrot.slane %v809_v36, 4 }
 0x2e1   :  { %v940_v43 = vsel %vm939_vm3, %v925_v37, %v938_v47  ;;  %v952_v44 = vsel %vm939_vm3, %v926_v38, %v951_v61  ;;  %v807_v45 = vrot.slane %v806_v39, 1  ;;  %v817_v46 = vrot.slane %v816_v40, 4  ;;  %v724_v48 = vpop.f32.mrb[32].mxu1 }
 0x2e2   :  { %v801_v49 = vmax.f32 %v799_v35, %v800_v41  ;;  %v811_v50 = vmax.f32 %v809_v36, %v810_v42  ;;  %v726_v51 = vpop.f32.mrb[33].mxu1  ;;  %v725_v56 = vadd.f32 %v724_v48, %v1410_v60 }
 0x2e3   :  { %v808_v52 = vmax.f32 %v806_v39, %v807_v45  ;;  %v818_v53 = vmax.f32 %v816_v40, %v817_v46  ;;  %v728_v54 = vpop.f32.mrb[34].mxu1  ;;  %v727_v47 = vadd.f32 %v726_v51, %v1412_v62 }
 0x2e4   :  { %v812_v55 = vrot.slane %v811_v50, 2  ;;  %v729_v57 = vadd.f32 %v728_v54, %v1410_v60  ;;  %v730_v58 = vpop.f32.mrb[35].mxu1 }
 0x2e5   :  { %v1035_v59 = vpack.c.bf16 %v808_v52, %v801_v49  ;;  %v819_v63 = vrot.slane %v818_v53, 2  ;;  %v731_v61 = vadd.f32 %v730_v58, %v1412_v62 }
 0x2e6   :  { %v813_v1 = vmax.f32 %v811_v50, %v812_v55  ;;  %v823_v2 = vmax.f32 %v725_v56, %v729_v57 }
 0x2e7   :  { %v927_v3 = vunpack.c.l.b16 %v1035_v59  ;;  %v928_v0 = vunpack.c.h.b16 %v1035_v59  ;;  %v820_v4 = vmax.f32 %v818_v53, %v819_v63  ;;  %v830_v5 = vmax.f32 %v727_v47, %v731_v61 }
 0x2e8   :  { %v814_v6 = vrot.slane %v813_v1, 1  ;;  %v824_v7 = vrot.slane %v823_v2, 4 }
 0x2e9   :  { %v942_v8 = vsel %vm941_vm4, %v927_v3, %v940_v43  ;;  %v953_v9 = vsel %vm941_vm4, %v928_v0, %v952_v44  ;;  %v821_v10 = vrot.slane %v820_v4, 1  ;;  %v831_v11 = vrot.slane %v830_v5, 4  ;;  %v734_v12 = vpop.f32.mrb[36].mxu1 }
 0x2ea   :  { %v815_v13 = vmax.f32 %v813_v1, %v814_v6  ;;  %v825_v14 = vmax.f32 %v823_v2, %v824_v7  ;;  %v736_v15 = vpop.f32.mrb[37].mxu1  ;;  %v735_v20 = vadd.f32 %v734_v12, %v1410_v60 }
 0x2eb   :  { %v822_v16 = vmax.f32 %v820_v4, %v821_v10  ;;  %v832_v17 = vmax.f32 %v830_v5, %v831_v11  ;;  %v738_v18 = vpop.f32.mrb[38].mxu1  ;;  %v737_v25 = vadd.f32 %v736_v15, %v1412_v62 }
 0x2ec   :  { %v826_v19 = vrot.slane %v825_v14, 2  ;;  %v739_v21 = vadd.f32 %v738_v18, %v1410_v60  ;;  %v740_v22 = vpop.f32.mrb[39].mxu1 }
 0x2ed   :  { %v1036_v23 = vpack.c.bf16 %v822_v16, %v815_v13  ;;  %v833_v24 = vrot.slane %v832_v17, 2  ;;  %v741_v26 = vadd.f32 %v740_v22, %v1412_v62 }
 0x2ee   :  { %v827_v27 = vmax.f32 %v825_v14, %v826_v19  ;;  %v837_v28 = vmax.f32 %v735_v20, %v739_v21 }
 0x2ef   :  { %v929_v29 = vunpack.c.l.b16 %v1036_v23  ;;  %v930_v30 = vunpack.c.h.b16 %v1036_v23  ;;  %v834_v31 = vmax.f32 %v832_v17, %v833_v24  ;;  %v844_v32 = vmax.f32 %v737_v25, %v741_v26 }
 0x2f0   :  { %v828_v33 = vrot.slane %v827_v27, 1  ;;  %v838_v34 = vrot.slane %v837_v28, 4 }
 0x2f1   :  { %v944_v35 = vsel %vm943_vm5, %v929_v29, %v942_v8  ;;  %v954_v36 = vsel %vm943_vm5, %v930_v30, %v953_v9  ;;  %v835_v37 = vrot.slane %v834_v31, 1  ;;  %v845_v38 = vrot.slane %v844_v32, 4  ;;  %v744_v39 = vpop.f32.mrb[40].mxu1 }
 0x2f2   :  { %v829_v40 = vmax.f32 %v827_v27, %v828_v33  ;;  %v839_v41 = vmax.f32 %v837_v28, %v838_v34  ;;  %v746_v42 = vpop.f32.mrb[41].mxu1  ;;  %v745_v48 = vadd.f32 %v744_v39, %v1410_v60 }
 0x2f3   :  { %v836_v43 = vmax.f32 %v834_v31, %v835_v37  ;;  %v846_v44 = vmax.f32 %v844_v32, %v845_v38  ;;  %v748_v45 = vpop.f32.mrb[42].mxu1  ;;  %v747_v53 = vadd.f32 %v746_v42, %v1412_v62 }
 0x2f4   :  { %v840_v46 = vrot.slane %v839_v41, 2  ;;  %v749_v49 = vadd.f32 %v748_v45, %v1410_v60  ;;  %v750_v50 = vpop.f32.mrb[43].mxu1 }
 0x2f5   :  { %v1037_v51 = vpack.c.bf16 %v836_v43, %v829_v40  ;;  %v847_v52 = vrot.slane %v846_v44, 2  ;;  %v751_v54 = vadd.f32 %v750_v50, %v1412_v62 }
 0x2f6   :  { %v841_v55 = vmax.f32 %v839_v41, %v840_v46  ;;  %v851_v56 = vmax.f32 %v745_v48, %v749_v49 }
 0x2f7   :  { %v931_v57 = vunpack.c.l.b16 %v1037_v51  ;;  %v932_v58 = vunpack.c.h.b16 %v1037_v51  ;;  %v848_v59 = vmax.f32 %v846_v44, %v847_v52  ;;  %v858_v63 = vmax.f32 %v747_v53, %v751_v54 }
 0x2f8   :  { %v842_v47 = vrot.slane %v841_v55, 1  ;;  %v852_v61 = vrot.slane %v851_v56, 4 }
 0x2f9   :  { %v946_v1 = vsel %vm945_vm6, %v931_v57, %v944_v35  ;;  %v955_v2 = vsel %vm945_vm6, %v932_v58, %v954_v36  ;;  %v849_v3 = vrot.slane %v848_v59, 1  ;;  %v859_v60 = vrot.slane %v858_v63, 4 }
 0x2fa   :  { %v843_v0 = vmax.f32 %v841_v55, %v842_v47  ;;  %v853_v4 = vmax.f32 %v851_v56, %v852_v61 }
 0x2fb   :  { %v850_v5 = vmax.f32 %v848_v59, %v849_v3  ;;  %v860_v6 = vmax.f32 %v858_v63, %v859_v60 }
 0x2fc   :  { %v854_v7 = vrot.slane %v853_v4, 2 }
 0x2fd   :  { %v1038_v8 = vpack.c.bf16 %v850_v5, %v843_v0  ;;  %v861_v62 = vrot.slane %v860_v6, 2 }
 0x2fe   :  { %v855_v9 = vmax.f32 %v853_v4, %v854_v7 }
 0x2ff   :  { %v933_v10 = vunpack.c.l.b16 %v1038_v8  ;;  %v934_v11 = vunpack.c.h.b16 %v1038_v8  ;;  %v862_v12 = vmax.f32 %v860_v6, %v861_v62 }
 0x300   :  { %v856_v13 = vrot.slane %v855_v9, 1 }
 0x301   :  { %v948_v14 = vsel %vm947_vm7, %v933_v10, %v946_v1  ;;  %v956_v15 = vsel %vm947_vm7, %v934_v11, %v955_v2  ;;  %v863_v16 = vrot.slane %v862_v12, 1 }
 0x302   :  { %v857_v17 = vmax.f32 %v855_v9, %v856_v13 }
 0x303   :  { %v864_v18 = vmax.f32 %v862_v12, %v863_v16 }
 0x305   :  { %v1039_v19 = vpack.c.bf16 %v864_v18, %v857_v17 }
 0x307   :  { %v935_v20 = vunpack.c.l.b16 %v1039_v19  ;;  %v936_v21 = vunpack.c.h.b16 %v1039_v19 }
 0x309   :  { %v950_v22 = vsel %vm949_vm8, %v935_v20, %v948_v14  ;;  %v957_v23 = vsel %vm949_vm8, %v936_v21, %v956_v15 }
 0x30a   :  { %v958_v24 = vpack.c.b16 %v957_v23, %v950_v22 }
 0x30c   :  { %960 = vst [vmem:[%s1456_s7] sm:$0xff] %v958_v24 }

// kernel: pn2_forward.9
= control target key start
LH: loop header
LB: loop body
LE: loop exit
PB: predicated region body
PF: predicated region fallthrough
CT: control target
= control target key end

     0   :  { %s2667_s3 = inlined_call_operand.vmem [shape: bf16[256,256], index: 3, kind: input, shape index: {}]   ;;  %s2668_s2 = inlined_call_operand.vmem [shape: bf16[1024,256], index: 2, kind: input, shape index: {}]   ;;  %s2669_s1 = inlined_call_operand.vmem [shape: bf16[8,256], index: 1, kind: input, shape index: {}]   ;;  %s2670_s0 = inlined_call_operand.vmem [shape: bf16[8,1024], index: 0, kind: input, shape index: {}]   ;;  %s2671_s5 = inlined_call_operand.vmem [shape: bf16[256,256], index: 5, kind: input, shape index: {}]   ;;  %s2672_s4 = inlined_call_operand.vmem [shape: f32[1,256], index: 4, kind: input, shape index: {}]   ;;  %s2673_s6 = inlined_call_operand.vmem [shape: f32[1,256], index: 6, kind: input, shape index: {}]   ;;  %s2674_s7 = inlined_call_operand.vmem [shape: bf16[8,256], index: 7, kind: output, shape index: {}]  }
   0x1   :  { %v1711_v0 = vld [vmem:[%s2667_s3 + $0x4] ss:$8 sps:$4 sm:$0xff]   ;;  %v1715_v2 = vld [vmem:[%s2667_s3] ss:$8 sps:$4 sm:$0xff]   ;;  %v1717_v4 = vld [vmem:[%s2667_s3 + $0x14] ss:$8 sps:$4 sm:$0xff]  }
   0x2   :  { %v1713_v1 = vld [vmem:[%s2668_s2 + $0x4] ss:$8 sps:$4 sm:$0xff]   ;;  %358 = vmatprep.subr.bf16.mxu0 %v1711_v0  ;;  %v1716_v3 = vld [vmem:[%s2668_s2] ss:$8 sps:$4 sm:$0xff]   ;;  %v1719_v5 = vld [vmem:[%s2668_s2 + $0x14] ss:$8 sps:$4 sm:$0xff]  }
   0x3   :  { %1067 = vmatprep.subr.bf16.mxu1 %v1713_v1  ;;  %359 = vmatpush1.bf16.msra.mxu0 %v1715_v2  ;;  %v1721_v6 = vld [vmem:[%s2667_s3 + $0x10] ss:$8 sps:$4 sm:$0xff]   ;;  %v1723_v8 = vld [vmem:[%s2667_s3 + $0x24] ss:$8 sps:$4 sm:$0xff]   ;;  %v1727_v10 = vld [vmem:[%s2667_s3 + $0x20] ss:$8 sps:$4 sm:$0xff]  }
   0x4   :  { %1068 = vmatpush1.bf16.msra.mxu1 %v1716_v3  ;;  %360 = vmatprep.subr.bf16.mxu0 %v1717_v4  ;;  %v1722_v7 = vld [vmem:[%s2668_s2 + $0x10] ss:$8 sps:$4 sm:$0xff]   ;;  %v1725_v9 = vld [vmem:[%s2668_s2 + $0x24] ss:$8 sps:$4 sm:$0xff]   ;;  %v1728_v11 = vld [vmem:[%s2668_s2 + $0x20] ss:$8 sps:$4 sm:$0xff]  }
   0x5   :  { %1069 = vmatprep.subr.bf16.mxu1 %v1719_v5  ;;  %v1729_v12 = vld [vmem:[%s2667_s3 + $0x34] ss:$8 sps:$4 sm:$0xff]   ;;  %v1733_v14 = vld [vmem:[%s2667_s3 + $0x30] ss:$8 sps:$4 sm:$0xff]   ;;  %v1735_v16 = vld [vmem:[%s2667_s3 + $0x44] ss:$8 sps:$4 sm:$0xff]  }
   0x6   :  { %v1731_v13 = vld [vmem:[%s2668_s2 + $0x34] ss:$8 sps:$4 sm:$0xff]   ;;  %v1734_v15 = vld [vmem:[%s2668_s2 + $0x30] ss:$8 sps:$4 sm:$0xff]   ;;  %v1737_v17 = vld [vmem:[%s2668_s2 + $0x44] ss:$8 sps:$4 sm:$0xff]  }
   0x7   :  { %361 = vmatpush1.bf16.msra.mxu0 %v1721_v6  ;;  %v1739_v18 = vld [vmem:[%s2667_s3 + $0x40] ss:$8 sps:$4 sm:$0xff]   ;;  %v1741_v20 = vld [vmem:[%s2667_s3 + $0x54] ss:$8 sps:$4 sm:$0xff]   ;;  %v1745_v22 = vld [vmem:[%s2667_s3 + $0x50] ss:$8 sps:$4 sm:$0xff]  }
   0x8   :  { %1070 = vmatpush1.bf16.msra.mxu1 %v1722_v7  ;;  %362 = vmatprep.subr.bf16.mxu0 %v1723_v8  ;;  %v1740_v19 = vld [vmem:[%s2668_s2 + $0x40] ss:$8 sps:$4 sm:$0xff]   ;;  %v1743_v21 = vld [vmem:[%s2668_s2 + $0x54] ss:$8 sps:$4 sm:$0xff]   ;;  %v1746_v23 = vld [vmem:[%s2668_s2 + $0x50] ss:$8 sps:$4 sm:$0xff]  }
   0x9   :  { %1071 = vmatprep.subr.bf16.mxu1 %v1725_v9  ;;  %v1747_v24 = vld [vmem:[%s2667_s3 + $0x64] ss:$8 sps:$4 sm:$0xff]   ;;  %v1751_v26 = vld [vmem:[%s2667_s3 + $0x60] ss:$8 sps:$4 sm:$0xff]   ;;  %v1753_v28 = vld [vmem:[%s2667_s3 + $0x74] ss:$8 sps:$4 sm:$0xff]  }
   0xa   :  { %v1749_v25 = vld [vmem:[%s2668_s2 + $0x64] ss:$8 sps:$4 sm:$0xff]   ;;  %v1752_v27 = vld [vmem:[%s2668_s2 + $0x60] ss:$8 sps:$4 sm:$0xff]   ;;  %v1755_v29 = vld [vmem:[%s2668_s2 + $0x74] ss:$8 sps:$4 sm:$0xff]  }
   0xb   :  { %363 = vmatpush1.bf16.msra.mxu0 %v1727_v10  ;;  %v1757_v30 = vld [vmem:[%s2667_s3 + $0x70] ss:$8 sps:$4 sm:$0xff]   ;;  %v1759_v32 = vld [vmem:[%s2667_s3 + $0x84] ss:$8 sps:$4 sm:$0xff]   ;;  %v1763_v34 = vld [vmem:[%s2667_s3 + $0x80] ss:$8 sps:$4 sm:$0xff]  }
   0xc   :  { %1072 = vmatpush1.bf16.msra.mxu1 %v1728_v11  ;;  %364 = vmatprep.subr.bf16.mxu0 %v1729_v12  ;;  %v1758_v31 = vld [vmem:[%s2668_s2 + $0x70] ss:$8 sps:$4 sm:$0xff]   ;;  %v1761_v33 = vld [vmem:[%s2668_s2 + $0x84] ss:$8 sps:$4 sm:$0xff]   ;;  %v1764_v35 = vld [vmem:[%s2668_s2 + $0x80] ss:$8 sps:$4 sm:$0xff]  }
   0xd   :  { %1073 = vmatprep.subr.bf16.mxu1 %v1731_v13  ;;  %v1765_v36 = vld [vmem:[%s2667_s3 + $0x94] ss:$8 sps:$4 sm:$0xff]   ;;  %v1769_v38 = vld [vmem:[%s2667_s3 + $0x90] ss:$8 sps:$4 sm:$0xff]   ;;  %v1771_v40 = vld [vmem:[%s2667_s3 + $0xa4] ss:$8 sps:$4 sm:$0xff]  }
   0xe   :  { %v1767_v37 = vld [vmem:[%s2668_s2 + $0x94] ss:$8 sps:$4 sm:$0xff]   ;;  %v1770_v39 = vld [vmem:[%s2668_s2 + $0x90] ss:$8 sps:$4 sm:$0xff]   ;;  %v1773_v41 = vld [vmem:[%s2668_s2 + $0xa4] ss:$8 sps:$4 sm:$0xff]  }
   0xf   :  { %365 = vmatpush1.bf16.msra.mxu0 %v1733_v14  ;;  %v1775_v42 = vld [vmem:[%s2667_s3 + $0xa0] ss:$8 sps:$4 sm:$0xff]   ;;  %v1777_v44 = vld [vmem:[%s2667_s3 + $0xb4] ss:$8 sps:$4 sm:$0xff]   ;;  %v1781_v49 = vld [vmem:[%s2667_s3 + $0xb0] ss:$8 sps:$4 sm:$0xff]  }
  0x10   :  { %1074 = vmatpush1.bf16.msra.mxu1 %v1734_v15  ;;  %366 = vmatprep.subr.bf16.mxu0 %v1735_v16  ;;  %v1776_v43 = vld [vmem:[%s2668_s2 + $0xa0] ss:$8 sps:$4 sm:$0xff]   ;;  %v1779_v45 = vld [vmem:[%s2668_s2 + $0xb4] ss:$8 sps:$4 sm:$0xff]   ;;  %v1782_v50 = vld [vmem:[%s2668_s2 + $0xb0] ss:$8 sps:$4 sm:$0xff]  }
  0x11   :  { %1075 = vmatprep.subr.bf16.mxu1 %v1737_v17  ;;  %v158_v46 = vld [vmem:[%s2669_s1] sm:$0xff]  ;;  %v1789_v56 = vld [vmem:[%s2667_s3 + $0xd4] ss:$8 sps:$4 sm:$0xff]   ;;  %v1793_v58 = vld [vmem:[%s2667_s3 + $0xd0] ss:$8 sps:$4 sm:$0xff]  }
  0x12   :  { %v1508_v47 = vcombine.high %v158_v46, %v158_v46  ;;  %v26_v48 = vld [vmem:[%s2670_s0] sm:$0xff]  ;;  %v1791_v57 = vld [vmem:[%s2668_s2 + $0xd4] ss:$8 sps:$4 sm:$0xff]   ;;  %v1794_v59 = vld [vmem:[%s2668_s2 + $0xd0] ss:$8 sps:$4 sm:$0xff]   ;;  %v1507_v6 = vcombine.low %v158_v46, %v158_v46 }
  0x13   :  { %367 = vmatpush1.bf16.msra.mxu0 %v1739_v18  ;;  %v1542_v51 = vcombine.high %v26_v48, %v26_v48  ;;  %v1783_v52 = vld [vmem:[%s2667_s3 + $0xc4] ss:$8 sps:$4 sm:$0xff]   ;;  %v1787_v54 = vld [vmem:[%s2667_s3 + $0xc0] ss:$8 sps:$4 sm:$0xff]   ;;  %v1801_v0 = vld [vmem:[%s2667_s3 + $0xf4] ss:$8 sps:$4 sm:$0xff]   ;;  %v1541_v7 = vcombine.low %v26_v48, %v26_v48 }
  0x14   :  { %1076 = vmatpush1.bf16.msra.mxu1 %v1740_v19  ;;  %368 = vmatprep.subr.bf16.mxu0 %v1741_v20  ;;  %v1785_v53 = vld [vmem:[%s2668_s2 + $0xc4] ss:$8 sps:$4 sm:$0xff]   ;;  %v1788_v55 = vld [vmem:[%s2668_s2 + $0xc0] ss:$8 sps:$4 sm:$0xff]   ;;  %v1803_v1 = vld [vmem:[%s2668_s2 + $0xf4] ss:$8 sps:$4 sm:$0xff]  }
  0x15   :  { %1077 = vmatprep.subr.bf16.mxu1 %v1743_v21  ;;  %390 = vmatprep.mubr.bf16.mxu0 %v1508_v47  ;;  %v1795_v60 = vld [vmem:[%s2667_s3 + $0xe4] ss:$8 sps:$4 sm:$0xff]   ;;  %v1799_v62 = vld [vmem:[%s2667_s3 + $0xe0] ss:$8 sps:$4 sm:$0xff]   ;;  %v1805_v2 = vld [vmem:[%s2667_s3 + $0xf0] ss:$8 sps:$4 sm:$0xff]  }
  0x16   :  { %1099 = vmatprep.mubr.bf16.mxu1 %v1542_v51  ;;  %v1797_v61 = vld [vmem:[%s2668_s2 + $0xe4] ss:$8 sps:$4 sm:$0xff]   ;;  %v1800_v63 = vld [vmem:[%s2668_s2 + $0xe0] ss:$8 sps:$4 sm:$0xff]   ;;  %v1806_v3 = vld [vmem:[%s2668_s2 + $0xf0] ss:$8 sps:$4 sm:$0xff]  }
  0x17   :  { %369 = vmatpush1.bf16.msra.mxu0 %v1745_v22  ;;  %v1813_v4 = vld [vmem:[%s2668_s2 + $0x104] ss:$8 sps:$4 sm:$0xff]   ;;  %v1811_v8 = vld [vmem:[%s2668_s2 + $0x100] ss:$8 sps:$4 sm:$0xff]   ;;  %v1819_v10 = vld [vmem:[%s2668_s2 + $0x114] ss:$8 sps:$4 sm:$0xff]  }
  0x18   :  { %1078 = vmatpush1.bf16.msra.mxu1 %v1746_v23  ;;  %370 = vmatprep.subr.bf16.mxu0 %v1747_v24  ;;  %v1816_v5 = vld [vmem:[%s2668_s2 + $0x204] ss:$8 sps:$4 sm:$0xff]   ;;  %v1814_v9 = vld [vmem:[%s2668_s2 + $0x200] ss:$8 sps:$4 sm:$0xff]   ;;  %v1822_v11 = vld [vmem:[%s2668_s2 + $0x214] ss:$8 sps:$4 sm:$0xff]  }
  0x19   :  { %1079 = vmatprep.subr.bf16.mxu1 %v1749_v25  ;;  %v1817_v12 = vld [vmem:[%s2668_s2 + $0x110] ss:$8 sps:$4 sm:$0xff]   ;;  %v1825_v14 = vld [vmem:[%s2668_s2 + $0x124] ss:$8 sps:$4 sm:$0xff]   ;;  %v1823_v16 = vld [vmem:[%s2668_s2 + $0x120] ss:$8 sps:$4 sm:$0xff]  }
  0x1a   :  { %v1820_v13 = vld [vmem:[%s2668_s2 + $0x210] ss:$8 sps:$4 sm:$0xff]   ;;  %v1828_v15 = vld [vmem:[%s2668_s2 + $0x224] ss:$8 sps:$4 sm:$0xff]   ;;  %v1826_v17 = vld [vmem:[%s2668_s2 + $0x220] ss:$8 sps:$4 sm:$0xff]  }
  0x1b   :  { %371 = vmatpush1.bf16.msra.mxu0 %v1751_v26  ;;  %v1831_v18 = vld [vmem:[%s2668_s2 + $0x134] ss:$8 sps:$4 sm:$0xff]   ;;  %v1829_v20 = vld [vmem:[%s2668_s2 + $0x130] ss:$8 sps:$4 sm:$0xff]   ;;  %v1837_v22 = vld [vmem:[%s2668_s2 + $0x144] ss:$8 sps:$4 sm:$0xff]  }
  0x1c   :  { %1080 = vmatpush1.bf16.msra.mxu1 %v1752_v27  ;;  %372 = vmatprep.subr.bf16.mxu0 %v1753_v28  ;;  %v1834_v19 = vld [vmem:[%s2668_s2 + $0x234] ss:$8 sps:$4 sm:$0xff]   ;;  %v1832_v21 = vld [vmem:[%s2668_s2 + $0x230] ss:$8 sps:$4 sm:$0xff]   ;;  %v1840_v23 = vld [vmem:[%s2668_s2 + $0x244] ss:$8 sps:$4 sm:$0xff]  }
  0x1d   :  { %1081 = vmatprep.subr.bf16.mxu1 %v1755_v29  ;;  %v1835_v24 = vld [vmem:[%s2668_s2 + $0x140] ss:$8 sps:$4 sm:$0xff]   ;;  %v1843_v26 = vld [vmem:[%s2668_s2 + $0x154] ss:$8 sps:$4 sm:$0xff]   ;;  %v1841_v28 = vld [vmem:[%s2668_s2 + $0x150] ss:$8 sps:$4 sm:$0xff]  }
  0x1e   :  { %v1838_v25 = vld [vmem:[%s2668_s2 + $0x240] ss:$8 sps:$4 sm:$0xff]   ;;  %v1846_v27 = vld [vmem:[%s2668_s2 + $0x254] ss:$8 sps:$4 sm:$0xff]   ;;  %v1844_v29 = vld [vmem:[%s2668_s2 + $0x250] ss:$8 sps:$4 sm:$0xff]  }
  0x1f   :  { %373 = vmatpush1.bf16.msra.mxu0 %v1757_v30  ;;  %v1849_v30 = vld [vmem:[%s2668_s2 + $0x164] ss:$8 sps:$4 sm:$0xff]   ;;  %v1867_v46 = vld [vmem:[%s2668_s2 + $0x194] ss:$8 sps:$4 sm:$0xff]   ;;  %v1865_v48 = vld [vmem:[%s2668_s2 + $0x190] ss:$8 sps:$4 sm:$0xff]  }
  0x20   :  { %1082 = vmatpush1.bf16.msra.mxu1 %v1758_v31  ;;  %374 = vmatprep.subr.bf16.mxu0 %v1759_v32  ;;  %v1852_v31 = vld [vmem:[%s2668_s2 + $0x264] ss:$8 sps:$4 sm:$0xff]   ;;  %v1870_v47 = vld [vmem:[%s2668_s2 + $0x294] ss:$8 sps:$4 sm:$0xff]  }
  0x21   :  { %1083 = vmatprep.subr.bf16.mxu1 %v1761_v33  ;;  %v2328_v32 = vld [vmem:[%s2670_s0 + $0x8] sm:$0xff] }
  0x22   :  { %v1847_v33 = vld [vmem:[%s2668_s2 + $0x160] ss:$8 sps:$4 sm:$0xff]   ;;  %v1876_v51 = vld [vmem:[%s2668_s2 + $0x2a4] ss:$8 sps:$4 sm:$0xff]  }
  0x23   :  { %375 = vmatpush1.bf16.msra.mxu0 %v1763_v34  ;;  %v1850_v34 = vld [vmem:[%s2668_s2 + $0x260] ss:$8 sps:$4 sm:$0xff]  }
  0x24   :  { %1084 = vmatpush1.bf16.msra.mxu1 %v1764_v35  ;;  %376 = vmatprep.subr.bf16.mxu0 %v1765_v36  ;;  %v1544_v35 = vcombine.high %v2328_v32, %v2328_v32  ;;  %v2341_v36 = vld [vmem:[%s2670_s0 + $0x10] sm:$0xff] }
  0x25   :  { %1085 = vmatprep.subr.bf16.mxu1 %v1767_v37  ;;  %v1855_v37 = vld [vmem:[%s2668_s2 + $0x174] ss:$8 sps:$4 sm:$0xff]  }
  0x27   :  { %377 = vmatpush1.bf16.msra.mxu0 %v1769_v38  ;;  %v1546_v38 = vcombine.high %v2341_v36, %v2341_v36 }
  0x28   :  { %1086 = vmatpush1.bf16.msra.mxu1 %v1770_v39  ;;  %378 = vmatprep.subr.bf16.mxu0 %v1771_v40  ;;  %v1858_v39 = vld [vmem:[%s2668_s2 + $0x274] ss:$8 sps:$4 sm:$0xff]   ;;  %v1853_v40 = vld [vmem:[%s2668_s2 + $0x170] ss:$8 sps:$4 sm:$0xff]  }
  0x29   :  { %1087 = vmatprep.subr.bf16.mxu1 %v1773_v41  ;;  %v1856_v41 = vld [vmem:[%s2668_s2 + $0x270] ss:$8 sps:$4 sm:$0xff]  }
  0x2b   :  { %379 = vmatpush1.bf16.msra.mxu0 %v1775_v42  ;;  %v1861_v42 = vld [vmem:[%s2668_s2 + $0x184] ss:$8 sps:$4 sm:$0xff]  }
  0x2c   :  { %1088 = vmatpush1.bf16.msra.mxu1 %v1776_v43  ;;  %380 = vmatprep.subr.bf16.mxu0 %v1777_v44  ;;  %v1864_v43 = vld [vmem:[%s2668_s2 + $0x284] ss:$8 sps:$4 sm:$0xff]   ;;  %v1859_v44 = vld [vmem:[%s2668_s2 + $0x180] ss:$8 sps:$4 sm:$0xff]  }
  0x2d   :  { %1089 = vmatprep.subr.bf16.mxu1 %v1779_v45  ;;  %v1862_v45 = vld [vmem:[%s2668_s2 + $0x280] ss:$8 sps:$4 sm:$0xff]  }
  0x2f   :  { %381 = vmatpush1.bf16.msra.mxu0 %v1781_v49  ;;  %v1868_v49 = vld [vmem:[%s2668_s2 + $0x290] ss:$8 sps:$4 sm:$0xff]  }
  0x30   :  { %1090 = vmatpush1.bf16.msra.mxu1 %v1782_v50  ;;  %382 = vmatprep.subr.bf16.mxu0 %v1783_v52  ;;  %v1873_v50 = vld [vmem:[%s2668_s2 + $0x1a4] ss:$8 sps:$4 sm:$0xff]   ;;  %v1871_v52 = vld [vmem:[%s2668_s2 + $0x1a0] ss:$8 sps:$4 sm:$0xff]  }
  0x31   :  { %1091 = vmatprep.subr.bf16.mxu1 %v1785_v53  ;;  %v1874_v53 = vld [vmem:[%s2668_s2 + $0x2a0] ss:$8 sps:$4 sm:$0xff]  }
  0x33   :  { %383 = vmatpush1.bf16.msra.mxu0 %v1787_v54  ;;  %v1879_v54 = vld [vmem:[%s2668_s2 + $0x1b4] ss:$8 sps:$4 sm:$0xff]  }
  0x34   :  { %1092 = vmatpush1.bf16.msra.mxu1 %v1788_v55  ;;  %384 = vmatprep.subr.bf16.mxu0 %v1789_v56  ;;  %v1882_v55 = vld [vmem:[%s2668_s2 + $0x2b4] ss:$8 sps:$4 sm:$0xff]   ;;  %v1877_v56 = vld [vmem:[%s2668_s2 + $0x1b0] ss:$8 sps:$4 sm:$0xff]  }
  0x35   :  { %1093 = vmatprep.subr.bf16.mxu1 %v1791_v57  ;;  %v1880_v57 = vld [vmem:[%s2668_s2 + $0x2b0] ss:$8 sps:$4 sm:$0xff]  }
  0x37   :  { %385 = vmatpush1.bf16.msra.mxu0 %v1793_v58  ;;  %v1885_v58 = vld [vmem:[%s2668_s2 + $0x1c4] ss:$8 sps:$4 sm:$0xff]  }
  0x38   :  { %1094 = vmatpush1.bf16.msra.mxu1 %v1794_v59  ;;  %386 = vmatprep.subr.bf16.mxu0 %v1795_v60  ;;  %v1888_v59 = vld [vmem:[%s2668_s2 + $0x2c4] ss:$8 sps:$4 sm:$0xff]   ;;  %v1883_v60 = vld [vmem:[%s2668_s2 + $0x1c0] ss:$8 sps:$4 sm:$0xff]  }
  0x39   :  { %1095 = vmatprep.subr.bf16.mxu1 %v1797_v61  ;;  %v1886_v61 = vld [vmem:[%s2668_s2 + $0x2c0] ss:$8 sps:$4 sm:$0xff]  }
  0x3b   :  { %387 = vmatpush1.bf16.msra.mxu0 %v1799_v62  ;;  %v1891_v62 = vld [vmem:[%s2668_s2 + $0x1d4] ss:$8 sps:$4 sm:$0xff]  }
  0x3c   :  { %1096 = vmatpush1.bf16.msra.mxu1 %v1800_v63  ;;  %388 = vmatprep.subr.bf16.mxu0 %v1801_v0  ;;  %v1894_v63 = vld [vmem:[%s2668_s2 + $0x2d4] ss:$8 sps:$4 sm:$0xff]   ;;  %v1889_v0 = vld [vmem:[%s2668_s2 + $0x1d0] ss:$8 sps:$4 sm:$0xff]  }
  0x3d   :  { %1097 = vmatprep.subr.bf16.mxu1 %v1803_v1  ;;  %v1892_v1 = vld [vmem:[%s2668_s2 + $0x2d0] ss:$8 sps:$4 sm:$0xff]  }
  0x3f   :  { %389 = vmatpush1.bf16.msra.mxu0 %v1805_v2  ;;  %v1897_v2 = vld [vmem:[%s2668_s2 + $0x1e4] ss:$8 sps:$4 sm:$0xff]  }
  0x40   :  { %1098 = vmatpush1.bf16.msra.mxu1 %v1806_v3  ;;  %1108 = vmatprep.subr.bf16.mxu0 %v1813_v4  ;;  %v1900_v3 = vld [vmem:[%s2668_s2 + $0x2e4] ss:$8 sps:$4 sm:$0xff]   ;;  %v1895_v4 = vld [vmem:[%s2668_s2 + $0x1e0] ss:$8 sps:$4 sm:$0xff]  }
  0x41   :  { %1149 = vmatprep.subr.bf16.mxu1 %v1816_v5  ;;  %v1898_v5 = vld [vmem:[%s2668_s2 + $0x2e0] ss:$8 sps:$4 sm:$0xff]  }
  0x42   :  { %391 = vmatmul.mubr.bf16.vlgmr.msra.gmra.mrb[0].mxu0 %v1507_v6  ;;  %v1903_v6 = vld [vmem:[%s2668_s2 + $0x1f4] ss:$8 sps:$4 sm:$0xff]  }
  0x43   :  { %1100 = vmatmul.mubr.bf16.vlgmr.msra.gmra.mrb[0].mxu1 %v1541_v7  ;;  %1109 = vmatpush1.bf16.msra.mxu0 %v1811_v8  ;;  %v1906_v7 = vld [vmem:[%s2668_s2 + $0x2f4] ss:$8 sps:$4 sm:$0xff]   ;;  %v1901_v8 = vld [vmem:[%s2668_s2 + $0x1f0] ss:$8 sps:$4 sm:$0xff]  }
  0x44   :  { %1150 = vmatpush1.bf16.msra.mxu1 %v1814_v9  ;;  %1110 = vmatprep.subr.bf16.mxu0 %v1819_v10  ;;  %v1904_v9 = vld [vmem:[%s2668_s2 + $0x2f0] ss:$8 sps:$4 sm:$0xff]   ;;  %v1911_v10 = vld [vmem:[%s2668_s2 + $0x304] ss:$8 sps:$4 sm:$0xff]  }
  0x45   :  { %1151 = vmatprep.subr.bf16.mxu1 %v1822_v11  ;;  %1140 = vmatprep.mubr.bf16.mxu0 %v1544_v35  ;;  %v2459_v11 = vld [vmem:[%s2670_s0 + $0x18] sm:$0xff]  ;;  %v1941_v35 = vld [vmem:[%s2668_s2 + $0x3a0] ss:$8 sps:$4 sm:$0xff]  }
  0x46   :  { %1181 = vmatprep.mubr.bf16.mxu1 %v1546_v38  ;;  %v1949_v38 = vld [vmem:[%s2668_s2 + $0x3c4] ss:$8 sps:$4 sm:$0xff]  }
  0x47   :  { %1111 = vmatpush1.bf16.msra.mxu0 %v1817_v12  ;;  %v1543_v12 = vcombine.low %v2328_v32, %v2328_v32  ;;  %v1940_v32 = vld [vmem:[%s2668_s2 + $0x394] ss:$8 sps:$4 sm:$0xff]  }
  0x48   :  { %1152 = vmatpush1.bf16.msra.mxu1 %v1820_v13  ;;  %1112 = vmatprep.subr.bf16.mxu0 %v1825_v14  ;;  %v1545_v13 = vcombine.low %v2341_v36, %v2341_v36  ;;  %v1909_v14 = vld [vmem:[%s2668_s2 + $0x300] ss:$8 sps:$4 sm:$0xff]   ;;  %v1946_v36 = vld [vmem:[%s2668_s2 + $0x3b4] ss:$8 sps:$4 sm:$0xff]  }
  0x49   :  { %1153 = vmatprep.subr.bf16.mxu1 %v1828_v15  ;;  %v1548_v15 = vcombine.high %v2459_v11, %v2459_v11 }
  0x4b   :  { %1113 = vmatpush1.bf16.msra.mxu0 %v1823_v16  ;;  %v1916_v16 = vld [vmem:[%s2668_s2 + $0x314] ss:$8 sps:$4 sm:$0xff]  }
  0x4c   :  { %1154 = vmatpush1.bf16.msra.mxu1 %v1826_v17  ;;  %1114 = vmatprep.subr.bf16.mxu0 %v1831_v18  ;;  %v1914_v17 = vld [vmem:[%s2668_s2 + $0x310] ss:$8 sps:$4 sm:$0xff]   ;;  %v1919_v18 = vld [vmem:[%s2668_s2 + $0x324] ss:$8 sps:$4 sm:$0xff]  }
  0x4d   :  { %1155 = vmatprep.subr.bf16.mxu1 %v1834_v19  ;;  %v1917_v19 = vld [vmem:[%s2668_s2 + $0x320] ss:$8 sps:$4 sm:$0xff]  }
  0x4f   :  { %1115 = vmatpush1.bf16.msra.mxu0 %v1829_v20  ;;  %v1922_v20 = vld [vmem:[%s2668_s2 + $0x334] ss:$8 sps:$4 sm:$0xff]  }
  0x50   :  { %1156 = vmatpush1.bf16.msra.mxu1 %v1832_v21  ;;  %1116 = vmatprep.subr.bf16.mxu0 %v1837_v22  ;;  %v1920_v21 = vld [vmem:[%s2668_s2 + $0x330] ss:$8 sps:$4 sm:$0xff]   ;;  %v1925_v22 = vld [vmem:[%s2668_s2 + $0x344] ss:$8 sps:$4 sm:$0xff]  }
  0x51   :  { %1157 = vmatprep.subr.bf16.mxu1 %v1840_v23  ;;  %v1923_v23 = vld [vmem:[%s2668_s2 + $0x340] ss:$8 sps:$4 sm:$0xff]  }
  0x53   :  { %1117 = vmatpush1.bf16.msra.mxu0 %v1835_v24  ;;  %v1928_v24 = vld [vmem:[%s2668_s2 + $0x354] ss:$8 sps:$4 sm:$0xff]  }
  0x54   :  { %1158 = vmatpush1.bf16.msra.mxu1 %v1838_v25  ;;  %1118 = vmatprep.subr.bf16.mxu0 %v1843_v26  ;;  %v1926_v25 = vld [vmem:[%s2668_s2 + $0x350] ss:$8 sps:$4 sm:$0xff]   ;;  %v1931_v26 = vld [vmem:[%s2668_s2 + $0x364] ss:$8 sps:$4 sm:$0xff]  }
  0x55   :  { %1159 = vmatprep.subr.bf16.mxu1 %v1846_v27  ;;  %v1929_v27 = vld [vmem:[%s2668_s2 + $0x360] ss:$8 sps:$4 sm:$0xff]  }
  0x57   :  { %1119 = vmatpush1.bf16.msra.mxu0 %v1841_v28  ;;  %v1934_v28 = vld [vmem:[%s2668_s2 + $0x374] ss:$8 sps:$4 sm:$0xff]  }
  0x58   :  { %1160 = vmatpush1.bf16.msra.mxu1 %v1844_v29  ;;  %1120 = vmatprep.subr.bf16.mxu0 %v1849_v30  ;;  %v1932_v29 = vld [vmem:[%s2668_s2 + $0x370] ss:$8 sps:$4 sm:$0xff]   ;;  %v1937_v30 = vld [vmem:[%s2668_s2 + $0x384] ss:$8 sps:$4 sm:$0xff]  }
  0x59   :  { %1161 = vmatprep.subr.bf16.mxu1 %v1852_v31  ;;  %v1935_v31 = vld [vmem:[%s2668_s2 + $0x380] ss:$8 sps:$4 sm:$0xff]  }
  0x5b   :  { %1121 = vmatpush1.bf16.msra.mxu0 %v1847_v33  ;;  %v1938_v33 = vld [vmem:[%s2668_s2 + $0x390] ss:$8 sps:$4 sm:$0xff]  }
  0x5c   :  { %1162 = vmatpush1.bf16.msra.mxu1 %v1850_v34  ;;  %1122 = vmatprep.subr.bf16.mxu0 %v1855_v37  ;;  %v1943_v34 = vld [vmem:[%s2668_s2 + $0x3a4] ss:$8 sps:$4 sm:$0xff]   ;;  %v1944_v37 = vld [vmem:[%s2668_s2 + $0x3b0] ss:$8 sps:$4 sm:$0xff]  }
  0x5d   :  { %1163 = vmatprep.subr.bf16.mxu1 %v1858_v39  ;;  %v1947_v39 = vld [vmem:[%s2668_s2 + $0x3c0] ss:$8 sps:$4 sm:$0xff]  }
  0x5f   :  { %1123 = vmatpush1.bf16.msra.mxu0 %v1853_v40  ;;  %v1952_v40 = vld [vmem:[%s2668_s2 + $0x3d4] ss:$8 sps:$4 sm:$0xff]  }
  0x60   :  { %1164 = vmatpush1.bf16.msra.mxu1 %v1856_v41  ;;  %1124 = vmatprep.subr.bf16.mxu0 %v1861_v42  ;;  %v1950_v41 = vld [vmem:[%s2668_s2 + $0x3d0] ss:$8 sps:$4 sm:$0xff]   ;;  %v1955_v42 = vld [vmem:[%s2668_s2 + $0x3e4] ss:$8 sps:$4 sm:$0xff]  }
  0x61   :  { %1165 = vmatprep.subr.bf16.mxu1 %v1864_v43  ;;  %v1953_v43 = vld [vmem:[%s2668_s2 + $0x3e0] ss:$8 sps:$4 sm:$0xff]  }
  0x63   :  { %1125 = vmatpush1.bf16.msra.mxu0 %v1859_v44  ;;  %v1958_v44 = vld [vmem:[%s2668_s2 + $0x3f4] ss:$8 sps:$4 sm:$0xff]  }
  0x64   :  { %1166 = vmatpush1.bf16.msra.mxu1 %v1862_v45  ;;  %1126 = vmatprep.subr.bf16.mxu0 %v1867_v46  ;;  %v1956_v45 = vld [vmem:[%s2668_s2 + $0x3f0] ss:$8 sps:$4 sm:$0xff]   ;;  %v1547_v46 = vcombine.low %v2459_v11, %v2459_v11 }
  0x65   :  { %1167 = vmatprep.subr.bf16.mxu1 %v1870_v47  ;;  %v1961_v47 = vld [vmem:[%s2671_s5] ss:$8 sps:$4 sm:$0xff]  }
  0x67   :  { %1127 = vmatpush1.bf16.msra.mxu0 %v1865_v48  ;;  %v1963_v48 = vld [vmem:[%s2671_s5 + $0x4] ss:$8 sps:$4 sm:$0xff]  }
  0x68   :  { %1168 = vmatpush1.bf16.msra.mxu1 %v1868_v49  ;;  %1128 = vmatprep.subr.bf16.mxu0 %v1873_v50  ;;  %v1966_v49 = vld [vmem:[%s2671_s5 + $0x14] ss:$8 sps:$4 sm:$0xff]   ;;  %v1964_v50 = vld [vmem:[%s2671_s5 + $0x10] ss:$8 sps:$4 sm:$0xff]  }
  0x69   :  { %1169 = vmatprep.subr.bf16.mxu1 %v1876_v51  ;;  %v1969_v51 = vld [vmem:[%s2671_s5 + $0x24] ss:$8 sps:$4 sm:$0xff]  }
  0x6b   :  { %1129 = vmatpush1.bf16.msra.mxu0 %v1871_v52  ;;  %v1967_v52 = vld [vmem:[%s2671_s5 + $0x20] ss:$8 sps:$4 sm:$0xff]  }
  0x6c   :  { %1170 = vmatpush1.bf16.msra.mxu1 %v1874_v53  ;;  %1130 = vmatprep.subr.bf16.mxu0 %v1879_v54  ;;  %v1972_v53 = vld [vmem:[%s2671_s5 + $0x34] ss:$8 sps:$4 sm:$0xff]   ;;  %v1970_v54 = vld [vmem:[%s2671_s5 + $0x30] ss:$8 sps:$4 sm:$0xff]  }
  0x6d   :  { %1171 = vmatprep.subr.bf16.mxu1 %v1882_v55  ;;  %v1975_v55 = vld [vmem:[%s2671_s5 + $0x44] ss:$8 sps:$4 sm:$0xff]  }
  0x6f   :  { %1131 = vmatpush1.bf16.msra.mxu0 %v1877_v56  ;;  %v1973_v56 = vld [vmem:[%s2671_s5 + $0x40] ss:$8 sps:$4 sm:$0xff]  }
  0x70   :  { %1172 = vmatpush1.bf16.msra.mxu1 %v1880_v57  ;;  %1132 = vmatprep.subr.bf16.mxu0 %v1885_v58  ;;  %v1978_v57 = vld [vmem:[%s2671_s5 + $0x54] ss:$8 sps:$4 sm:$0xff]   ;;  %v1976_v58 = vld [vmem:[%s2671_s5 + $0x50] ss:$8 sps:$4 sm:$0xff]  }
  0x71   :  { %1173 = vmatprep.subr.bf16.mxu1 %v1888_v59  ;;  %v1981_v59 = vld [vmem:[%s2671_s5 + $0x64] ss:$8 sps:$4 sm:$0xff]  }
  0x73   :  { %1133 = vmatpush1.bf16.msra.mxu0 %v1883_v60  ;;  %v1979_v60 = vld [vmem:[%s2671_s5 + $0x60] ss:$8 sps:$4 sm:$0xff]  }
  0x74   :  { %1174 = vmatpush1.bf16.msra.mxu1 %v1886_v61  ;;  %1134 = vmatprep.subr.bf16.mxu0 %v1891_v62  ;;  %v1984_v61 = vld [vmem:[%s2671_s5 + $0x74] ss:$8 sps:$4 sm:$0xff]   ;;  %v1982_v62 = vld [vmem:[%s2671_s5 + $0x70] ss:$8 sps:$4 sm:$0xff]  }
  0x75   :  { %1175 = vmatprep.subr.bf16.mxu1 %v1894_v63  ;;  %v1987_v63 = vld [vmem:[%s2671_s5 + $0x84] ss:$8 sps:$4 sm:$0xff]  }
  0x77   :  { %1135 = vmatpush1.bf16.msra.mxu0 %v1889_v0  ;;  %v1985_v0 = vld [vmem:[%s2671_s5 + $0x80] ss:$8 sps:$4 sm:$0xff]  }
  0x78   :  { %1176 = vmatpush1.bf16.msra.mxu1 %v1892_v1  ;;  %1136 = vmatprep.subr.bf16.mxu0 %v1897_v2  ;;  %v1990_v1 = vld [vmem:[%s2671_s5 + $0x94] ss:$8 sps:$4 sm:$0xff]   ;;  %v1988_v2 = vld [vmem:[%s2671_s5 + $0x90] ss:$8 sps:$4 sm:$0xff]  }
  0x79   :  { %1177 = vmatprep.subr.bf16.mxu1 %v1900_v3  ;;  %v1993_v3 = vld [vmem:[%s2671_s5 + $0xa4] ss:$8 sps:$4 sm:$0xff]  }
  0x7b   :  { %1137 = vmatpush1.bf16.msra.mxu0 %v1895_v4  ;;  %v1991_v4 = vld [vmem:[%s2671_s5 + $0xa0] ss:$8 sps:$4 sm:$0xff]  }
  0x7c   :  { %1178 = vmatpush1.bf16.msra.mxu1 %v1898_v5  ;;  %1138 = vmatprep.subr.bf16.mxu0 %v1903_v6  ;;  %v1996_v5 = vld [vmem:[%s2671_s5 + $0xb4] ss:$8 sps:$4 sm:$0xff]   ;;  %v1994_v6 = vld [vmem:[%s2671_s5 + $0xb0] ss:$8 sps:$4 sm:$0xff]  }
  0x7d   :  { %1179 = vmatprep.subr.bf16.mxu1 %v1906_v7  ;;  %v1999_v7 = vld [vmem:[%s2671_s5 + $0xc4] ss:$8 sps:$4 sm:$0xff]  }
  0x7f   :  { %1139 = vmatpush1.bf16.msra.mxu0 %v1901_v8  ;;  %v1997_v8 = vld [vmem:[%s2671_s5 + $0xc0] ss:$8 sps:$4 sm:$0xff]  }
  0x80   :  { %1180 = vmatpush1.bf16.msra.mxu1 %v1904_v9  ;;  %1190 = vmatprep.subr.bf16.mxu0 %v1911_v10  ;;  %v2002_v9 = vld [vmem:[%s2671_s5 + $0xd4] ss:$8 sps:$4 sm:$0xff]   ;;  %v2000_v10 = vld [vmem:[%s2671_s5 + $0xd0] ss:$8 sps:$4 sm:$0xff]  }
  0x81   :  { %1453 = vmatprep.subr.bf16.mxu1 %v1963_v48 }
  0x82   :  { %1141 = vmatmul.mubr.bf16.vlgmr.msra.gmra.mrb[4].mxu0 %v1543_v12 }
  0x83   :  { %1182 = vmatmul.mubr.bf16.vlgmr.msra.gmra.mrb[4].mxu1 %v1545_v13  ;;  %1191 = vmatpush1.bf16.msra.mxu0 %v1909_v14 }
  0x84   :  { %1222 = vmatprep.mubr.bf16.mxu0 %v1548_v15  ;;  %1192 = vmatprep.subr.bf16.mxu0 %v1916_v16  ;;  %v2005_v16 = vld [vmem:[%s2671_s5 + $0xe4] ss:$8 sps:$4 sm:$0xff]  }
  0x85   :  { %1454 = vmatpush1.bf16.msra.mxu1 %v1961_v47 }
  0x86   :  { %1455 = vmatprep.subr.bf16.mxu1 %v1966_v49 }
  0x87   :  { %1193 = vmatpush1.bf16.msra.mxu0 %v1914_v17 }
  0x88   :  { %1194 = vmatprep.subr.bf16.mxu0 %v1919_v18 }
  0x89   :  { %1456 = vmatpush1.bf16.msra.mxu1 %v1964_v50 }
  0x8a   :  { %1457 = vmatprep.subr.bf16.mxu1 %v1969_v51 }
  0x8b   :  { %1195 = vmatpush1.bf16.msra.mxu0 %v1917_v19 }
  0x8c   :  { %1196 = vmatprep.subr.bf16.mxu0 %v1922_v20  ;;  %v2003_v20 = vld [vmem:[%s2671_s5 + $0xe0] ss:$8 sps:$4 sm:$0xff]  }
  0x8d   :  { %1458 = vmatpush1.bf16.msra.mxu1 %v1967_v52 }
  0x8e   :  { %1459 = vmatprep.subr.bf16.mxu1 %v1972_v53 }
  0x8f   :  { %1197 = vmatpush1.bf16.msra.mxu0 %v1920_v21 }
  0x90   :  { %1198 = vmatprep.subr.bf16.mxu0 %v1925_v22 }
  0x91   :  { %1460 = vmatpush1.bf16.msra.mxu1 %v1970_v54 }
  0x92   :  { %1461 = vmatprep.subr.bf16.mxu1 %v1975_v55 }
  0x93   :  { %1199 = vmatpush1.bf16.msra.mxu0 %v1923_v23  ;;  %v2008_v23 = vld [vmem:[%s2671_s5 + $0xf4] ss:$8 sps:$4 sm:$0xff]  }
  0x94   :  { %1200 = vmatprep.subr.bf16.mxu0 %v1928_v24  ;;  %v2006_v24 = vld [vmem:[%s2671_s5 + $0xf0] ss:$8 sps:$4 sm:$0xff]  }
  0x95   :  { %1462 = vmatpush1.bf16.msra.mxu1 %v1973_v56  ;;  %v1281_v56 = vld [vmem:[%s2673_s6] sm:$0x3] }
  0x96   :  { %1463 = vmatprep.subr.bf16.mxu1 %v1978_v57 }
  0x97   :  { %1201 = vmatpush1.bf16.msra.mxu0 %v1926_v25 }
  0x98   :  { %1202 = vmatprep.subr.bf16.mxu0 %v1931_v26 }
  0x99   :  { %1464 = vmatpush1.bf16.msra.mxu1 %v1976_v58 }
  0x9a   :  { %1465 = vmatprep.subr.bf16.mxu1 %v1981_v59 }
  0x9b   :  { %1203 = vmatpush1.bf16.msra.mxu0 %v1929_v27 }
  0x9c   :  { %1204 = vmatprep.subr.bf16.mxu0 %v1934_v28 }
  0x9d   :  { %1466 = vmatpush1.bf16.msra.mxu1 %v1979_v60 }
  0x9e   :  { %1467 = vmatprep.subr.bf16.mxu1 %v1984_v61 }
  0x9f   :  { %1205 = vmatpush1.bf16.msra.mxu0 %v1932_v29 }
  0xa0   :  { %1206 = vmatprep.subr.bf16.mxu0 %v1937_v30 }
  0xa1   :  { %1468 = vmatpush1.bf16.msra.mxu1 %v1982_v62 }
  0xa2   :  { %1469 = vmatprep.subr.bf16.mxu1 %v1987_v63 }
  0xa3   :  { %1207 = vmatpush1.bf16.msra.mxu0 %v1935_v31 }
  0xa4   :  { %1208 = vmatprep.subr.bf16.mxu0 %v1940_v32 }
  0xa5   :  { %1470 = vmatpush1.bf16.msra.mxu1 %v1985_v0 }
  0xa6   :  { %1471 = vmatprep.subr.bf16.mxu1 %v1990_v1 }
  0xa7   :  { %1209 = vmatpush1.bf16.msra.mxu0 %v1938_v33 }
  0xa8   :  { %1210 = vmatprep.subr.bf16.mxu0 %v1943_v34 }
  0xa9   :  { %1472 = vmatpush1.bf16.msra.mxu1 %v1988_v2 }
  0xaa   :  { %1473 = vmatprep.subr.bf16.mxu1 %v1993_v3 }
  0xab   :  { %1211 = vmatpush1.bf16.msra.mxu0 %v1941_v35 }
  0xac   :  { %1212 = vmatprep.subr.bf16.mxu0 %v1946_v36 }
  0xad   :  { %1474 = vmatpush1.bf16.msra.mxu1 %v1991_v4 }
  0xae   :  { %1475 = vmatprep.subr.bf16.mxu1 %v1996_v5 }
  0xaf   :  { %1213 = vmatpush1.bf16.msra.mxu0 %v1944_v37  ;;  %v1233_v37 = vlaneseq }
  0xb0   :  { %1214 = vmatprep.subr.bf16.mxu0 %v1949_v38 }
  0xb1   :  { %1476 = vmatpush1.bf16.msra.mxu1 %v1994_v6  ;;  %v1234_v38 = vshrl.u32 %v1233_v37, 7 }
  0xb2   :  { %1477 = vmatprep.subr.bf16.mxu1 %v1999_v7 }
  0xb3   :  { %1215 = vmatpush1.bf16.msra.mxu0 %v1947_v39  ;;  %v1235_v39 = vsub.s32 0, %v1234_v38 }
  0xb4   :  { %1216 = vmatprep.subr.bf16.mxu0 %v1952_v40  ;;  %v1231_v40 = vld [vmem:[%s2672_s4] sm:$0x3] }
  0xb5   :  { %1478 = vmatpush1.bf16.msra.mxu1 %v1997_v8  ;;  %v1286_v57 = vrot.slane %v1281_v56, %v1235_v39 }
  0xb6   :  { %1479 = vmatprep.subr.bf16.mxu1 %v2002_v9 }
  0xb7   :  { %1217 = vmatpush1.bf16.msra.mxu0 %v1950_v41  ;;  %v1239_v41 = vsub.s32 1, %v1234_v38 }
  0xb8   :  { %1218 = vmatprep.subr.bf16.mxu0 %v1955_v42  ;;  %v1236_v42 = vrot.slane %v1231_v40, %v1235_v39 }
  0xb9   :  { %1480 = vmatpush1.bf16.msra.mxu1 %v2000_v10  ;;  %v1290_v58 = vrot.slane %v1281_v56, %v1239_v41 }
  0xba   :  { %1481 = vmatprep.subr.bf16.mxu1 %v2005_v16 }
  0xbb   :  { %1219 = vmatpush1.bf16.msra.mxu0 %v1953_v43 }
  0xbc   :  { %1220 = vmatprep.subr.bf16.mxu0 %v1958_v44  ;;  %v1240_v44 = vrot.slane %v1231_v40, %v1239_v41 }
  0xbd   :  { %1482 = vmatpush1.bf16.msra.mxu1 %v2003_v20 }
  0xbe   :  { %1483 = vmatprep.subr.bf16.mxu1 %v2008_v23 }
  0xbf   :  { %1221 = vmatpush1.bf16.msra.mxu0 %v1956_v45 }
  0xc1   :  { %1484 = vmatpush1.bf16.msra.mxu1 %v2006_v24 }
  0xc2   :  { %1223 = vmatmul.mubr.bf16.vlgmr.msra.gmra.mrb[8].mxu0 %v1547_v46 }
 0x115   :  { %v392_v11 = vpop.f32.mrb[0].mxu0 }
 0x116   :  { %v1101_v12 = vpop.f32.mrb[0].mxu1  ;;  %v394_v14 = vpop.f32.mrb[1].mxu0 }
 0x117   :  { %v1102_v13 = vadd.f32 %v1101_v12, %v392_v11  ;;  %v1103_v15 = vpop.f32.mrb[1].mxu1  ;;  %v396_v18 = vpop.f32.mrb[2].mxu0 }
 0x118   :  { %v1104_v17 = vadd.f32 %v1103_v15, %v394_v14  ;;  %v1105_v19 = vpop.f32.mrb[2].mxu1  ;;  %v397_v21 = vpop.f32.mrb[3].mxu0 }
 0x119   :  { %v1106_v22 = vpop.f32.mrb[3].mxu1 }
 0x155   :  { %v1142_v25 = vpop.f32.mrb[4].mxu0 }
 0x156   :  { %v1183_v26 = vpop.f32.mrb[4].mxu1  ;;  %v1143_v27 = vadd.f32 %v1142_v25, %v1102_v13  ;;  %v1144_v28 = vpop.f32.mrb[5].mxu0 }
 0x157   :  { %v1185_v29 = vpop.f32.mrb[5].mxu1  ;;  %v1145_v30 = vadd.f32 %v1144_v28, %v1104_v17  ;;  %v1146_v31 = vpop.f32.mrb[6].mxu0 }
 0x158   :  { %v1187_v32 = vpop.f32.mrb[6].mxu1  ;;  %v1184_v33 = vadd.f32 %v1183_v26, %v1143_v27  ;;  %v1147_v34 = vpop.f32.mrb[7].mxu0 }
 0x159   :  { %v1188_v35 = vpop.f32.mrb[7].mxu1  ;;  %v1186_v36 = vadd.f32 %v1185_v29, %v1145_v30 }
 0x195   :  { %v1224_v43 = vpop.f32.mrb[8].mxu0 }
 0x196   :  { %v1225_v45 = vadd.f32 %v1224_v43, %v1184_v33  ;;  %v1226_v46 = vpop.f32.mrb[9].mxu0 }
 0x197   :  { %v1227_v47 = vadd.f32 %v1226_v46, %v1186_v36  ;;  %v1228_v48 = vpop.f32.mrb[10].mxu0 }
 0x198   :  { %v1243_v49 = vadd.f32 %v1236_v42, %v1225_v45  ;;  %v1229_v50 = vpop.f32.mrb[11].mxu0 }
 0x199   :  { %v1244_v51 = vadd.f32 %v1240_v44, %v1227_v47 }
 0x19a   :  { %v1245_v52 = vmax.f32 %v1243_v49, 0.0 }
 0x19b   :  { %v1246_v53 = vmax.f32 %v1244_v51, 0.0 }
 0x19c   :  { %v1247_v55 = vpack.c.bf16 %v1245_v52, %v1245_v52 }
 0x19d   :  { %v1248_v54 = vpack.c.bf16 %v1246_v53, %v1246_v53 }
 0x19f   :  { %1485 = vmatprep.mubr.bf16.mxu1 %v1248_v54 }
 0x1a0   :  { %1486 = vmatmul.mubr.bf16.vlgmr.msra.gmra.mrb[8].mxu1 %v1247_v55 }
 0x273   :  { %v1487_v59 = vpop.f32.mrb[8].mxu1 }
 0x274   :  { %v1488_v60 = vadd.f32 %v1487_v59, %v1286_v57  ;;  %v1489_v61 = vpop.f32.mrb[9].mxu1 }
 0x275   :  { %v1490_v62 = vadd.f32 %v1489_v61, %v1290_v58  ;;  %v1491_v63 = vpop.f32.mrb[10].mxu1 }
 0x276   :  { %v1492_v0 = vpop.f32.mrb[11].mxu1 }
 0x277   :  { %v1710_v1 = vpack.c.bf16 %v1490_v62, %v1488_v60 }
 0x279   :  { %1502 = vst [vmem:[%s2674_s7] sm:$0xff] %v1710_v1 }

// kernel: pn2_forward.8
= control target key start
LH: loop header
LB: loop body
LE: loop exit
PB: predicated region body
PF: predicated region fallthrough
CT: control target
= control target key end

     0   :  { %vm84_vm0 = vcmask 1043456   ;;  %v3757_v1 = vmov 0   ;;  %vm80_vm1 = vcmask 64512   ;;  %vm3128_vm2 = vcmask 1041409   ;;  %s5032_s3 = inlined_call_operand.vmem [shape: bf16[8,256], index: 3, kind: input, shape index: {}]   ;;  %s5033_s2 = inlined_call_operand.vmem [shape: bf16[256,256], index: 2, kind: input, shape index: {}]   ;;  %s5034_s1 = inlined_call_operand.vmem [shape: bf16[16,8], index: 1, kind: input, shape index: {}]   ;;  %s5035_s0 = inlined_call_operand.vmem [shape: bf16[16,256], index: 0, kind: input, shape index: {}]   ;;  %s5036_s5 = inlined_call_operand.vmem [shape: bf16[256,512], index: 5, kind: input, shape index: {}]   ;;  %s5037_s7 = inlined_call_operand.vmem [shape: bf16[512,1024], index: 7, kind: input, shape index: {}]   ;;  %s5038_s4 = inlined_call_operand.vmem [shape: f32[1,256], index: 4, kind: input, shape index: {}]   ;;  %s5039_s6 = inlined_call_operand.vmem [shape: f32[1,512], index: 6, kind: input, shape index: {}]   ;;  %s5040_s8 = inlined_call_operand.vmem [shape: f32[1,1024], index: 8, kind: input, shape index: {}]   ;;  %s5041_s9 = inlined_call_operand.vmem [shape: bf16[2,1024], index: 9, kind: output, shape index: {}]  }
   0x1   :  { %v69_v0 = vld [vmem:[%s5032_s3] sm:$0xff]  ;;  %123 = vmatprep.mubr.bf16.mxu0 %v3757_v1  ;;  %v3615_v8 = vld [vmem:[%s5033_s2 + $0x14] ss:$8 sps:$4 sm:$0xff]   ;;  %v3613_v9 = vld [vmem:[%s5033_s2 + $0x10] ss:$8 sps:$4 sm:$0xff]  }
   0x2   :  { %v3201_v2 = vcombine.high %v69_v0, %v69_v0  ;;  %v3200_v3 = vcombine.low %v69_v0, %v69_v0  ;;  %v3611_v4 = vld [vmem:[%s5033_s2 + $0x4] ss:$8 sps:$4 sm:$0xff]   ;;  %v3609_v7 = vld [vmem:[%s5033_s2] ss:$8 sps:$4 sm:$0xff]   ;;  %v3621_v12 = vld [vmem:[%s5033_s2 + $0x34] ss:$8 sps:$4 sm:$0xff]  }
   0x3   :  { %v3612_v6 = vld [vmem:[%s5034_s1] sm:$0xff]   ;;  %v3619_v13 = vld [vmem:[%s5033_s2 + $0x30] ss:$8 sps:$4 sm:$0xff]   ;;  %v3627_v16 = vld [vmem:[%s5033_s2 + $0x54] ss:$8 sps:$4 sm:$0xff]  }
   0x4   :  { %3202 = vmatprep.subr.msk.bf16.mxu0 %vm84_vm0, %v3201_v2  ;;  %v86_v5 = vsel %vm84_vm0, %v3200_v3, 0  ;;  %v3618_v10 = vld [vmem:[%s5033_s2 + $0x24] ss:$8 sps:$4 sm:$0xff]   ;;  %v3616_v11 = vld [vmem:[%s5033_s2 + $0x20] ss:$8 sps:$4 sm:$0xff]  }
   0x5   :  { %92 = vmatpush1.bf16.msra.mxu0 %v86_v5  ;;  %v3624_v14 = vld [vmem:[%s5033_s2 + $0x44] ss:$8 sps:$4 sm:$0xff]   ;;  %v3622_v15 = vld [vmem:[%s5033_s2 + $0x40] ss:$8 sps:$4 sm:$0xff]   ;;  %v3625_v17 = vld [vmem:[%s5033_s2 + $0x50] ss:$8 sps:$4 sm:$0xff]  }
   0x6   :  { %304 = vmatprep.subr.bf16.mxu0 %v3611_v4  ;;  %v3630_v18 = vld [vmem:[%s5033_s2 + $0x64] ss:$8 sps:$4 sm:$0xff]   ;;  %v3663_v21 = vld [vmem:[%s5036_s5] ss:$16 sps:$4 sm:$0xff]   ;;  %v3633_v26 = vld [vmem:[%s5033_s2 + $0x74] ss:$8 sps:$4 sm:$0xff]  }
   0x7   :  { %v3660_v19 = vld [vmem:[%s5035_s0 + $0x4] ss:$8 sps:$4 sm:$0xff]   ;;  %v3628_v23 = vld [vmem:[%s5033_s2 + $0x60] ss:$8 sps:$4 sm:$0xff]   ;;  %v3631_v27 = vld [vmem:[%s5033_s2 + $0x70] ss:$8 sps:$4 sm:$0xff]  }
   0x8   :  { %3203 = vmatmul.mubr.msk.bf16.vlgmr.msra.gmra.mrb[0].mxu0 %vm80_vm1, %v3612_v6  ;;  %v3661_v20 = vld [vmem:[%s5036_s5 + $0x4] ss:$16 sps:$4 sm:$0xff]   ;;  %v3666_v24 = vld [vmem:[%s5036_s5 + $0x20] ss:$16 sps:$4 sm:$0xff]  }
   0x9   :  { %305 = vmatpush1.bf16.msra.mxu0 %v3609_v7  ;;  %336 = vmatprep.mubr.bf16.mxu0 %v3660_v19  ;;  %v3664_v22 = vld [vmem:[%s5036_s5 + $0x24] ss:$16 sps:$4 sm:$0xff]   ;;  %v3669_v28 = vld [vmem:[%s5036_s5 + $0x40] ss:$16 sps:$4 sm:$0xff]  }
   0xa   :  { %306 = vmatprep.subr.bf16.mxu0 %v3615_v8  ;;  %775 = vmatprep.subr.bf16.mxu1 %v3661_v20  ;;  %v3667_v25 = vld [vmem:[%s5036_s5 + $0x44] ss:$16 sps:$4 sm:$0xff]   ;;  %v3634_v31 = vld [vmem:[%s5033_s2 + $0x80] ss:$8 sps:$4 sm:$0xff]   ;;  %v3637_v35 = vld [vmem:[%s5033_s2 + $0x90] ss:$8 sps:$4 sm:$0xff]  }
   0xb   :  { %776 = vmatpush1.bf16.msra.mxu1 %v3663_v21  ;;  %v3670_v29 = vld [vmem:[%s5036_s5 + $0x64] ss:$16 sps:$4 sm:$0xff]   ;;  %v3672_v32 = vld [vmem:[%s5036_s5 + $0x60] ss:$16 sps:$4 sm:$0xff]   ;;  %v3711_v8 = vld [vmem:[%s5036_s5 + $0xc] ss:$16 sps:$4 sm:$0xff]  }
   0xc   :  { %777 = vmatprep.subr.bf16.mxu1 %v3664_v22  ;;  %v3636_v30 = vld [vmem:[%s5033_s2 + $0x84] ss:$8 sps:$4 sm:$0xff]   ;;  %v3639_v34 = vld [vmem:[%s5033_s2 + $0x94] ss:$8 sps:$4 sm:$0xff]   ;;  %v3675_v36 = vld [vmem:[%s5036_s5 + $0x80] ss:$16 sps:$4 sm:$0xff]  }
   0xd   :  { %307 = vmatpush1.bf16.msra.mxu0 %v3613_v9  ;;  %v3673_v33 = vld [vmem:[%s5036_s5 + $0x84] ss:$16 sps:$4 sm:$0xff]   ;;  %v3640_v39 = vld [vmem:[%s5033_s2 + $0xa0] ss:$8 sps:$4 sm:$0xff]   ;;  %v3643_v44 = vld [vmem:[%s5033_s2 + $0xb0] ss:$8 sps:$4 sm:$0xff]  }
   0xe   :  { %308 = vmatprep.subr.bf16.mxu0 %v3618_v10  ;;  %v3676_v37 = vld [vmem:[%s5036_s5 + $0xa4] ss:$16 sps:$4 sm:$0xff]   ;;  %v3678_v40 = vld [vmem:[%s5036_s5 + $0xa0] ss:$16 sps:$4 sm:$0xff]  }
   0xf   :  { %778 = vmatpush1.bf16.msra.mxu1 %v3666_v24  ;;  %v3642_v38 = vld [vmem:[%s5033_s2 + $0xa4] ss:$8 sps:$4 sm:$0xff]   ;;  %v3645_v42 = vld [vmem:[%s5033_s2 + $0xb4] ss:$8 sps:$4 sm:$0xff]   ;;  %v3681_v43 = vld [vmem:[%s5036_s5 + $0xc0] ss:$16 sps:$4 sm:$0xff]  }
  0x10   :  { %779 = vmatprep.subr.bf16.mxu1 %v3667_v25  ;;  %v3679_v41 = vld [vmem:[%s5036_s5 + $0xc4] ss:$16 sps:$4 sm:$0xff]   ;;  %v3684_v47 = vld [vmem:[%s5036_s5 + $0xe0] ss:$16 sps:$4 sm:$0xff]  }
  0x11   :  { %309 = vmatpush1.bf16.msra.mxu0 %v3616_v11  ;;  %v3682_v45 = vld [vmem:[%s5036_s5 + $0xe4] ss:$16 sps:$4 sm:$0xff]   ;;  %v3646_v48 = vld [vmem:[%s5033_s2 + $0xc0] ss:$8 sps:$4 sm:$0xff]   ;;  %v3649_v52 = vld [vmem:[%s5033_s2 + $0xd0] ss:$8 sps:$4 sm:$0xff]  }
  0x12   :  { %310 = vmatprep.subr.bf16.mxu0 %v3621_v12  ;;  %v3648_v46 = vld [vmem:[%s5033_s2 + $0xc4] ss:$8 sps:$4 sm:$0xff]   ;;  %v3651_v50 = vld [vmem:[%s5033_s2 + $0xd4] ss:$8 sps:$4 sm:$0xff]   ;;  %v3687_v51 = vld [vmem:[%s5036_s5 + $0x100] ss:$16 sps:$4 sm:$0xff]  }
  0x13   :  { %780 = vmatpush1.bf16.msra.mxu1 %v3669_v28  ;;  %v3685_v49 = vld [vmem:[%s5036_s5 + $0x104] ss:$16 sps:$4 sm:$0xff]   ;;  %v3690_v55 = vld [vmem:[%s5036_s5 + $0x120] ss:$16 sps:$4 sm:$0xff]  }
  0x14   :  { %781 = vmatprep.subr.bf16.mxu1 %v3670_v29  ;;  %v3688_v53 = vld [vmem:[%s5036_s5 + $0x124] ss:$16 sps:$4 sm:$0xff]   ;;  %v3652_v56 = vld [vmem:[%s5033_s2 + $0xe0] ss:$8 sps:$4 sm:$0xff]   ;;  %v3655_v60 = vld [vmem:[%s5033_s2 + $0xf0] ss:$8 sps:$4 sm:$0xff]  }
  0x15   :  { %311 = vmatpush1.bf16.msra.mxu0 %v3619_v13  ;;  %v3654_v54 = vld [vmem:[%s5033_s2 + $0xe4] ss:$8 sps:$4 sm:$0xff]   ;;  %v3657_v58 = vld [vmem:[%s5033_s2 + $0xf4] ss:$8 sps:$4 sm:$0xff]   ;;  %v3693_v59 = vld [vmem:[%s5036_s5 + $0x140] ss:$16 sps:$4 sm:$0xff]  }
  0x16   :  { %312 = vmatprep.subr.bf16.mxu0 %v3624_v14  ;;  %v3691_v57 = vld [vmem:[%s5036_s5 + $0x144] ss:$16 sps:$4 sm:$0xff]   ;;  %v3658_v62 = vld [vmem:[%s5035_s0] ss:$8 sps:$4 sm:$0xff]  }
  0x17   :  { %782 = vmatpush1.bf16.msra.mxu1 %v3672_v32  ;;  %v3694_v61 = vld [vmem:[%s5036_s5 + $0x164] ss:$16 sps:$4 sm:$0xff]   ;;  %v3696_v63 = vld [vmem:[%s5036_s5 + $0x160] ss:$16 sps:$4 sm:$0xff]  }
  0x18   :  { %783 = vmatprep.subr.bf16.mxu1 %v3673_v33  ;;  %v3697_v0 = vld [vmem:[%s5036_s5 + $0x184] ss:$16 sps:$4 sm:$0xff]   ;;  %v3699_v1 = vld [vmem:[%s5036_s5 + $0x180] ss:$16 sps:$4 sm:$0xff]  }
  0x19   :  { %313 = vmatpush1.bf16.msra.mxu0 %v3622_v15  ;;  %v3700_v2 = vld [vmem:[%s5036_s5 + $0x1a4] ss:$16 sps:$4 sm:$0xff]   ;;  %v3702_v3 = vld [vmem:[%s5036_s5 + $0x1a0] ss:$16 sps:$4 sm:$0xff]  }
  0x1a   :  { %314 = vmatprep.subr.bf16.mxu0 %v3627_v16  ;;  %v3703_v4 = vld [vmem:[%s5036_s5 + $0x1c4] ss:$16 sps:$4 sm:$0xff]   ;;  %v3705_v5 = vld [vmem:[%s5036_s5 + $0x1c0] ss:$16 sps:$4 sm:$0xff]  }
  0x1b   :  { %784 = vmatpush1.bf16.msra.mxu1 %v3675_v36  ;;  %v3706_v6 = vld [vmem:[%s5036_s5 + $0x1e4] ss:$16 sps:$4 sm:$0xff]   ;;  %v3708_v7 = vld [vmem:[%s5036_s5 + $0x1e0] ss:$16 sps:$4 sm:$0xff]  }
  0x1c   :  { %785 = vmatprep.subr.bf16.mxu1 %v3676_v37  ;;  %v873_v9 = vld [vmem:[%s5037_s7] sm:$0xff] }
  0x1d   :  { %315 = vmatpush1.bf16.msra.mxu0 %v3625_v17  ;;  %v877_v10 = vld [vmem:[%s5037_s7 + $0x20] sm:$0xff] }
  0x1e   :  { %316 = vmatprep.subr.bf16.mxu0 %v3630_v18  ;;  %v3302_v11 = vcombine.low %v873_v9, %v877_v10  ;;  %v3303_v12 = vcombine.high %v873_v9, %v877_v10  ;;  %v881_v13 = vld [vmem:[%s5037_s7 + $0x40] sm:$0xff] }
  0x1f   :  { %786 = vmatpush1.bf16.msra.mxu1 %v3678_v40  ;;  %v885_v14 = vld [vmem:[%s5037_s7 + $0x60] sm:$0xff] }
  0x20   :  { %787 = vmatprep.subr.bf16.mxu1 %v3679_v41  ;;  %v3311_v15 = vcombine.high %v881_v13, %v885_v14  ;;  %v3310_v16 = vcombine.low %v881_v13, %v885_v14  ;;  %v889_v17 = vld [vmem:[%s5037_s7 + $0x80] sm:$0xff] }
  0x21   :  { %317 = vmatpush1.bf16.msra.mxu0 %v3628_v23  ;;  %v893_v18 = vld [vmem:[%s5037_s7 + $0xa0] sm:$0xff] }
  0x22   :  { %318 = vmatprep.subr.bf16.mxu0 %v3633_v26  ;;  %v3319_v19 = vcombine.high %v889_v17, %v893_v18  ;;  %v3318_v20 = vcombine.low %v889_v17, %v893_v18  ;;  %v897_v21 = vld [vmem:[%s5037_s7 + $0xc0] sm:$0xff] }
  0x23   :  { %788 = vmatpush1.bf16.msra.mxu1 %v3681_v43  ;;  %v901_v22 = vld [vmem:[%s5037_s7 + $0xe0] sm:$0xff] }
  0x24   :  { %789 = vmatprep.subr.bf16.mxu1 %v3682_v45  ;;  %v3327_v23 = vcombine.high %v897_v21, %v901_v22  ;;  %v3326_v24 = vcombine.low %v897_v21, %v901_v22  ;;  %v905_v25 = vld [vmem:[%s5037_s7 + $0x100] sm:$0xff]  ;;  %v3709_v22 = vld [vmem:[%s5036_s5 + $0x8] ss:$16 sps:$4 sm:$0xff]  }
  0x25   :  { %319 = vmatpush1.bf16.msra.mxu0 %v3631_v27  ;;  %v909_v26 = vld [vmem:[%s5037_s7 + $0x120] sm:$0xff] }
  0x26   :  { %320 = vmatprep.subr.bf16.mxu0 %v3636_v30  ;;  %v3335_v27 = vcombine.high %v905_v25, %v909_v26  ;;  %v3334_v28 = vcombine.low %v905_v25, %v909_v26  ;;  %v913_v29 = vld [vmem:[%s5037_s7 + $0x140] sm:$0xff]  ;;  %v3717_v25 = vld [vmem:[%s5036_s5 + $0x4c] ss:$16 sps:$4 sm:$0xff]   ;;  %v3715_v26 = vld [vmem:[%s5036_s5 + $0x48] ss:$16 sps:$4 sm:$0xff]  }
  0x27   :  { %790 = vmatpush1.bf16.msra.mxu1 %v3684_v47  ;;  %v917_v30 = vld [vmem:[%s5037_s7 + $0x160] sm:$0xff] }
  0x28   :  { %791 = vmatprep.subr.bf16.mxu1 %v3685_v49  ;;  %v3342_v32 = vcombine.low %v913_v29, %v917_v30  ;;  %v921_v33 = vld [vmem:[%s5037_s7 + $0x180] sm:$0xff] }
  0x29   :  { %321 = vmatpush1.bf16.msra.mxu0 %v3634_v31  ;;  %v3343_v31 = vcombine.high %v913_v29, %v917_v30  ;;  %v929_v37 = vld [vmem:[%s5037_s7 + $0x1c0] sm:$0xff]  ;;  %v3723_v29 = vld [vmem:[%s5036_s5 + $0x8c] ss:$16 sps:$4 sm:$0xff]   ;;  %v3721_v30 = vld [vmem:[%s5036_s5 + $0x88] ss:$16 sps:$4 sm:$0xff]  }
  0x2a   :  { %322 = vmatprep.subr.bf16.mxu0 %v3639_v34  ;;  %v925_v34 = vld [vmem:[%s5037_s7 + $0x1a0] sm:$0xff] }
  0x2b   :  { %792 = vmatpush1.bf16.msra.mxu1 %v3687_v51  ;;  %v3350_v36 = vcombine.low %v921_v33, %v925_v34  ;;  %v937_v41 = vld [vmem:[%s5037_s7 + $0x200] sm:$0xff]  ;;  %v349_v51 = vlaneseq }
  0x2c   :  { %793 = vmatprep.subr.bf16.mxu1 %v3688_v53  ;;  %v945_v45 = vld [vmem:[%s5037_s7 + $0x240] sm:$0xff] }
  0x2d   :  { %323 = vmatpush1.bf16.msra.mxu0 %v3637_v35  ;;  %v3351_v35 = vcombine.high %v921_v33, %v925_v34  ;;  %v953_v49 = vld [vmem:[%s5037_s7 + $0x280] sm:$0xff]  ;;  %v3729_v33 = vld [vmem:[%s5036_s5 + $0xcc] ss:$16 sps:$4 sm:$0xff]   ;;  %v3727_v34 = vld [vmem:[%s5036_s5 + $0xc8] ss:$16 sps:$4 sm:$0xff]  }
  0x2e   :  { %324 = vmatprep.subr.bf16.mxu0 %v3642_v38  ;;  %v933_v38 = vld [vmem:[%s5037_s7 + $0x1e0] sm:$0xff] }
  0x2f   :  { %794 = vmatpush1.bf16.msra.mxu1 %v3690_v55  ;;  %v3358_v40 = vcombine.low %v929_v37, %v933_v38  ;;  %v965_v55 = vld [vmem:[%s5037_s7 + $0x2e0] sm:$0xff] }
  0x30   :  { %795 = vmatprep.subr.bf16.mxu1 %v3691_v57 }
  0x31   :  { %325 = vmatpush1.bf16.msra.mxu0 %v3640_v39  ;;  %v3359_v39 = vcombine.high %v929_v37, %v933_v38  ;;  %v3735_v37 = vld [vmem:[%s5036_s5 + $0x10c] ss:$16 sps:$4 sm:$0xff]   ;;  %v3733_v38 = vld [vmem:[%s5036_s5 + $0x108] ss:$16 sps:$4 sm:$0xff]  }
  0x32   :  { %326 = vmatprep.subr.bf16.mxu0 %v3645_v42  ;;  %v941_v42 = vld [vmem:[%s5037_s7 + $0x220] sm:$0xff] }
  0x33   :  { %796 = vmatpush1.bf16.msra.mxu1 %v3693_v59  ;;  %v3367_v43 = vcombine.high %v937_v41, %v941_v42  ;;  %v969_v59 = vld [vmem:[%s5037_s7 + $0x300] sm:$0xff] }
  0x34   :  { %797 = vmatprep.subr.bf16.mxu1 %v3694_v61 }
  0x35   :  { %327 = vmatpush1.bf16.msra.mxu0 %v3643_v44  ;;  %v3366_v44 = vcombine.low %v937_v41, %v941_v42  ;;  %v3741_v41 = vld [vmem:[%s5036_s5 + $0x14c] ss:$16 sps:$4 sm:$0xff]   ;;  %v3739_v42 = vld [vmem:[%s5036_s5 + $0x148] ss:$16 sps:$4 sm:$0xff]  }
  0x36   :  { %328 = vmatprep.subr.bf16.mxu0 %v3648_v46  ;;  %v949_v46 = vld [vmem:[%s5037_s7 + $0x260] sm:$0xff] }
  0x37   :  { %798 = vmatpush1.bf16.msra.mxu1 %v3696_v63  ;;  %v3375_v47 = vcombine.high %v945_v45, %v949_v46  ;;  %v347_v63 = vld [vmem:[%s5038_s4] sm:$0x3] }
  0x38   :  { %799 = vmatprep.subr.bf16.mxu1 %v3697_v0 }
  0x39   :  { %329 = vmatpush1.bf16.msra.mxu0 %v3646_v48  ;;  %v3374_v48 = vcombine.low %v945_v45, %v949_v46  ;;  %v3747_v45 = vld [vmem:[%s5036_s5 + $0x18c] ss:$16 sps:$4 sm:$0xff]   ;;  %v3745_v46 = vld [vmem:[%s5036_s5 + $0x188] ss:$16 sps:$4 sm:$0xff]  }
  0x3a   :  { %330 = vmatprep.subr.bf16.mxu0 %v3651_v50  ;;  %v957_v50 = vld [vmem:[%s5037_s7 + $0x2a0] sm:$0xff] }
  0x3b   :  { %800 = vmatpush1.bf16.msra.mxu1 %v3699_v1  ;;  %v3382_v53 = vcombine.low %v953_v49, %v957_v50 }
  0x3c   :  { %801 = vmatprep.subr.bf16.mxu1 %v3700_v2  ;;  %v977_v2 = vld [vmem:[%s5037_s7 + $0x340] sm:$0xff] }
  0x3d   :  { %331 = vmatpush1.bf16.msra.mxu0 %v3649_v52  ;;  %v3383_v52 = vcombine.high %v953_v49, %v957_v50  ;;  %v3753_v49 = vld [vmem:[%s5036_s5 + $0x1cc] ss:$16 sps:$4 sm:$0xff]   ;;  %v3751_v50 = vld [vmem:[%s5036_s5 + $0x1c8] ss:$16 sps:$4 sm:$0xff]  }
  0x3e   :  { %332 = vmatprep.subr.bf16.mxu0 %v3654_v54  ;;  %v961_v54 = vld [vmem:[%s5037_s7 + $0x2c0] sm:$0xff] }
  0x3f   :  { %802 = vmatpush1.bf16.msra.mxu1 %v3702_v3  ;;  %v3391_v57 = vcombine.high %v961_v54, %v965_v55  ;;  %v981_v3 = vld [vmem:[%s5037_s7 + $0x360] sm:$0xff] }
  0x40   :  { %803 = vmatprep.subr.bf16.mxu1 %v3703_v4 }
  0x41   :  { %333 = vmatpush1.bf16.msra.mxu0 %v3652_v56  ;;  %v4089_v56 = vshrl.u32 %v349_v51, 7  ;;  %v3756_v51 = vld [vmem:[%s5036_s5 + $0x1ec] ss:$16 sps:$4 sm:$0xff]  }
  0x42   :  { %334 = vmatprep.subr.bf16.mxu0 %v3657_v58  ;;  %v3390_v58 = vcombine.low %v961_v54, %v965_v55  ;;  %v3754_v54 = vld [vmem:[%s5036_s5 + $0x1e8] ss:$16 sps:$4 sm:$0xff]  }
  0x43   :  { %804 = vmatpush1.bf16.msra.mxu1 %v3705_v5  ;;  %v4098_v61 = vsub.s32 0, %v4089_v56  ;;  %v4104_v0 = vsub.s32 1, %v4089_v56  ;;  %v3407_v5 = vcombine.high %v977_v2, %v981_v3 }
  0x44   :  { %805 = vmatprep.subr.bf16.mxu1 %v3706_v6 }
  0x45   :  { %335 = vmatpush1.bf16.msra.mxu0 %v3655_v60  ;;  %v973_v60 = vld [vmem:[%s5037_s7 + $0x320] sm:$0xff]  ;;  %v352_v4 = vrot.slane %v347_v63, %v4098_v61  ;;  %v356_v6 = vrot.slane %v347_v63, %v4104_v0  ;;  %v894_v63 = vld [vmem:[%s5037_s7 + $0xa8] sm:$0xff] }
  0x46   :  { %2451 = vmatprep.subr.bf16.mxu0 %v3303_v12  ;;  %v3398_v1 = vcombine.low %v969_v59, %v973_v60 }
  0x47   :  { %806 = vmatpush1.bf16.msra.mxu1 %v3708_v7 }
  0x48   :  { %337 = vmatmul.mubr.bf16.vlgmr.msra.gmra.mrb[0].mxu0 %v3658_v62  ;;  %818 = vmatprep.subr.bf16.mxu1 %v3711_v8  ;;  %v3399_v62 = vcombine.high %v969_v59, %v973_v60  ;;  %v3406_v8 = vcombine.low %v977_v2, %v981_v3  ;;  %v898_v3 = vld [vmem:[%s5037_s7 + $0xc8] sm:$0xff] }
  0x49   :  { %2452 = vmatpush1.bf16.msra.mxu0 %v3302_v11 }
  0x4a   :  { %2453 = vmatprep.subr.bf16.mxu0 %v3311_v15 }
  0x4d   :  { %2454 = vmatpush1.bf16.msra.mxu0 %v3310_v16 }
  0x4e   :  { %2455 = vmatprep.subr.bf16.mxu0 %v3319_v19 }
  0x51   :  { %2456 = vmatpush1.bf16.msra.mxu0 %v3318_v20 }
  0x52   :  { %2457 = vmatprep.subr.bf16.mxu0 %v3327_v23  ;;  %v3714_v23 = vld [vmem:[%s5036_s5 + $0x2c] ss:$16 sps:$4 sm:$0xff]  }
  0x55   :  { %2458 = vmatpush1.bf16.msra.mxu0 %v3326_v24  ;;  %v3712_v24 = vld [vmem:[%s5036_s5 + $0x28] ss:$16 sps:$4 sm:$0xff]  }
  0x56   :  { %2459 = vmatprep.subr.bf16.mxu0 %v3335_v27  ;;  %v3720_v27 = vld [vmem:[%s5036_s5 + $0x6c] ss:$16 sps:$4 sm:$0xff]  }
  0x59   :  { %2460 = vmatpush1.bf16.msra.mxu0 %v3334_v28  ;;  %v3718_v28 = vld [vmem:[%s5036_s5 + $0x68] ss:$16 sps:$4 sm:$0xff]  }
  0x5a   :  { %2461 = vmatprep.subr.bf16.mxu0 %v3343_v31  ;;  %v3726_v31 = vld [vmem:[%s5036_s5 + $0xac] ss:$16 sps:$4 sm:$0xff]  }
  0x5d   :  { %2462 = vmatpush1.bf16.msra.mxu0 %v3342_v32  ;;  %v3724_v32 = vld [vmem:[%s5036_s5 + $0xa8] ss:$16 sps:$4 sm:$0xff]  }
  0x5e   :  { %2463 = vmatprep.subr.bf16.mxu0 %v3351_v35  ;;  %v3732_v35 = vld [vmem:[%s5036_s5 + $0xec] ss:$16 sps:$4 sm:$0xff]  }
  0x61   :  { %2464 = vmatpush1.bf16.msra.mxu0 %v3350_v36  ;;  %v3730_v36 = vld [vmem:[%s5036_s5 + $0xe8] ss:$16 sps:$4 sm:$0xff]  }
  0x62   :  { %2465 = vmatprep.subr.bf16.mxu0 %v3359_v39  ;;  %v3738_v39 = vld [vmem:[%s5036_s5 + $0x12c] ss:$16 sps:$4 sm:$0xff]  }
  0x65   :  { %2466 = vmatpush1.bf16.msra.mxu0 %v3358_v40  ;;  %v3736_v40 = vld [vmem:[%s5036_s5 + $0x128] ss:$16 sps:$4 sm:$0xff]  }
  0x66   :  { %2467 = vmatprep.subr.bf16.mxu0 %v3367_v43  ;;  %v3744_v43 = vld [vmem:[%s5036_s5 + $0x16c] ss:$16 sps:$4 sm:$0xff]  }
  0x69   :  { %2468 = vmatpush1.bf16.msra.mxu0 %v3366_v44  ;;  %v3742_v44 = vld [vmem:[%s5036_s5 + $0x168] ss:$16 sps:$4 sm:$0xff]  }
  0x6a   :  { %2469 = vmatprep.subr.bf16.mxu0 %v3375_v47  ;;  %v3750_v47 = vld [vmem:[%s5036_s5 + $0x1ac] ss:$16 sps:$4 sm:$0xff]  }
  0x6d   :  { %2470 = vmatpush1.bf16.msra.mxu0 %v3374_v48  ;;  %v3748_v48 = vld [vmem:[%s5036_s5 + $0x1a8] ss:$16 sps:$4 sm:$0xff]  }
  0x6e   :  { %2471 = vmatprep.subr.bf16.mxu0 %v3383_v52  ;;  %v874_v52 = vld [vmem:[%s5037_s7 + $0x8] sm:$0xff] }
  0x71   :  { %2472 = vmatpush1.bf16.msra.mxu0 %v3382_v53  ;;  %v878_v53 = vld [vmem:[%s5037_s7 + $0x28] sm:$0xff] }
  0x72   :  { %2473 = vmatprep.subr.bf16.mxu0 %v3391_v57  ;;  %v3305_v55 = vcombine.high %v874_v52, %v878_v53  ;;  %v882_v57 = vld [vmem:[%s5037_s7 + $0x48] sm:$0xff]  ;;  %v3304_v59 = vcombine.low %v874_v52, %v878_v53 }
  0x75   :  { %2474 = vmatpush1.bf16.msra.mxu0 %v3390_v58  ;;  %v886_v58 = vld [vmem:[%s5037_s7 + $0x68] sm:$0xff] }
  0x76   :  { %2475 = vmatprep.subr.bf16.mxu0 %v3399_v62  ;;  %v3313_v60 = vcombine.high %v882_v57, %v886_v58  ;;  %v890_v62 = vld [vmem:[%s5037_s7 + $0x88] sm:$0xff] }
  0x77   :  { %v3321_v2 = vcombine.high %v890_v62, %v894_v63 }
  0x79   :  { %2476 = vmatpush1.bf16.msra.mxu0 %v3398_v1  ;;  %v3312_v1 = vcombine.low %v882_v57, %v886_v58 }
  0x7a   :  { %2477 = vmatprep.subr.bf16.mxu0 %v3407_v5  ;;  %v3320_v5 = vcombine.low %v890_v62, %v894_v63 }
  0x7d   :  { %2478 = vmatpush1.bf16.msra.mxu0 %v3406_v8  ;;  %v910_v8 = vld [vmem:[%s5037_s7 + $0x128] sm:$0xff] }
 0x11b   :  { %v338_v7 = vpop.f32.mrb[0].mxu0 }
 0x11c   :  { %v359_v9 = vadd.f32 %v352_v4, %v338_v7  ;;  %v340_v10 = vpop.f32.mrb[1].mxu0  ;;  %v906_v7 = vld [vmem:[%s5037_s7 + $0x108] sm:$0xff] }
 0x11d   :  { %v360_v11 = vadd.f32 %v356_v6, %v340_v10  ;;  %v342_v12 = vpop.f32.mrb[2].mxu0  ;;  %v3337_v10 = vcombine.high %v906_v7, %v910_v8 }
 0x11e   :  { %v361_v13 = vadd.f32 %v352_v4, %v342_v12  ;;  %v344_v14 = vpop.f32.mrb[3].mxu0  ;;  %v363_v16 = vmax.f32 %v359_v9, 0.0  ;;  %v902_v4 = vld [vmem:[%s5037_s7 + $0xe8] sm:$0xff] }
 0x11f   :  { %v362_v15 = vadd.f32 %v356_v6, %v344_v14  ;;  %v364_v18 = vmax.f32 %v360_v11, 0.0  ;;  %v3329_v6 = vcombine.high %v898_v3, %v902_v4  ;;  %v3328_v9 = vcombine.low %v898_v3, %v902_v4  ;;  %v914_v11 = vld [vmem:[%s5037_s7 + $0x148] sm:$0xff] }
 0x120   :  { %v365_v17 = vmax.f32 %v361_v13, 0.0  ;;  %v918_v12 = vld [vmem:[%s5037_s7 + $0x168] sm:$0xff]  ;;  %v3336_v13 = vcombine.low %v906_v7, %v910_v8 }
 0x121   :  { %v366_v19 = vmax.f32 %v362_v15, 0.0  ;;  %v3345_v14 = vcombine.high %v914_v11, %v918_v12  ;;  %v922_v15 = vld [vmem:[%s5037_s7 + $0x188] sm:$0xff] }
 0x122   :  { %v4114_v20 = vpack.c.bf16 %v365_v17, %v363_v16  ;;  %v926_v16 = vld [vmem:[%s5037_s7 + $0x1a8] sm:$0xff]  ;;  %v3344_v17 = vcombine.low %v914_v11, %v918_v12  ;;  %v4350_v11 = vld [vmem:[%s5039_s6] sm:$0xf] }
 0x123   :  { %v368_v21 = vpack.c.bf16 %v366_v19, %v364_v18  ;;  %v3353_v18 = vcombine.high %v922_v15, %v926_v16  ;;  %v930_v19 = vld [vmem:[%s5037_s7 + $0x1c8] sm:$0xff]  ;;  %v438_v12 = vrot.slane %v4350_v11, %v4098_v61 }
 0x125   :  { %807 = vmatprep.mubr.bf16.mxu1 %v368_v21 }
 0x126   :  { %808 = vmatmul.mubr.bf16.vlgmr.msra.gmra.mrb[0].mxu1 %v4114_v20 }
 0x127   :  { %819 = vmatpush1.bf16.msra.mxu1 %v3709_v22  ;;  %850 = vmatprep.mubr.bf16.mxu1 %v368_v21  ;;  %v985_v21 = vld [vmem:[%s5037_s7 + $0x380] sm:$0xff] }
 0x128   :  { %820 = vmatprep.subr.bf16.mxu1 %v3714_v23  ;;  %v989_v22 = vld [vmem:[%s5037_s7 + $0x3a0] sm:$0xff] }
 0x129   :  { %v3415_v23 = vcombine.high %v985_v21, %v989_v22 }
 0x12b   :  { %821 = vmatpush1.bf16.msra.mxu1 %v3712_v24  ;;  %v3352_v24 = vcombine.low %v922_v15, %v926_v16  ;;  %2479 = vmatprep.subr.bf16.mxu0 %v3415_v23 }
 0x12c   :  { %822 = vmatprep.subr.bf16.mxu1 %v3717_v25  ;;  %v3414_v25 = vcombine.low %v985_v21, %v989_v22 }
 0x12e   :  { %2480 = vmatpush1.bf16.msra.mxu0 %v3414_v25 }
 0x12f   :  { %823 = vmatpush1.bf16.msra.mxu1 %v3715_v26 }
 0x130   :  { %824 = vmatprep.subr.bf16.mxu1 %v3720_v27  ;;  %v938_v27 = vld [vmem:[%s5037_s7 + $0x208] sm:$0xff] }
 0x133   :  { %825 = vmatpush1.bf16.msra.mxu1 %v3718_v28  ;;  %v942_v28 = vld [vmem:[%s5037_s7 + $0x228] sm:$0xff] }
 0x134   :  { %826 = vmatprep.subr.bf16.mxu1 %v3723_v29  ;;  %v993_v29 = vld [vmem:[%s5037_s7 + $0x3c0] sm:$0xff] }
 0x137   :  { %827 = vmatpush1.bf16.msra.mxu1 %v3721_v30  ;;  %v997_v30 = vld [vmem:[%s5037_s7 + $0x3e0] sm:$0xff] }
 0x138   :  { %828 = vmatprep.subr.bf16.mxu1 %v3726_v31  ;;  %v3423_v31 = vcombine.high %v993_v29, %v997_v30 }
 0x13a   :  { %2481 = vmatprep.subr.bf16.mxu0 %v3423_v31 }
 0x13b   :  { %829 = vmatpush1.bf16.msra.mxu1 %v3724_v32 }
 0x13c   :  { %830 = vmatprep.subr.bf16.mxu1 %v3729_v33  ;;  %v3422_v33 = vcombine.low %v993_v29, %v997_v30  ;;  %v1014_v29 = vld [vmem:[%s5037_s7 + $0x468] sm:$0xff] }
 0x13e   :  { %2482 = vmatpush1.bf16.msra.mxu0 %v3422_v33 }
 0x13f   :  { %831 = vmatpush1.bf16.msra.mxu1 %v3727_v34  ;;  %v3369_v34 = vcombine.high %v938_v27, %v942_v28 }
 0x140   :  { %832 = vmatprep.subr.bf16.mxu1 %v3732_v35  ;;  %v946_v35 = vld [vmem:[%s5037_s7 + $0x248] sm:$0xff] }
 0x143   :  { %833 = vmatpush1.bf16.msra.mxu1 %v3730_v36  ;;  %v950_v36 = vld [vmem:[%s5037_s7 + $0x268] sm:$0xff] }
 0x144   :  { %834 = vmatprep.subr.bf16.mxu1 %v3735_v37  ;;  %v4286_v37 = vld [vmem:[%s5037_s7 + $0x400] sm:$0xff] }
 0x147   :  { %835 = vmatpush1.bf16.msra.mxu1 %v3733_v38  ;;  %v4291_v38 = vld [vmem:[%s5037_s7 + $0x420] sm:$0xff] }
 0x148   :  { %836 = vmatprep.subr.bf16.mxu1 %v3738_v39  ;;  %v4296_v39 = vld [vmem:[%s5037_s7 + $0x408] sm:$0xff] }
 0x14b   :  { %837 = vmatpush1.bf16.msra.mxu1 %v3736_v40  ;;  %v3431_v40 = vcombine.high %v4286_v37, %v4291_v38 }
 0x14c   :  { %838 = vmatprep.subr.bf16.mxu1 %v3741_v41  ;;  %v4303_v41 = vld [vmem:[%s5037_s7 + $0x428] sm:$0xff] }
 0x14d   :  { %2494 = vmatprep.subr.bf16.mxu0 %v3431_v40  ;;  %v1022_v40 = vld [vmem:[%s5037_s7 + $0x4a8] sm:$0xff] }
 0x14f   :  { %839 = vmatpush1.bf16.msra.mxu1 %v3739_v42  ;;  %v3368_v42 = vcombine.low %v938_v27, %v942_v28  ;;  %v1013_v27 = vld [vmem:[%s5037_s7 + $0x460] sm:$0xff]  ;;  %v1010_v28 = vld [vmem:[%s5037_s7 + $0x448] sm:$0xff] }
 0x150   :  { %840 = vmatprep.subr.bf16.mxu1 %v3744_v43  ;;  %v3430_v43 = vcombine.low %v4286_v37, %v4291_v38  ;;  %v3441_v33 = vcombine.high %v1010_v28, %v1014_v29  ;;  %v1026_v37 = vld [vmem:[%s5037_s7 + $0x4c8] sm:$0xff] }
 0x151   :  { %v1030_v38 = vld [vmem:[%s5037_s7 + $0x4e8] sm:$0xff] }
 0x153   :  { %841 = vmatpush1.bf16.msra.mxu1 %v3742_v44  ;;  %v3432_v44 = vcombine.low %v4296_v39, %v4303_v41 }
 0x154   :  { %842 = vmatprep.subr.bf16.mxu1 %v3747_v45  ;;  %v3377_v45 = vcombine.high %v946_v35, %v950_v36 }
 0x157   :  { %843 = vmatpush1.bf16.msra.mxu1 %v3745_v46  ;;  %v954_v46 = vld [vmem:[%s5037_s7 + $0x288] sm:$0xff] }
 0x158   :  { %844 = vmatprep.subr.bf16.mxu1 %v3750_v47  ;;  %v958_v47 = vld [vmem:[%s5037_s7 + $0x2a8] sm:$0xff] }
 0x159   :  { %v3384_v52 = vcombine.low %v954_v46, %v958_v47 }
 0x15b   :  { %845 = vmatpush1.bf16.msra.mxu1 %v3748_v48  ;;  %v3376_v48 = vcombine.low %v946_v35, %v950_v36  ;;  %v1021_v35 = vld [vmem:[%s5037_s7 + $0x4a0] sm:$0xff]  ;;  %v1018_v36 = vld [vmem:[%s5037_s7 + $0x488] sm:$0xff] }
 0x15c   :  { %846 = vmatprep.subr.bf16.mxu1 %v3753_v49  ;;  %v3385_v49 = vcombine.high %v954_v46, %v958_v47  ;;  %v3449_v47 = vcombine.high %v1018_v36, %v1022_v40 }
 0x15f   :  { %847 = vmatpush1.bf16.msra.mxu1 %v3751_v50  ;;  %v962_v50 = vld [vmem:[%s5037_s7 + $0x2c8] sm:$0xff] }
 0x160   :  { %848 = vmatprep.subr.bf16.mxu1 %v3756_v51  ;;  %v966_v51 = vld [vmem:[%s5037_s7 + $0x2e8] sm:$0xff] }
 0x161   :  { %v3393_v53 = vcombine.high %v962_v50, %v966_v51  ;;  %v3392_v57 = vcombine.low %v962_v50, %v966_v51  ;;  %v1033_v50 = vld [vmem:[%s5037_s7 + $0x500] sm:$0xff] }
 0x162   :  { %v1037_v51 = vld [vmem:[%s5037_s7 + $0x520] sm:$0xff] }
 0x163   :  { %849 = vmatpush1.bf16.msra.mxu1 %v3754_v54  ;;  %v970_v54 = vld [vmem:[%s5037_s7 + $0x308] sm:$0xff] }
 0x164   :  { %2537 = vmatprep.subr.bf16.mxu1 %v3305_v55  ;;  %v974_v55 = vld [vmem:[%s5037_s7 + $0x328] sm:$0xff] }
 0x165   :  { %v3401_v58 = vcombine.high %v970_v54, %v974_v55  ;;  %v3400_v62 = vcombine.low %v970_v54, %v974_v55  ;;  %v3456_v55 = vcombine.low %v1026_v37, %v1030_v38 }
 0x166   :  { %851 = vmatmul.mubr.bf16.vlgmr.msra.gmra.mrb[4].mxu1 %v4114_v20  ;;  %v934_v20 = vld [vmem:[%s5037_s7 + $0x1e8] sm:$0xff] }
 0x167   :  { %2538 = vmatpush1.bf16.msra.mxu1 %v3304_v59  ;;  %v3361_v26 = vcombine.high %v930_v19, %v934_v20  ;;  %v3360_v32 = vcombine.low %v930_v19, %v934_v20  ;;  %v978_v59 = vld [vmem:[%s5037_s7 + $0x348] sm:$0xff] }
 0x168   :  { %2539 = vmatprep.subr.bf16.mxu1 %v3313_v60  ;;  %v982_v60 = vld [vmem:[%s5037_s7 + $0x368] sm:$0xff] }
 0x169   :  { %v3409_v63 = vcombine.high %v978_v59, %v982_v60  ;;  %v3408_v3 = vcombine.low %v978_v59, %v982_v60  ;;  %v1041_v59 = vld [vmem:[%s5037_s7 + $0x540] sm:$0xff] }
 0x16a   :  { %v1045_v60 = vld [vmem:[%s5037_s7 + $0x560] sm:$0xff] }
 0x16b   :  { %2540 = vmatpush1.bf16.msra.mxu1 %v3312_v1  ;;  %v986_v1 = vld [vmem:[%s5037_s7 + $0x388] sm:$0xff] }
 0x16c   :  { %2541 = vmatprep.subr.bf16.mxu1 %v3321_v2  ;;  %v990_v2 = vld [vmem:[%s5037_s7 + $0x3a8] sm:$0xff] }
 0x16d   :  { %v3417_v4 = vcombine.high %v986_v1, %v990_v2  ;;  %v3416_v7 = vcombine.low %v986_v1, %v990_v2  ;;  %v3462_v1 = vcombine.low %v1033_v50, %v1037_v51 }
 0x16f   :  { %2542 = vmatpush1.bf16.msra.mxu1 %v3320_v5  ;;  %v994_v5 = vld [vmem:[%s5037_s7 + $0x3c8] sm:$0xff] }
 0x170   :  { %2543 = vmatprep.subr.bf16.mxu1 %v3329_v6  ;;  %v998_v6 = vld [vmem:[%s5037_s7 + $0x3e8] sm:$0xff] }
 0x171   :  { %v3425_v8 = vcombine.high %v994_v5, %v998_v6 }
 0x173   :  { %2544 = vmatpush1.bf16.msra.mxu1 %v3328_v9  ;;  %v3424_v9 = vcombine.low %v994_v5, %v998_v6  ;;  %v1049_v5 = vld [vmem:[%s5037_s7 + $0x580] sm:$0xff] }
 0x174   :  { %2545 = vmatprep.subr.bf16.mxu1 %v3337_v10  ;;  %v3433_v10 = vcombine.high %v4296_v39, %v4303_v41  ;;  %v3448_v41 = vcombine.low %v1018_v36, %v1022_v40  ;;  %v1053_v6 = vld [vmem:[%s5037_s7 + $0x5a0] sm:$0xff] }
 0x177   :  { %2546 = vmatpush1.bf16.msra.mxu1 %v3336_v13  ;;  %v442_v13 = vrot.slane %v4350_v11, %v4104_v0 }
 0x178   :  { %2547 = vmatprep.subr.bf16.mxu1 %v3345_v14 }
 0x17b   :  { %2548 = vmatpush1.bf16.msra.mxu1 %v3344_v17 }
 0x17c   :  { %2549 = vmatprep.subr.bf16.mxu1 %v3353_v18 }
 0x17f   :  { %2550 = vmatpush1.bf16.msra.mxu1 %v3352_v24  ;;  %v1009_v24 = vld [vmem:[%s5037_s7 + $0x440] sm:$0xff] }
 0x180   :  { %2551 = vmatprep.subr.bf16.mxu1 %v3361_v26 }
 0x183   :  { %2552 = vmatpush1.bf16.msra.mxu1 %v3360_v32  ;;  %v3439_v32 = vcombine.high %v1009_v24, %v1013_v27 }
 0x184   :  { %2553 = vmatprep.subr.bf16.mxu1 %v3369_v34  ;;  %v1017_v34 = vld [vmem:[%s5037_s7 + $0x480] sm:$0xff] }
 0x185   :  { %v3447_v46 = vcombine.high %v1017_v34, %v1021_v35  ;;  %v3446_v39 = vcombine.low %v1017_v34, %v1021_v35  ;;  %v1074_v34 = vld [vmem:[%s5037_s7 + $0x648] sm:$0xff] }
 0x186   :  { %v1078_v35 = vld [vmem:[%s5037_s7 + $0x668] sm:$0xff] }
 0x187   :  { %2554 = vmatpush1.bf16.msra.mxu1 %v3368_v42  ;;  %v3438_v42 = vcombine.low %v1009_v24, %v1013_v27  ;;  %v1066_v24 = vld [vmem:[%s5037_s7 + $0x608] sm:$0xff] }
 0x188   :  { %2555 = vmatprep.subr.bf16.mxu1 %v3377_v45  ;;  %v3440_v45 = vcombine.low %v1010_v28, %v1014_v29 }
 0x18b   :  { %2556 = vmatpush1.bf16.msra.mxu1 %v3376_v48  ;;  %v1025_v48 = vld [vmem:[%s5037_s7 + $0x4c0] sm:$0xff] }
 0x18c   :  { %2557 = vmatprep.subr.bf16.mxu1 %v3385_v49  ;;  %v1029_v49 = vld [vmem:[%s5037_s7 + $0x4e0] sm:$0xff] }
 0x18d   :  { %v3454_v54 = vcombine.low %v1025_v48, %v1029_v49 }
 0x18f   :  { %2558 = vmatpush1.bf16.msra.mxu1 %v3384_v52  ;;  %v1034_v52 = vld [vmem:[%s5037_s7 + $0x508] sm:$0xff] }
 0x190   :  { %2559 = vmatprep.subr.bf16.mxu1 %v3393_v53  ;;  %v1038_v53 = vld [vmem:[%s5037_s7 + $0x528] sm:$0xff] }
 0x191   :  { %v3464_v2 = vcombine.low %v1034_v52, %v1038_v53 }
 0x193   :  { %2560 = vmatpush1.bf16.msra.mxu1 %v3392_v57  ;;  %v3463_v57 = vcombine.high %v1033_v50, %v1037_v51  ;;  %v1090_v50 = vld [vmem:[%s5037_s7 + $0x6c8] sm:$0xff] }
 0x194   :  { %2561 = vmatprep.subr.bf16.mxu1 %v3401_v58  ;;  %v3465_v58 = vcombine.high %v1034_v52, %v1038_v53  ;;  %v1094_v51 = vld [vmem:[%s5037_s7 + $0x6e8] sm:$0xff] }
 0x197   :  { %2562 = vmatpush1.bf16.msra.mxu1 %v3400_v62  ;;  %v1042_v62 = vld [vmem:[%s5037_s7 + $0x548] sm:$0xff] }
 0x198   :  { %2563 = vmatprep.subr.bf16.mxu1 %v3409_v63  ;;  %v1046_v63 = vld [vmem:[%s5037_s7 + $0x568] sm:$0xff] }
 0x19b   :  { %2564 = vmatpush1.bf16.msra.mxu1 %v3408_v3  ;;  %v3471_v3 = vcombine.high %v1041_v59, %v1045_v60 }
 0x19c   :  { %2565 = vmatprep.subr.bf16.mxu1 %v3417_v4  ;;  %v3473_v4 = vcombine.high %v1042_v62, %v1046_v63 }
 0x19f   :  { %2566 = vmatpush1.bf16.msra.mxu1 %v3416_v7  ;;  %v1050_v7 = vld [vmem:[%s5037_s7 + $0x588] sm:$0xff] }
 0x1a0   :  { %2567 = vmatprep.subr.bf16.mxu1 %v3425_v8  ;;  %v1054_v8 = vld [vmem:[%s5037_s7 + $0x5a8] sm:$0xff] }
 0x1a3   :  { %2568 = vmatpush1.bf16.msra.mxu1 %v3424_v9  ;;  %v3470_v9 = vcombine.low %v1041_v59, %v1045_v60  ;;  %v1098_v59 = vld [vmem:[%s5037_s7 + $0x708] sm:$0xff] }
 0x1a4   :  { %2580 = vmatprep.subr.bf16.mxu1 %v3433_v10  ;;  %v3472_v10 = vcombine.low %v1042_v62, %v1046_v63  ;;  %v1102_v60 = vld [vmem:[%s5037_s7 + $0x728] sm:$0xff]  ;;  %v3520_v63 = vcombine.low %v1090_v50, %v1094_v51 }
 0x1f9   :  { %v809_v14 = vpop.f32.mrb[0].mxu1 }
 0x1fa   :  { %v810_v15 = vadd.f32 %v809_v14, %v438_v12  ;;  %v811_v16 = vpop.f32.mrb[1].mxu1  ;;  %v1057_v14 = vld [vmem:[%s5037_s7 + $0x5c0] sm:$0xff] }
 0x1fb   :  { %v812_v17 = vadd.f32 %v811_v16, %v442_v13  ;;  %v813_v18 = vpop.f32.mrb[2].mxu1  ;;  %v1058_v16 = vld [vmem:[%s5037_s7 + $0x5c8] sm:$0xff] }
 0x1fc   :  { %v814_v19 = vadd.f32 %v813_v18, %v438_v12  ;;  %v815_v20 = vpop.f32.mrb[3].mxu1  ;;  %v861_v22 = vmax.f32 %v810_v15, 0.0  ;;  %v3479_v12 = vcombine.high %v1049_v5, %v1053_v6  ;;  %v1061_v15 = vld [vmem:[%s5037_s7 + $0x5e0] sm:$0xff]  ;;  %v3478_v18 = vcombine.low %v1049_v5, %v1053_v6  ;;  %v1106_v5 = vld [vmem:[%s5037_s7 + $0x748] sm:$0xff] }
 0x1fd   :  { %v816_v21 = vadd.f32 %v815_v20, %v442_v13  ;;  %v862_v25 = vmax.f32 %v812_v17, 0.0  ;;  %v3481_v13 = vcombine.high %v1050_v7, %v1054_v8  ;;  %v1062_v17 = vld [vmem:[%s5037_s7 + $0x5e8] sm:$0xff]  ;;  %v3487_v20 = vcombine.high %v1057_v14, %v1061_v15 }
 0x1fe   :  { %v865_v23 = vmax.f32 %v814_v19, 0.0  ;;  %v3480_v19 = vcombine.low %v1050_v7, %v1054_v8  ;;  %v3488_v27 = vcombine.low %v1058_v16, %v1062_v17  ;;  %v1110_v6 = vld [vmem:[%s5037_s7 + $0x768] sm:$0xff]  ;;  %v3528_v8 = vcombine.low %v1098_v59, %v1102_v60 }
 0x1ff   :  { %v866_v26 = vmax.f32 %v816_v21, 0.0  ;;  %v3489_v21 = vcombine.high %v1058_v16, %v1062_v17  ;;  %v1114_v16 = vld [vmem:[%s5037_s7 + $0x788] sm:$0xff] }
 0x200   :  { %v4368_v30 = vpack.c.bf16 %v865_v23, %v861_v22  ;;  %v1065_v22 = vld [vmem:[%s5037_s7 + $0x600] sm:$0xff]  ;;  %v1118_v17 = vld [vmem:[%s5037_s7 + $0x7a8] sm:$0xff] }
 0x201   :  { %v4370_v31 = vpack.c.bf16 %v866_v26, %v862_v25  ;;  %v1069_v23 = vld [vmem:[%s5037_s7 + $0x620] sm:$0xff]  ;;  %v1070_v25 = vld [vmem:[%s5037_s7 + $0x628] sm:$0xff]  ;;  %v3486_v26 = vcombine.low %v1057_v14, %v1061_v15  ;;  %v449_v14 = vsub.s32 3, %v4089_v56 }
 0x202   :  { %v3495_v28 = vcombine.high %v1065_v22, %v1069_v23  ;;  %v3497_v29 = vcombine.high %v1066_v24, %v1070_v25  ;;  %v3494_v36 = vcombine.low %v1065_v22, %v1069_v23  ;;  %v3496_v40 = vcombine.low %v1066_v24, %v1070_v25  ;;  %v1117_v15 = vld [vmem:[%s5037_s7 + $0x7a0] sm:$0xff] }
 0x203   :  { %2483 = vmatprep.mubr.bf16.mxu0 %v4370_v31  ;;  %2569 = vmatprep.mubr.bf16.mxu1 %v4370_v31  ;;  %v3545_v22 = vcombine.high %v1114_v16, %v1118_v17  ;;  %v1121_v23 = vld [vmem:[%s5037_s7 + $0x7c0] sm:$0xff]  ;;  %v450_v24 = vrot.slane %v4350_v11, %v449_v14 }
 0x204   :  { %2484 = vmatmul.mubr.bf16.vlgmr.msra.gmra.mrb[4].mxu0 %v4368_v30  ;;  %2570 = vmatmul.mubr.bf16.vlgmr.msra.gmra.mrb[8].mxu1 %v4368_v30  ;;  %v1125_v25 = vld [vmem:[%s5037_s7 + $0x7e0] sm:$0xff] }
 0x205   :  { %2495 = vmatpush1.bf16.msra.mxu0 %v3430_v43  ;;  %2581 = vmatpush1.bf16.msra.mxu1 %v3432_v44  ;;  %v3455_v43 = vcombine.high %v1025_v48, %v1029_v49  ;;  %v3457_v44 = vcombine.high %v1026_v37, %v1030_v38  ;;  %v1082_v48 = vld [vmem:[%s5037_s7 + $0x688] sm:$0xff]  ;;  %v3504_v38 = vcombine.low %v1074_v34, %v1078_v35 }
 0x206   :  { %2496 = vmatprep.subr.bf16.mxu0 %v3439_v32  ;;  %2582 = vmatprep.subr.bf16.mxu1 %v3441_v33  ;;  %v1073_v32 = vld [vmem:[%s5037_s7 + $0x640] sm:$0xff]  ;;  %v1086_v49 = vld [vmem:[%s5037_s7 + $0x6a8] sm:$0xff] }
 0x207   :  { %v1077_v33 = vld [vmem:[%s5037_s7 + $0x660] sm:$0xff]  ;;  %v3512_v53 = vcombine.low %v1082_v48, %v1086_v49 }
 0x208   :  { %v3502_v37 = vcombine.low %v1073_v32, %v1077_v33 }
 0x209   :  { %2497 = vmatpush1.bf16.msra.mxu0 %v3438_v42  ;;  %2583 = vmatpush1.bf16.msra.mxu1 %v3440_v45  ;;  %v3503_v42 = vcombine.high %v1073_v32, %v1077_v33  ;;  %v3505_v45 = vcombine.high %v1074_v34, %v1078_v35  ;;  %v3544_v32 = vcombine.low %v1114_v16, %v1118_v17 }
 0x20a   :  { %2498 = vmatprep.subr.bf16.mxu0 %v3447_v46  ;;  %2584 = vmatprep.subr.bf16.mxu1 %v3449_v47  ;;  %v1081_v46 = vld [vmem:[%s5037_s7 + $0x680] sm:$0xff] }
 0x20b   :  { %v1085_v47 = vld [vmem:[%s5037_s7 + $0x6a0] sm:$0xff] }
 0x20c   :  { %v3510_v52 = vcombine.low %v1081_v46, %v1085_v47 }
 0x20d   :  { %2499 = vmatpush1.bf16.msra.mxu0 %v3446_v39  ;;  %2585 = vmatpush1.bf16.msra.mxu1 %v3448_v41  ;;  %v3511_v39 = vcombine.high %v1081_v46, %v1085_v47  ;;  %v3513_v41 = vcombine.high %v1082_v48, %v1086_v49  ;;  %v876_v46 = vld [vmem:[%s5037_s7 + $0x18] sm:$0xff] }
 0x20e   :  { %2500 = vmatprep.subr.bf16.mxu0 %v3455_v43  ;;  %2586 = vmatprep.subr.bf16.mxu1 %v3457_v44  ;;  %v1089_v43 = vld [vmem:[%s5037_s7 + $0x6c0] sm:$0xff]  ;;  %v880_v47 = vld [vmem:[%s5037_s7 + $0x38] sm:$0xff] }
 0x20f   :  { %v1093_v44 = vld [vmem:[%s5037_s7 + $0x6e0] sm:$0xff] }
 0x210   :  { %v3518_v62 = vcombine.low %v1089_v43, %v1093_v44 }
 0x211   :  { %2501 = vmatpush1.bf16.msra.mxu0 %v3454_v54  ;;  %2587 = vmatpush1.bf16.msra.mxu1 %v3456_v55  ;;  %v3519_v54 = vcombine.high %v1089_v43, %v1093_v44  ;;  %v3521_v55 = vcombine.high %v1090_v50, %v1094_v51  ;;  %v3309_v50 = vcombine.high %v876_v46, %v880_v47 }
 0x212   :  { %2502 = vmatprep.subr.bf16.mxu0 %v3463_v57  ;;  %2588 = vmatprep.subr.bf16.mxu1 %v3465_v58  ;;  %v1097_v57 = vld [vmem:[%s5037_s7 + $0x700] sm:$0xff] }
 0x213   :  { %v1101_v58 = vld [vmem:[%s5037_s7 + $0x720] sm:$0xff] }
 0x214   :  { %v3526_v7 = vcombine.low %v1097_v57, %v1101_v58 }
 0x215   :  { %2503 = vmatpush1.bf16.msra.mxu0 %v3462_v1  ;;  %2589 = vmatpush1.bf16.msra.mxu1 %v3464_v2  ;;  %v3527_v1 = vcombine.high %v1097_v57, %v1101_v58  ;;  %v3529_v2 = vcombine.high %v1098_v59, %v1102_v60  ;;  %v884_v57 = vld [vmem:[%s5037_s7 + $0x58] sm:$0xff] }
 0x216   :  { %2504 = vmatprep.subr.bf16.mxu0 %v3471_v3  ;;  %2590 = vmatprep.subr.bf16.mxu1 %v3473_v4  ;;  %v1105_v3 = vld [vmem:[%s5037_s7 + $0x740] sm:$0xff]  ;;  %v888_v58 = vld [vmem:[%s5037_s7 + $0x78] sm:$0xff] }
 0x217   :  { %v1109_v4 = vld [vmem:[%s5037_s7 + $0x760] sm:$0xff] }
 0x219   :  { %2505 = vmatpush1.bf16.msra.mxu0 %v3470_v9  ;;  %2591 = vmatpush1.bf16.msra.mxu1 %v3472_v10  ;;  %v3535_v9 = vcombine.high %v1105_v3, %v1109_v4  ;;  %v3537_v10 = vcombine.high %v1106_v5, %v1110_v6 }
 0x21a   :  { %2506 = vmatprep.subr.bf16.mxu0 %v3479_v12  ;;  %2592 = vmatprep.subr.bf16.mxu1 %v3481_v13  ;;  %v445_v12 = vsub.s32 2, %v4089_v56  ;;  %v1113_v13 = vld [vmem:[%s5037_s7 + $0x780] sm:$0xff] }
 0x21d   :  { %2507 = vmatpush1.bf16.msra.mxu0 %v3478_v18  ;;  %2593 = vmatpush1.bf16.msra.mxu1 %v3480_v19  ;;  %v3534_v18 = vcombine.low %v1105_v3, %v1109_v4  ;;  %v3536_v19 = vcombine.low %v1106_v5, %v1110_v6  ;;  %v895_v3 = vld [vmem:[%s5037_s7 + $0xb0] sm:$0xff]  ;;  %v892_v4 = vld [vmem:[%s5037_s7 + $0x98] sm:$0xff] }
 0x21e   :  { %2508 = vmatprep.subr.bf16.mxu0 %v3487_v20  ;;  %2594 = vmatprep.subr.bf16.mxu1 %v3489_v21  ;;  %v446_v20 = vrot.slane %v4350_v11, %v445_v12  ;;  %v3543_v21 = vcombine.high %v1113_v13, %v1117_v15  ;;  %v3551_v11 = vcombine.high %v1121_v23, %v1125_v25  ;;  %v896_v5 = vld [vmem:[%s5037_s7 + $0xb8] sm:$0xff] }
 0x21f   :  { %v3324_v17 = vcombine.low %v892_v4, %v896_v5 }
 0x221   :  { %2509 = vmatpush1.bf16.msra.mxu0 %v3486_v26  ;;  %2595 = vmatpush1.bf16.msra.mxu1 %v3488_v27  ;;  %v1122_v26 = vld [vmem:[%s5037_s7 + $0x7c8] sm:$0xff] }
 0x222   :  { %2510 = vmatprep.subr.bf16.mxu0 %v3495_v28  ;;  %2596 = vmatprep.subr.bf16.mxu1 %v3497_v29  ;;  %v1126_v27 = vld [vmem:[%s5037_s7 + $0x7e8] sm:$0xff]  ;;  %v3542_v29 = vcombine.low %v1113_v13, %v1117_v15  ;;  %v903_v13 = vld [vmem:[%s5037_s7 + $0xf0] sm:$0xff]  ;;  %v900_v15 = vld [vmem:[%s5037_s7 + $0xd8] sm:$0xff] }
 0x223   :  { %v3553_v35 = vcombine.high %v1122_v26, %v1126_v27 }
 0x225   :  { %2511 = vmatpush1.bf16.msra.mxu0 %v3494_v36  ;;  %2597 = vmatpush1.bf16.msra.mxu1 %v3496_v40  ;;  %v875_v36 = vld [vmem:[%s5037_s7 + $0x10] sm:$0xff] }
 0x226   :  { %2512 = vmatprep.subr.bf16.mxu0 %v3503_v42  ;;  %2598 = vmatprep.subr.bf16.mxu1 %v3505_v45  ;;  %v879_v45 = vld [vmem:[%s5037_s7 + $0x30] sm:$0xff] }
 0x227   :  { %v3307_v44 = vcombine.high %v875_v36, %v879_v45  ;;  %v3306_v60 = vcombine.low %v875_v36, %v879_v45  ;;  %v924_v45 = vld [vmem:[%s5037_s7 + $0x198] sm:$0xff] }
 0x229   :  { %2513 = vmatpush1.bf16.msra.mxu0 %v3502_v37  ;;  %2599 = vmatpush1.bf16.msra.mxu1 %v3504_v38  ;;  %v3550_v38 = vcombine.low %v1121_v23, %v1125_v25  ;;  %v912_v23 = vld [vmem:[%s5037_s7 + $0x138] sm:$0xff] }
 0x22a   :  { %2514 = vmatprep.subr.bf16.mxu0 %v3511_v39  ;;  %2600 = vmatprep.subr.bf16.mxu1 %v3513_v41  ;;  %v3552_v39 = vcombine.low %v1122_v26, %v1126_v27 }
 0x22d   :  { %2515 = vmatpush1.bf16.msra.mxu0 %v3510_v52  ;;  %2601 = vmatpush1.bf16.msra.mxu1 %v3512_v53  ;;  %v883_v53 = vld [vmem:[%s5037_s7 + $0x50] sm:$0xff] }
 0x22e   :  { %2516 = vmatprep.subr.bf16.mxu0 %v3519_v54  ;;  %2602 = vmatprep.subr.bf16.mxu1 %v3521_v55  ;;  %v887_v55 = vld [vmem:[%s5037_s7 + $0x70] sm:$0xff] }
 0x22f   :  { %v3314_v6 = vcombine.low %v883_v53, %v887_v55 }
 0x231   :  { %2517 = vmatpush1.bf16.msra.mxu0 %v3518_v62  ;;  %2603 = vmatpush1.bf16.msra.mxu1 %v3520_v63  ;;  %v3308_v62 = vcombine.low %v876_v46, %v880_v47  ;;  %v3315_v63 = vcombine.high %v883_v53, %v887_v55  ;;  %v928_v46 = vld [vmem:[%s5037_s7 + $0x1b8] sm:$0xff]  ;;  %v939_v53 = vld [vmem:[%s5037_s7 + $0x210] sm:$0xff] }
 0x232   :  { %2518 = vmatprep.subr.bf16.mxu0 %v3527_v1  ;;  %2604 = vmatprep.subr.bf16.mxu1 %v3529_v2  ;;  %v3317_v1 = vcombine.high %v884_v57, %v888_v58  ;;  %v891_v2 = vld [vmem:[%s5037_s7 + $0x90] sm:$0xff] }
 0x233   :  { %v3322_v16 = vcombine.low %v891_v2, %v895_v3  ;;  %v943_v55 = vld [vmem:[%s5037_s7 + $0x230] sm:$0xff] }
 0x235   :  { %2519 = vmatpush1.bf16.msra.mxu0 %v3526_v7  ;;  %2605 = vmatpush1.bf16.msra.mxu1 %v3528_v8  ;;  %v3316_v7 = vcombine.low %v884_v57, %v888_v58  ;;  %v3323_v8 = vcombine.high %v891_v2, %v895_v3  ;;  %v940_v57 = vld [vmem:[%s5037_s7 + $0x218] sm:$0xff]  ;;  %v947_v2 = vld [vmem:[%s5037_s7 + $0x250] sm:$0xff] }
 0x236   :  { %2520 = vmatprep.subr.bf16.mxu0 %v3535_v9  ;;  %2606 = vmatprep.subr.bf16.mxu1 %v3537_v10  ;;  %v3325_v9 = vcombine.high %v892_v4, %v896_v5  ;;  %v899_v10 = vld [vmem:[%s5037_s7 + $0xd0] sm:$0xff]  ;;  %v944_v58 = vld [vmem:[%s5037_s7 + $0x238] sm:$0xff] }
 0x237   :  { %v951_v3 = vld [vmem:[%s5037_s7 + $0x270] sm:$0xff]  ;;  %v948_v4 = vld [vmem:[%s5037_s7 + $0x258] sm:$0xff] }
 0x238   :  { %v952_v5 = vld [vmem:[%s5037_s7 + $0x278] sm:$0xff] }
 0x239   :  { %v852_v28 = vpop.f32.mrb[4].mxu1  ;;  %2521 = vmatpush1.bf16.msra.mxu0 %v3534_v18  ;;  %2607 = vmatpush1.bf16.msra.mxu1 %v3536_v19  ;;  %v3331_v18 = vcombine.high %v899_v10, %v903_v13 }
 0x23a   :  { %v853_v33 = vadd.f32 %v852_v28, %v446_v20  ;;  %v854_v34 = vpop.f32.mrb[5].mxu1  ;;  %2522 = vmatprep.subr.bf16.mxu0 %v3543_v21  ;;  %2608 = vmatprep.subr.bf16.mxu1 %v3545_v22  ;;  %v911_v21 = vld [vmem:[%s5037_s7 + $0x130] sm:$0xff]  ;;  %v908_v22 = vld [vmem:[%s5037_s7 + $0x118] sm:$0xff] }
 0x23b   :  { %v855_v40 = vadd.f32 %v854_v34, %v450_v24  ;;  %v856_v42 = vpop.f32.mrb[6].mxu1  ;;  %v3341_v27 = vcombine.high %v908_v22, %v912_v23  ;;  %v915_v28 = vld [vmem:[%s5037_s7 + $0x150] sm:$0xff] }
 0x23c   :  { %v857_v48 = vadd.f32 %v856_v42, %v446_v20  ;;  %v858_v49 = vpop.f32.mrb[7].mxu1  ;;  %v863_v41 = vmax.f32 %v853_v33, 0.0  ;;  %v907_v20 = vld [vmem:[%s5037_s7 + $0x110] sm:$0xff]  ;;  %v920_v33 = vld [vmem:[%s5037_s7 + $0x178] sm:$0xff] }
 0x23d   :  { %v859_v37 = vadd.f32 %v858_v49, %v450_v24  ;;  %2523 = vmatpush1.bf16.msra.mxu0 %v3542_v29  ;;  %2609 = vmatpush1.bf16.msra.mxu1 %v3544_v32  ;;  %v864_v51 = vmax.f32 %v855_v40, 0.0  ;;  %v3330_v24 = vcombine.low %v899_v10, %v903_v13  ;;  %v3339_v26 = vcombine.high %v907_v20, %v911_v21  ;;  %v919_v29 = vld [vmem:[%s5037_s7 + $0x170] sm:$0xff]  ;;  %v916_v32 = vld [vmem:[%s5037_s7 + $0x158] sm:$0xff] }
 0x23e   :  { %v867_v43 = vmax.f32 %v857_v48, 0.0  ;;  %2524 = vmatprep.subr.bf16.mxu0 %v3551_v11  ;;  %2610 = vmatprep.subr.bf16.mxu1 %v3553_v35  ;;  %v3338_v34 = vcombine.low %v907_v20, %v911_v21  ;;  %v3340_v11 = vcombine.low %v908_v22, %v912_v23  ;;  %v3347_v35 = vcombine.high %v915_v28, %v919_v29  ;;  %v923_v40 = vld [vmem:[%s5037_s7 + $0x190] sm:$0xff]  ;;  %v964_v22 = vld [vmem:[%s5037_s7 + $0x2d8] sm:$0xff] }
 0x23f   :  { %v868_v52 = vmax.f32 %v859_v37, 0.0  ;;  %v3349_v36 = vcombine.high %v916_v32, %v920_v33  ;;  %v927_v42 = vld [vmem:[%s5037_s7 + $0x1b0] sm:$0xff]  ;;  %v3346_v47 = vcombine.low %v915_v28, %v919_v29  ;;  %v3348_v48 = vcombine.low %v916_v32, %v920_v33  ;;  %v968_v23 = vld [vmem:[%s5037_s7 + $0x2f8] sm:$0xff] }
 0x240   :  { %v4573_v54 = vpack.c.bf16 %v867_v43, %v863_v41  ;;  %v3355_v49 = vcombine.high %v923_v40, %v927_v42  ;;  %v3357_v37 = vcombine.high %v924_v45, %v928_v46  ;;  %v932_v41 = vld [vmem:[%s5037_s7 + $0x1d8] sm:$0xff]  ;;  %v955_v10 = vld [vmem:[%s5037_s7 + $0x290] sm:$0xff] }
 0x241   :  { %v4584_v59 = vpack.c.bf16 %v868_v52, %v864_v51  ;;  %2525 = vmatpush1.bf16.msra.mxu0 %v3550_v38  ;;  %2611 = vmatpush1.bf16.msra.mxu1 %v3552_v39  ;;  %v931_v38 = vld [vmem:[%s5037_s7 + $0x1d0] sm:$0xff]  ;;  %v936_v43 = vld [vmem:[%s5037_s7 + $0x1f8] sm:$0xff] }
 0x242   :  { %2623 = vmatprep.subr.bf16.mxu0 %v3307_v44  ;;  %2709 = vmatprep.subr.bf16.mxu1 %v3309_v50  ;;  %v935_v39 = vld [vmem:[%s5037_s7 + $0x1f0] sm:$0xff]  ;;  %v3354_v44 = vcombine.low %v923_v40, %v927_v42  ;;  %v3356_v50 = vcombine.low %v924_v45, %v928_v46  ;;  %v3365_v52 = vcombine.high %v932_v41, %v936_v43  ;;  %v972_v32 = vld [vmem:[%s5037_s7 + $0x318] sm:$0xff] }
 0x243   :  { %2526 = vmatprep.mubr.bf16.mxu0 %v4584_v59  ;;  %2612 = vmatprep.mubr.bf16.mxu1 %v4584_v59  ;;  %v3363_v51 = vcombine.high %v931_v38, %v935_v39  ;;  %v959_v13 = vld [vmem:[%s5037_s7 + $0x2b0] sm:$0xff]  ;;  %v976_v33 = vld [vmem:[%s5037_s7 + $0x338] sm:$0xff] }
 0x244   :  { %2527 = vmatmul.mubr.bf16.vlgmr.msra.gmra.mrb[4].mxu0 %v4573_v54  ;;  %2613 = vmatmul.mubr.bf16.vlgmr.msra.gmra.mrb[8].mxu1 %v4573_v54  ;;  %v963_v20 = vld [vmem:[%s5037_s7 + $0x2d0] sm:$0xff]  ;;  %v980_v45 = vld [vmem:[%s5037_s7 + $0x358] sm:$0xff] }
 0x245   :  { %2624 = vmatpush1.bf16.msra.mxu0 %v3306_v60  ;;  %2655 = vmatprep.mubr.bf16.mxu0 %v4370_v31  ;;  %v3362_v60 = vcombine.low %v931_v38, %v935_v39  ;;  %v967_v21 = vld [vmem:[%s5037_s7 + $0x2f0] sm:$0xff]  ;;  %v984_v46 = vld [vmem:[%s5037_s7 + $0x378] sm:$0xff] }
 0x246   :  { %2710 = vmatpush1.bf16.msra.mxu1 %v3308_v62  ;;  %2741 = vmatprep.mubr.bf16.mxu1 %v4370_v31  ;;  %v904_v31 = vld [vmem:[%s5037_s7 + $0xf8] sm:$0xff]  ;;  %v3364_v62 = vcombine.low %v932_v41, %v936_v43  ;;  %v971_v28 = vld [vmem:[%s5037_s7 + $0x310] sm:$0xff] }
 0x247   :  { %2625 = vmatprep.subr.bf16.mxu0 %v3315_v63  ;;  %2711 = vmatprep.subr.bf16.mxu1 %v3317_v1  ;;  %v3333_v19 = vcombine.high %v900_v15, %v904_v31  ;;  %v3332_v25 = vcombine.low %v900_v15, %v904_v31  ;;  %v3371_v63 = vcombine.high %v939_v53, %v943_v55  ;;  %v956_v15 = vld [vmem:[%s5037_s7 + $0x298] sm:$0xff]  ;;  %v975_v29 = vld [vmem:[%s5037_s7 + $0x330] sm:$0xff] }
 0x248   :  { %v3373_v1 = vcombine.high %v940_v57, %v944_v58  ;;  %v960_v31 = vld [vmem:[%s5037_s7 + $0x2b8] sm:$0xff]  ;;  %v979_v40 = vld [vmem:[%s5037_s7 + $0x350] sm:$0xff] }
 0x249   :  { %2626 = vmatpush1.bf16.msra.mxu0 %v3314_v6  ;;  %v3370_v6 = vcombine.low %v939_v53, %v943_v55  ;;  %v983_v42 = vld [vmem:[%s5037_s7 + $0x370] sm:$0xff]  ;;  %v988_v41 = vld [vmem:[%s5037_s7 + $0x398] sm:$0xff] }
 0x24a   :  { %2712 = vmatpush1.bf16.msra.mxu1 %v3316_v7  ;;  %2627 = vmatprep.subr.bf16.mxu0 %v3323_v8  ;;  %v3372_v7 = vcombine.low %v940_v57, %v944_v58  ;;  %v3379_v8 = vcombine.high %v947_v2, %v951_v3  ;;  %v987_v38 = vld [vmem:[%s5037_s7 + $0x390] sm:$0xff]  ;;  %v992_v43 = vld [vmem:[%s5037_s7 + $0x3b8] sm:$0xff] }
 0x24b   :  { %2713 = vmatprep.subr.bf16.mxu1 %v3325_v9  ;;  %v3381_v9 = vcombine.high %v948_v4, %v952_v5  ;;  %v991_v39 = vld [vmem:[%s5037_s7 + $0x3b0] sm:$0xff]  ;;  %v996_v57 = vld [vmem:[%s5037_s7 + $0x3d8] sm:$0xff] }
 0x24c   :  { %v995_v53 = vld [vmem:[%s5037_s7 + $0x3d0] sm:$0xff]  ;;  %v1000_v58 = vld [vmem:[%s5037_s7 + $0x3f8] sm:$0xff] }
 0x24d   :  { %2628 = vmatpush1.bf16.msra.mxu0 %v3322_v16  ;;  %v3378_v16 = vcombine.low %v947_v2, %v951_v3  ;;  %v999_v55 = vld [vmem:[%s5037_s7 + $0x3f0] sm:$0xff] }
 0x24e   :  { %2714 = vmatpush1.bf16.msra.mxu1 %v3324_v17  ;;  %2629 = vmatprep.subr.bf16.mxu0 %v3331_v18  ;;  %v3380_v17 = vcombine.low %v948_v4, %v952_v5  ;;  %v3387_v18 = vcombine.high %v955_v10, %v959_v13  ;;  %v1003_v2 = vld [vmem:[%s5037_s7 + $0x410] sm:$0xff]  ;;  %v1004_v4 = vld [vmem:[%s5037_s7 + $0x418] sm:$0xff] }
 0x24f   :  { %2715 = vmatprep.subr.bf16.mxu1 %v3333_v19  ;;  %v3389_v19 = vcombine.high %v956_v15, %v960_v31  ;;  %v1007_v3 = vld [vmem:[%s5037_s7 + $0x430] sm:$0xff]  ;;  %v1008_v5 = vld [vmem:[%s5037_s7 + $0x438] sm:$0xff] }
 0x251   :  { %2630 = vmatpush1.bf16.msra.mxu0 %v3330_v24  ;;  %v3386_v24 = vcombine.low %v955_v10, %v959_v13  ;;  %v1011_v10 = vld [vmem:[%s5037_s7 + $0x450] sm:$0xff] }
 0x252   :  { %2716 = vmatpush1.bf16.msra.mxu1 %v3332_v25  ;;  %2631 = vmatprep.subr.bf16.mxu0 %v3339_v26  ;;  %v3388_v25 = vcombine.low %v956_v15, %v960_v31  ;;  %v3395_v26 = vcombine.high %v963_v20, %v967_v21  ;;  %v1015_v13 = vld [vmem:[%s5037_s7 + $0x470] sm:$0xff]  ;;  %v3434_v15 = vcombine.low %v1003_v2, %v1007_v3  ;;  %v1012_v31 = vld [vmem:[%s5037_s7 + $0x458] sm:$0xff] }
 0x253   :  { %2717 = vmatprep.subr.bf16.mxu1 %v3341_v27  ;;  %v3397_v27 = vcombine.high %v964_v22, %v968_v23 }
 0x255   :  { %2632 = vmatpush1.bf16.msra.mxu0 %v3338_v34  ;;  %v3394_v34 = vcombine.low %v963_v20, %v967_v21  ;;  %v1023_v20 = vld [vmem:[%s5037_s7 + $0x4b0] sm:$0xff] }
 0x256   :  { %2718 = vmatpush1.bf16.msra.mxu1 %v3340_v11  ;;  %2633 = vmatprep.subr.bf16.mxu0 %v3347_v35  ;;  %v3396_v11 = vcombine.low %v964_v22, %v968_v23  ;;  %v3403_v35 = vcombine.high %v971_v28, %v975_v29  ;;  %v1020_v22 = vld [vmem:[%s5037_s7 + $0x498] sm:$0xff] }
 0x257   :  { %2719 = vmatprep.subr.bf16.mxu1 %v3349_v36  ;;  %v3405_v36 = vcombine.high %v972_v32, %v976_v33  ;;  %v1024_v23 = vld [vmem:[%s5037_s7 + $0x4b8] sm:$0xff] }
 0x259   :  { %2634 = vmatpush1.bf16.msra.mxu0 %v3346_v47  ;;  %v3402_v47 = vcombine.low %v971_v28, %v975_v29  ;;  %v1027_v28 = vld [vmem:[%s5037_s7 + $0x4d0] sm:$0xff] }
 0x25a   :  { %2720 = vmatpush1.bf16.msra.mxu1 %v3348_v48  ;;  %2635 = vmatprep.subr.bf16.mxu0 %v3355_v49  ;;  %v3404_v48 = vcombine.low %v972_v32, %v976_v33  ;;  %v3411_v49 = vcombine.high %v979_v40, %v983_v42  ;;  %v1031_v29 = vld [vmem:[%s5037_s7 + $0x4f0] sm:$0xff]  ;;  %v1032_v32 = vld [vmem:[%s5037_s7 + $0x4f8] sm:$0xff]  ;;  %v3452_v33 = vcombine.low %v1020_v22, %v1024_v23 }
 0x25b   :  { %2721 = vmatprep.subr.bf16.mxu1 %v3357_v37  ;;  %v3413_v37 = vcombine.high %v980_v45, %v984_v46 }
 0x25d   :  { %2636 = vmatpush1.bf16.msra.mxu0 %v3354_v44  ;;  %v3410_v44 = vcombine.low %v979_v40, %v983_v42  ;;  %v1036_v40 = vld [vmem:[%s5037_s7 + $0x518] sm:$0xff] }
 0x25e   :  { %2722 = vmatpush1.bf16.msra.mxu1 %v3356_v50  ;;  %2637 = vmatprep.subr.bf16.mxu0 %v3363_v51  ;;  %v3412_v50 = vcombine.low %v980_v45, %v984_v46  ;;  %v3419_v51 = vcombine.high %v987_v38, %v991_v39  ;;  %v1040_v42 = vld [vmem:[%s5037_s7 + $0x538] sm:$0xff]  ;;  %v3458_v45 = vcombine.low %v1027_v28, %v1031_v29 }
 0x25f   :  { %2723 = vmatprep.subr.bf16.mxu1 %v3365_v52  ;;  %v3421_v52 = vcombine.high %v988_v41, %v992_v43 }
 0x261   :  { %2638 = vmatpush1.bf16.msra.mxu0 %v3362_v60  ;;  %v3418_v60 = vcombine.low %v987_v38, %v991_v39  ;;  %v1044_v38 = vld [vmem:[%s5037_s7 + $0x558] sm:$0xff] }
 0x262   :  { %2724 = vmatpush1.bf16.msra.mxu1 %v3364_v62  ;;  %2639 = vmatprep.subr.bf16.mxu0 %v3371_v63  ;;  %v3420_v62 = vcombine.low %v988_v41, %v992_v43  ;;  %v3427_v63 = vcombine.high %v995_v53, %v999_v55  ;;  %v1048_v39 = vld [vmem:[%s5037_s7 + $0x578] sm:$0xff]  ;;  %v3468_v43 = vcombine.low %v1036_v40, %v1040_v42 }
 0x263   :  { %2725 = vmatprep.subr.bf16.mxu1 %v3373_v1  ;;  %v3429_v1 = vcombine.high %v996_v57, %v1000_v58 }
 0x265   :  { %2640 = vmatpush1.bf16.msra.mxu0 %v3370_v6  ;;  %v3426_v6 = vcombine.low %v995_v53, %v999_v55  ;;  %v1052_v53 = vld [vmem:[%s5037_s7 + $0x598] sm:$0xff] }
 0x266   :  { %2726 = vmatpush1.bf16.msra.mxu1 %v3372_v7  ;;  %2641 = vmatprep.subr.bf16.mxu0 %v3379_v8  ;;  %v3428_v7 = vcombine.low %v996_v57, %v1000_v58  ;;  %v3435_v8 = vcombine.high %v1003_v2, %v1007_v3  ;;  %v1056_v55 = vld [vmem:[%s5037_s7 + $0x5b8] sm:$0xff]  ;;  %v3476_v58 = vcombine.low %v1044_v38, %v1048_v39 }
 0x267   :  { %2727 = vmatprep.subr.bf16.mxu1 %v3381_v9  ;;  %v3437_v9 = vcombine.high %v1004_v4, %v1008_v5  ;;  %v1060_v2 = vld [vmem:[%s5037_s7 + $0x5d8] sm:$0xff] }
 0x268   :  { %v1064_v3 = vld [vmem:[%s5037_s7 + $0x5f8] sm:$0xff] }
 0x269   :  { %2642 = vmatpush1.bf16.msra.mxu0 %v3378_v16  ;;  %v1016_v16 = vld [vmem:[%s5037_s7 + $0x478] sm:$0xff] }
 0x26a   :  { %2728 = vmatpush1.bf16.msra.mxu1 %v3380_v17  ;;  %2643 = vmatprep.subr.bf16.mxu0 %v3387_v18  ;;  %v3436_v17 = vcombine.low %v1004_v4, %v1008_v5  ;;  %v3443_v18 = vcombine.high %v1011_v10, %v1015_v13  ;;  %v3445_v21 = vcombine.high %v1012_v31, %v1016_v16 }
 0x26b   :  { %2729 = vmatprep.subr.bf16.mxu1 %v3389_v19  ;;  %v1019_v19 = vld [vmem:[%s5037_s7 + $0x490] sm:$0xff]  ;;  %v3484_v5 = vcombine.low %v1052_v53, %v1056_v55 }
 0x26d   :  { %2644 = vmatpush1.bf16.msra.mxu0 %v3386_v24  ;;  %v3442_v24 = vcombine.low %v1011_v10, %v1015_v13  ;;  %v1068_v10 = vld [vmem:[%s5037_s7 + $0x618] sm:$0xff] }
 0x26e   :  { %2730 = vmatpush1.bf16.msra.mxu1 %v3388_v25  ;;  %2645 = vmatprep.subr.bf16.mxu0 %v3395_v26  ;;  %v3444_v25 = vcombine.low %v1012_v31, %v1016_v16  ;;  %v3451_v26 = vcombine.high %v1019_v19, %v1023_v20  ;;  %v1072_v13 = vld [vmem:[%s5037_s7 + $0x638] sm:$0xff]  ;;  %v3492_v31 = vcombine.low %v1060_v2, %v1064_v3 }
 0x26f   :  { %2731 = vmatprep.subr.bf16.mxu1 %v3397_v27  ;;  %v3453_v27 = vcombine.high %v1020_v22, %v1024_v23  ;;  %v3500_v23 = vcombine.low %v1068_v10, %v1072_v13 }
 0x271   :  { %2646 = vmatpush1.bf16.msra.mxu0 %v3394_v34  ;;  %v3459_v34 = vcombine.high %v1027_v28, %v1031_v29  ;;  %v1084_v28 = vld [vmem:[%s5037_s7 + $0x698] sm:$0xff] }
 0x272   :  { %2732 = vmatpush1.bf16.msra.mxu1 %v3396_v11  ;;  %2647 = vmatprep.subr.bf16.mxu0 %v3403_v35  ;;  %v1035_v35 = vld [vmem:[%s5037_s7 + $0x510] sm:$0xff]  ;;  %v1088_v29 = vld [vmem:[%s5037_s7 + $0x6b8] sm:$0xff] }
 0x273   :  { %2733 = vmatprep.subr.bf16.mxu1 %v3405_v36  ;;  %v1039_v36 = vld [vmem:[%s5037_s7 + $0x530] sm:$0xff] }
 0x274   :  { %v3466_v41 = vcombine.low %v1035_v35, %v1039_v36 }
 0x275   :  { %2648 = vmatpush1.bf16.msra.mxu0 %v3402_v47  ;;  %v3467_v47 = vcombine.high %v1035_v35, %v1039_v36  ;;  %v1092_v35 = vld [vmem:[%s5037_s7 + $0x6d8] sm:$0xff] }
 0x276   :  { %2734 = vmatpush1.bf16.msra.mxu1 %v3404_v48  ;;  %2649 = vmatprep.subr.bf16.mxu0 %v3411_v49  ;;  %v3469_v48 = vcombine.high %v1036_v40, %v1040_v42  ;;  %v1043_v49 = vld [vmem:[%s5037_s7 + $0x550] sm:$0xff]  ;;  %v1096_v36 = vld [vmem:[%s5037_s7 + $0x6f8] sm:$0xff]  ;;  %v3516_v42 = vcombine.low %v1084_v28, %v1088_v29 }
 0x277   :  { %2735 = vmatprep.subr.bf16.mxu1 %v3413_v37  ;;  %v1047_v37 = vld [vmem:[%s5037_s7 + $0x570] sm:$0xff] }
 0x278   :  { %v3474_v57 = vcombine.low %v1043_v49, %v1047_v37 }
 0x279   :  { %2650 = vmatpush1.bf16.msra.mxu0 %v3410_v44  ;;  %v3475_v44 = vcombine.high %v1043_v49, %v1047_v37  ;;  %v1100_v49 = vld [vmem:[%s5037_s7 + $0x718] sm:$0xff] }
 0x27a   :  { %2736 = vmatpush1.bf16.msra.mxu1 %v3412_v50  ;;  %2651 = vmatprep.subr.bf16.mxu0 %v3419_v51  ;;  %v3477_v50 = vcombine.high %v1044_v38, %v1048_v39  ;;  %v1051_v51 = vld [vmem:[%s5037_s7 + $0x590] sm:$0xff]  ;;  %v1104_v37 = vld [vmem:[%s5037_s7 + $0x738] sm:$0xff]  ;;  %v3524_v39 = vcombine.low %v1092_v35, %v1096_v36 }
 0x27b   :  { %2737 = vmatprep.subr.bf16.mxu1 %v3421_v52  ;;  %v1055_v52 = vld [vmem:[%s5037_s7 + $0x5b0] sm:$0xff] }
 0x27c   :  { %v3482_v4 = vcombine.low %v1051_v51, %v1055_v52 }
 0x27d   :  { %2652 = vmatpush1.bf16.msra.mxu0 %v3418_v60  ;;  %v3483_v60 = vcombine.high %v1051_v51, %v1055_v52  ;;  %v1108_v51 = vld [vmem:[%s5037_s7 + $0x758] sm:$0xff] }
 0x27e   :  { %2738 = vmatpush1.bf16.msra.mxu1 %v3420_v62  ;;  %2653 = vmatprep.subr.bf16.mxu0 %v3427_v63  ;;  %v3485_v62 = vcombine.high %v1052_v53, %v1056_v55  ;;  %v1059_v63 = vld [vmem:[%s5037_s7 + $0x5d0] sm:$0xff]  ;;  %v1112_v52 = vld [vmem:[%s5037_s7 + $0x778] sm:$0xff]  ;;  %v3532_v55 = vcombine.low %v1100_v49, %v1104_v37 }
 0x27f   :  { %2739 = vmatprep.subr.bf16.mxu1 %v3429_v1  ;;  %v1063_v1 = vld [vmem:[%s5037_s7 + $0x5f0] sm:$0xff] }
 0x281   :  { %2654 = vmatpush1.bf16.msra.mxu0 %v3426_v6  ;;  %v3491_v6 = vcombine.high %v1059_v63, %v1063_v1 }
 0x282   :  { %2740 = vmatpush1.bf16.msra.mxu1 %v3428_v7  ;;  %2666 = vmatprep.subr.bf16.mxu0 %v3435_v8  ;;  %v3493_v7 = vcombine.high %v1060_v2, %v1064_v3  ;;  %v1067_v8 = vld [vmem:[%s5037_s7 + $0x610] sm:$0xff]  ;;  %v3540_v3 = vcombine.low %v1108_v51, %v1112_v52 }
 0x283   :  { %2752 = vmatprep.subr.bf16.mxu1 %v3437_v9  ;;  %v1071_v9 = vld [vmem:[%s5037_s7 + $0x630] sm:$0xff] }
 0x284   :  { %2656 = vmatmul.mubr.bf16.vlgmr.msra.gmra.mrb[8].mxu0 %v4368_v30  ;;  %v3499_v16 = vcombine.high %v1067_v8, %v1071_v9  ;;  %v3498_v22 = vcombine.low %v1067_v8, %v1071_v9  ;;  %v1124_v8 = vld [vmem:[%s5037_s7 + $0x7d8] sm:$0xff] }
 0x285   :  { %2742 = vmatmul.mubr.bf16.vlgmr.msra.gmra.mrb[12].mxu1 %v4368_v30  ;;  %2667 = vmatpush1.bf16.msra.mxu0 %v3434_v15  ;;  %v1028_v30 = vld [vmem:[%s5037_s7 + $0x4d8] sm:$0xff]  ;;  %v3490_v15 = vcombine.low %v1059_v63, %v1063_v1 }
 0x286   :  { %2698 = vmatprep.mubr.bf16.mxu0 %v4584_v59  ;;  %2753 = vmatpush1.bf16.msra.mxu1 %v3436_v17  ;;  %v3461_v11 = vcombine.high %v1028_v30, %v1032_v32  ;;  %v3460_v46 = vcombine.low %v1028_v30, %v1032_v32  ;;  %v3501_v17 = vcombine.high %v1068_v10, %v1072_v13  ;;  %v1116_v63 = vld [vmem:[%s5037_s7 + $0x798] sm:$0xff] }
 0x287   :  { %2784 = vmatprep.mubr.bf16.mxu1 %v4584_v59  ;;  %2668 = vmatprep.subr.bf16.mxu0 %v3443_v18  ;;  %v3450_v59 = vcombine.low %v1019_v19, %v1023_v20  ;;  %v1075_v18 = vld [vmem:[%s5037_s7 + $0x650] sm:$0xff]  ;;  %v1076_v20 = vld [vmem:[%s5037_s7 + $0x658] sm:$0xff] }
 0x288   :  { %2754 = vmatprep.subr.bf16.mxu1 %v3445_v21  ;;  %v1079_v19 = vld [vmem:[%s5037_s7 + $0x670] sm:$0xff]  ;;  %v1080_v21 = vld [vmem:[%s5037_s7 + $0x678] sm:$0xff] }
 0x289   :  { %2669 = vmatpush1.bf16.msra.mxu0 %v3442_v24  ;;  %v3507_v24 = vcombine.high %v1075_v18, %v1079_v19  ;;  %v3506_v30 = vcombine.low %v1075_v18, %v1079_v19  ;;  %v3508_v32 = vcombine.low %v1076_v20, %v1080_v21  ;;  %v1120_v1 = vld [vmem:[%s5037_s7 + $0x7b8] sm:$0xff]  ;;  %v3758_v18 = vmov 1966171168  }
 0x28a   :  { %2755 = vmatpush1.bf16.msra.mxu1 %v3444_v25  ;;  %2670 = vmatprep.subr.bf16.mxu0 %v3451_v26  ;;  %v3509_v25 = vcombine.high %v1076_v20, %v1080_v21  ;;  %v1083_v26 = vld [vmem:[%s5037_s7 + $0x690] sm:$0xff]  ;;  %v1128_v9 = vld [vmem:[%s5037_s7 + $0x7f8] sm:$0xff]  ;;  %v3548_v13 = vcombine.low %v1116_v63, %v1120_v1  ;;  %v2928_v19 = vunpack.c.l.s4 %v3758_v18  ;;  %v4961_v20 = vld [vmem:[%s5040_s8] sm:$0xff] }
 0x28b   :  { %2756 = vmatprep.subr.bf16.mxu1 %v3453_v27  ;;  %v1087_v27 = vld [vmem:[%s5037_s7 + $0x6b0] sm:$0xff]  ;;  %v1134_v21 = vrot.slane %v4961_v20, %v4098_v61 }
 0x28c   :  { %v3514_v40 = vcombine.low %v1083_v26, %v1087_v27 }
 0x28d   :  { %2671 = vmatpush1.bf16.msra.mxu0 %v3450_v59  ;;  %v3515_v59 = vcombine.high %v1083_v26, %v1087_v27 }
 0x28e   :  { %2757 = vmatpush1.bf16.msra.mxu1 %v3452_v33  ;;  %2672 = vmatprep.subr.bf16.mxu0 %v3459_v34  ;;  %v3517_v33 = vcombine.high %v1084_v28, %v1088_v29  ;;  %v1091_v34 = vld [vmem:[%s5037_s7 + $0x6d0] sm:$0xff] }
 0x28f   :  { %2758 = vmatprep.subr.bf16.mxu1 %v3461_v11  ;;  %v1095_v11 = vld [vmem:[%s5037_s7 + $0x6f0] sm:$0xff] }
 0x290   :  { %v3522_v38 = vcombine.low %v1091_v34, %v1095_v11 }
 0x291   :  { %2673 = vmatpush1.bf16.msra.mxu0 %v3458_v45  ;;  %v3523_v45 = vcombine.high %v1091_v34, %v1095_v11 }
 0x292   :  { %2759 = vmatpush1.bf16.msra.mxu1 %v3460_v46  ;;  %2674 = vmatprep.subr.bf16.mxu0 %v3467_v47  ;;  %v3525_v46 = vcombine.high %v1092_v35, %v1096_v36  ;;  %v1099_v47 = vld [vmem:[%s5037_s7 + $0x710] sm:$0xff] }
 0x293   :  { %2760 = vmatprep.subr.bf16.mxu1 %v3469_v48  ;;  %v1103_v48 = vld [vmem:[%s5037_s7 + $0x730] sm:$0xff] }
 0x294   :  { %v3530_v53 = vcombine.low %v1099_v47, %v1103_v48 }
 0x295   :  { %2675 = vmatpush1.bf16.msra.mxu0 %v3466_v41  ;;  %v3531_v41 = vcombine.high %v1099_v47, %v1103_v48 }
 0x296   :  { %2761 = vmatpush1.bf16.msra.mxu1 %v3468_v43  ;;  %2676 = vmatprep.subr.bf16.mxu0 %v3475_v44  ;;  %v3533_v43 = vcombine.high %v1100_v49, %v1104_v37  ;;  %v1107_v44 = vld [vmem:[%s5037_s7 + $0x750] sm:$0xff] }
 0x297   :  { %2762 = vmatprep.subr.bf16.mxu1 %v3477_v50  ;;  %v1111_v50 = vld [vmem:[%s5037_s7 + $0x770] sm:$0xff] }
 0x298   :  { %v3538_v2 = vcombine.low %v1107_v44, %v1111_v50 }
 0x299   :  { %2677 = vmatpush1.bf16.msra.mxu0 %v3474_v57  ;;  %v3539_v57 = vcombine.high %v1107_v44, %v1111_v50 }
 0x29a   :  { %2763 = vmatpush1.bf16.msra.mxu1 %v3476_v58  ;;  %2678 = vmatprep.subr.bf16.mxu0 %v3483_v60  ;;  %v3541_v58 = vcombine.high %v1108_v51, %v1112_v52  ;;  %v1115_v60 = vld [vmem:[%s5037_s7 + $0x790] sm:$0xff] }
 0x29b   :  { %2764 = vmatprep.subr.bf16.mxu1 %v3485_v62  ;;  %v1119_v62 = vld [vmem:[%s5037_s7 + $0x7b0] sm:$0xff] }
 0x29c   :  { %v3546_v10 = vcombine.low %v1115_v60, %v1119_v62 }
 0x29d   :  { %2679 = vmatpush1.bf16.msra.mxu0 %v3482_v4  ;;  %v3547_v4 = vcombine.high %v1115_v60, %v1119_v62 }
 0x29e   :  { %2765 = vmatpush1.bf16.msra.mxu1 %v3484_v5  ;;  %2680 = vmatprep.subr.bf16.mxu0 %v3491_v6  ;;  %v3549_v5 = vcombine.high %v1116_v63, %v1120_v1  ;;  %v1123_v6 = vld [vmem:[%s5037_s7 + $0x7d0] sm:$0xff] }
 0x29f   :  { %2766 = vmatprep.subr.bf16.mxu1 %v3493_v7  ;;  %v1127_v7 = vld [vmem:[%s5037_s7 + $0x7f0] sm:$0xff] }
 0x2a1   :  { %2681 = vmatpush1.bf16.msra.mxu0 %v3490_v15  ;;  %v3555_v15 = vcombine.high %v1123_v6, %v1127_v7 }
 0x2a2   :  { %2767 = vmatpush1.bf16.msra.mxu1 %v3492_v31  ;;  %2682 = vmatprep.subr.bf16.mxu0 %v3499_v16  ;;  %v3557_v31 = vcombine.high %v1124_v8, %v1128_v9  ;;  %v3554_v16 = vcombine.low %v1123_v6, %v1127_v7 }
 0x2a3   :  { %2768 = vmatprep.subr.bf16.mxu1 %v3501_v17  ;;  %v3556_v17 = vcombine.low %v1124_v8, %v1128_v9 }
 0x2a5   :  { %2683 = vmatpush1.bf16.msra.mxu0 %v3498_v22  ;;  %v1142_v22 = vrot.slane %v4961_v20, %v445_v12 }
 0x2a6   :  { %2769 = vmatpush1.bf16.msra.mxu1 %v3500_v23  ;;  %2684 = vmatprep.subr.bf16.mxu0 %v3507_v24  ;;  %v2929_v23 = vunpack.c.0.s8 %v2928_v19  ;;  %v1138_v24 = vrot.slane %v4961_v20, %v4104_v0 }
 0x2a7   :  { %2770 = vmatprep.subr.bf16.mxu1 %v3509_v25 }
 0x2a8   :  { %v4974_v61 = vsub.s32 %v2929_v23, %v4089_v56 }
 0x2a9   :  { %2685 = vmatpush1.bf16.msra.mxu0 %v3506_v30 }
 0x2aa   :  { %2771 = vmatpush1.bf16.msra.mxu1 %v3508_v32  ;;  %2686 = vmatprep.subr.bf16.mxu0 %v3515_v59 }
 0x2ab   :  { %2772 = vmatprep.subr.bf16.mxu1 %v3517_v33 }
 0x2ad   :  { %2687 = vmatpush1.bf16.msra.mxu0 %v3514_v40 }
 0x2ae   :  { %2773 = vmatpush1.bf16.msra.mxu1 %v3516_v42  ;;  %2688 = vmatprep.subr.bf16.mxu0 %v3523_v45 }
 0x2af   :  { %2774 = vmatprep.subr.bf16.mxu1 %v3525_v46 }
 0x2b1   :  { %2689 = vmatpush1.bf16.msra.mxu0 %v3522_v38 }
 0x2b2   :  { %2775 = vmatpush1.bf16.msra.mxu1 %v3524_v39  ;;  %2690 = vmatprep.subr.bf16.mxu0 %v3531_v41 }
 0x2b3   :  { %2776 = vmatprep.subr.bf16.mxu1 %v3533_v43 }
 0x2b5   :  { %2691 = vmatpush1.bf16.msra.mxu0 %v3530_v53 }
 0x2b6   :  { %2777 = vmatpush1.bf16.msra.mxu1 %v3532_v55  ;;  %2692 = vmatprep.subr.bf16.mxu0 %v3539_v57 }
 0x2b7   :  { %2778 = vmatprep.subr.bf16.mxu1 %v3541_v58 }
 0x2b9   :  { %2693 = vmatpush1.bf16.msra.mxu0 %v3538_v2 }
 0x2ba   :  { %2779 = vmatpush1.bf16.msra.mxu1 %v3540_v3  ;;  %2694 = vmatprep.subr.bf16.mxu0 %v3547_v4 }
 0x2bb   :  { %2780 = vmatprep.subr.bf16.mxu1 %v3549_v5 }
 0x2bd   :  { %2695 = vmatpush1.bf16.msra.mxu0 %v3546_v10 }
 0x2be   :  { %2781 = vmatpush1.bf16.msra.mxu1 %v3548_v13  ;;  %2696 = vmatprep.subr.bf16.mxu0 %v3555_v15 }
 0x2bf   :  { %2782 = vmatprep.subr.bf16.mxu1 %v3557_v31 }
 0x2c1   :  { %2697 = vmatpush1.bf16.msra.mxu0 %v3554_v16 }
 0x2c2   :  { %2783 = vmatpush1.bf16.msra.mxu1 %v3556_v17 }
 0x2c4   :  { %2699 = vmatmul.mubr.bf16.vlgmr.msra.gmra.mrb[8].mxu0 %v4573_v54 }
 0x2c5   :  { %2785 = vmatmul.mubr.bf16.vlgmr.msra.gmra.mrb[12].mxu1 %v4573_v54  ;;  %v1146_v54 = vrot.slane %v4961_v20, %v449_v14 }
 0x317   :  { %v2528_v25 = vpop.f32.mrb[4].mxu0  ;;  %v2614_v26 = vpop.f32.mrb[8].mxu1 }
 0x318   :  { %v3568_v27 = vadd.f32 %v2528_v25, %v1134_v21  ;;  %v3572_v28 = vadd.f32 %v2614_v26, %v1142_v22  ;;  %v2530_v29 = vpop.f32.mrb[5].mxu0  ;;  %v2616_v30 = vpop.f32.mrb[9].mxu1 }
 0x319   :  { %v3569_v32 = vadd.f32 %v2530_v29, %v1138_v24  ;;  %v3573_v59 = vadd.f32 %v2616_v30, %v1146_v54  ;;  %v2532_v12 = vpop.f32.mrb[6].mxu0  ;;  %v2618_v33 = vpop.f32.mrb[10].mxu1 }
 0x31a   :  { %v2795_v34 = vrot.slane %v3568_v27, 4  ;;  %v2807_v11 = vrot.slane %v3572_v28, 4  ;;  %v3570_v0 = vadd.f32 %v2532_v12, %v1134_v21  ;;  %v3574_v35 = vadd.f32 %v2618_v33, %v1142_v22  ;;  %v2534_v36 = vpop.f32.mrb[7].mxu0  ;;  %v2620_v40 = vpop.f32.mrb[11].mxu1 }
 0x31b   :  { %v2801_v14 = vrot.slane %v3569_v32, 4  ;;  %v2813_v42 = vrot.slane %v3573_v59, 4  ;;  %v3571_v45 = vadd.f32 %v2534_v36, %v1138_v24  ;;  %v3575_v46 = vadd.f32 %v2620_v40, %v1146_v54 }
 0x31c   :  { %v2796_v47 = vmax.f32 %v3568_v27, %v2795_v34  ;;  %v2808_v48 = vmax.f32 %v3572_v28, %v2807_v11  ;;  %v2843_v49 = vrot.slane %v3570_v0, 4  ;;  %v2855_v37 = vrot.slane %v3574_v35, 4 }
 0x31d   :  { %v2802_v38 = vmax.f32 %v3569_v32, %v2801_v14  ;;  %v2814_v39 = vmax.f32 %v3573_v59, %v2813_v42  ;;  %v2849_v41 = vrot.slane %v3571_v45, 4  ;;  %v2861_v43 = vrot.slane %v3575_v46, 4 }
 0x31e   :  { %v2797_v44 = vrot.slane %v2796_v47, 2  ;;  %v2809_v50 = vrot.slane %v2808_v48, 2  ;;  %v2844_v51 = vmax.f32 %v3570_v0, %v2843_v49  ;;  %v2856_v52 = vmax.f32 %v3574_v35, %v2855_v37 }
 0x31f   :  { %v2803_v53 = vrot.slane %v2802_v38, 2  ;;  %v2815_v55 = vrot.slane %v2814_v39, 2  ;;  %v2850_v57 = vmax.f32 %v3571_v45, %v2849_v41  ;;  %v2862_v58 = vmax.f32 %v3575_v46, %v2861_v43 }
 0x320   :  { %v2798_v60 = vmax.f32 %v2796_v47, %v2797_v44  ;;  %v2810_v62 = vmax.f32 %v2808_v48, %v2809_v50  ;;  %v2845_v63 = vrot.slane %v2844_v51, 2  ;;  %v2857_v1 = vrot.slane %v2856_v52, 2 }
 0x321   :  { %v2804_v2 = vmax.f32 %v2802_v38, %v2803_v53  ;;  %v2816_v3 = vmax.f32 %v2814_v39, %v2815_v55  ;;  %v2851_v4 = vrot.slane %v2850_v57, 2  ;;  %v2863_v5 = vrot.slane %v2862_v58, 2 }
 0x322   :  { %v2799_v6 = vrot.slane %v2798_v60, 1  ;;  %v2811_v7 = vrot.slane %v2810_v62, 1  ;;  %v2846_v8 = vmax.f32 %v2844_v51, %v2845_v63  ;;  %v2858_v9 = vmax.f32 %v2856_v52, %v2857_v1 }
 0x323   :  { %v2805_v10 = vrot.slane %v2804_v2, 1  ;;  %v2817_v13 = vrot.slane %v2816_v3, 1  ;;  %v2852_v15 = vmax.f32 %v2850_v57, %v2851_v4  ;;  %v2864_v31 = vmax.f32 %v2862_v58, %v2863_v5 }
 0x324   :  { %v2800_v16 = vmax.f32 %v2798_v60, %v2799_v6  ;;  %v2812_v17 = vmax.f32 %v2810_v62, %v2811_v7  ;;  %v2847_v18 = vrot.slane %v2846_v8, 1  ;;  %v2859_v19 = vrot.slane %v2858_v9, 1 }
 0x325   :  { %v2806_v21 = vmax.f32 %v2804_v2, %v2805_v10  ;;  %v2818_v22 = vmax.f32 %v2816_v3, %v2817_v13  ;;  %v2853_v23 = vrot.slane %v2852_v15, 1  ;;  %v2865_v24 = vrot.slane %v2864_v31, 1 }
 0x326   :  { %v2848_v54 = vmax.f32 %v2846_v8, %v2847_v18  ;;  %v2860_v25 = vmax.f32 %v2858_v9, %v2859_v19  ;;  %v1149_v35 = vsub.s32 4, %v4089_v56  ;;  %v1157_v36 = vsub.s32 6, %v4089_v56 }
 0x327   :  { %v3558_v26 = vpack.c.bf16 %v2806_v21, %v2800_v16  ;;  %v3559_v27 = vpack.c.bf16 %v2818_v22, %v2812_v17  ;;  %v2854_v28 = vmax.f32 %v2852_v15, %v2853_v23  ;;  %v2866_v29 = vmax.f32 %v2864_v31, %v2865_v24 }
 0x328   :  { %v1153_v40 = vsub.s32 5, %v4089_v56  ;;  %v1161_v14 = vsub.s32 7, %v4089_v56  ;;  %v1150_v42 = vrot.slane %v4961_v20, %v1149_v35  ;;  %v1158_v45 = vrot.slane %v4961_v20, %v1157_v36 }
 0x329   :  { %v4977_v30 = vrot.slane %v3558_v26, %v4974_v61  ;;  %v4980_v32 = vrot.slane %v3559_v27, %v4974_v61  ;;  %v3562_v59 = vpack.c.bf16 %v2854_v28, %v2848_v54  ;;  %v3563_v12 = vpack.c.bf16 %v2866_v29, %v2860_v25 }
 0x32a   :  { %v1154_v46 = vrot.slane %v4961_v20, %v1153_v40  ;;  %v1162_v47 = vrot.slane %v4961_v20, %v1161_v14 }
 0x32b   :  { %v2955_v33 = vcombine.low %v4977_v30, %v4980_v32  ;;  %v4985_v34 = vrot.slane %v3562_v59, %v4974_v61  ;;  %v4988_v11 = vrot.slane %v3563_v12, %v4974_v61 }
 0x32d   :  { %v3004_v0 = vcombine.low %v4985_v34, %v4988_v11 }
 0x397   :  { %v2700_v48 = vpop.f32.mrb[8].mxu0 }
 0x398   :  { %v3576_v49 = vadd.f32 %v2700_v48, %v1150_v42  ;;  %v2786_v37 = vpop.f32.mrb[12].mxu1  ;;  %v2702_v38 = vpop.f32.mrb[9].mxu0 }
 0x399   :  { %v3580_v39 = vadd.f32 %v2786_v37, %v1158_v45  ;;  %v3577_v41 = vadd.f32 %v2702_v38, %v1154_v46  ;;  %v2788_v43 = vpop.f32.mrb[13].mxu1  ;;  %v2704_v44 = vpop.f32.mrb[10].mxu0  ;;  %v3759_v38 = vmov 1935823168  }
 0x39a   :  { %v2819_v50 = vrot.slane %v3576_v49, 4  ;;  %v3581_v51 = vadd.f32 %v2788_v43, %v1162_v47  ;;  %v3578_v52 = vadd.f32 %v2704_v44, %v1150_v42  ;;  %v2790_v53 = vpop.f32.mrb[14].mxu1  ;;  %v2706_v55 = vpop.f32.mrb[11].mxu0 }
 0x39b   :  { %v2831_v57 = vrot.slane %v3580_v39, 4  ;;  %v2825_v58 = vrot.slane %v3577_v41, 4  ;;  %v3582_v60 = vadd.f32 %v2790_v53, %v1158_v45  ;;  %v3579_v62 = vadd.f32 %v2706_v55, %v1154_v46  ;;  %v2792_v63 = vpop.f32.mrb[15].mxu1 }
 0x39c   :  { %v2820_v1 = vmax.f32 %v3576_v49, %v2819_v50  ;;  %v2837_v20 = vrot.slane %v3581_v51, 4  ;;  %v2867_v2 = vrot.slane %v3578_v52, 4  ;;  %v3583_v3 = vadd.f32 %v2792_v63, %v1162_v47 }
 0x39d   :  { %v2832_v4 = vmax.f32 %v3580_v39, %v2831_v57  ;;  %v2826_v5 = vmax.f32 %v3577_v41, %v2825_v58  ;;  %v2879_v6 = vrot.slane %v3582_v60, 4  ;;  %v2873_v7 = vrot.slane %v3579_v62, 4 }
 0x39e   :  { %v2821_v8 = vrot.slane %v2820_v1, 2  ;;  %v2838_v9 = vmax.f32 %v3581_v51, %v2837_v20  ;;  %v2868_v10 = vmax.f32 %v3578_v52, %v2867_v2  ;;  %v2885_v13 = vrot.slane %v3583_v3, 4 }
 0x39f   :  { %v2833_v15 = vrot.slane %v2832_v4, 2  ;;  %v2827_v31 = vrot.slane %v2826_v5, 2  ;;  %v2880_v16 = vmax.f32 %v3582_v60, %v2879_v6  ;;  %v2874_v17 = vmax.f32 %v3579_v62, %v2873_v7 }
 0x3a0   :  { %v2822_v18 = vmax.f32 %v2820_v1, %v2821_v8  ;;  %v2839_v19 = vrot.slane %v2838_v9, 2  ;;  %v2869_v21 = vrot.slane %v2868_v10, 2  ;;  %v2886_v22 = vmax.f32 %v3583_v3, %v2885_v13 }
 0x3a1   :  { %v2834_v23 = vmax.f32 %v2832_v4, %v2833_v15  ;;  %v2828_v24 = vmax.f32 %v2826_v5, %v2827_v31  ;;  %v2881_v54 = vrot.slane %v2880_v16, 2  ;;  %v2875_v25 = vrot.slane %v2874_v17, 2 }
 0x3a2   :  { %v2823_v26 = vrot.slane %v2822_v18, 1  ;;  %v2840_v27 = vmax.f32 %v2838_v9, %v2839_v19  ;;  %v2870_v28 = vmax.f32 %v2868_v10, %v2869_v21  ;;  %v2887_v29 = vrot.slane %v2886_v22, 2 }
 0x3a3   :  { %v2835_v59 = vrot.slane %v2834_v23, 1  ;;  %v2829_v12 = vrot.slane %v2828_v24, 1  ;;  %v2882_v35 = vmax.f32 %v2880_v16, %v2881_v54  ;;  %v2876_v36 = vmax.f32 %v2874_v17, %v2875_v25 }
 0x3a4   :  { %v2824_v40 = vmax.f32 %v2822_v18, %v2823_v26  ;;  %v2841_v14 = vrot.slane %v2840_v27, 1  ;;  %v2871_v42 = vrot.slane %v2870_v28, 1  ;;  %v2888_v45 = vmax.f32 %v2886_v22, %v2887_v29 }
 0x3a5   :  { %v2836_v46 = vmax.f32 %v2834_v23, %v2835_v59  ;;  %v2830_v47 = vmax.f32 %v2828_v24, %v2829_v12  ;;  %v2883_v48 = vrot.slane %v2882_v35, 1  ;;  %v2877_v49 = vrot.slane %v2876_v36, 1 }
 0x3a6   :  { %v2842_v37 = vmax.f32 %v2840_v27, %v2841_v14  ;;  %v3023_v39 = vunpack.c.l.s4 %v3759_v38  ;;  %v2872_v41 = vmax.f32 %v2870_v28, %v2871_v42  ;;  %v2889_v43 = vrot.slane %v2888_v45, 1 }
 0x3a7   :  { %v3560_v44 = vpack.c.bf16 %v2830_v47, %v2824_v40  ;;  %v2884_v50 = vmax.f32 %v2882_v35, %v2883_v48  ;;  %v2878_v51 = vmax.f32 %v2876_v36, %v2877_v49  ;;  %v2963_v2 = vrot.slane %v2955_v33, %v4974_v61 }
 0x3a8   :  { %v3561_v52 = vpack.c.bf16 %v2842_v37, %v2836_v46  ;;  %v2890_v53 = vmax.f32 %v2888_v45, %v2889_v43  ;;  %v3024_v60 = vunpack.c.0.s8 %v3023_v39  ;;  %v3012_v6 = vrot.slane %v3004_v0, %v4974_v61 }
 0x3a9   :  { %v2947_v55 = vrot.slane %v3560_v44, %v4974_v61  ;;  %v3564_v57 = vpack.c.bf16 %v2878_v51, %v2872_v41 }
 0x3aa   :  { %v2954_v58 = vrot.slane %v3561_v52, %v4974_v61  ;;  %v3565_v62 = vpack.c.bf16 %v2890_v53, %v2884_v50  ;;  %v3027_v4 = vsub.s32 %v3024_v60, %v4089_v56 }
 0x3ab   :  { %v2996_v63 = vrot.slane %v3564_v57, %v4974_v61 }
 0x3ac   :  { %v2956_v1 = vcombine.low %v2947_v55, %v2954_v58  ;;  %v3003_v20 = vrot.slane %v3565_v62, %v4974_v61 }
 0x3ae   :  { %v2970_v3 = vrot.slane %v2956_v1, %v4974_v61  ;;  %v3005_v5 = vcombine.low %v2996_v63, %v3003_v20 }
 0x3b0   :  { %v2971_v7 = vcombine.low %v2963_v2, %v2970_v3  ;;  %v3566_v8 = vcombine.low %v2970_v3, %v2970_v3  ;;  %v3019_v9 = vrot.slane %v3005_v5, %v4974_v61 }
 0x3b2   :  { %v3028_v10 = vrot.slane %v2971_v7, %v3027_v4  ;;  %v3035_v13 = vrot.slane %v3566_v8, %v3027_v4  ;;  %v3020_v15 = vcombine.low %v3012_v6, %v3019_v9  ;;  %v3567_v31 = vcombine.low %v3019_v9, %v3019_v9 }
 0x3b4   :  { %v3036_v30 = vcombine.high %v3028_v10, %v3028_v10  ;;  %v3037_v32 = vcombine.high %v3035_v13, %v3035_v13  ;;  %v3044_v33 = vrot.slane %v3028_v10, %v3027_v4  ;;  %v3058_v16 = vrot.slane %v3035_v13, %v3027_v4 }
 0x3b5   :  { %v3073_v17 = vrot.slane %v3020_v15, %v3027_v4  ;;  %v3080_v56 = vrot.slane %v3567_v31, %v3027_v4 }
 0x3b6   :  { %v3051_v18 = vrot.slane %v3036_v30, %v3027_v4  ;;  %v3065_v19 = vrot.slane %v3037_v32, %v3027_v4  ;;  %v3111_v34 = vunpack.c.l.b16 %v3044_v33  ;;  %v3112_v11 = vunpack.c.h.b16 %v3044_v33 }
 0x3b7   :  { %v3081_v21 = vcombine.high %v3073_v17, %v3073_v17  ;;  %v3082_v22 = vcombine.high %v3080_v56, %v3080_v56  ;;  %v3115_v0 = vunpack.c.l.b16 %v3058_v16  ;;  %v3116_v23 = vunpack.c.h.b16 %v3058_v16 }
 0x3b8   :  { %v3089_v24 = vrot.slane %v3073_v17, %v3027_v4  ;;  %v3103_v25 = vrot.slane %v3080_v56, %v3027_v4  ;;  %v3113_v27 = vunpack.c.l.b16 %v3051_v18  ;;  %v3114_v28 = vunpack.c.h.b16 %v3051_v18 }
 0x3b9   :  { %v3096_v54 = vrot.slane %v3081_v21, %v3027_v4  ;;  %v3110_v26 = vrot.slane %v3082_v22, %v3027_v4  ;;  %v3117_v29 = vunpack.c.l.b16 %v3065_v19  ;;  %v3118_v59 = vunpack.c.h.b16 %v3065_v19 }
 0x3ba   :  { %v3119_v12 = vunpack.c.l.b16 %v3089_v24  ;;  %v3120_v35 = vunpack.c.h.b16 %v3089_v24  ;;  %v3123_v14 = vunpack.c.l.b16 %v3103_v25  ;;  %v3124_v42 = vunpack.c.h.b16 %v3103_v25 }
 0x3bb   :  { %v3121_v36 = vunpack.c.l.b16 %v3096_v54  ;;  %v3122_v40 = vunpack.c.h.b16 %v3096_v54  ;;  %v3125_v45 = vunpack.c.l.b16 %v3110_v26  ;;  %v3126_v46 = vunpack.c.h.b16 %v3110_v26 }
 0x3bc   :  { %v3127_v47 = vrot.slane %v3119_v12, 7  ;;  %v3130_v48 = vrot.slane %v3120_v35, 7  ;;  %v3136_v38 = vrot.slane %v3123_v14, 7  ;;  %v3138_v39 = vrot.slane %v3124_v42, 7 }
 0x3bd   :  { %v3132_v49 = vrot.slane %v3121_v36, 7  ;;  %v3134_v37 = vrot.slane %v3122_v40, 7  ;;  %v3140_v41 = vrot.slane %v3125_v45, 7  ;;  %v3142_v43 = vrot.slane %v3126_v46, 7 }
 0x3be   :  { %v3129_v44 = vsel %vm3128_vm2, %v3127_v47, %v3111_v34  ;;  %v3131_v50 = vsel %vm3128_vm2, %v3130_v48, %v3112_v11  ;;  %v3137_v53 = vsel %vm3128_vm2, %v3136_v38, %v3115_v0  ;;  %v3139_v55 = vsel %vm3128_vm2, %v3138_v39, %v3116_v23 }
 0x3bf   :  { %v3133_v51 = vsel %vm3128_vm2, %v3132_v49, %v3113_v27  ;;  %v3135_v52 = vsel %vm3128_vm2, %v3134_v37, %v3114_v28  ;;  %v3141_v57 = vsel %vm3128_vm2, %v3140_v41, %v3117_v29  ;;  %v3143_v58 = vsel %vm3128_vm2, %v3142_v43, %v3118_v59 }
 0x3c0   :  { %v3144_v60 = vpack.c.b16 %v3131_v50, %v3129_v44  ;;  %v3145_v62 = vpack.c.b16 %v3135_v52, %v3133_v51  ;;  %v3146_v63 = vpack.c.b16 %v3139_v55, %v3137_v53  ;;  %v3147_v1 = vpack.c.b16 %v3143_v58, %v3141_v57 }
 0x3c2   :  { %v3154_v20 = vrot.slane %v3144_v60, %v4974_v61  ;;  %v3161_v2 = vrot.slane %v3145_v62, %v4974_v61  ;;  %v3168_v3 = vrot.slane %v3146_v63, %v4974_v61  ;;  %v3175_v4 = vrot.slane %v3147_v1, %v4974_v61 }
 0x3c4   :  { %v3176_v5 = vcombine.low %v3154_v20, %v3161_v2  ;;  %v3177_v6 = vcombine.low %v3168_v3, %v3175_v4 }
 0x3c6   :  { %v3184_v7 = vrot.slane %v3176_v5, %v4974_v61  ;;  %v3191_v8 = vrot.slane %v3177_v6, %v4974_v61 }
 0x3c8   :  { %v3192_v9 = vcombine.low %v3184_v7, %v3191_v8 }
 0x3ca   :  { %3194 = vst [vmem:[%s5041_s9] sm:$0xff] %v3192_v9 }

// kernel: pn2_forward.10
= control target key start
LH: loop header
LB: loop body
LE: loop exit
PB: predicated region body
PF: predicated region fallthrough
CT: control target
= control target key end

     0   :  { %s1246_s24 = smov 0   ;;  %s1478_s0 = inlined_call_operand.vmem [shape: bf16[32,256], index: 0, kind: input, shape index: {}]   ;;  %s1479_s1 = inlined_call_operand.vmem [shape: bf16[32,128], index: 1, kind: input, shape index: {}]   ;;  %s1480_s2 = inlined_call_operand.vmem [shape: bf16[256,256], index: 2, kind: input, shape index: {}]   ;;  %s1481_s3 = inlined_call_operand.vmem [shape: bf16[128,256], index: 3, kind: input, shape index: {}]   ;;  %s1482_s4 = inlined_call_operand.vmem [shape: f32[1,256], index: 4, kind: input, shape index: {}]   ;;  %s1483_s5 = inlined_call_operand.vmem [shape: bf16[256,128], index: 5, kind: input, shape index: {}]   ;;  %s1484_s6 = inlined_call_operand.vmem [shape: f32[1,128], index: 6, kind: input, shape index: {}]   ;;  %s1485_s7 = inlined_call_operand.vmem [shape: bf16[32,128], index: 7, kind: output, shape index: {}]  }
   0x1 LB: > { %s978_s25 = sadd.s32 4294967295, %s1203_s24   ;;  %p982_p0 = scmp.ge.s32.totalorder %s1203_s24, 1  ;;  %s1203_s24 = sphi %s1246_s24, %s17_s24  }
   0x2   : > { %p250_p1 = scmp.lt.s32.totalorder %s1203_s24, 3 }
   0x4   : > { %p251_p2 = pnand %p982_p0, %p250_p1 }
   0x5   : > { %v1105_v0 = vld [vmem:[%s1480_s2 + $0x4] ss:$8 sps:$4 sm:$0xff] (!%p251_p2)   ;;  %v1107_v1 = vld [vmem:[%s1480_s2] ss:$8 sps:$4 sm:$0xff] (!%p251_p2)   ;;  %v1205_v2 = vmov (!%p251_p2), 0   ;;  %s983_s14 = sshll.u32 (!%p251_p2), %s978_s25, 1 }
   0x6   : > { %254 = sbr.rel (%p251_p2) target bundleno = 516 (0x204), region = 48  ;;  %478 = vmatprep.mubr.bf16.mxu1 (!%p251_p2), %v1205_v2  ;;  %659 = vmatprep.subr.bf16.mxu0 (!%p251_p2), %v1105_v0  ;;  %v1108_v3 = vld [vmem:[%s1480_s2 + $0x14] ss:$8 sps:$4 sm:$0xff] (!%p251_p2)   ;;  %v1110_v4 = vld [vmem:[%s1480_s2 + $0x10] ss:$8 sps:$4 sm:$0xff] (!%p251_p2)   ;;  %p289_p3 = scmp.lt.s32.totalorder (!%p251_p2), %s983_s14, 3 }
   0x7   : > { %660 = vmatpush1.bf16.msra.mxu0 (!%p251_p2), %v1107_v1  ;;  %v1111_v5 = vld [vmem:[%s1480_s2 + $0x24] ss:$8 sps:$4 sm:$0xff] (!%p251_p2)   ;;  %v1113_v6 = vld [vmem:[%s1480_s2 + $0x20] ss:$8 sps:$4 sm:$0xff] (!%p251_p2)   ;;  %v1114_v7 = vld [vmem:[%s1480_s2 + $0x34] ss:$8 sps:$4 sm:$0xff] (!%p251_p2)  }
   0x8   : > { %661 = vmatprep.subr.bf16.mxu0 (!%p251_p2), %v1108_v3  ;;  %v1116_v8 = vld [vmem:[%s1480_s2 + $0x30] ss:$8 sps:$4 sm:$0xff] (!%p251_p2)   ;;  %v1128_v9 = vld [vmem:[%s1481_s3 + $0x4] ss:$8 sps:$4 sm:$0xff] (!%p251_p2)   ;;  %v1131_v10 = vld [vmem:[%s1481_s3] ss:$8 sps:$4 sm:$0xff] (!%p251_p2)  }
   0x9   : > { %v1117_v11 = vld [vmem:[%s1480_s2 + $0x44] ss:$8 sps:$4 sm:$0xff] (!%p251_p2)   ;;  %446 = vmatprep.subr.bf16.mxu1 (!%p251_p2), %v1128_v9  ;;  %v1134_v12 = vld [vmem:[%s1481_s3 + $0x14] ss:$8 sps:$4 sm:$0xff] (!%p251_p2)   ;;  %v1137_v13 = vld [vmem:[%s1481_s3 + $0x10] ss:$8 sps:$4 sm:$0xff] (!%p251_p2)  }
   0xa   : > { %447 = vmatpush1.bf16.msra.mxu1 (!%p251_p2), %v1131_v10  ;;  %v1119_v14 = vld [vmem:[%s1480_s2 + $0x40] ss:$8 sps:$4 sm:$0xff] (!%p251_p2)   ;;  %v1120_v15 = vld [vmem:[%s1480_s2 + $0x54] ss:$8 sps:$4 sm:$0xff] (!%p251_p2)   ;;  %v1140_v16 = vld [vmem:[%s1481_s3 + $0x24] ss:$8 sps:$4 sm:$0xff] (!%p251_p2)  }
   0xb   : > { %662 = vmatpush1.bf16.msra.mxu0 (!%p251_p2), %v1110_v4  ;;  %448 = vmatprep.subr.bf16.mxu1 (!%p251_p2), %v1134_v12  ;;  %v1143_v17 = vld [vmem:[%s1481_s3 + $0x20] ss:$8 sps:$4 sm:$0xff] (!%p251_p2)   ;;  %v1122_v18 = vld [vmem:[%s1480_s2 + $0x50] ss:$8 sps:$4 sm:$0xff] (!%p251_p2)   ;;  %v1146_v19 = vld [vmem:[%s1481_s3 + $0x34] ss:$8 sps:$4 sm:$0xff] (!%p251_p2)  }
   0xc   : > { %663 = vmatprep.subr.bf16.mxu0 (!%p251_p2), %v1111_v5  ;;  %v1123_v20 = vld [vmem:[%s1480_s2 + $0x64] ss:$8 sps:$4 sm:$0xff] (!%p251_p2)   ;;  %v1125_v21 = vld [vmem:[%s1480_s2 + $0x60] ss:$8 sps:$4 sm:$0xff] (!%p251_p2)   ;;  %v1149_v22 = vld [vmem:[%s1481_s3 + $0x30] ss:$8 sps:$4 sm:$0xff] (!%p251_p2)  }
   0xd   : > { %v1152_v23 = vld [vmem:[%s1481_s3 + $0x44] ss:$8 sps:$4 sm:$0xff]   ;;  %s1487_s14 = smov (!%p289_p3, %s983_s14), 3  ;;  %v1126_v24 = vld [vmem:[%s1480_s2 + $0x74] ss:$8 sps:$4 sm:$0xff]  }
   0xe   : > { %449 = vmatpush1.bf16.msra.mxu1 %v1137_v13  ;;  %v1155_v25 = vld [vmem:[%s1481_s3 + $0x40] ss:$8 sps:$4 sm:$0xff]   ;;  %v1130_v26 = vld [vmem:[%s1480_s2 + $0x70] ss:$8 sps:$4 sm:$0xff]   ;;  %v1158_v27 = vld [vmem:[%s1481_s3 + $0x54] ss:$8 sps:$4 sm:$0xff]  }
   0xf   : > { %664 = vmatpush1.bf16.msra.mxu0 %v1113_v6  ;;  %450 = vmatprep.subr.bf16.mxu1 %v1140_v16  ;;  %s987_s16 = sshll.u32 %s1487_s14, 2  ;;  %v1132_v28 = vld [vmem:[%s1480_s2 + $0x84] ss:$8 sps:$4 sm:$0xff]   ;;  %s1062_s19 = sshll.u32 %s1487_s14, 3  ;;  %v1136_v29 = vld [vmem:[%s1480_s2 + $0x80] ss:$8 sps:$4 sm:$0xff]  }
  0x10   : > { %665 = vmatprep.subr.bf16.mxu0 %v1114_v7  ;;  %v1161_v30 = vld [vmem:[%s1481_s3 + $0x50] ss:$8 sps:$4 sm:$0xff]   ;;  %s299_s27 = scalar_lea.vmem %s1479_s1, %s987_s16  ;;  %v1164_v31 = vld [vmem:[%s1481_s3 + $0x64] ss:$8 sps:$4 sm:$0xff]   ;;  %s1361_s9 = scalar_lea.vmem %s1478_s0, %s1062_s19  ;;  %v1138_v32 = vld [vmem:[%s1480_s2 + $0x94] ss:$8 sps:$4 sm:$0xff]  }
  0x11   : > { %v1142_v33 = vld [vmem:[%s1480_s2 + $0x90] ss:$8 sps:$4 sm:$0xff]   ;;  %v1167_v34 = vld [vmem:[%s1481_s3 + $0x60] ss:$8 sps:$4 sm:$0xff]   ;;  %v1180_v35 = vld [vmem:[%s1361_s9 + $0x4] ss:$8 sps:$4 sm:$0xff]   ;;  %s305_s28 = scalar_lea.vmem %s1485_s7, %s987_s16 }
  0x12   : > { %451 = vmatpush1.bf16.msra.mxu1 %v1143_v17  ;;  %v1170_v36 = vld [vmem:[%s1481_s3 + $0x74] ss:$8 sps:$4 sm:$0xff]   ;;  %v1144_v37 = vld [vmem:[%s1480_s2 + $0xa4] ss:$8 sps:$4 sm:$0xff]   ;;  %691 = vmatprep.mubr.bf16.mxu0 %v1180_v35  ;;  %v1148_v38 = vld [vmem:[%s1480_s2 + $0xa0] ss:$8 sps:$4 sm:$0xff]  }
  0x13   : > { %666 = vmatpush1.bf16.msra.mxu0 %v1116_v8  ;;  %452 = vmatprep.subr.bf16.mxu1 %v1146_v19  ;;  %v1150_v39 = vld [vmem:[%s1480_s2 + $0xb4] ss:$8 sps:$4 sm:$0xff]   ;;  %v1173_v40 = vld [vmem:[%s1481_s3 + $0x70] ss:$8 sps:$4 sm:$0xff]   ;;  %v1181_v41 = vld [vmem:[%s1483_s5 + $0x40] sm:$0xff]   ;;  %v704_v8 = vlaneseq }
  0x14   : > { %667 = vmatprep.subr.bf16.mxu0 %v1117_v11  ;;  %v1176_v42 = vld [vmem:[%s299_s27] sm:$0xff]   ;;  %v1154_v43 = vld [vmem:[%s1480_s2 + $0xb0] ss:$8 sps:$4 sm:$0xff]   ;;  %v1183_v46 = vld [vmem:[%s1483_s5 + $0x48] sm:$0xff]  }
  0x15   : > { %v1182_v44 = vld [vmem:[%s1483_s5] sm:$0xff]   ;;  %v1184_v47 = vld [vmem:[%s1483_s5 + $0x8] sm:$0xff]   ;;  %v1185_v49 = vld [vmem:[%s1483_s5 + $0x50] sm:$0xff]   ;;  %v705_v9 = vshrl.u32 %v704_v8, 7 }
  0x16   : > { %453 = vmatpush1.bf16.msra.mxu1 %v1149_v22  ;;  %v1156_v45 = vld [vmem:[%s1480_s2 + $0xc4] ss:$8 sps:$4 sm:$0xff]   ;;  %v1160_v48 = vld [vmem:[%s1480_s2 + $0xc0] ss:$8 sps:$4 sm:$0xff]   ;;  %v1162_v50 = vld [vmem:[%s1480_s2 + $0xd4] ss:$8 sps:$4 sm:$0xff]  }
  0x17   : > { %668 = vmatpush1.bf16.msra.mxu0 %v1119_v14  ;;  %454 = vmatprep.subr.bf16.mxu1 %v1152_v23  ;;  %v1186_v51 = vld [vmem:[%s1483_s5 + $0x10] sm:$0xff]   ;;  %v1187_v53 = vld [vmem:[%s1483_s5 + $0x58] sm:$0xff]   ;;  %v1168_v54 = vld [vmem:[%s1480_s2 + $0xe4] ss:$8 sps:$4 sm:$0xff]   ;;  %v706_v10 = vsub.s32 0, %v705_v9  ;;  %v710_v12 = vsub.s32 1, %v705_v9 }
  0x18   : > { %669 = vmatprep.subr.bf16.mxu0 %v1120_v15  ;;  %v1166_v52 = vld [vmem:[%s1480_s2 + $0xd0] ss:$8 sps:$4 sm:$0xff]   ;;  %v1172_v56 = vld [vmem:[%s1480_s2 + $0xe0] ss:$8 sps:$4 sm:$0xff]   ;;  %v1174_v57 = vld [vmem:[%s1480_s2 + $0xf4] ss:$8 sps:$4 sm:$0xff]  }
  0x19   : > { %v1188_v55 = vld [vmem:[%s1483_s5 + $0x18] sm:$0xff]   ;;  %v1178_v59 = vld [vmem:[%s1361_s9] ss:$8 sps:$4 sm:$0xff]   ;;  %v1193_v0 = vld [vmem:[%s1483_s5 + $0x70] sm:$0xff]  }
  0x1a   : > { %455 = vmatpush1.bf16.msra.mxu1 %v1155_v25  ;;  %v1177_v58 = vld [vmem:[%s1480_s2 + $0xf0] ss:$8 sps:$4 sm:$0xff]   ;;  %v1189_v60 = vld [vmem:[%s1483_s5 + $0x60] sm:$0xff]   ;;  %v1191_v62 = vld [vmem:[%s1483_s5 + $0x68] sm:$0xff]  }
  0x1b   : > { %670 = vmatpush1.bf16.msra.mxu0 %v1122_v18  ;;  %456 = vmatprep.subr.bf16.mxu1 %v1158_v27  ;;  %v1190_v61 = vld [vmem:[%s1483_s5 + $0x20] sm:$0xff]   ;;  %v1192_v63 = vld [vmem:[%s1483_s5 + $0x28] sm:$0xff]   ;;  %v1194_v1 = vld [vmem:[%s1483_s5 + $0x30] sm:$0xff]  }
  0x1c   : > { %671 = vmatprep.subr.bf16.mxu0 %v1123_v20  ;;  %v1195_v2 = vld [vmem:[%s1483_s5 + $0x78] sm:$0xff]   ;;  %v702_v11 = vld [vmem:[%s1482_s4] sm:$0x3] }
  0x1d   : > { %v1196_v3 = vld [vmem:[%s1483_s5 + $0x38] sm:$0xff]   ;;  %v707_v13 = vrot.slane %v702_v11, %v706_v10  ;;  %v711_v15 = vrot.slane %v702_v11, %v710_v12 }
  0x1e   : > { %457 = vmatpush1.bf16.msra.mxu1 %v1161_v30 }
  0x1f   : > { %672 = vmatpush1.bf16.msra.mxu0 %v1125_v21  ;;  %458 = vmatprep.subr.bf16.mxu1 %v1164_v31 }
  0x20   : > { %673 = vmatprep.subr.bf16.mxu0 %v1126_v24 }
  0x22   : > { %459 = vmatpush1.bf16.msra.mxu1 %v1167_v34 }
  0x23   : > { %674 = vmatpush1.bf16.msra.mxu0 %v1130_v26  ;;  %460 = vmatprep.subr.bf16.mxu1 %v1170_v36 }
  0x24   : > { %675 = vmatprep.subr.bf16.mxu0 %v1132_v28 }
  0x26   : > { %461 = vmatpush1.bf16.msra.mxu1 %v1173_v40 }
  0x27   : > { %676 = vmatpush1.bf16.msra.mxu0 %v1136_v29  ;;  %1070 = vmatprep.subr.bf16.mxu1 %v1181_v41 }
  0x28   : > { %677 = vmatprep.subr.bf16.mxu0 %v1138_v32 }
  0x29   : > { %479 = vmatmul.mubr.bf16.vlgmr.msra.gmra.mrb[0].mxu1 %v1176_v42 }
  0x2a   : > { %1071 = vmatpush3.bf16.msra.mxu1 %v1182_v44 }
  0x2b   : > { %678 = vmatpush1.bf16.msra.mxu0 %v1142_v33  ;;  %1072 = vmatprep.subr.bf16.mxu1 %v1183_v46 }
  0x2c   : > { %679 = vmatprep.subr.bf16.mxu0 %v1144_v37  ;;  %v1041_v37 = vld [vmem:[%s1484_s6] ss:$0 sm:$0xff] }
  0x2e   : > { %1073 = vmatpush3.bf16.msra.mxu1 %v1184_v47 }
  0x2f   : > { %680 = vmatpush1.bf16.msra.mxu0 %v1148_v38  ;;  %1074 = vmatprep.subr.bf16.mxu1 %v1185_v49 }
  0x30   : > { %681 = vmatprep.subr.bf16.mxu0 %v1150_v39 }
  0x32   : > { %1075 = vmatpush3.bf16.msra.mxu1 %v1186_v51 }
  0x33   : > { %682 = vmatpush1.bf16.msra.mxu0 %v1154_v43  ;;  %1076 = vmatprep.subr.bf16.mxu1 %v1187_v53 }
  0x34   : > { %683 = vmatprep.subr.bf16.mxu0 %v1156_v45 }
  0x36   : > { %1077 = vmatpush3.bf16.msra.mxu1 %v1188_v55 }
  0x37   : > { %684 = vmatpush1.bf16.msra.mxu0 %v1160_v48  ;;  %1078 = vmatprep.subr.bf16.mxu1 %v1189_v60 }
  0x38   : > { %685 = vmatprep.subr.bf16.mxu0 %v1162_v50 }
  0x3a   : > { %1079 = vmatpush3.bf16.msra.mxu1 %v1190_v61 }
  0x3b   : > { %686 = vmatpush1.bf16.msra.mxu0 %v1166_v52  ;;  %1080 = vmatprep.subr.bf16.mxu1 %v1191_v62 }
  0x3c   : > { %687 = vmatprep.subr.bf16.mxu0 %v1168_v54 }
  0x3e   : > { %1081 = vmatpush3.bf16.msra.mxu1 %v1192_v63 }
  0x3f   : > { %688 = vmatpush1.bf16.msra.mxu0 %v1172_v56  ;;  %1082 = vmatprep.subr.bf16.mxu1 %v1193_v0 }
  0x40   : > { %689 = vmatprep.subr.bf16.mxu0 %v1174_v57 }
  0x42   : > { %1083 = vmatpush3.bf16.msra.mxu1 %v1194_v1 }
  0x43   : > { %690 = vmatpush1.bf16.msra.mxu0 %v1177_v58  ;;  %1084 = vmatprep.subr.bf16.mxu1 %v1195_v2 }
  0x46   : > { %692 = vmatmul.mubr.bf16.vlgmr.msra.gmra.mrb[0].mxu0 %v1178_v59  ;;  %1085 = vmatpush3.bf16.msra.mxu1 %v1196_v3 }
  0xfc   : > { %v480_v4 = vpop.f32.mrb[0].mxu1 }
  0xfd   : > { %v482_v5 = vpop.f32.mrb[1].mxu1 }
  0xfe   : > { %v484_v6 = vpop.f32.mrb[2].mxu1 }
  0xff   : > { %v486_v7 = vpop.f32.mrb[3].mxu1 }
 0x119   : > { %v693_v14 = vpop.f32.mrb[0].mxu0 }
 0x11a   : > { %v694_v16 = vadd.f32 %v693_v14, %v480_v4  ;;  %v695_v17 = vpop.f32.mrb[1].mxu0 }
 0x11b   : > { %v696_v18 = vadd.f32 %v695_v17, %v482_v5  ;;  %v697_v19 = vpop.f32.mrb[2].mxu0 }
 0x11c   : > { %v714_v20 = vadd.f32 %v707_v13, %v694_v16  ;;  %v698_v21 = vadd.f32 %v697_v19, %v484_v6  ;;  %v699_v22 = vpop.f32.mrb[3].mxu0 }
 0x11d   : > { %v715_v23 = vadd.f32 %v711_v15, %v696_v18  ;;  %v700_v24 = vadd.f32 %v699_v22, %v486_v7 }
 0x11e   : > { %v716_v25 = vadd.f32 %v707_v13, %v698_v21  ;;  %v718_v27 = vmax.f32 %v714_v20, 0.0 }
 0x11f   : > { %v717_v26 = vadd.f32 %v711_v15, %v700_v24  ;;  %v719_v29 = vmax.f32 %v715_v23, 0.0 }
 0x120   : > { %v720_v28 = vmax.f32 %v716_v25, 0.0 }
 0x121   : > { %v721_v30 = vmax.f32 %v717_v26, 0.0 }
 0x122   : > { %v722_v31 = vpack.c.bf16 %v720_v28, %v718_v27 }
 0x123   : > { %v723_v32 = vpack.c.bf16 %v721_v30, %v719_v29 }
 0x125   : > { %891 = vmatprep.mubr.bf16.mxu1 %v723_v32 }
 0x126   : > { %892 = vmatmul.mubr.bf16.vlgmr.msra.gmra.mrb[4].mxu1 %v722_v31 }
 0x1f9   : > { %v1086_v33 = vpop.f32.mrb[4].mxu1 }
 0x1fa   : > { %v1087_v34 = vpop.f32.mrb[5].mxu1 }
 0x1fb   : > { %v1088_v35 = vadd.f32 %v1087_v34, %v1086_v33  ;;  %v1089_v36 = vpop.f32.mrb[6].mxu1 }
 0x1fc   : > { %v1090_v38 = vpop.f32.mrb[7].mxu1 }
 0x1fd   : > { %v1091_v39 = vadd.f32 %v1090_v38, %v1089_v36  ;;  %v894_v40 = vadd.f32 %v1088_v35, %v1041_v37 }
 0x1ff   : > { %v897_v41 = vadd.f32 %v1091_v39, %v1041_v37 }
 0x201   : > { %v1068_v42 = vpack.c.bf16 %v897_v41, %v894_v40 }
 0x203   : > { %1069 = vst [vmem:[%s305_s28] sm:$0xff] %v1068_v42  }
 0x204 PF: > { %s17_s24 = sadd.s32 1, %s1203_s24  }
 0x205   : > { %p14_p4 = scmp.ge.s32.totalorder %s17_s24, 4  }
 0x207   :  { %16 = sbr.rel (!%p14_p4) target bundleno = 1 (0x1), region = 81 }

// kernel: pn2_forward.11
= control target key start
LH: loop header
LB: loop body
LE: loop exit
PB: predicated region body
PF: predicated region fallthrough
CT: control target
= control target key end

     0   :  { %s1977_s25 = smov 0   ;;  %s2222_s0 = inlined_call_operand.vmem [shape: bf16[128,136], index: 0, kind: input, shape index: {}]   ;;  %s2223_s1 = inlined_call_operand.vmem [shape: bf16[136,128], index: 1, kind: input, shape index: {}]   ;;  %s2224_s2 = inlined_call_operand.vmem [shape: f32[1,128], index: 2, kind: input, shape index: {}]   ;;  %s2225_s3 = inlined_call_operand.vmem [shape: bf16[128,128], index: 3, kind: input, shape index: {}]   ;;  %s2226_s4 = inlined_call_operand.vmem [shape: f32[1,128], index: 4, kind: input, shape index: {}]   ;;  %s2227_s5 = inlined_call_operand.vmem [shape: bf16[128,128], index: 5, kind: input, shape index: {}]   ;;  %s2228_s6 = inlined_call_operand.vmem [shape: f32[1,128], index: 6, kind: input, shape index: {}]   ;;  %s2229_s7 = inlined_call_operand.vmem [shape: bf16[128,128], index: 7, kind: input, shape index: {}]   ;;  %s2230_s8 = inlined_call_operand.vmem [shape: f32[1,128], index: 8, kind: input, shape index: {}]   ;;  %s2231_s9 = inlined_call_operand.vmem [shape: bf16[128,128], index: 9, kind: input, shape index: {}]   ;;  %s2232_s10 = inlined_call_operand.vmem [shape: f32[1,128], index: 10, kind: input, shape index: {}]   ;;  %s2233_s11 = inlined_call_operand.vmem [shape: bf16[128,128], index: 11, kind: input, shape index: {}]   ;;  %s2234_s12 = inlined_call_operand.vmem [shape: f32[1,128], index: 12, kind: input, shape index: {}]   ;;  %s2235_s13 = inlined_call_operand.vmem [shape: f32[128,128], index: 13, kind: output, shape index: {}]  }
   0x1 LB: > { %s1536_s26 = sadd.s32 4294967295, %s1904_s25   ;;  %p1540_p0 = scmp.ge.s32.totalorder %s1904_s25, 1  ;;  %s1904_s25 = sphi %s1977_s25, %s23_s25  }
   0x2   : > { %p389_p1 = scmp.lt.s32.totalorder %s1904_s25, 3 }
   0x4   : > { %p390_p2 = pnand %p1540_p0, %p389_p1 }
   0x5   : > { %v1805_v0 = vld [vmem:[%s2223_s1] sm:$0xff] (!%p390_p2)   ;;  %v1906_v1 = vmov (!%p390_p2), 0   ;;  %v1806_v2 = vld [vmem:[%s2223_s1 + $0x8] sm:$0xff] (!%p390_p2)   ;;  %s1541_s14 = sshll.u32 (!%p390_p2), %s1536_s26, 3  ;;  %v1807_v3 = vld [vmem:[%s2223_s1 + $0x10] sm:$0xff] (!%p390_p2)   ;;  %vm567_vm0 = vcmask (!%p390_p2), 64512  }
   0x6   : > { %393 = sbr.rel (%p390_p2) target bundleno = 1709 (0x6ad), region = 72  ;;  %584 = vmatprep.subr.bf16.mxu0 (!%p390_p2), %v1906_v1  ;;  %p435_p3 = scmp.lt.s32.totalorder (!%p390_p2), %s1541_s14, 15  ;;  %v1808_v4 = vld [vmem:[%s2223_s1 + $0x18] sm:$0xff] (!%p390_p2)   ;;  %v1809_v6 = vld [vmem:[%s2223_s1 + $0x20] sm:$0xff] (!%p390_p2)   ;;  %vm580_vm1 = vcmask (!%p390_p2), 1043456   ;;  %v1827_v9 = vld [vmem:[%s2225_s3 + $0x8] sm:$0xff] (!%p390_p2)  }
   0x7   : > { %585 = vmatpush1.bf16.msra.mxu0 (!%p390_p2), %v1805_v0  ;;  %v1813_v7 = vld [vmem:[%s2223_s1 + $0x40] ss:$0 sps:$4 sm:$0xff] (!%p390_p2)   ;;  %v1810_v10 = vld [vmem:[%s2223_s1 + $0x28] sm:$0xff] (!%p390_p2)   ;;  %v1828_v12 = vld [vmem:[%s2225_s3 + $0x10] sm:$0xff] (!%p390_p2)  }
   0x8   : > { %586 = vmatprep.subr.bf16.mxu0 (!%p390_p2), %v1906_v1  ;;  %v1826_v8 = vld [vmem:[%s2225_s3] sm:$0xff] (!%p390_p2)   ;;  %v582_v11 = vsel (!%p390_p2), %vm580_vm1, %v1813_v7, 0  ;;  %v1811_v13 = vld [vmem:[%s2223_s1 + $0x30] sm:$0xff] (!%p390_p2)   ;;  %v1829_v14 = vld [vmem:[%s2225_s3 + $0x18] sm:$0xff] (!%p390_p2)  }
   0x9   : > { %1676 = vmatprep.subr.bf16.mxu1 (!%p390_p2), %v1826_v8  ;;  %v1812_v15 = vld [vmem:[%s2223_s1 + $0x38] sm:$0xff] (!%p390_p2)   ;;  %v1830_v23 = vld [vmem:[%s2225_s3 + $0x20] sm:$0xff] (!%p390_p2)   ;;  %v1831_v24 = vld [vmem:[%s2225_s3 + $0x28] sm:$0xff] (!%p390_p2)  }
   0xa   : > { %1677 = vmatpush3.bf16.msra.mxu1 (!%p390_p2), %v1826_v8  ;;  %v1832_v25 = vld [vmem:[%s2225_s3 + $0x30] sm:$0xff] (!%p390_p2)   ;;  %v1833_v26 = vld [vmem:[%s2225_s3 + $0x38] sm:$0xff] (!%p390_p2)   ;;  %v1834_v27 = vld [vmem:[%s2227_s5] sm:$0xff] (!%p390_p2)  }
   0xb   : > { %587 = vmatpush1.bf16.msra.mxu0 (!%p390_p2), %v1806_v2  ;;  %1678 = vmatprep.subr.bf16.mxu1 (!%p390_p2), %v1827_v9  ;;  %v1546_v28 = vld [vmem:[%s2224_s2] ss:$0 sm:$0xff] (!%p390_p2)  ;;  %v1835_v47 = vld [vmem:[%s2227_s5 + $0x8] sm:$0xff] (!%p390_p2)   ;;  %v1836_v54 = vld [vmem:[%s2227_s5 + $0x10] sm:$0xff] (!%p390_p2)  }
   0xc   : > { %588 = vmatprep.subr.bf16.mxu0 (!%p390_p2), %v1906_v1  ;;  %v1837_v58 = vld [vmem:[%s2227_s5 + $0x18] sm:$0xff] (!%p390_p2)   ;;  %v1842_v8 = vld [vmem:[%s2229_s7] sm:$0xff] (!%p390_p2)  }
   0xd   : > { %s2237_s14 = smov (!%p435_p3, %s1541_s14), 15  ;;  %v1841_v7 = vld [vmem:[%s2227_s5 + $0x38] sm:$0xff]  }
   0xe   : > { %s1615_s17 = sshll.u32 %s2237_s14, 3  ;;  %1679 = vmatpush3.bf16.msra.mxu1 %v1827_v9  ;;  %v1843_v9 = vld [vmem:[%s2229_s7 + $0x8] sm:$0xff]  }
   0xf   : > { %s2002_s20 = scalar_lea.vmem %s2222_s0, %s1615_s17  ;;  %589 = vmatpush1.bf16.msra.mxu0 %v1807_v3  ;;  %1680 = vmatprep.subr.bf16.mxu1 %v1828_v12  ;;  %s2203_s15 = scalar_lea.vmem %s2235_s13, %s1615_s17 }
  0x10   : > { %v1816_v5 = vld [vmem:[%s2002_s20 + $0x4] ss:$8 sps:$4 sm:$0xff]   ;;  %590 = vmatprep.subr.bf16.mxu0 %v1906_v1  ;;  %v1814_v16 = vld [vmem:[%s2002_s20] ss:$8 sps:$4 sm:$0xff]   ;;  %v1817_v17 = vld [vmem:[%s2002_s20 + $0x14] ss:$8 sps:$4 sm:$0xff]  }
  0x11   : > { %1564 = vmatprep.mubr.msk.bf16.mxu0 %vm567_vm0, %v1816_v5  ;;  %v1819_v18 = vld [vmem:[%s2002_s20 + $0x10] ss:$8 sps:$4 sm:$0xff]   ;;  %v1820_v19 = vld [vmem:[%s2002_s20 + $0x24] ss:$8 sps:$4 sm:$0xff]   ;;  %v1822_v20 = vld [vmem:[%s2002_s20 + $0x20] ss:$8 sps:$4 sm:$0xff]  }
  0x12   : > { %1681 = vmatpush3.bf16.msra.mxu1 %v1828_v12  ;;  %v1823_v21 = vld [vmem:[%s2002_s20 + $0x34] ss:$8 sps:$4 sm:$0xff]   ;;  %v1825_v22 = vld [vmem:[%s2002_s20 + $0x30] ss:$8 sps:$4 sm:$0xff]   ;;  %v1839_v5 = vld [vmem:[%s2227_s5 + $0x28] sm:$0xff]  }
  0x13   : > { %591 = vmatpush1.bf16.msra.mxu0 %v1808_v4  ;;  %1682 = vmatprep.subr.bf16.mxu1 %v1829_v14  ;;  %v1846_v12 = vld [vmem:[%s2229_s7 + $0x20] sm:$0xff]  }
  0x14   : > { %592 = vmatprep.subr.bf16.mxu0 %v1906_v1 }
  0x16   : > { %1683 = vmatpush3.bf16.msra.mxu1 %v1829_v14  ;;  %v1568_v14 = vld [vmem:[%s2226_s4] ss:$0 sm:$0xff] }
  0x17   : > { %593 = vmatpush1.bf16.msra.mxu0 %v1809_v6  ;;  %1684 = vmatprep.subr.bf16.mxu1 %v1830_v23  ;;  %v1840_v6 = vld [vmem:[%s2227_s5 + $0x30] sm:$0xff]  }
  0x18   : > { %594 = vmatprep.subr.bf16.mxu0 %v1906_v1 }
  0x1a   : > { %1685 = vmatpush3.bf16.msra.mxu1 %v1830_v23 }
  0x1b   : > { %595 = vmatpush1.bf16.msra.mxu0 %v1810_v10  ;;  %1686 = vmatprep.subr.bf16.mxu1 %v1831_v24  ;;  %v1844_v10 = vld [vmem:[%s2229_s7 + $0x10] sm:$0xff]  }
  0x1c   : > { %596 = vmatprep.subr.bf16.mxu0 %v1906_v1 }
  0x1e   : > { %1687 = vmatpush3.bf16.msra.mxu1 %v1831_v24 }
  0x1f   : > { %597 = vmatpush1.bf16.msra.mxu0 %v1811_v13  ;;  %1688 = vmatprep.subr.bf16.mxu1 %v1832_v25  ;;  %v1847_v13 = vld [vmem:[%s2229_s7 + $0x28] sm:$0xff]  }
  0x20   : > { %598 = vmatprep.subr.bf16.mxu0 %v1906_v1 }
  0x22   : > { %1689 = vmatpush3.bf16.msra.mxu1 %v1832_v25 }
  0x23   : > { %599 = vmatpush1.bf16.msra.mxu0 %v1812_v15  ;;  %1690 = vmatprep.subr.bf16.mxu1 %v1833_v26 }
  0x24   : > { %600 = vmatprep.subr.bf16.mxu0 %v1906_v1  ;;  %v1838_v1 = vld [vmem:[%s2227_s5 + $0x20] sm:$0xff]  }
  0x26   : > { %1691 = vmatpush3.bf16.msra.mxu1 %v1833_v26 }
  0x27   : > { %601 = vmatpush1.bf16.msra.mxu0 %v582_v11  ;;  %1700 = vmatprep.subr.bf16.mxu1 %v1834_v27  ;;  %v1845_v11 = vld [vmem:[%s2229_s7 + $0x18] sm:$0xff]  }
  0x28   : > { %1724 = vmatprep.subr.bf16.mxu0 %v1842_v8 }
  0x2a   : > { %617 = vmatmul.mubr.bf16.vlgmr.msra.gmra.mrb[0].mxu0 %v1814_v16 }
  0x2b   : > { %1565 = vmatprep.mubr.msk.bf16.mxu0 %vm567_vm0, %v1817_v17  ;;  %1725 = vmatpush3.bf16.msra.mxu0 %v1842_v8  ;;  %v1856_v8 = vld [vmem:[%s2231_s9 + $0x30] sm:$0xff]  }
  0x2c   : > { %1726 = vmatprep.subr.bf16.mxu0 %v1843_v9 }
  0x2f   : > { %1727 = vmatpush3.bf16.msra.mxu0 %v1843_v9  ;;  %v1857_v9 = vld [vmem:[%s2231_s9 + $0x38] sm:$0xff]  }
  0x30   : > { %1728 = vmatprep.subr.bf16.mxu0 %v1844_v10 }
  0x32   : > { %625 = vmatmul.mubr.bf16.gmra.mrb[4].mxu0 %v1819_v18 }
  0x33   : > { %1566 = vmatprep.mubr.msk.bf16.mxu0 %vm567_vm0, %v1820_v19  ;;  %1729 = vmatpush3.bf16.msra.mxu0 %v1844_v10  ;;  %v1858_v10 = vld [vmem:[%s2233_s11] sm:$0xff]  }
  0x34   : > { %1730 = vmatprep.subr.bf16.mxu0 %v1845_v11 }
  0x37   : > { %1731 = vmatpush3.bf16.msra.mxu0 %v1845_v11  ;;  %v1859_v11 = vld [vmem:[%s2233_s11 + $0x8] sm:$0xff]  }
  0x38   : > { %1732 = vmatprep.subr.bf16.mxu0 %v1846_v12 }
  0x3a   : > { %633 = vmatmul.mubr.bf16.gmra.mrb[8].mxu0 %v1822_v20 }
  0x3b   : > { %1567 = vmatprep.mubr.msk.bf16.mxu0 %vm567_vm0, %v1823_v21  ;;  %1733 = vmatpush3.bf16.msra.mxu0 %v1846_v12  ;;  %v1860_v12 = vld [vmem:[%s2233_s11 + $0x10] sm:$0xff]  }
  0x3c   : > { %1734 = vmatprep.subr.bf16.mxu0 %v1847_v13 }
  0x3f   : > { %1735 = vmatpush3.bf16.msra.mxu0 %v1847_v13  ;;  %v1861_v13 = vld [vmem:[%s2233_s11 + $0x18] sm:$0xff]  }
  0x42   : > { %641 = vmatmul.mubr.bf16.gmra.mrb[12].mxu0 %v1825_v22 }
  0xfd   : > { %v618_v29 = vpop.f32.mrb[0].mxu0 }
  0xfe   : > { %v619_v30 = vadd.f32 %v1546_v28, %v618_v29  ;;  %v620_v31 = vpop.f32.mrb[1].mxu0 }
  0xff   : > { %v621_v32 = vpop.f32.mrb[2].mxu0 }
 0x100   : > { %v622_v33 = vadd.f32 %v1546_v28, %v621_v32  ;;  %v623_v34 = vpop.f32.mrb[3].mxu0  ;;  %v649_v35 = vmax.f32 %v619_v30, 0.0 }
 0x102   : > { %v650_v36 = vmax.f32 %v622_v33, 0.0 }
 0x104   : > { %v657_v37 = vpack.c.bf16 %v650_v36, %v649_v35 }
 0x105   : > { %v626_v38 = vpop.f32.mrb[4].mxu0 }
 0x106   : > { %v627_v39 = vadd.f32 %v1546_v28, %v626_v38  ;;  %v628_v40 = vpop.f32.mrb[5].mxu0  ;;  %1692 = vmatprep.mubr.bf16.mxu1 %v657_v37 }
 0x107   : > { %v629_v41 = vpop.f32.mrb[6].mxu0 }
 0x108   : > { %v630_v42 = vadd.f32 %v1546_v28, %v629_v41  ;;  %v631_v43 = vpop.f32.mrb[7].mxu0  ;;  %v651_v44 = vmax.f32 %v627_v39, 0.0 }
 0x109   : > { %v1848_v43 = vld [vmem:[%s2229_s7 + $0x30] sm:$0xff]  }
 0x10a   : > { %v652_v45 = vmax.f32 %v630_v42, 0.0  ;;  %1736 = vmatprep.subr.bf16.mxu0 %v1848_v43 }
 0x10b   : > { %1737 = vmatpush3.bf16.msra.mxu0 %v1848_v43 }
 0x10c   : > { %v658_v46 = vpack.c.bf16 %v652_v45, %v651_v44  ;;  %v1849_v44 = vld [vmem:[%s2229_s7 + $0x38] sm:$0xff]   ;;  %v1850_v45 = vld [vmem:[%s2231_s9] sm:$0xff]  }
 0x10d   : > { %v634_v48 = vpop.f32.mrb[8].mxu0  ;;  %1738 = vmatprep.subr.bf16.mxu0 %v1849_v44 }
 0x10e   : > { %v635_v49 = vadd.f32 %v1546_v28, %v634_v48  ;;  %v636_v50 = vpop.f32.mrb[9].mxu0  ;;  %1693 = vmatmul.mubr.bf16.vlgmr.msra.gmra.mrb[0].mxu1 %v658_v46  ;;  %v1851_v46 = vld [vmem:[%s2231_s9 + $0x8] sm:$0xff]   ;;  %v1853_v48 = vld [vmem:[%s2231_s9 + $0x18] sm:$0xff]  }
 0x10f   : > { %v637_v51 = vpop.f32.mrb[10].mxu0  ;;  %1701 = vmatpush3.bf16.msra.mxu1 %v1834_v27  ;;  %1739 = vmatpush3.bf16.msra.mxu0 %v1849_v44  ;;  %v1855_v50 = vld [vmem:[%s2231_s9 + $0x28] sm:$0xff]  }
 0x110   : > { %v638_v52 = vadd.f32 %v1546_v28, %v637_v51  ;;  %v639_v53 = vpop.f32.mrb[11].mxu0  ;;  %1702 = vmatprep.subr.bf16.mxu1 %v1835_v47  ;;  %v653_v55 = vmax.f32 %v635_v49, 0.0  ;;  %v1854_v49 = vld [vmem:[%s2231_s9 + $0x20] sm:$0xff]   ;;  %1772 = vmatprep.subr.bf16.mxu0 %v1858_v10 }
 0x112   : > { %v654_v56 = vmax.f32 %v638_v52, 0.0  ;;  %v1577_v52 = vld [vmem:[%s2228_s6] ss:$0 sm:$0xff] }
 0x113   : > { %1703 = vmatpush3.bf16.msra.mxu1 %v1835_v47  ;;  %v1852_v47 = vld [vmem:[%s2231_s9 + $0x10] sm:$0xff]  }
 0x114   : > { %v659_v57 = vpack.c.bf16 %v654_v56, %v653_v55  ;;  %1704 = vmatprep.subr.bf16.mxu1 %v1836_v54 }
 0x115   : > { %v642_v59 = vpop.f32.mrb[12].mxu0 }
 0x116   : > { %v643_v60 = vadd.f32 %v1546_v28, %v642_v59  ;;  %v644_v61 = vpop.f32.mrb[13].mxu0  ;;  %1696 = vmatprep.mubr.bf16.mxu1 %v659_v57 }
 0x117   : > { %v645_v62 = vpop.f32.mrb[14].mxu0  ;;  %1705 = vmatpush3.bf16.msra.mxu1 %v1836_v54 }
 0x118   : > { %v646_v63 = vadd.f32 %v1546_v28, %v645_v62  ;;  %v647_v0 = vpop.f32.mrb[15].mxu0  ;;  %1706 = vmatprep.subr.bf16.mxu1 %v1837_v58  ;;  %v655_v2 = vmax.f32 %v643_v60, 0.0 }
 0x11a   : > { %v656_v3 = vmax.f32 %v646_v63, 0.0 }
 0x11b   : > { %1707 = vmatpush3.bf16.msra.mxu1 %v1837_v58 }
 0x11c   : > { %v660_v4 = vpack.c.bf16 %v656_v3, %v655_v2  ;;  %1708 = vmatprep.subr.bf16.mxu1 %v1838_v1 }
 0x11e   : > { %1697 = vmatmul.mubr.bf16.gmra.mrb[4].mxu1 %v660_v4 }
 0x11f   : > { %1709 = vmatpush3.bf16.msra.mxu1 %v1838_v1 }
 0x120   : > { %1710 = vmatprep.subr.bf16.mxu1 %v1839_v5 }
 0x123   : > { %1711 = vmatpush3.bf16.msra.mxu1 %v1839_v5 }
 0x124   : > { %1712 = vmatprep.subr.bf16.mxu1 %v1840_v6 }
 0x127   : > { %1713 = vmatpush3.bf16.msra.mxu1 %v1840_v6 }
 0x128   : > { %1714 = vmatprep.subr.bf16.mxu1 %v1841_v7 }
 0x12b   : > { %1715 = vmatpush3.bf16.msra.mxu1 %v1841_v7 }
 0x12c   : > { %1748 = vmatprep.subr.bf16.mxu1 %v1850_v45 }
 0x1e1   : > { %v1694_v15 = vpop.f32.mrb[0].mxu1 }
 0x1e2   : > { %v775_v16 = vadd.f32 %v1694_v15, %v1568_v14  ;;  %v766_v17 = vpop.f32.mrb[1].mxu1  ;;  %v1863_v15 = vld [vmem:[%s2233_s11 + $0x28] sm:$0xff]  }
 0x1e3   : > { %v767_v18 = vadd.f32 %v1568_v14, %v766_v17  ;;  %v1695_v19 = vpop.f32.mrb[2].mxu1 }
 0x1e4   : > { %v778_v20 = vadd.f32 %v1695_v19, %v1568_v14  ;;  %v769_v21 = vpop.f32.mrb[3].mxu1  ;;  %v799_v23 = vmax.f32 %v775_v16, 0.0  ;;  %v1586_v16 = vld [vmem:[%s2230_s8] ss:$0 sm:$0xff] }
 0x1e5   : > { %v770_v22 = vadd.f32 %v1568_v14, %v769_v21  ;;  %v797_v25 = vmax.f32 %v767_v18, 0.0 }
 0x1e6   : > { %v800_v24 = vmax.f32 %v778_v20, 0.0 }
 0x1e7   : > { %v798_v26 = vmax.f32 %v770_v22, 0.0 }
 0x1e8   : > { %v806_v27 = vpack.c.bf16 %v800_v24, %v799_v23 }
 0x1e9   : > { %v805_v28 = vpack.c.bf16 %v798_v26, %v797_v25 }
 0x1eb   : > { %1716 = vmatprep.mubr.bf16.mxu1 %v805_v28 }
 0x1ec   : > { %1717 = vmatmul.mubr.bf16.vlgmr.msra.gmra.mrb[8].mxu1 %v806_v27 }
 0x1ed   : > { %1749 = vmatpush3.bf16.msra.mxu1 %v1850_v45  ;;  %v1864_v45 = vld [vmem:[%s2233_s11 + $0x30] sm:$0xff]  }
 0x1ee   : > { %1750 = vmatprep.subr.bf16.mxu1 %v1851_v46 }
 0x1f1   : > { %v1698_v29 = vpop.f32.mrb[4].mxu1  ;;  %1751 = vmatpush3.bf16.msra.mxu1 %v1851_v46  ;;  %v1865_v46 = vld [vmem:[%s2233_s11 + $0x38] sm:$0xff]  }
 0x1f2   : > { %v791_v30 = vadd.f32 %v1698_v29, %v1568_v14  ;;  %v782_v31 = vpop.f32.mrb[5].mxu1  ;;  %1752 = vmatprep.subr.bf16.mxu1 %v1852_v47 }
 0x1f3   : > { %v783_v32 = vadd.f32 %v1568_v14, %v782_v31  ;;  %v1699_v33 = vpop.f32.mrb[6].mxu1 }
 0x1f4   : > { %v794_v34 = vadd.f32 %v1699_v33, %v1568_v14  ;;  %v785_v35 = vpop.f32.mrb[7].mxu1  ;;  %v803_v37 = vmax.f32 %v791_v30, 0.0 }
 0x1f5   : > { %v786_v36 = vadd.f32 %v1568_v14, %v785_v35  ;;  %v801_v39 = vmax.f32 %v783_v32, 0.0  ;;  %1753 = vmatpush3.bf16.msra.mxu1 %v1852_v47  ;;  %v1862_v14 = vld [vmem:[%s2233_s11 + $0x20] sm:$0xff]  }
 0x1f6   : > { %v804_v38 = vmax.f32 %v794_v34, 0.0  ;;  %1754 = vmatprep.subr.bf16.mxu1 %v1853_v48  ;;  %v1595_v47 = vld [vmem:[%s2232_s10] ss:$0 sm:$0xff] }
 0x1f7   : > { %v802_v40 = vmax.f32 %v786_v36, 0.0 }
 0x1f8   : > { %v808_v41 = vpack.c.bf16 %v804_v38, %v803_v37 }
 0x1f9   : > { %v807_v42 = vpack.c.bf16 %v802_v40, %v801_v39  ;;  %1755 = vmatpush3.bf16.msra.mxu1 %v1853_v48 }
 0x1fa   : > { %1756 = vmatprep.subr.bf16.mxu1 %v1854_v49 }
 0x1fb   : > { %1720 = vmatprep.mubr.bf16.mxu1 %v807_v42 }
 0x1fc   : > { %1721 = vmatmul.mubr.bf16.gmra.mrb[12].mxu1 %v808_v41 }
 0x1fd   : > { %1757 = vmatpush3.bf16.msra.mxu1 %v1854_v49 }
 0x1fe   : > { %1758 = vmatprep.subr.bf16.mxu1 %v1855_v50 }
 0x201   : > { %1759 = vmatpush3.bf16.msra.mxu1 %v1855_v50 }
 0x202   : > { %1760 = vmatprep.subr.bf16.mxu1 %v1856_v8 }
 0x205   : > { %1761 = vmatpush3.bf16.msra.mxu1 %v1856_v8 }
 0x206   : > { %1762 = vmatprep.subr.bf16.mxu1 %v1857_v9 }
 0x209   : > { %1763 = vmatpush3.bf16.msra.mxu1 %v1857_v9 }
 0x2bf   : > { %v1718_v51 = vpop.f32.mrb[8].mxu1 }
 0x2c0   : > { %v914_v53 = vpop.f32.mrb[9].mxu1  ;;  %v923_v55 = vadd.f32 %v1718_v51, %v1577_v52 }
 0x2c1   : > { %v1719_v54 = vpop.f32.mrb[10].mxu1  ;;  %v915_v58 = vadd.f32 %v1577_v52, %v914_v53 }
 0x2c2   : > { %v926_v56 = vadd.f32 %v1719_v54, %v1577_v52  ;;  %v917_v57 = vpop.f32.mrb[11].mxu1 }
 0x2c3   : > { %v918_v59 = vadd.f32 %v1577_v52, %v917_v57 }
 0x2c4   : > { %v946_v60 = vpack.c.bf16 %v926_v56, %v923_v55 }
 0x2c5   : > { %v945_v61 = vpack.c.bf16 %v918_v59, %v915_v58 }
 0x2c7   : > { %1740 = vmatprep.mubr.bf16.mxu0 %v945_v61 }
 0x2c8   : > { %1741 = vmatmul.mubr.bf16.vlgmr.msra.gmra.mrb[16].mxu0 %v946_v60 }
 0x2c9   : > { %1773 = vmatpush3.bf16.msra.mxu0 %v1858_v10 }
 0x2ca   : > { %1774 = vmatprep.subr.bf16.mxu0 %v1859_v11 }
 0x2cd   : > { %1775 = vmatpush3.bf16.msra.mxu0 %v1859_v11 }
 0x2ce   : > { %1776 = vmatprep.subr.bf16.mxu0 %v1860_v12 }
 0x2cf   : > { %v1722_v62 = vpop.f32.mrb[12].mxu1 }
 0x2d0   : > { %v930_v63 = vpop.f32.mrb[13].mxu1  ;;  %v939_v1 = vadd.f32 %v1722_v62, %v1577_v52 }
 0x2d1   : > { %v1723_v0 = vpop.f32.mrb[14].mxu1  ;;  %v931_v4 = vadd.f32 %v1577_v52, %v930_v63  ;;  %1777 = vmatpush3.bf16.msra.mxu0 %v1860_v12  ;;  %v1381_v12 = vlaneseq }
 0x2d2   : > { %v942_v2 = vadd.f32 %v1723_v0, %v1577_v52  ;;  %v933_v3 = vpop.f32.mrb[15].mxu1  ;;  %1778 = vmatprep.subr.bf16.mxu0 %v1861_v13 }
 0x2d3   : > { %v934_v5 = vadd.f32 %v1577_v52, %v933_v3 }
 0x2d4   : > { %v948_v6 = vpack.c.bf16 %v942_v2, %v939_v1 }
 0x2d5   : > { %v947_v7 = vpack.c.bf16 %v934_v5, %v931_v4  ;;  %1779 = vmatpush3.bf16.msra.mxu0 %v1861_v13  ;;  %v1382_v13 = vand.u32 127, %v1381_v12 }
 0x2d6   : > { %1780 = vmatprep.subr.bf16.mxu0 %v1862_v14 }
 0x2d7   : > { %1744 = vmatprep.mubr.bf16.mxu0 %v947_v7  ;;  %vm1383_vm2 = vcmp.lt.s32.totalorder %v1382_v13, 6 }
 0x2d8   : > { %1745 = vmatmul.mubr.bf16.gmra.mrb[20].mxu0 %v948_v6 }
 0x2d9   : > { %1781 = vmatpush3.bf16.msra.mxu0 %v1862_v14  ;;  %v1604_v14 = vld [vmem:[%s2234_s12] ss:$0 sm:$0xff] }
 0x2da   : > { %1782 = vmatprep.subr.bf16.mxu0 %v1863_v15 }
 0x2dd   : > { %1783 = vmatpush3.bf16.msra.mxu0 %v1863_v15 }
 0x2de   : > { %1784 = vmatprep.subr.bf16.mxu0 %v1864_v45 }
 0x2e1   : > { %1785 = vmatpush3.bf16.msra.mxu0 %v1864_v45 }
 0x2e2   : > { %1786 = vmatprep.subr.bf16.mxu0 %v1865_v46 }
 0x2e5   : > { %1787 = vmatpush3.bf16.msra.mxu0 %v1865_v46 }
 0x39b   : > { %v1742_v17 = vpop.f32.mrb[16].mxu0 }
 0x39c   : > { %v1063_v18 = vadd.f32 %v1742_v17, %v1586_v16  ;;  %v1054_v19 = vpop.f32.mrb[17].mxu0 }
 0x39d   : > { %v1055_v20 = vadd.f32 %v1586_v16, %v1054_v19  ;;  %v1743_v21 = vpop.f32.mrb[18].mxu0 }
 0x39e   : > { %v1066_v22 = vadd.f32 %v1743_v21, %v1586_v16  ;;  %v1057_v23 = vpop.f32.mrb[19].mxu0  ;;  %v1087_v25 = vmax.f32 %v1063_v18, 0.0 }
 0x39f   : > { %v1058_v24 = vadd.f32 %v1586_v16, %v1057_v23  ;;  %v1085_v27 = vmax.f32 %v1055_v20, 0.0 }
 0x3a0   : > { %v1088_v26 = vmax.f32 %v1066_v22, 0.0 }
 0x3a1   : > { %v1086_v28 = vmax.f32 %v1058_v24, 0.0 }
 0x3a2   : > { %v1094_v29 = vpack.c.bf16 %v1088_v26, %v1087_v25 }
 0x3a3   : > { %v1093_v30 = vpack.c.bf16 %v1086_v28, %v1085_v27 }
 0x3a5   : > { %1764 = vmatprep.mubr.bf16.mxu1 %v1093_v30 }
 0x3a6   : > { %1765 = vmatmul.mubr.bf16.vlgmr.msra.gmra.mrb[16].mxu1 %v1094_v29 }
 0x3ab   : > { %v1746_v31 = vpop.f32.mrb[20].mxu0 }
 0x3ac   : > { %v1079_v32 = vadd.f32 %v1746_v31, %v1586_v16  ;;  %v1070_v33 = vpop.f32.mrb[21].mxu0 }
 0x3ad   : > { %v1071_v34 = vadd.f32 %v1586_v16, %v1070_v33  ;;  %v1747_v35 = vpop.f32.mrb[22].mxu0 }
 0x3ae   : > { %v1082_v36 = vadd.f32 %v1747_v35, %v1586_v16  ;;  %v1073_v37 = vpop.f32.mrb[23].mxu0  ;;  %v1091_v39 = vmax.f32 %v1079_v32, 0.0 }
 0x3af   : > { %v1074_v38 = vadd.f32 %v1586_v16, %v1073_v37  ;;  %v1089_v41 = vmax.f32 %v1071_v34, 0.0 }
 0x3b0   : > { %v1092_v40 = vmax.f32 %v1082_v36, 0.0 }
 0x3b1   : > { %v1090_v42 = vmax.f32 %v1074_v38, 0.0 }
 0x3b2   : > { %v1096_v43 = vpack.c.bf16 %v1092_v40, %v1091_v39 }
 0x3b3   : > { %v1095_v44 = vpack.c.bf16 %v1090_v42, %v1089_v41 }
 0x3b5   : > { %1768 = vmatprep.mubr.bf16.mxu1 %v1095_v44 }
 0x3b6   : > { %1769 = vmatmul.mubr.bf16.gmra.mrb[20].mxu1 %v1096_v43 }
 0x479   : > { %v1766_v48 = vpop.f32.mrb[16].mxu1 }
 0x47a   : > { %v1211_v49 = vadd.f32 %v1766_v48, %v1595_v47  ;;  %v1202_v50 = vpop.f32.mrb[17].mxu1 }
 0x47b   : > { %v1203_v51 = vadd.f32 %v1595_v47, %v1202_v50  ;;  %v1767_v52 = vpop.f32.mrb[18].mxu1 }
 0x47c   : > { %v1214_v53 = vadd.f32 %v1767_v52, %v1595_v47  ;;  %v1205_v54 = vpop.f32.mrb[19].mxu1  ;;  %v1235_v56 = vmax.f32 %v1211_v49, 0.0 }
 0x47d   : > { %v1206_v55 = vadd.f32 %v1595_v47, %v1205_v54  ;;  %v1233_v58 = vmax.f32 %v1203_v51, 0.0 }
 0x47e   : > { %v1236_v57 = vmax.f32 %v1214_v53, 0.0 }
 0x47f   : > { %v1234_v59 = vmax.f32 %v1206_v55, 0.0 }
 0x480   : > { %v1242_v60 = vpack.c.bf16 %v1236_v57, %v1235_v56 }
 0x481   : > { %v1241_v61 = vpack.c.bf16 %v1234_v59, %v1233_v58 }
 0x483   : > { %1788 = vmatprep.mubr.bf16.mxu0 %v1241_v61 }
 0x484   : > { %1789 = vmatmul.mubr.bf16.vlgmr.msra.gmra.mrb[24].mxu0 %v1242_v60 }
 0x489   : > { %v1770_v62 = vpop.f32.mrb[20].mxu1 }
 0x48a   : > { %v1227_v63 = vadd.f32 %v1770_v62, %v1595_v47  ;;  %v1218_v0 = vpop.f32.mrb[21].mxu1 }
 0x48b   : > { %v1219_v1 = vadd.f32 %v1595_v47, %v1218_v0  ;;  %v1771_v2 = vpop.f32.mrb[22].mxu1 }
 0x48c   : > { %v1230_v3 = vadd.f32 %v1771_v2, %v1595_v47  ;;  %v1221_v4 = vpop.f32.mrb[23].mxu1  ;;  %v1239_v6 = vmax.f32 %v1227_v63, 0.0 }
 0x48d   : > { %v1222_v5 = vadd.f32 %v1595_v47, %v1221_v4  ;;  %v1237_v8 = vmax.f32 %v1219_v1, 0.0 }
 0x48e   : > { %v1240_v7 = vmax.f32 %v1230_v3, 0.0 }
 0x48f   : > { %v1238_v9 = vmax.f32 %v1222_v5, 0.0 }
 0x490   : > { %v1244_v10 = vpack.c.bf16 %v1240_v7, %v1239_v6 }
 0x491   : > { %v1243_v11 = vpack.c.bf16 %v1238_v9, %v1237_v8 }
 0x493   : > { %1792 = vmatprep.mubr.bf16.mxu0 %v1243_v11 }
 0x494   : > { %1793 = vmatmul.mubr.bf16.gmra.mrb[28].mxu0 %v1244_v10 }
 0x557   : > { %v1790_v15 = vpop.f32.mrb[24].mxu0 }
 0x558   : > { %v1359_v16 = vadd.f32 %v1790_v15, %v1604_v14  ;;  %v1350_v17 = vpop.f32.mrb[25].mxu0 }
 0x559   : > { %v1351_v18 = vadd.f32 %v1604_v14, %v1350_v17  ;;  %v1791_v19 = vpop.f32.mrb[26].mxu0 }
 0x55a   : > { %v1362_v20 = vadd.f32 %v1791_v19, %v1604_v14  ;;  %v1353_v21 = vpop.f32.mrb[27].mxu0  ;;  %v1386_v22 = vsel %vm1383_vm2, %v1359_v16, -1e+30 }
 0x55b   : > { %v1354_v23 = vadd.f32 %v1604_v14, %v1353_v21  ;;  %1396 = vmax.xlane.f32.xlu1 %v1386_v22  ;;  %v1384_v24 = vsel %vm1383_vm2, %v1351_v18, -1e+30 }
 0x55c   : > { %1392 = vmax.xlane.f32.xlu0 %v1384_v24  ;;  %v1387_v25 = vsel %vm1383_vm2, %v1362_v20, -1e+30 }
 0x55d   : > { %v1385_v26 = vsel %vm1383_vm2, %v1354_v23, -1e+30 }
 0x55f   : > { %1398 = vmax.xlane.f32.xlu1 %v1387_v25 }
 0x560   : > { %1394 = vmax.xlane.f32.xlu0 %v1385_v26 }
 0x567   : > { %v1794_v27 = vpop.f32.mrb[28].mxu0 }
 0x568   : > { %v1366_v28 = vpop.f32.mrb[29].mxu0  ;;  %v1375_v32 = vadd.f32 %v1794_v27, %v1604_v14 }
 0x569   : > { %v1367_v29 = vadd.f32 %v1604_v14, %v1366_v28  ;;  %v1795_v30 = vpop.f32.mrb[30].mxu0 }
 0x56a   : > { %v1369_v31 = vpop.f32.mrb[31].mxu0  ;;  %v1378_v35 = vadd.f32 %v1795_v30, %v1604_v14  ;;  %v1390_v37 = vsel %vm1383_vm2, %v1375_v32, -1e+30 }
 0x56b   : > { %v1370_v33 = vadd.f32 %v1604_v14, %v1369_v31  ;;  %v1388_v34 = vsel %vm1383_vm2, %v1367_v29, -1e+30 }
 0x56c   : > { %1400 = vmax.xlane.f32.xlu0 %v1388_v34  ;;  %v1391_v38 = vsel %vm1383_vm2, %v1378_v35, -1e+30 }
 0x56d   : > { %v1389_v36 = vsel %vm1383_vm2, %v1370_v33, -1e+30 }
 0x56e   : > { %1402 = vmax.xlane.f32.xlu1 %v1389_v36 }
 0x570   : > { %1404 = vmax.xlane.f32.xlu0 %v1390_v37 }
 0x572   : > { %1406 = vmax.xlane.f32.xlu1 %v1391_v38 }
 0x5e8   : > { %v1397_v39 = vpop.xlane.xlu1 %1396 }
 0x5e9   : > { %v1410_v40 = vsub.f32 %v1386_v22, %v1397_v39  ;;  %v1393_v41 = vpop.xlane.xlu0 %1392 }
 0x5ea   : > { %v2180_v42 = vsub.f32 %v1384_v24, %v1393_v41 }
 0x5eb   : > { %v1420_v43 = vmul.f32 1.442695, %v1410_v40 }
 0x5ec   : > { %v1416_v44 = vmul.f32 1.442695, %v2180_v42  ;;  %v1399_v45 = vpop.xlane.xlu1 %1398 }
 0x5ed   : > { %1866 = vpow2.f32 %v1420_v43  ;;  %v2183_v46 = vsub.f32 %v1387_v25, %v1399_v45  ;;  %v1395_v47 = vpop.xlane.xlu0 %1394 }
 0x5ee   : > { %v2185_v48 = vsub.f32 %v1385_v26, %v1395_v47  ;;  %1868 = vpow2.f32 %v1416_v44 }
 0x5ef   : > { %v1422_v49 = vmul.f32 1.442695, %v2183_v46 }
 0x5f0   : > { %v1418_v50 = vmul.f32 1.442695, %v2185_v48 }
 0x5f1   : > { %1870 = vpow2.f32 %v1422_v49 }
 0x5f2   : > { %1872 = vpow2.f32 %v1418_v50 }
 0x5f7   : > { %v1867_v51 = vpop.eup %1866 }
 0x5f8   : > { %1436 = vadd.xlane.f32.xlu0 %v1867_v51  ;;  %v1869_v53 = vpop.eup %1868 }
 0x5f9   : > { %v1401_v52 = vpop.xlane.xlu0 %1400 }
 0x5fa   : > { %v2189_v54 = vsub.f32 %v1388_v34, %v1401_v52 }
 0x5fb   : > { %v1871_v55 = vpop.eup %1870  ;;  %v1403_v56 = vpop.xlane.xlu1 %1402 }
 0x5fc   : > { %v1424_v57 = vmul.f32 1.442695, %v2189_v54  ;;  %v2192_v58 = vsub.f32 %v1389_v36, %v1403_v56  ;;  %1438 = vadd.xlane.f32.xlu1 %v1871_v55  ;;  %1432 = vadd.xlane.f32.xlu0 %v1869_v53  ;;  %v1873_v62 = vpop.eup %1872 }
 0x5fd   : > { %v1405_v59 = vpop.xlane.xlu0 %1404 }
 0x5fe   : > { %1874 = vpow2.f32 %v1424_v57  ;;  %v1426_v60 = vmul.f32 1.442695, %v2192_v58  ;;  %v2195_v61 = vsub.f32 %v1390_v37, %v1405_v59 }
 0x5ff   : > { %v1407_v63 = vpop.xlane.xlu1 %1406 }
 0x600   : > { %1876 = vpow2.f32 %v1426_v60  ;;  %v1428_v0 = vmul.f32 1.442695, %v2195_v61  ;;  %v1415_v1 = vsub.f32 %v1391_v38, %v1407_v63  ;;  %1434 = vadd.xlane.f32.xlu1 %v1873_v62 }
 0x602   : > { %1878 = vpow2.f32 %v1428_v0  ;;  %v1430_v2 = vmul.f32 1.442695, %v1415_v1 }
 0x604   : > { %1880 = vpow2.f32 %v1430_v2 }
 0x608   : > { %v1875_v3 = vpop.eup %1874 }
 0x609   : > { %1440 = vadd.xlane.f32.xlu0 %v1875_v3 }
 0x60a   : > { %v1877_v4 = vpop.eup %1876 }
 0x60b   : > { %1442 = vadd.xlane.f32.xlu1 %v1877_v4 }
 0x60c   : > { %v1879_v5 = vpop.eup %1878 }
 0x60d   : > { %1444 = vadd.xlane.f32.xlu0 %v1879_v5 }
 0x60e   : > { %v1881_v6 = vpop.eup %1880 }
 0x60f   : > { %1446 = vadd.xlane.f32.xlu1 %v1881_v6 }
 0x685   : > { %v1437_v7 = vpop.xlane.xlu0 %1436 }
 0x686   : > { %1882 = vlog2.f32 %v1437_v7 }
 0x689   : > { %v1439_v8 = vpop.xlane.xlu1 %1438  ;;  %v1433_v9 = vpop.xlane.xlu0 %1432 }
 0x68a   : > { %1884 = vlog2.f32 %v1439_v8 }
 0x68b   : > { %1886 = vlog2.f32 %v1433_v9 }
 0x68d   : > { %v1435_v10 = vpop.xlane.xlu1 %1434 }
 0x68e   : > { %1888 = vlog2.f32 %v1435_v10 }
 0x690   : > { %v1883_v11 = vpop.eup %1882 }
 0x691   : > { %v1453_v12 = vmul.f32 0.6931472, %v1883_v11 }
 0x693   : > { %v1466_v13 = vsub.f32 %v1410_v40, %v1453_v12 }
 0x694   : > { %v1885_v14 = vpop.eup %1884 }
 0x695   : > { %v1887_v15 = vpop.eup %1886  ;;  %1474 = vst [vmem:[%s2203_s15 + $0x10] sm:$0xff] %v1466_v13  ;;  %v1455_v16 = vmul.f32 0.6931472, %v1885_v14 }
 0x696   : > { %v1449_v17 = vmul.f32 0.6931472, %v1887_v15  ;;  %v1441_v18 = vpop.xlane.xlu0 %1440 }
 0x697   : > { %v1467_v19 = vsub.f32 %v2183_v46, %v1455_v16  ;;  %1890 = vlog2.f32 %v1441_v18 }
 0x698   : > { %v1889_v20 = vpop.eup %1888  ;;  %v1464_v21 = vsub.f32 %v2180_v42, %v1449_v17  ;;  %v1443_v22 = vpop.xlane.xlu1 %1442 }
 0x699   : > { %1475 = vst [vmem:[%s2203_s15 + $0x18] sm:$0xff] %v1467_v19  ;;  %v1451_v23 = vmul.f32 0.6931472, %v1889_v20  ;;  %1892 = vlog2.f32 %v1443_v22 }
 0x69a   : > { %1472 = vst [vmem:[%s2203_s15] sm:$0xff] %v1464_v21  ;;  %v1445_v24 = vpop.xlane.xlu0 %1444 }
 0x69b   : > { %v1465_v25 = vsub.f32 %v2185_v48, %v1451_v23  ;;  %1894 = vlog2.f32 %v1445_v24 }
 0x69c   : > { %v1447_v26 = vpop.xlane.xlu1 %1446 }
 0x69d   : > { %1473 = vst [vmem:[%s2203_s15 + $0x8] sm:$0xff] %v1465_v25  ;;  %1896 = vlog2.f32 %v1447_v26 }
 0x6a1   : > { %v1891_v27 = vpop.eup %1890 }
 0x6a2   : > { %v1457_v28 = vmul.f32 0.6931472, %v1891_v27 }
 0x6a3   : > { %v1893_v29 = vpop.eup %1892 }
 0x6a4   : > { %v1468_v30 = vsub.f32 %v2189_v54, %v1457_v28  ;;  %v1459_v31 = vmul.f32 0.6931472, %v1893_v29 }
 0x6a5   : > { %v1895_v32 = vpop.eup %1894 }
 0x6a6   : > { %1476 = vst [vmem:[%s2203_s15 + $0x20] sm:$0xff] %v1468_v30  ;;  %v1469_v33 = vsub.f32 %v2192_v58, %v1459_v31  ;;  %v1461_v34 = vmul.f32 0.6931472, %v1895_v32 }
 0x6a7   : > { %v1897_v35 = vpop.eup %1896 }
 0x6a8   : > { %1477 = vst [vmem:[%s2203_s15 + $0x28] sm:$0xff] %v1469_v33  ;;  %v1470_v36 = vsub.f32 %v2195_v61, %v1461_v34  ;;  %v1463_v37 = vmul.f32 0.6931472, %v1897_v35 }
 0x6aa   : > { %1478 = vst [vmem:[%s2203_s15 + $0x30] sm:$0xff] %v1470_v36  ;;  %v1471_v38 = vsub.f32 %v1415_v1, %v1463_v37 }
 0x6ac   : > { %1479 = vst [vmem:[%s2203_s15 + $0x38] sm:$0xff] %v1471_v38 }
 0x6ad PF: > { %s23_s25 = sadd.s32 1, %s1904_s25  }
 0x6ae   : > { %p20_p4 = scmp.ge.s32.totalorder %s23_s25, 4  }
 0x6b0   :  { %22 = sbr.rel (!%p20_p4) target bundleno = 1 (0x1), region = 102 }

</bundles_post_ra>
